<compile_context>
chip_gen: v7x
topology: tpu7x:2x2x1
jax: 0.10.0
libtpu: 0.0.40
codegen_flags: <defaults>
</compile_context>

<pallas_src>
import functools

import jax
import jax.numpy as jnp
from jax.experimental import pallas as pl
from jax.experimental.pallas import tpu as pltpu


# ----------------------------------------------------------------------------
# Fused stage kernel: conv3x3+bias+ReLU -> conv3x3+bias+ReLU [-> 2x2 maxpool]
# One grid step == one batch element; everything stays in VMEM.
# ----------------------------------------------------------------------------
def _fused_stage_kernel(do_pool, x_ref, w1_ref, b1_ref, w2_ref, b2_ref, *refs):
    if do_pool:
        act_ref, pool_ref = refs[0], refs[1]
        xp_ref, y1p_ref, p1_ref, p2_ref = refs[2:]
    else:
        act_ref, pool_ref = refs[0], None
        xp_ref, y1p_ref, p1_ref, p2_ref = refs[1:]

    _, H, W, C2 = act_ref.shape
    Cin = x_ref.shape[-1]
    C1 = y1p_ref.shape[-1]
    HW = H * W

    # ---- conv1: zero halo built in VMEM (no jnp.pad HBM pre-pass) -----------
    xp_ref[...] = jnp.zeros(xp_ref.shape, xp_ref.dtype)
    xp_ref[1:H + 1, 1:W + 1, :] = x_ref[0].astype(xp_ref.dtype)

    # im2col slab: fold the 9 taps into the matmul contraction dim (K = 9*Cin).
    for kh in range(3):
        for kw in range(3):
            t = kh * 3 + kw
            p1_ref[:, t * Cin:(t + 1) * Cin] = (
                xp_ref[kh:kh + H, kw:kw + W, :].reshape(HW, Cin))
    acc1 = jnp.dot(p1_ref[...], w1_ref[...],
                   preferred_element_type=jnp.float32)       # MXU, bf16 x bf16
    acc1 = jnp.maximum(acc1 + b1_ref[...], 0.0)              # f32 bias + ReLU

    # ---- conv2: padded intermediate stays in VMEM (bf16) --------------------
    y1p_ref[...] = jnp.zeros(y1p_ref.shape, y1p_ref.dtype)
    y1p_ref[1:H + 1, 1:W + 1, :] = acc1.reshape(H, W, C1).astype(y1p_ref.dtype)
    for kh in range(3):
        for kw in range(3):
            t = kh * 3 + kw
            p2_ref[:, t * C1:(t + 1) * C1] = (
                y1p_ref[kh:kh + H, kw:kw + W, :].reshape(HW, C1))
    acc2 = jnp.dot(p2_ref[...], w2_ref[...],
                   preferred_element_type=jnp.float32)
    acc2 = jnp.maximum(acc2 + b2_ref[...], 0.0)

    # full-resolution activation (skip connection / last-stage output), f32
    act_ref[0] = acc2.reshape(H, W, C2).astype(act_ref.dtype)

    # ---- fused 2x2 max pool on the f32 accumulator (no extra HBM pass) ------
    if do_pool:
        Ho, Wo = H // 2, W // 2
        y4 = acc2.reshape(Ho, 2, Wo, 2, C2)
        p = jnp.maximum(jnp.maximum(y4[:, 0, :, 0, :], y4[:, 0, :, 1, :]),
                        jnp.maximum(y4[:, 1, :, 0, :], y4[:, 1, :, 1, :]))
        pool_ref[0] = p.astype(pool_ref.dtype)


def fused_stage(x, w1, b1, w2, b2, *, pool):
    """One encoder stage.

    x:  (N, H, W, Cin) NHWC, f32 or bf16
    w*: (3, 3, Cin*, Cout*) HWIO f32;  b*: (Cout*,) f32
    Returns act (N, H, W, C2) f32 [and pooled (N, H//2, W//2, C2) bf16 if pool].
    """
    N, H, W, Cin = x.shape
    C1 = w1.shape[-1]
    C2 = w2.shape[-1]
    Ho, Wo = H // 2, W // 2

    # Fold (kh, kw, cin) into the contraction dim; bf16 MXU operands.
    w1f = w1.reshape(9 * Cin, C1).astype(jnp.bfloat16)
    w2f = w2.reshape(9 * C1, C2).astype(jnp.bfloat16)
    b1f = b1.reshape(1, C1).astype(jnp.float32)
    b2f = b2.reshape(1, C2).astype(jnp.float32)

    out_shape = [jax.ShapeDtypeStruct((N, H, W, C2), jnp.float32)]
    out_specs = [pl.BlockSpec((1, H, W, C2), lambda n: (n, 0, 0, 0))]
    if pool:
        out_shape.append(jax.ShapeDtypeStruct((N, Ho, Wo, C2), jnp.bfloat16))
        out_specs.append(pl.BlockSpec((1, Ho, Wo, C2), lambda n: (n, 0, 0, 0)))

    return pl.pallas_call(
        functools.partial(_fused_stage_kernel, pool),
        out_shape=tuple(out_shape) if pool else out_shape[0],
        grid=(N,),
        in_specs=[
            pl.BlockSpec((1, H, W, Cin), lambda n: (n, 0, 0, 0)),
            pl.BlockSpec((9 * Cin, C1), lambda n: (0, 0)),
            pl.BlockSpec((1, C1), lambda n: (0, 0)),
            pl.BlockSpec((9 * C1, C2), lambda n: (0, 0)),
            pl.BlockSpec((1, C2), lambda n: (0, 0)),
        ],
        out_specs=tuple(out_specs) if pool else out_specs[0],
        scratch_shapes=[
            pltpu.VMEM((H + 2, W + 2, Cin), jnp.bfloat16),   # padded input
            pltpu.VMEM((H + 2, W + 2, C1), jnp.bfloat16),    # padded conv1 out
            pltpu.VMEM((H * W, 9 * Cin), jnp.bfloat16),      # im2col slab 1
            pltpu.VMEM((H * W, 9 * C1), jnp.bfloat16),       # im2col slab 2
        ],
        compiler_params=pltpu.CompilerParams(
            dimension_semantics=("parallel",)),
    )(x, w1f, b1f, w2f, b2f)


# ----------------------------------------------------------------------------
# UNetEncoder forward (norm=None, non_lin='relu', pooling='max').
# ----------------------------------------------------------------------------
def unet_encoder_forward(x_nchw, params):
    """params: list (per stage) of [(w1, b1), (w2, b2)] with weights in HWIO.
    Returns (out_nchw f32, [act_nchw f32, ...]) mirroring UNetEncoder.forward."""
    x = jnp.transpose(x_nchw, (0, 2, 3, 1))      # NCHW -> NHWC (boundary only)
    acts = []
    n_stages = len(params)
    for i, ((w1, b1), (w2, b2)) in enumerate(params):
        if i < n_stages - 1:
            act, x = fused_stage(x, w1, b1, w2, b2, pool=True)   # x: bf16 NHWC
            acts.append(jnp.transpose(act, (0, 3, 1, 2)))        # skip, NCHW
        else:
            x = fused_stage(x, w1, b1, w2, b2, pool=False)       # f32 NHWC
    return jnp.transpose(x, (0, 3, 1, 2)), acts


# ----------------------------------------------------------------------------
# Deterministic parameter init (mirrors PyTorch Conv2d default uniform bounds).
# ----------------------------------------------------------------------------
def init_conv(key, cin, cout, ksize=3):
    kwk, kbk = jax.random.split(key)
    fan_in = cin * ksize * ksize
    bound = 1.0 / (fan_in ** 0.5)
    w = jax.random.uniform(kwk, (ksize, ksize, cin, cout), jnp.float32, -bound, bound)
    b = jax.random.uniform(kbk, (cout,), jnp.float32, -bound, bound)
    return w, b


# ----------------------------------------------------------------------------
# Pure-JAX reference.  matmul_dtype=bfloat16 mirrors the kernel's MXU operand
# cast (f32 accumulation); matmul_dtype=float32 is the exact PyTorch math.
# ----------------------------------------------------------------------------
def ref_forward(x_nchw, params, *, matmul_dtype=jnp.float32):
    def conv_relu(x, w, b):
        y = jax.lax.conv_general_dilated(
            x.astype(matmul_dtype), w.astype(matmul_dtype),
            window_strides=(1, 1), padding="SAME",
            dimension_numbers=("NHWC", "HWIO", "NHWC"),
            preferred_element_type=jnp.float32)
        return jax.nn.relu(y + b[None, None, None, :])

    x = jnp.transpose(x_nchw, (0, 2, 3, 1)).astype(jnp.float32)
    acts = []
    n_stages = len(params)
    for i, ((w1, b1), (w2, b2)) in enumerate(params):
        x = conv_relu(x, w1, b1)
        x = conv_relu(x, w2, b2)
        if i < n_stages - 1:
            acts.append(jnp.transpose(x, (0, 3, 1, 2)))
            x = jax.lax.reduce_window(x, -jnp.inf, jax.lax.max,
                                      (1, 2, 2, 1), (1, 2, 2, 1), "VALID")
    return jnp.transpose(x, (0, 3, 1, 2)), acts


if __name__ == "__main__":
    # UNetEncoder(dim=2, in_channels=4, num_stages=2, initial_num_channels=8,
    #             norm=None, non_lin='relu', kernel_size=3, pooling='max')
    N, Cin, H, W = 2, 4, 16, 16
    num_stages, init_ch = 2, 8

    key = jax.random.PRNGKey(0)
    kx, kp = jax.random.split(key)
    x = jax.random.normal(kx, (N, Cin, H, W), jnp.float32)

    params = []
    k = kp
    for i in range(num_stages):
        c_in = Cin if i == 0 else (2 ** i) * init_ch
        c_mid = (2 ** i) * init_ch
        c_out = (2 ** (i + 1)) * init_ch
        stage = []
        for (ci, co) in [(c_in, c_mid), (c_mid, c_out)]:
            k, sub = jax.random.split(k)
            stage.append(init_conv(sub, ci, co))
        params.append(stage)

    fwd = jax.jit(unet_encoder_forward)
    out, acts = fwd(x, params)
    out = jax.block_until_ready(out)
    acts = [jax.block_until_ready(a) for a in acts]

    assert out.shape == (N, (2 ** num_stages) * init_ch, H // 2, W // 2), out.shape
    assert len(acts) == num_stages - 1
    assert acts[0].shape == (N, 2 * init_ch, H, W), acts[0].shape

    # Tight check vs a reference with matching bf16 MXU operands / f32 accum.
    ref_out, ref_acts = ref_forward(x, params, matmul_dtype=jnp.bfloat16)
    err_out = float(jnp.max(jnp.abs(out - ref_out)))
    err_act = float(jnp.max(jnp.abs(acts[0] - ref_acts[0])))
    assert err_out < 5e-3 and err_act < 5e-3, (err_out, err_act)

    # Loose sanity check vs exact f32 math (difference = bf16 operand rounding).
    f32_out, _ = ref_forward(x, params, matmul_dtype=jnp.float32)
    assert float(jnp.max(jnp.abs(out - f32_out))) < 1e-1

    print("KERNEL_OK")
</pallas_src>

<mosaic_0001>
module attributes {stable_mosaic.version = 11 : i64} {
  func.func @_fused_stage_kernel(%arg0: i32, %arg1: memref<1x16x16x4xf32, #tpu.memory_space<vmem>>, %arg2: memref<36x8xbf16, #tpu.memory_space<vmem>>, %arg3: memref<1x8xf32, #tpu.memory_space<vmem>>, %arg4: memref<72x16xbf16, #tpu.memory_space<vmem>>, %arg5: memref<1x16xf32, #tpu.memory_space<vmem>>, %arg6: memref<1x16x16x16xf32, #tpu.memory_space<vmem>>, %arg7: memref<1x8x8x16xbf16, #tpu.memory_space<vmem>>, %arg8: memref<18x18x4xbf16, #tpu.memory_space<vmem>>, %arg9: memref<18x18x8xbf16, #tpu.memory_space<vmem>>, %arg10: memref<256x36xbf16, #tpu.memory_space<vmem>>, %arg11: memref<256x72xbf16, #tpu.memory_space<vmem>>) attributes {dimension_semantics = [#tpu.dimension_semantics<parallel>], iteration_bounds = array<i64: 2>, scalar_prefetch = 0 : i64, scratch_operands = 4 : i64, tpu.core_type = #tpu.core_type<tc>, window_params = [{transform_indices = @transform_0, window_bounds = array<i64: 1, 16, 16, 4>}, {pipeline_mode = #tpu.pipeline_mode<synchronous>, transform_indices = @transform_1, window_bounds = array<i64: 36, 8>}, {pipeline_mode = #tpu.pipeline_mode<synchronous>, transform_indices = @transform_2, window_bounds = array<i64: 1, 8>}, {pipeline_mode = #tpu.pipeline_mode<synchronous>, transform_indices = @transform_3, window_bounds = array<i64: 72, 16>}, {pipeline_mode = #tpu.pipeline_mode<synchronous>, transform_indices = @transform_4, window_bounds = array<i64: 1, 16>}, {transform_indices = @transform_5, window_bounds = array<i64: 1, 16, 16, 16>}, {transform_indices = @transform_6, window_bounds = array<i64: 1, 8, 8, 16>}]} {
    %cst = arith.constant 0.000000e+00 : bf16
    %0 = vector.broadcast %cst : bf16 to vector<18x18x4xbf16>
    %c0 = arith.constant 0 : index
    %c0_0 = arith.constant 0 : index
    %c0_1 = arith.constant 0 : index
    %1 = vector.load %arg8[%c0, %c0_0, %c0_1] : memref<18x18x4xbf16, #tpu.memory_space<vmem>>, vector<18x18x4xbf16>
    tpu.vector_store %arg8[%c0, %c0_0, %c0_1], %0 {strides = array<i32>} : memref<18x18x4xbf16, #tpu.memory_space<vmem>>, vector<18x18x4xbf16>,
    %c0_2 = arith.constant 0 : index
    %c0_3 = arith.constant 0 : index
    %c0_4 = arith.constant 0 : index
    %c0_5 = arith.constant 0 : index
    %2 = vector.load %arg1[%c0_2, %c0_3, %c0_4, %c0_5] : memref<1x16x16x4xf32, #tpu.memory_space<vmem>>, vector<1x16x16x4xf32>
    %3 = vector.shape_cast %2 : vector<1x16x16x4xf32> to vector<16x16x4xf32>
    %4 = arith.truncf %3 : vector<16x16x4xf32> to vector<16x16x4xbf16>
    %c1 = arith.constant 1 : index
    %c1_6 = arith.constant 1 : index
    %c0_7 = arith.constant 0 : index
    %5 = vector.load %arg8[%c1, %c1_6, %c0_7] : memref<18x18x4xbf16, #tpu.memory_space<vmem>>, vector<16x16x4xbf16>
    tpu.vector_store %arg8[%c1, %c1_6, %c0_7], %4 {strides = array<i32>} : memref<18x18x4xbf16, #tpu.memory_space<vmem>>, vector<16x16x4xbf16>,
    %c0_8 = arith.constant 0 : index
    %c0_9 = arith.constant 0 : index
    %c0_10 = arith.constant 0 : index
    %6 = vector.load %arg8[%c0_8, %c0_9, %c0_10] : memref<18x18x4xbf16, #tpu.memory_space<vmem>>, vector<16x16x4xbf16>
    %7 = vector.shape_cast %6 : vector<16x16x4xbf16> to vector<256x4xbf16>
    %c0_11 = arith.constant 0 : index
    %c0_12 = arith.constant 0 : index
    %8 = vector.load %arg10[%c0_11, %c0_12] : memref<256x36xbf16, #tpu.memory_space<vmem>>, vector<256x4xbf16>
    tpu.vector_store %arg10[%c0_11, %c0_12], %7 {strides = array<i32>} : memref<256x36xbf16, #tpu.memory_space<vmem>>, vector<256x4xbf16>,
    %c0_13 = arith.constant 0 : index
    %c1_14 = arith.constant 1 : index
    %c0_15 = arith.constant 0 : index
    %9 = vector.load %arg8[%c0_13, %c1_14, %c0_15] : memref<18x18x4xbf16, #tpu.memory_space<vmem>>, vector<16x16x4xbf16>
    %10 = vector.shape_cast %9 : vector<16x16x4xbf16> to vector<256x4xbf16>
    %c0_16 = arith.constant 0 : index
    %c4 = arith.constant 4 : index
    %11 = vector.load %arg10[%c0_16, %c4] : memref<256x36xbf16, #tpu.memory_space<vmem>>, vector<256x4xbf16>
    tpu.vector_store %arg10[%c0_16, %c4], %10 {strides = array<i32>} : memref<256x36xbf16, #tpu.memory_space<vmem>>, vector<256x4xbf16>,
    %c0_17 = arith.constant 0 : index
    %c2 = arith.constant 2 : index
    %c0_18 = arith.constant 0 : index
    %12 = vector.load %arg8[%c0_17, %c2, %c0_18] : memref<18x18x4xbf16, #tpu.memory_space<vmem>>, vector<16x16x4xbf16>
    %13 = vector.shape_cast %12 : vector<16x16x4xbf16> to vector<256x4xbf16>
    %c0_19 = arith.constant 0 : index
    %c8 = arith.constant 8 : index
    %14 = vector.load %arg10[%c0_19, %c8] : memref<256x36xbf16, #tpu.memory_space<vmem>>, vector<256x4xbf16>
    tpu.vector_store %arg10[%c0_19, %c8], %13 {strides = array<i32>} : memref<256x36xbf16, #tpu.memory_space<vmem>>, vector<256x4xbf16>,
    %c1_20 = arith.constant 1 : index
    %c0_21 = arith.constant 0 : index
    %c0_22 = arith.constant 0 : index
    %15 = vector.load %arg8[%c1_20, %c0_21, %c0_22] : memref<18x18x4xbf16, #tpu.memory_space<vmem>>, vector<16x16x4xbf16>
    %16 = vector.shape_cast %15 : vector<16x16x4xbf16> to vector<256x4xbf16>
    %c0_23 = arith.constant 0 : index
    %c12 = arith.constant 12 : index
    %17 = vector.load %arg10[%c0_23, %c12] : memref<256x36xbf16, #tpu.memory_space<vmem>>, vector<256x4xbf16>
    tpu.vector_store %arg10[%c0_23, %c12], %16 {strides = array<i32>} : memref<256x36xbf16, #tpu.memory_space<vmem>>, vector<256x4xbf16>,
    %c1_24 = arith.constant 1 : index
    %c1_25 = arith.constant 1 : index
    %c0_26 = arith.constant 0 : index
    %18 = vector.load %arg8[%c1_24, %c1_25, %c0_26] : memref<18x18x4xbf16, #tpu.memory_space<vmem>>, vector<16x16x4xbf16>
    %19 = vector.shape_cast %18 : vector<16x16x4xbf16> to vector<256x4xbf16>
    %c0_27 = arith.constant 0 : index
    %c16 = arith.constant 16 : index
    %20 = vector.load %arg10[%c0_27, %c16] : memref<256x36xbf16, #tpu.memory_space<vmem>>, vector<256x4xbf16>
    tpu.vector_store %arg10[%c0_27, %c16], %19 {strides = array<i32>} : memref<256x36xbf16, #tpu.memory_space<vmem>>, vector<256x4xbf16>,
    %c1_28 = arith.constant 1 : index
    %c2_29 = arith.constant 2 : index
    %c0_30 = arith.constant 0 : index
    %21 = vector.load %arg8[%c1_28, %c2_29, %c0_30] : memref<18x18x4xbf16, #tpu.memory_space<vmem>>, vector<16x16x4xbf16>
    %22 = vector.shape_cast %21 : vector<16x16x4xbf16> to vector<256x4xbf16>
    %c0_31 = arith.constant 0 : index
    %c20 = arith.constant 20 : index
    %23 = vector.load %arg10[%c0_31, %c20] : memref<256x36xbf16, #tpu.memory_space<vmem>>, vector<256x4xbf16>
    tpu.vector_store %arg10[%c0_31, %c20], %22 {strides = array<i32>} : memref<256x36xbf16, #tpu.memory_space<vmem>>, vector<256x4xbf16>,
    %c2_32 = arith.constant 2 : index
    %c0_33 = arith.constant 0 : index
    %c0_34 = arith.constant 0 : index
    %24 = vector.load %arg8[%c2_32, %c0_33, %c0_34] : memref<18x18x4xbf16, #tpu.memory_space<vmem>>, vector<16x16x4xbf16>
    %25 = vector.shape_cast %24 : vector<16x16x4xbf16> to vector<256x4xbf16>
    %c0_35 = arith.constant 0 : index
    %c24 = arith.constant 24 : index
    %26 = vector.load %arg10[%c0_35, %c24] : memref<256x36xbf16, #tpu.memory_space<vmem>>, vector<256x4xbf16>
    tpu.vector_store %arg10[%c0_35, %c24], %25 {strides = array<i32>} : memref<256x36xbf16, #tpu.memory_space<vmem>>, vector<256x4xbf16>,
    %c2_36 = arith.constant 2 : index
    %c1_37 = arith.constant 1 : index
    %c0_38 = arith.constant 0 : index
    %27 = vector.load %arg8[%c2_36, %c1_37, %c0_38] : memref<18x18x4xbf16, #tpu.memory_space<vmem>>, vector<16x16x4xbf16>
    %28 = vector.shape_cast %27 : vector<16x16x4xbf16> to vector<256x4xbf16>
    %c0_39 = arith.constant 0 : index
    %c28 = arith.constant 28 : index
    %29 = vector.load %arg10[%c0_39, %c28] : memref<256x36xbf16, #tpu.memory_space<vmem>>, vector<256x4xbf16>
    tpu.vector_store %arg10[%c0_39, %c28], %28 {strides = array<i32>} : memref<256x36xbf16, #tpu.memory_space<vmem>>, vector<256x4xbf16>,
    %c2_40 = arith.constant 2 : index
    %c2_41 = arith.constant 2 : index
    %c0_42 = arith.constant 0 : index
    %30 = vector.load %arg8[%c2_40, %c2_41, %c0_42] : memref<18x18x4xbf16, #tpu.memory_space<vmem>>, vector<16x16x4xbf16>
    %31 = vector.shape_cast %30 : vector<16x16x4xbf16> to vector<256x4xbf16>
    %c0_43 = arith.constant 0 : index
    %c32 = arith.constant 32 : index
    %32 = vector.load %arg10[%c0_43, %c32] : memref<256x36xbf16, #tpu.memory_space<vmem>>, vector<256x4xbf16>
    tpu.vector_store %arg10[%c0_43, %c32], %31 {strides = array<i32>} : memref<256x36xbf16, #tpu.memory_space<vmem>>, vector<256x4xbf16>,
    %c0_44 = arith.constant 0 : index
    %c0_45 = arith.constant 0 : index
    %33 = vector.load %arg10[%c0_44, %c0_45] : memref<256x36xbf16, #tpu.memory_space<vmem>>, vector<256x36xbf16>
    %c0_46 = arith.constant 0 : index
    %c0_47 = arith.constant 0 : index
    %34 = vector.load %arg2[%c0_46, %c0_47] : memref<36x8xbf16, #tpu.memory_space<vmem>>, vector<36x8xbf16>
    %cst_48 = arith.constant dense<0.000000e+00> : vector<256x8xf32>
    %35 = tpu.matmul %33, %34, %cst_48 {dimension_numbers = #tpu.dot_dimension_numbers<[1], [0], [0], [1], [0, 0, 1, 1], [], []>} : vector<256x36xbf16>, vector<36x8xbf16>, vector<256x8xf32> -> vector<256x8xf32>
    %c0_49 = arith.constant 0 : index
    %c0_50 = arith.constant 0 : index
    %36 = vector.load %arg3[%c0_49, %c0_50] : memref<1x8xf32, #tpu.memory_space<vmem>>, vector<1x8xf32>
    %37 = vector.broadcast %36 : vector<1x8xf32> to vector<256x8xf32>
    %38 = arith.addf %35, %37 : vector<256x8xf32>
    %cst_51 = arith.constant 0.000000e+00 : f32
    %39 = vector.broadcast %cst_51 : f32 to vector<256x8xf32>
    %40 = arith.maximumf %38, %39 : vector<256x8xf32>
    %cst_52 = arith.constant 0.000000e+00 : bf16
    %41 = vector.broadcast %cst_52 : bf16 to vector<18x18x8xbf16>
    %c0_53 = arith.constant 0 : index
    %c0_54 = arith.constant 0 : index
    %c0_55 = arith.constant 0 : index
    %42 = vector.load %arg9[%c0_53, %c0_54, %c0_55] : memref<18x18x8xbf16, #tpu.memory_space<vmem>>, vector<18x18x8xbf16>
    tpu.vector_store %arg9[%c0_53, %c0_54, %c0_55], %41 {strides = array<i32>} : memref<18x18x8xbf16, #tpu.memory_space<vmem>>, vector<18x18x8xbf16>,
    %43 = vector.shape_cast %40 : vector<256x8xf32> to vector<16x16x8xf32>
    %44 = arith.truncf %43 : vector<16x16x8xf32> to vector<16x16x8xbf16>
    %c1_56 = arith.constant 1 : index
    %c1_57 = arith.constant 1 : index
    %c0_58 = arith.constant 0 : index
    %45 = vector.load %arg9[%c1_56, %c1_57, %c0_58] : memref<18x18x8xbf16, #tpu.memory_space<vmem>>, vector<16x16x8xbf16>
    tpu.vector_store %arg9[%c1_56, %c1_57, %c0_58], %44 {strides = array<i32>} : memref<18x18x8xbf16, #tpu.memory_space<vmem>>, vector<16x16x8xbf16>,
    %c0_59 = arith.constant 0 : index
    %c0_60 = arith.constant 0 : index
    %c0_61 = arith.constant 0 : index
    %46 = vector.load %arg9[%c0_59, %c0_60, %c0_61] : memref<18x18x8xbf16, #tpu.memory_space<vmem>>, vector<16x16x8xbf16>
    %47 = vector.shape_cast %46 : vector<16x16x8xbf16> to vector<256x8xbf16>
    %c0_62 = arith.constant 0 : index
    %c0_63 = arith.constant 0 : index
    %48 = vector.load %arg11[%c0_62, %c0_63] : memref<256x72xbf16, #tpu.memory_space<vmem>>, vector<256x8xbf16>
    tpu.vector_store %arg11[%c0_62, %c0_63], %47 {strides = array<i32>} : memref<256x72xbf16, #tpu.memory_space<vmem>>, vector<256x8xbf16>,
    %c0_64 = arith.constant 0 : index
    %c1_65 = arith.constant 1 : index
    %c0_66 = arith.constant 0 : index
    %49 = vector.load %arg9[%c0_64, %c1_65, %c0_66] : memref<18x18x8xbf16, #tpu.memory_space<vmem>>, vector<16x16x8xbf16>
    %50 = vector.shape_cast %49 : vector<16x16x8xbf16> to vector<256x8xbf16>
    %c0_67 = arith.constant 0 : index
    %c8_68 = arith.constant 8 : index
    %51 = vector.load %arg11[%c0_67, %c8_68] : memref<256x72xbf16, #tpu.memory_space<vmem>>, vector<256x8xbf16>
    tpu.vector_store %arg11[%c0_67, %c8_68], %50 {strides = array<i32>} : memref<256x72xbf16, #tpu.memory_space<vmem>>, vector<256x8xbf16>,
    %c0_69 = arith.constant 0 : index
    %c2_70 = arith.constant 2 : index
    %c0_71 = arith.constant 0 : index
    %52 = vector.load %arg9[%c0_69, %c2_70, %c0_71] : memref<18x18x8xbf16, #tpu.memory_space<vmem>>, vector<16x16x8xbf16>
    %53 = vector.shape_cast %52 : vector<16x16x8xbf16> to vector<256x8xbf16>
    %c0_72 = arith.constant 0 : index
    %c16_73 = arith.constant 16 : index
    %54 = vector.load %arg11[%c0_72, %c16_73] : memref<256x72xbf16, #tpu.memory_space<vmem>>, vector<256x8xbf16>
    tpu.vector_store %arg11[%c0_72, %c16_73], %53 {strides = array<i32>} : memref<256x72xbf16, #tpu.memory_space<vmem>>, vector<256x8xbf16>,
    %c1_74 = arith.constant 1 : index
    %c0_75 = arith.constant 0 : index
    %c0_76 = arith.constant 0 : index
    %55 = vector.load %arg9[%c1_74, %c0_75, %c0_76] : memref<18x18x8xbf16, #tpu.memory_space<vmem>>, vector<16x16x8xbf16>
    %56 = vector.shape_cast %55 : vector<16x16x8xbf16> to vector<256x8xbf16>
    %c0_77 = arith.constant 0 : index
    %c24_78 = arith.constant 24 : index
    %57 = vector.load %arg11[%c0_77, %c24_78] : memref<256x72xbf16, #tpu.memory_space<vmem>>, vector<256x8xbf16>
    tpu.vector_store %arg11[%c0_77, %c24_78], %56 {strides = array<i32>} : memref<256x72xbf16, #tpu.memory_space<vmem>>, vector<256x8xbf16>,
    %c1_79 = arith.constant 1 : index
    %c1_80 = arith.constant 1 : index
    %c0_81 = arith.constant 0 : index
    %58 = vector.load %arg9[%c1_79, %c1_80, %c0_81] : memref<18x18x8xbf16, #tpu.memory_space<vmem>>, vector<16x16x8xbf16>
    %59 = vector.shape_cast %58 : vector<16x16x8xbf16> to vector<256x8xbf16>
    %c0_82 = arith.constant 0 : index
    %c32_83 = arith.constant 32 : index
    %60 = vector.load %arg11[%c0_82, %c32_83] : memref<256x72xbf16, #tpu.memory_space<vmem>>, vector<256x8xbf16>
    tpu.vector_store %arg11[%c0_82, %c32_83], %59 {strides = array<i32>} : memref<256x72xbf16, #tpu.memory_space<vmem>>, vector<256x8xbf16>,
    %c1_84 = arith.constant 1 : index
    %c2_85 = arith.constant 2 : index
    %c0_86 = arith.constant 0 : index
    %61 = vector.load %arg9[%c1_84, %c2_85, %c0_86] : memref<18x18x8xbf16, #tpu.memory_space<vmem>>, vector<16x16x8xbf16>
    %62 = vector.shape_cast %61 : vector<16x16x8xbf16> to vector<256x8xbf16>
    %c0_87 = arith.constant 0 : index
    %c40 = arith.constant 40 : index
    %63 = vector.load %arg11[%c0_87, %c40] : memref<256x72xbf16, #tpu.memory_space<vmem>>, vector<256x8xbf16>
    tpu.vector_store %arg11[%c0_87, %c40], %62 {strides = array<i32>} : memref<256x72xbf16, #tpu.memory_space<vmem>>, vector<256x8xbf16>,
    %c2_88 = arith.constant 2 : index
    %c0_89 = arith.constant 0 : index
    %c0_90 = arith.constant 0 : index
    %64 = vector.load %arg9[%c2_88, %c0_89, %c0_90] : memref<18x18x8xbf16, #tpu.memory_space<vmem>>, vector<16x16x8xbf16>
    %65 = vector.shape_cast %64 : vector<16x16x8xbf16> to vector<256x8xbf16>
    %c0_91 = arith.constant 0 : index
    %c48 = arith.constant 48 : index
    %66 = vector.load %arg11[%c0_91, %c48] : memref<256x72xbf16, #tpu.memory_space<vmem>>, vector<256x8xbf16>
    tpu.vector_store %arg11[%c0_91, %c48], %65 {strides = array<i32>} : memref<256x72xbf16, #tpu.memory_space<vmem>>, vector<256x8xbf16>,
    %c2_92 = arith.constant 2 : index
    %c1_93 = arith.constant 1 : index
    %c0_94 = arith.constant 0 : index
    %67 = vector.load %arg9[%c2_92, %c1_93, %c0_94] : memref<18x18x8xbf16, #tpu.memory_space<vmem>>, vector<16x16x8xbf16>
    %68 = vector.shape_cast %67 : vector<16x16x8xbf16> to vector<256x8xbf16>
    %c0_95 = arith.constant 0 : index
    %c56 = arith.constant 56 : index
    %69 = vector.load %arg11[%c0_95, %c56] : memref<256x72xbf16, #tpu.memory_space<vmem>>, vector<256x8xbf16>
    tpu.vector_store %arg11[%c0_95, %c56], %68 {strides = array<i32>} : memref<256x72xbf16, #tpu.memory_space<vmem>>, vector<256x8xbf16>,
    %c2_96 = arith.constant 2 : index
    %c2_97 = arith.constant 2 : index
    %c0_98 = arith.constant 0 : index
    %70 = vector.load %arg9[%c2_96, %c2_97, %c0_98] : memref<18x18x8xbf16, #tpu.memory_space<vmem>>, vector<16x16x8xbf16>
    %71 = vector.shape_cast %70 : vector<16x16x8xbf16> to vector<256x8xbf16>
    %c0_99 = arith.constant 0 : index
    %c64 = arith.constant 64 : index
    %72 = vector.load %arg11[%c0_99, %c64] : memref<256x72xbf16, #tpu.memory_space<vmem>>, vector<256x8xbf16>
    tpu.vector_store %arg11[%c0_99, %c64], %71 {strides = array<i32>} : memref<256x72xbf16, #tpu.memory_space<vmem>>, vector<256x8xbf16>,
    %c0_100 = arith.constant 0 : index
    %c0_101 = arith.constant 0 : index
    %73 = vector.load %arg11[%c0_100, %c0_101] : memref<256x72xbf16, #tpu.memory_space<vmem>>, vector<256x72xbf16>
    %c0_102 = arith.constant 0 : index
    %c0_103 = arith.constant 0 : index
    %74 = vector.load %arg4[%c0_102, %c0_103] : memref<72x16xbf16, #tpu.memory_space<vmem>>, vector<72x16xbf16>
    %cst_104 = arith.constant dense<0.000000e+00> : vector<256x16xf32>
    %75 = tpu.matmul %73, %74, %cst_104 {dimension_numbers = #tpu.dot_dimension_numbers<[1], [0], [0], [1], [0, 0, 1, 1], [], []>} : vector<256x72xbf16>, vector<72x16xbf16>, vector<256x16xf32> -> vector<256x16xf32>
    %c0_105 = arith.constant 0 : index
    %c0_106 = arith.constant 0 : index
    %76 = vector.load %arg5[%c0_105, %c0_106] : memref<1x16xf32, #tpu.memory_space<vmem>>, vector<1x16xf32>
    %77 = vector.broadcast %76 : vector<1x16xf32> to vector<256x16xf32>
    %78 = arith.addf %75, %77 : vector<256x16xf32>
    %cst_107 = arith.constant 0.000000e+00 : f32
    %79 = vector.broadcast %cst_107 : f32 to vector<256x16xf32>
    %80 = arith.maximumf %78, %79 : vector<256x16xf32>
    %81 = vector.shape_cast %80 : vector<256x16xf32> to vector<16x16x16xf32>
    %c0_108 = arith.constant 0 : index
    %c0_109 = arith.constant 0 : index
    %c0_110 = arith.constant 0 : index
    %c0_111 = arith.constant 0 : index
    %82 = vector.load %arg6[%c0_108, %c0_109, %c0_110, %c0_111] : memref<1x16x16x16xf32, #tpu.memory_space<vmem>>, vector<1x16x16x16xf32>
    %83 = vector.shape_cast %82 : vector<1x16x16x16xf32> to vector<16x16x16xf32>
    %84 = vector.shape_cast %81 : vector<16x16x16xf32> to vector<1x16x16x16xf32>
    tpu.vector_store %arg6[%c0_108, %c0_109, %c0_110, %c0_111], %84 {strides = array<i32>} : memref<1x16x16x16xf32, #tpu.memory_space<vmem>>, vector<1x16x16x16xf32>,
    %85 = vector.shape_cast %80 : vector<256x16xf32> to vector<8x2x8x2x16xf32>
    %86 = vector.extract_strided_slice %85 {offsets = [0, 0, 0, 0, 0], sizes = [8, 1, 8, 1, 16], strides = [1, 1, 1, 1, 1]} : vector<8x2x8x2x16xf32> to vector<8x1x8x1x16xf32>
    %87 = vector.shape_cast %86 : vector<8x1x8x1x16xf32> to vector<8x8x16xf32>
    %88 = vector.extract_strided_slice %85 {offsets = [0, 0, 0, 1, 0], sizes = [8, 1, 8, 1, 16], strides = [1, 1, 1, 1, 1]} : vector<8x2x8x2x16xf32> to vector<8x1x8x1x16xf32>
    %89 = vector.shape_cast %88 : vector<8x1x8x1x16xf32> to vector<8x8x16xf32>
    %90 = arith.maximumf %87, %89 : vector<8x8x16xf32>
    %91 = vector.extract_strided_slice %85 {offsets = [0, 1, 0, 0, 0], sizes = [8, 1, 8, 1, 16], strides = [1, 1, 1, 1, 1]} : vector<8x2x8x2x16xf32> to vector<8x1x8x1x16xf32>
    %92 = vector.shape_cast %91 : vector<8x1x8x1x16xf32> to vector<8x8x16xf32>
    %93 = vector.extract_strided_slice %85 {offsets = [0, 1, 0, 1, 0], sizes = [8, 1, 8, 1, 16], strides = [1, 1, 1, 1, 1]} : vector<8x2x8x2x16xf32> to vector<8x1x8x1x16xf32>
    %94 = vector.shape_cast %93 : vector<8x1x8x1x16xf32> to vector<8x8x16xf32>
    %95 = arith.maximumf %92, %94 : vector<8x8x16xf32>
    %96 = arith.maximumf %90, %95 : vector<8x8x16xf32>
    %97 = arith.truncf %96 : vector<8x8x16xf32> to vector<8x8x16xbf16>
    %c0_112 = arith.constant 0 : index
    %c0_113 = arith.constant 0 : index
    %c0_114 = arith.constant 0 : index
    %c0_115 = arith.constant 0 : index
    %98 = vector.load %arg7[%c0_112, %c0_113, %c0_114, %c0_115] : memref<1x8x8x16xbf16, #tpu.memory_space<vmem>>, vector<1x8x8x16xbf16>
    %99 = vector.shape_cast %98 : vector<1x8x8x16xbf16> to vector<8x8x16xbf16>
    %100 = vector.shape_cast %97 : vector<8x8x16xbf16> to vector<1x8x8x16xbf16>
    tpu.vector_store %arg7[%c0_112, %c0_113, %c0_114, %c0_115], %100 {strides = array<i32>} : memref<1x8x8x16xbf16, #tpu.memory_space<vmem>>, vector<1x8x8x16xbf16>,
    return
  }
  func.func @transform_0(%arg0: i32) -> (i32, i32, i32, i32) {
    %c0_i32 = arith.constant 0 : i32
    %c0_i32_0 = arith.constant 0 : i32
    %c0_i32_1 = arith.constant 0 : i32
    %c0_i32_2 = arith.constant 0 : i32
    return %arg0, %c0_i32, %c0_i32_0, %c0_i32_1 : i32, i32, i32, i32
  }
  func.func @transform_1(%arg0: i32) -> (i32, i32) {
    %c0_i32 = arith.constant 0 : i32
    %c0_i32_0 = arith.constant 0 : i32
    %c0_i32_1 = arith.constant 0 : i32
    return %c0_i32, %c0_i32_0 : i32, i32
  }
  func.func @transform_2(%arg0: i32) -> (i32, i32) {
    %c0_i32 = arith.constant 0 : i32
    %c0_i32_0 = arith.constant 0 : i32
    %c0_i32_1 = arith.constant 0 : i32
    return %c0_i32, %c0_i32_0 : i32, i32
  }
  func.func @transform_3(%arg0: i32) -> (i32, i32) {
    %c0_i32 = arith.constant 0 : i32
    %c0_i32_0 = arith.constant 0 : i32
    %c0_i32_1 = arith.constant 0 : i32
    return %c0_i32, %c0_i32_0 : i32, i32
  }
  func.func @transform_4(%arg0: i32) -> (i32, i32) {
    %c0_i32 = arith.constant 0 : i32
    %c0_i32_0 = arith.constant 0 : i32
    %c0_i32_1 = arith.constant 0 : i32
    return %c0_i32, %c0_i32_0 : i32, i32
  }
  func.func @transform_5(%arg0: i32) -> (i32, i32, i32, i32) {
    %c0_i32 = arith.constant 0 : i32
    %c0_i32_0 = arith.constant 0 : i32
    %c0_i32_1 = arith.constant 0 : i32
    %c0_i32_2 = arith.constant 0 : i32
    return %arg0, %c0_i32, %c0_i32_0, %c0_i32_1 : i32, i32, i32, i32
  }
  func.func @transform_6(%arg0: i32) -> (i32, i32, i32, i32) {
    %c0_i32 = arith.constant 0 : i32
    %c0_i32_0 = arith.constant 0 : i32
    %c0_i32_1 = arith.constant 0 : i32
    %c0_i32_2 = arith.constant 0 : i32
    return %arg0, %c0_i32, %c0_i32_0, %c0_i32_1 : i32, i32, i32, i32
  }
}

module attributes {stable_mosaic.version = 11 : i64} {
  func.func @_fused_stage_kernel(%arg0: i32, %arg1: memref<1x8x8x16xbf16, #tpu.memory_space<vmem>>, %arg2: memref<144x16xbf16, #tpu.memory_space<vmem>>, %arg3: memref<1x16xf32, #tpu.memory_space<vmem>>, %arg4: memref<144x32xbf16, #tpu.memory_space<vmem>>, %arg5: memref<1x32xf32, #tpu.memory_space<vmem>>, %arg6: memref<1x8x8x32xf32, #tpu.memory_space<vmem>>, %arg7: memref<10x10x16xbf16, #tpu.memory_space<vmem>>, %arg8: memref<10x10x16xbf16, #tpu.memory_space<vmem>>, %arg9: memref<64x144xbf16, #tpu.memory_space<vmem>>, %arg10: memref<64x144xbf16, #tpu.memory_space<vmem>>) attributes {dimension_semantics = [#tpu.dimension_semantics<parallel>], iteration_bounds = array<i64: 2>, scalar_prefetch = 0 : i64, scratch_operands = 4 : i64, tpu.core_type = #tpu.core_type<tc>, window_params = [{transform_indices = @transform_0, window_bounds = array<i64: 1, 8, 8, 16>}, {pipeline_mode = #tpu.pipeline_mode<synchronous>, transform_indices = @transform_1, window_bounds = array<i64: 144, 16>}, {pipeline_mode = #tpu.pipeline_mode<synchronous>, transform_indices = @transform_2, window_bounds = array<i64: 1, 16>}, {pipeline_mode = #tpu.pipeline_mode<synchronous>, transform_indices = @transform_3, window_bounds = array<i64: 144, 32>}, {pipeline_mode = #tpu.pipeline_mode<synchronous>, transform_indices = @transform_4, window_bounds = array<i64: 1, 32>}, {transform_indices = @transform_5, window_bounds = array<i64: 1, 8, 8, 32>}]} {
    %cst = arith.constant 0.000000e+00 : bf16
    %0 = vector.broadcast %cst : bf16 to vector<10x10x16xbf16>
    %c0 = arith.constant 0 : index
    %c0_0 = arith.constant 0 : index
    %c0_1 = arith.constant 0 : index
    %1 = vector.load %arg7[%c0, %c0_0, %c0_1] : memref<10x10x16xbf16, #tpu.memory_space<vmem>>, vector<10x10x16xbf16>
    tpu.vector_store %arg7[%c0, %c0_0, %c0_1], %0 {strides = array<i32>} : memref<10x10x16xbf16, #tpu.memory_space<vmem>>, vector<10x10x16xbf16>,
    %c0_2 = arith.constant 0 : index
    %c0_3 = arith.constant 0 : index
    %c0_4 = arith.constant 0 : index
    %c0_5 = arith.constant 0 : index
    %2 = vector.load %arg1[%c0_2, %c0_3, %c0_4, %c0_5] : memref<1x8x8x16xbf16, #tpu.memory_space<vmem>>, vector<1x8x8x16xbf16>
    %3 = vector.shape_cast %2 : vector<1x8x8x16xbf16> to vector<8x8x16xbf16>
    %c1 = arith.constant 1 : index
    %c1_6 = arith.constant 1 : index
    %c0_7 = arith.constant 0 : index
    %4 = vector.load %arg7[%c1, %c1_6, %c0_7] : memref<10x10x16xbf16, #tpu.memory_space<vmem>>, vector<8x8x16xbf16>
    tpu.vector_store %arg7[%c1, %c1_6, %c0_7], %3 {strides = array<i32>} : memref<10x10x16xbf16, #tpu.memory_space<vmem>>, vector<8x8x16xbf16>,
    %c0_8 = arith.constant 0 : index
    %c0_9 = arith.constant 0 : index
    %c0_10 = arith.constant 0 : index
    %5 = vector.load %arg7[%c0_8, %c0_9, %c0_10] : memref<10x10x16xbf16, #tpu.memory_space<vmem>>, vector<8x8x16xbf16>
    %6 = vector.shape_cast %5 : vector<8x8x16xbf16> to vector<64x16xbf16>
    %c0_11 = arith.constant 0 : index
    %c0_12 = arith.constant 0 : index
    %7 = vector.load %arg9[%c0_11, %c0_12] : memref<64x144xbf16, #tpu.memory_space<vmem>>, vector<64x16xbf16>
    tpu.vector_store %arg9[%c0_11, %c0_12], %6 {strides = array<i32>} : memref<64x144xbf16, #tpu.memory_space<vmem>>, vector<64x16xbf16>,
    %c0_13 = arith.constant 0 : index
    %c1_14 = arith.constant 1 : index
    %c0_15 = arith.constant 0 : index
    %8 = vector.load %arg7[%c0_13, %c1_14, %c0_15] : memref<10x10x16xbf16, #tpu.memory_space<vmem>>, vector<8x8x16xbf16>
    %9 = vector.shape_cast %8 : vector<8x8x16xbf16> to vector<64x16xbf16>
    %c0_16 = arith.constant 0 : index
    %c16 = arith.constant 16 : index
    %10 = vector.load %arg9[%c0_16, %c16] : memref<64x144xbf16, #tpu.memory_space<vmem>>, vector<64x16xbf16>
    tpu.vector_store %arg9[%c0_16, %c16], %9 {strides = array<i32>} : memref<64x144xbf16, #tpu.memory_space<vmem>>, vector<64x16xbf16>,
    %c0_17 = arith.constant 0 : index
    %c2 = arith.constant 2 : index
    %c0_18 = arith.constant 0 : index
    %11 = vector.load %arg7[%c0_17, %c2, %c0_18] : memref<10x10x16xbf16, #tpu.memory_space<vmem>>, vector<8x8x16xbf16>
    %12 = vector.shape_cast %11 : vector<8x8x16xbf16> to vector<64x16xbf16>
    %c0_19 = arith.constant 0 : index
    %c32 = arith.constant 32 : index
    %13 = vector.load %arg9[%c0_19, %c32] : memref<64x144xbf16, #tpu.memory_space<vmem>>, vector<64x16xbf16>
    tpu.vector_store %arg9[%c0_19, %c32], %12 {strides = array<i32>} : memref<64x144xbf16, #tpu.memory_space<vmem>>, vector<64x16xbf16>,
    %c1_20 = arith.constant 1 : index
    %c0_21 = arith.constant 0 : index
    %c0_22 = arith.constant 0 : index
    %14 = vector.load %arg7[%c1_20, %c0_21, %c0_22] : memref<10x10x16xbf16, #tpu.memory_space<vmem>>, vector<8x8x16xbf16>
    %15 = vector.shape_cast %14 : vector<8x8x16xbf16> to vector<64x16xbf16>
    %c0_23 = arith.constant 0 : index
    %c48 = arith.constant 48 : index
    %16 = vector.load %arg9[%c0_23, %c48] : memref<64x144xbf16, #tpu.memory_space<vmem>>, vector<64x16xbf16>
    tpu.vector_store %arg9[%c0_23, %c48], %15 {strides = array<i32>} : memref<64x144xbf16, #tpu.memory_space<vmem>>, vector<64x16xbf16>,
    %c1_24 = arith.constant 1 : index
    %c1_25 = arith.constant 1 : index
    %c0_26 = arith.constant 0 : index
    %17 = vector.load %arg7[%c1_24, %c1_25, %c0_26] : memref<10x10x16xbf16, #tpu.memory_space<vmem>>, vector<8x8x16xbf16>
    %18 = vector.shape_cast %17 : vector<8x8x16xbf16> to vector<64x16xbf16>
    %c0_27 = arith.constant 0 : index
    %c64 = arith.constant 64 : index
    %19 = vector.load %arg9[%c0_27, %c64] : memref<64x144xbf16, #tpu.memory_space<vmem>>, vector<64x16xbf16>
    tpu.vector_store %arg9[%c0_27, %c64], %18 {strides = array<i32>} : memref<64x144xbf16, #tpu.memory_space<vmem>>, vector<64x16xbf16>,
    %c1_28 = arith.constant 1 : index
    %c2_29 = arith.constant 2 : index
    %c0_30 = arith.constant 0 : index
    %20 = vector.load %arg7[%c1_28, %c2_29, %c0_30] : memref<10x10x16xbf16, #tpu.memory_space<vmem>>, vector<8x8x16xbf16>
    %21 = vector.shape_cast %20 : vector<8x8x16xbf16> to vector<64x16xbf16>
    %c0_31 = arith.constant 0 : index
    %c80 = arith.constant 80 : index
    %22 = vector.load %arg9[%c0_31, %c80] : memref<64x144xbf16, #tpu.memory_space<vmem>>, vector<64x16xbf16>
    tpu.vector_store %arg9[%c0_31, %c80], %21 {strides = array<i32>} : memref<64x144xbf16, #tpu.memory_space<vmem>>, vector<64x16xbf16>,
    %c2_32 = arith.constant 2 : index
    %c0_33 = arith.constant 0 : index
    %c0_34 = arith.constant 0 : index
    %23 = vector.load %arg7[%c2_32, %c0_33, %c0_34] : memref<10x10x16xbf16, #tpu.memory_space<vmem>>, vector<8x8x16xbf16>
    %24 = vector.shape_cast %23 : vector<8x8x16xbf16> to vector<64x16xbf16>
    %c0_35 = arith.constant 0 : index
    %c96 = arith.constant 96 : index
    %25 = vector.load %arg9[%c0_35, %c96] : memref<64x144xbf16, #tpu.memory_space<vmem>>, vector<64x16xbf16>
    tpu.vector_store %arg9[%c0_35, %c96], %24 {strides = array<i32>} : memref<64x144xbf16, #tpu.memory_space<vmem>>, vector<64x16xbf16>,
    %c2_36 = arith.constant 2 : index
    %c1_37 = arith.constant 1 : index
    %c0_38 = arith.constant 0 : index
    %26 = vector.load %arg7[%c2_36, %c1_37, %c0_38] : memref<10x10x16xbf16, #tpu.memory_space<vmem>>, vector<8x8x16xbf16>
    %27 = vector.shape_cast %26 : vector<8x8x16xbf16> to vector<64x16xbf16>
    %c0_39 = arith.constant 0 : index
    %c112 = arith.constant 112 : index
    %28 = vector.load %arg9[%c0_39, %c112] : memref<64x144xbf16, #tpu.memory_space<vmem>>, vector<64x16xbf16>
    tpu.vector_store %arg9[%c0_39, %c112], %27 {strides = array<i32>} : memref<64x144xbf16, #tpu.memory_space<vmem>>, vector<64x16xbf16>,
    %c2_40 = arith.constant 2 : index
    %c2_41 = arith.constant 2 : index
    %c0_42 = arith.constant 0 : index
    %29 = vector.load %arg7[%c2_40, %c2_41, %c0_42] : memref<10x10x16xbf16, #tpu.memory_space<vmem>>, vector<8x8x16xbf16>
    %30 = vector.shape_cast %29 : vector<8x8x16xbf16> to vector<64x16xbf16>
    %c0_43 = arith.constant 0 : index
    %c128 = arith.constant 128 : index
    %31 = vector.load %arg9[%c0_43, %c128] : memref<64x144xbf16, #tpu.memory_space<vmem>>, vector<64x16xbf16>
    tpu.vector_store %arg9[%c0_43, %c128], %30 {strides = array<i32>} : memref<64x144xbf16, #tpu.memory_space<vmem>>, vector<64x16xbf16>,
    %c0_44 = arith.constant 0 : index
    %c0_45 = arith.constant 0 : index
    %32 = vector.load %arg9[%c0_44, %c0_45] : memref<64x144xbf16, #tpu.memory_space<vmem>>, vector<64x144xbf16>
    %c0_46 = arith.constant 0 : index
    %c0_47 = arith.constant 0 : index
    %33 = vector.load %arg2[%c0_46, %c0_47] : memref<144x16xbf16, #tpu.memory_space<vmem>>, vector<144x16xbf16>
    %cst_48 = arith.constant dense<0.000000e+00> : vector<64x16xf32>
    %34 = tpu.matmul %32, %33, %cst_48 {dimension_numbers = #tpu.dot_dimension_numbers<[1], [0], [0], [1], [0, 0, 1, 1], [], []>} : vector<64x144xbf16>, vector<144x16xbf16>, vector<64x16xf32> -> vector<64x16xf32>
    %c0_49 = arith.constant 0 : index
    %c0_50 = arith.constant 0 : index
    %35 = vector.load %arg3[%c0_49, %c0_50] : memref<1x16xf32, #tpu.memory_space<vmem>>, vector<1x16xf32>
    %36 = vector.broadcast %35 : vector<1x16xf32> to vector<64x16xf32>
    %37 = arith.addf %34, %36 : vector<64x16xf32>
    %cst_51 = arith.constant 0.000000e+00 : f32
    %38 = vector.broadcast %cst_51 : f32 to vector<64x16xf32>
    %39 = arith.maximumf %37, %38 : vector<64x16xf32>
    %cst_52 = arith.constant 0.000000e+00 : bf16
    %40 = vector.broadcast %cst_52 : bf16 to vector<10x10x16xbf16>
    %c0_53 = arith.constant 0 : index
    %c0_54 = arith.constant 0 : index
    %c0_55 = arith.constant 0 : index
    %41 = vector.load %arg8[%c0_53, %c0_54, %c0_55] : memref<10x10x16xbf16, #tpu.memory_space<vmem>>, vector<10x10x16xbf16>
    tpu.vector_store %arg8[%c0_53, %c0_54, %c0_55], %40 {strides = array<i32>} : memref<10x10x16xbf16, #tpu.memory_space<vmem>>, vector<10x10x16xbf16>,
    %42 = vector.shape_cast %39 : vector<64x16xf32> to vector<8x8x16xf32>
    %43 = arith.truncf %42 : vector<8x8x16xf32> to vector<8x8x16xbf16>
    %c1_56 = arith.constant 1 : index
    %c1_57 = arith.constant 1 : index
    %c0_58 = arith.constant 0 : index
    %44 = vector.load %arg8[%c1_56, %c1_57, %c0_58] : memref<10x10x16xbf16, #tpu.memory_space<vmem>>, vector<8x8x16xbf16>
    tpu.vector_store %arg8[%c1_56, %c1_57, %c0_58], %43 {strides = array<i32>} : memref<10x10x16xbf16, #tpu.memory_space<vmem>>, vector<8x8x16xbf16>,
    %c0_59 = arith.constant 0 : index
    %c0_60 = arith.constant 0 : index
    %c0_61 = arith.constant 0 : index
    %45 = vector.load %arg8[%c0_59, %c0_60, %c0_61] : memref<10x10x16xbf16, #tpu.memory_space<vmem>>, vector<8x8x16xbf16>
    %46 = vector.shape_cast %45 : vector<8x8x16xbf16> to vector<64x16xbf16>
    %c0_62 = arith.constant 0 : index
    %c0_63 = arith.constant 0 : index
    %47 = vector.load %arg10[%c0_62, %c0_63] : memref<64x144xbf16, #tpu.memory_space<vmem>>, vector<64x16xbf16>
    tpu.vector_store %arg10[%c0_62, %c0_63], %46 {strides = array<i32>} : memref<64x144xbf16, #tpu.memory_space<vmem>>, vector<64x16xbf16>,
    %c0_64 = arith.constant 0 : index
    %c1_65 = arith.constant 1 : index
    %c0_66 = arith.constant 0 : index
    %48 = vector.load %arg8[%c0_64, %c1_65, %c0_66] : memref<10x10x16xbf16, #tpu.memory_space<vmem>>, vector<8x8x16xbf16>
    %49 = vector.shape_cast %48 : vector<8x8x16xbf16> to vector<64x16xbf16>
    %c0_67 = arith.constant 0 : index
    %c16_68 = arith.constant 16 : index
    %50 = vector.load %arg10[%c0_67, %c16_68] : memref<64x144xbf16, #tpu.memory_space<vmem>>, vector<64x16xbf16>
    tpu.vector_store %arg10[%c0_67, %c16_68], %49 {strides = array<i32>} : memref<64x144xbf16, #tpu.memory_space<vmem>>, vector<64x16xbf16>,
    %c0_69 = arith.constant 0 : index
    %c2_70 = arith.constant 2 : index
    %c0_71 = arith.constant 0 : index
    %51 = vector.load %arg8[%c0_69, %c2_70, %c0_71] : memref<10x10x16xbf16, #tpu.memory_space<vmem>>, vector<8x8x16xbf16>
    %52 = vector.shape_cast %51 : vector<8x8x16xbf16> to vector<64x16xbf16>
    %c0_72 = arith.constant 0 : index
    %c32_73 = arith.constant 32 : index
    %53 = vector.load %arg10[%c0_72, %c32_73] : memref<64x144xbf16, #tpu.memory_space<vmem>>, vector<64x16xbf16>
    tpu.vector_store %arg10[%c0_72, %c32_73], %52 {strides = array<i32>} : memref<64x144xbf16, #tpu.memory_space<vmem>>, vector<64x16xbf16>,
    %c1_74 = arith.constant 1 : index
    %c0_75 = arith.constant 0 : index
    %c0_76 = arith.constant 0 : index
    %54 = vector.load %arg8[%c1_74, %c0_75, %c0_76] : memref<10x10x16xbf16, #tpu.memory_space<vmem>>, vector<8x8x16xbf16>
    %55 = vector.shape_cast %54 : vector<8x8x16xbf16> to vector<64x16xbf16>
    %c0_77 = arith.constant 0 : index
    %c48_78 = arith.constant 48 : index
    %56 = vector.load %arg10[%c0_77, %c48_78] : memref<64x144xbf16, #tpu.memory_space<vmem>>, vector<64x16xbf16>
    tpu.vector_store %arg10[%c0_77, %c48_78], %55 {strides = array<i32>} : memref<64x144xbf16, #tpu.memory_space<vmem>>, vector<64x16xbf16>,
    %c1_79 = arith.constant 1 : index
    %c1_80 = arith.constant 1 : index
    %c0_81 = arith.constant 0 : index
    %57 = vector.load %arg8[%c1_79, %c1_80, %c0_81] : memref<10x10x16xbf16, #tpu.memory_space<vmem>>, vector<8x8x16xbf16>
    %58 = vector.shape_cast %57 : vector<8x8x16xbf16> to vector<64x16xbf16>
    %c0_82 = arith.constant 0 : index
    %c64_83 = arith.constant 64 : index
    %59 = vector.load %arg10[%c0_82, %c64_83] : memref<64x144xbf16, #tpu.memory_space<vmem>>, vector<64x16xbf16>
    tpu.vector_store %arg10[%c0_82, %c64_83], %58 {strides = array<i32>} : memref<64x144xbf16, #tpu.memory_space<vmem>>, vector<64x16xbf16>,
    %c1_84 = arith.constant 1 : index
    %c2_85 = arith.constant 2 : index
    %c0_86 = arith.constant 0 : index
    %60 = vector.load %arg8[%c1_84, %c2_85, %c0_86] : memref<10x10x16xbf16, #tpu.memory_space<vmem>>, vector<8x8x16xbf16>
    %61 = vector.shape_cast %60 : vector<8x8x16xbf16> to vector<64x16xbf16>
    %c0_87 = arith.constant 0 : index
    %c80_88 = arith.constant 80 : index
    %62 = vector.load %arg10[%c0_87, %c80_88] : memref<64x144xbf16, #tpu.memory_space<vmem>>, vector<64x16xbf16>
    tpu.vector_store %arg10[%c0_87, %c80_88], %61 {strides = array<i32>} : memref<64x144xbf16, #tpu.memory_space<vmem>>, vector<64x16xbf16>,
    %c2_89 = arith.constant 2 : index
    %c0_90 = arith.constant 0 : index
    %c0_91 = arith.constant 0 : index
    %63 = vector.load %arg8[%c2_89, %c0_90, %c0_91] : memref<10x10x16xbf16, #tpu.memory_space<vmem>>, vector<8x8x16xbf16>
    %64 = vector.shape_cast %63 : vector<8x8x16xbf16> to vector<64x16xbf16>
    %c0_92 = arith.constant 0 : index
    %c96_93 = arith.constant 96 : index
    %65 = vector.load %arg10[%c0_92, %c96_93] : memref<64x144xbf16, #tpu.memory_space<vmem>>, vector<64x16xbf16>
    tpu.vector_store %arg10[%c0_92, %c96_93], %64 {strides = array<i32>} : memref<64x144xbf16, #tpu.memory_space<vmem>>, vector<64x16xbf16>,
    %c2_94 = arith.constant 2 : index
    %c1_95 = arith.constant 1 : index
    %c0_96 = arith.constant 0 : index
    %66 = vector.load %arg8[%c2_94, %c1_95, %c0_96] : memref<10x10x16xbf16, #tpu.memory_space<vmem>>, vector<8x8x16xbf16>
    %67 = vector.shape_cast %66 : vector<8x8x16xbf16> to vector<64x16xbf16>
    %c0_97 = arith.constant 0 : index
    %c112_98 = arith.constant 112 : index
    %68 = vector.load %arg10[%c0_97, %c112_98] : memref<64x144xbf16, #tpu.memory_space<vmem>>, vector<64x16xbf16>
    tpu.vector_store %arg10[%c0_97, %c112_98], %67 {strides = array<i32>} : memref<64x144xbf16, #tpu.memory_space<vmem>>, vector<64x16xbf16>,
    %c2_99 = arith.constant 2 : index
    %c2_100 = arith.constant 2 : index
    %c0_101 = arith.constant 0 : index
    %69 = vector.load %arg8[%c2_99, %c2_100, %c0_101] : memref<10x10x16xbf16, #tpu.memory_space<vmem>>, vector<8x8x16xbf16>
    %70 = vector.shape_cast %69 : vector<8x8x16xbf16> to vector<64x16xbf16>
    %c0_102 = arith.constant 0 : index
    %c128_103 = arith.constant 128 : index
    %71 = vector.load %arg10[%c0_102, %c128_103] : memref<64x144xbf16, #tpu.memory_space<vmem>>, vector<64x16xbf16>
    tpu.vector_store %arg10[%c0_102, %c128_103], %70 {strides = array<i32>} : memref<64x144xbf16, #tpu.memory_space<vmem>>, vector<64x16xbf16>,
    %c0_104 = arith.constant 0 : index
    %c0_105 = arith.constant 0 : index
    %72 = vector.load %arg10[%c0_104, %c0_105] : memref<64x144xbf16, #tpu.memory_space<vmem>>, vector<64x144xbf16>
    %c0_106 = arith.constant 0 : index
    %c0_107 = arith.constant 0 : index
    %73 = vector.load %arg4[%c0_106, %c0_107] : memref<144x32xbf16, #tpu.memory_space<vmem>>, vector<144x32xbf16>
    %cst_108 = arith.constant dense<0.000000e+00> : vector<64x32xf32>
    %74 = tpu.matmul %72, %73, %cst_108 {dimension_numbers = #tpu.dot_dimension_numbers<[1], [0], [0], [1], [0, 0, 1, 1], [], []>} : vector<64x144xbf16>, vector<144x32xbf16>, vector<64x32xf32> -> vector<64x32xf32>
    %c0_109 = arith.constant 0 : index
    %c0_110 = arith.constant 0 : index
    %75 = vector.load %arg5[%c0_109, %c0_110] : memref<1x32xf32, #tpu.memory_space<vmem>>, vector<1x32xf32>
    %76 = vector.broadcast %75 : vector<1x32xf32> to vector<64x32xf32>
    %77 = arith.addf %74, %76 : vector<64x32xf32>
    %cst_111 = arith.constant 0.000000e+00 : f32
    %78 = vector.broadcast %cst_111 : f32 to vector<64x32xf32>
    %79 = arith.maximumf %77, %78 : vector<64x32xf32>
    %80 = vector.shape_cast %79 : vector<64x32xf32> to vector<8x8x32xf32>
    %c0_112 = arith.constant 0 : index
    %c0_113 = arith.constant 0 : index
    %c0_114 = arith.constant 0 : index
    %c0_115 = arith.constant 0 : index
    %81 = vector.load %arg6[%c0_112, %c0_113, %c0_114, %c0_115] : memref<1x8x8x32xf32, #tpu.memory_space<vmem>>, vector<1x8x8x32xf32>
    %82 = vector.shape_cast %81 : vector<1x8x8x32xf32> to vector<8x8x32xf32>
    %83 = vector.shape_cast %80 : vector<8x8x32xf32> to vector<1x8x8x32xf32>
    tpu.vector_store %arg6[%c0_112, %c0_113, %c0_114, %c0_115], %83 {strides = array<i32>} : memref<1x8x8x32xf32, #tpu.memory_space<vmem>>, vector<1x8x8x32xf32>,
    return
  }
  func.func @transform_0(%arg0: i32) -> (i32, i32, i32, i32) {
    %c0_i32 = arith.constant 0 : i32
    %c0_i32_0 = arith.constant 0 : i32
    %c0_i32_1 = arith.constant 0 : i32
    %c0_i32_2 = arith.constant 0 : i32
    return %arg0, %c0_i32, %c0_i32_0, %c0_i32_1 : i32, i32, i32, i32
  }
  func.func @transform_1(%arg0: i32) -> (i32, i32) {
    %c0_i32 = arith.constant 0 : i32
    %c0_i32_0 = arith.constant 0 : i32
    %c0_i32_1 = arith.constant 0 : i32
    return %c0_i32, %c0_i32_0 : i32, i32
  }
  func.func @transform_2(%arg0: i32) -> (i32, i32) {
    %c0_i32 = arith.constant 0 : i32
    %c0_i32_0 = arith.constant 0 : i32
    %c0_i32_1 = arith.constant 0 : i32
    return %c0_i32, %c0_i32_0 : i32, i32
  }
  func.func @transform_3(%arg0: i32) -> (i32, i32) {
    %c0_i32 = arith.constant 0 : i32
    %c0_i32_0 = arith.constant 0 : i32
    %c0_i32_1 = arith.constant 0 : i32
    return %c0_i32, %c0_i32_0 : i32, i32
  }
  func.func @transform_4(%arg0: i32) -> (i32, i32) {
    %c0_i32 = arith.constant 0 : i32
    %c0_i32_0 = arith.constant 0 : i32
    %c0_i32_1 = arith.constant 0 : i32
    return %c0_i32, %c0_i32_0 : i32, i32
  }
  func.func @transform_5(%arg0: i32) -> (i32, i32, i32, i32) {
    %c0_i32 = arith.constant 0 : i32
    %c0_i32_0 = arith.constant 0 : i32
    %c0_i32_1 = arith.constant 0 : i32
    %c0_i32_2 = arith.constant 0 : i32
    return %arg0, %c0_i32, %c0_i32_0, %c0_i32_1 : i32, i32, i32, i32
  }
}

</mosaic_0001>

<bundles_post_ra>
// kernel: unet_encoder_forward.3
= control target key start
LH: loop header
LB: loop body
LE: loop exit
PB: predicated region body
PF: predicated region fallthrough
CT: control target
= control target key end

     0   :  { %10 = vsyncpa [#allocation7], 0  ;;  %s3912_s0 = inlined_call_operand.vmem [shape: bf16[2,8,8,16], index: 0, kind: input, shape index: {}]   ;;  %s3913_s1 = inlined_call_operand.vmem [shape: bf16[144,16], index: 1, kind: input, shape index: {}]   ;;  %s3914_s2 = inlined_call_operand.vmem [shape: f32[1,16], index: 2, kind: input, shape index: {}]   ;;  %s3915_s3 = inlined_call_operand.vmem [shape: bf16[144,32], index: 3, kind: input, shape index: {}]   ;;  %s3916_s4 = inlined_call_operand.vmem [shape: f32[1,32], index: 4, kind: input, shape index: {}]   ;;  %s3917_s5 = inlined_call_operand.hbm [shape: f32[2,8,8,32], index: 5, kind: output, shape index: {}]  }
   0x1   :  { %12 = vsyncpa [#allocation7 + $0x1], 0  ;;  %s3109_s18 = smov 0   ;;  %s3111_s19 = smov 0  }
   0x2   :  { %s3113_s20 = smov 0   ;;  %s3115_s21 = smov 0  }
   0x3 LB: > { %s3130_s22 = sadd.s32 4294967295, %s3066_s21   ;;  %s2735_s23 = sadd.s32 4294967294, %s3066_s21   ;;  %s3066_s21 = sphi %s3115_s21, %s3931_s21   ;;  %s3062_s20 = sphi %s3113_s20, %s3930_s20   ;;  %s3058_s19 = sphi %s3111_s19, %s3929_s19   ;;  %s3054_s18 = sphi %s3109_s18, %s3928_s18  }
   0x4   : > { %s3134_s24 = sadd.s32 1, %s3066_s21   ;;  %s135_s25 = sadd.s32 1, %s3062_s20 }
   0x5   : > { %s132_s26 = ssub.s32 %s3066_s21, %s3134_s24  ;;  %p145_p0 = scmp.ne.s32.totalorder %s3062_s20, %s3058_s19 }
   0x6   : > { %p133_p1 = scmp.eq.s32.totalorder %s132_s26, 0  ;;  %p146_p2 = scmp.eq.s32.totalorder %s3130_s22, 1 }
   0x7   : > { %p151_p3 = scmp.ne.s32.totalorder %s3058_s19, %s3054_s18  ;;  %p152_p4 = scmp.eq.s32.totalorder %s2735_s23, 1 }
   0x8   : > { %s3145_s27 = scalar_select %p133_p1, %s3062_s20, %s135_s25  }
   0x9   : > { %p3147_p5 = por %p146_p2, %p145_p0  ;;  %p3151_p6 = por %p152_p4, %p151_p3 }
   0xa   : > { %p2738_p7 = scmp.ge.s32.totalorder %s3066_s21, 1  ;;  %p190_p8 = scmp.lt.s32.totalorder %s3066_s21, 3 }
   0xc   : > { %p191_p9 = pnand %p2738_p7, %p190_p8 }
   0xd   : > { %p218_p10 = scmp.lt.s32.totalorder (!%p191_p9), %s3130_s22, 1  ;;  %vm224_vm0 = vcmask (!%p191_p9), 125952   ;;  %v3068_v0 = vmov (!%p191_p9), 0   ;;  %vm226_vm1 = vcmask (!%p191_p9), 122880   ;;  %v2970_v1 = vld [vmem:[%s3913_s1] sm:$0xff] (!%p191_p9)   ;;  %vm618_vm4 = vcmask (!%p191_p9), 1042432  }
   0xe   : > { %194 = sbr.rel (%p191_p9) target bundleno = 888 (0x378), region = 40  ;;  %234 = vst.msk [vmem:[#allocation2 + $0x20] sm:$0xf] (!%p191_p9), %vm224_vm0, %v3068_v0  ;;  %236 = vst.msk [vmem:[#allocation2 + $0x28] sm:$0xf] (!%p191_p9), %vm224_vm0, %v3068_v0  ;;  %1363 = vmatprep.subr.bf16.mxu0 (!%p191_p9), %v3068_v0  ;;  %2577 = vmatprep.subr.bf16.mxu1 (!%p191_p9), %v3068_v0  ;;  %vm619_vm5 = vcmask (!%p191_p9), 1046532  }
   0xf   : > { %225 = vst.msk [vmem:[#allocation2] sm:$0xf] (!%p191_p9), %vm224_vm0, %v3068_v0  ;;  %228 = vst.msk [vmem:[#allocation2 + $0x8] sm:$0xf] (!%p191_p9), %vm224_vm0, %v3068_v0  ;;  %1364 = vmatpush1.bf16.msra.mxu0 (!%p191_p9), %v2970_v1  ;;  %vm336_vm2 = vsmask.f32 (!%p191_p9), 7938 }
  0x10   : > { %230 = vst.msk [vmem:[#allocation2 + $0x10] sm:$0xf] (!%p191_p9), %vm224_vm0, %v3068_v0  ;;  %232 = vst.msk [vmem:[#allocation2 + $0x18] sm:$0xf] (!%p191_p9), %vm224_vm0, %v3068_v0  ;;  %1365 = vmatprep.subr.bf16.mxu0 (!%p191_p9), %v3068_v0  ;;  %vm342_vm3 = vsmask.f32 (!%p191_p9), 256 }
  0x11   : > { %238 = vst.msk [vmem:[#allocation2 + $0x30] sm:$0xf] (!%p191_p9), %vm224_vm0, %v3068_v0  ;;  %240 = vst.msk [vmem:[#allocation2 + $0x38] sm:$0xf] (!%p191_p9), %vm224_vm0, %v3068_v0  ;;  %v2971_v33 = vld [vmem:[%s3913_s1 + $0x8] sm:$0xff] (!%p191_p9)   ;;  %v2972_v1 = vld [vmem:[%s3913_s1 + $0x10] sm:$0xff] (!%p191_p9)  }
  0x12   : > { %242 = vst.msk [vmem:[#allocation2 + $0x40] sm:$0xf] (!%p191_p9), %vm224_vm0, %v3068_v0  ;;  %244 = vst.msk [vmem:[#allocation2 + $0x48] sm:$0xf] (!%p191_p9), %vm224_vm0, %v3068_v0  ;;  %s3069_s23 = smov (!%p191_p9), 96   ;;  %s3070_s25 = smov (!%p191_p9), 48  }
  0x13   : > { %1436 = vst.msk [vmem:[#allocation3] sm:$0xf] (!%p191_p9), %vm224_vm0, %v3068_v0  ;;  %1438 = vst.msk [vmem:[#allocation3 + $0x8] sm:$0xf] (!%p191_p9), %vm224_vm0, %v3068_v0  ;;  %1366 = vmatpush1.bf16.msra.mxu0 (!%p191_p9), %v2971_v33  ;;  %vm442_vm9 = vsmask.f32 (!%p191_p9), 3328 }
  0x14   : > { %1440 = vst.msk [vmem:[#allocation3 + $0x10] sm:$0xf] (!%p191_p9), %vm224_vm0, %v3068_v0  ;;  %1442 = vst.msk [vmem:[#allocation3 + $0x18] sm:$0xf] (!%p191_p9), %vm224_vm0, %v3068_v0  ;;  %1367 = vmatprep.subr.bf16.mxu0 (!%p191_p9), %v3068_v0  ;;  %vm443_vm10 = vsmask.f32 (!%p191_p9), 7440 }
  0x15   : > { %1444 = vst.msk [vmem:[#allocation3 + $0x20] sm:$0xf] %vm224_vm0, %v3068_v0  ;;  %1446 = vst.msk [vmem:[#allocation3 + $0x28] sm:$0xf] %vm224_vm0, %v3068_v0  ;;  %s219_s30 = scalar_select %p218_p10, %s3130_s22, 1  ;;  %vm421_vm12 = vcmask 130048  }
  0x16   : > { %1448 = vst.msk [vmem:[#allocation3 + $0x30] sm:$0xf] %vm224_vm0, %v3068_v0  ;;  %1450 = vst.msk [vmem:[#allocation3 + $0x38] sm:$0xf] %vm224_vm0, %v3068_v0  ;;  %v359_v14 = vld [vmem:[#allocation2 + $0x20] sm:$0xf] }
  0x17   : > { %1452 = vst.msk [vmem:[#allocation3 + $0x40] sm:$0xf] %vm224_vm0, %v3068_v0  ;;  %1454 = vst.msk [vmem:[#allocation3 + $0x48] sm:$0xf] %vm224_vm0, %v3068_v0  ;;  %s2903_s8 = sshll.u32 %s219_s30, 5  ;;  %1368 = vmatpush1.bf16.msra.mxu0 %v2972_v1  ;;  %s3071_s26 = smov 32  }
  0x18   : > { %227 = vst.msk [vmem:[#allocation2 + $0x4] sm:$0x1] %vm226_vm1, %v3068_v0  ;;  %229 = vst.msk [vmem:[#allocation2 + $0xc] sm:$0x1] %vm226_vm1, %v3068_v0  ;;  %s3249_s11 = scalar_lea.vmem %s3912_s0, %s2903_s8  ;;  %v365_v17 = vld [vmem:[#allocation2 + $0x28] sm:$0xf]  ;;  %1369 = vmatprep.subr.bf16.mxu0 %v3068_v0 }
  0x19   : > { %231 = vst.msk [vmem:[#allocation2 + $0x14] sm:$0x1] %vm226_vm1, %v3068_v0  ;;  %233 = vst.msk [vmem:[#allocation2 + $0x1c] sm:$0x1] %vm226_vm1, %v3068_v0  ;;  %v249_v2 = vld [vmem:[%s3249_s11 + $0xc] sm:$0xf] }
  0x1a   : > { %235 = vst.msk [vmem:[#allocation2 + $0x24] sm:$0x1] %vm226_vm1, %v3068_v0  ;;  %237 = vst.msk [vmem:[#allocation2 + $0x2c] sm:$0x1] %vm226_vm1, %v3068_v0  ;;  %v250_v3 = vld [vmem:[%s3249_s11 + $0x10] sm:$0xf] }
  0x1b   : > { %239 = vst.msk [vmem:[#allocation2 + $0x34] sm:$0x1] %vm226_vm1, %v3068_v0  ;;  %241 = vst.msk [vmem:[#allocation2 + $0x3c] sm:$0x1] %vm226_vm1, %v3068_v0  ;;  %v246_v4 = vld [vmem:[%s3249_s11] sm:$0xf] }
  0x1c   : > { %243 = vst.msk [vmem:[#allocation2 + $0x44] sm:$0x1] %vm226_vm1, %v3068_v0  ;;  %245 = vst.msk [vmem:[#allocation2 + $0x4c] sm:$0x1] %vm226_vm1, %v3068_v0  ;;  %v279_v5 = vshrl.u32 %v249_v2, 16  ;;  %v282_v6 = vshll.u32 %v249_v2, 16 }
  0x1d   : > { %1437 = vst.msk [vmem:[#allocation3 + $0x4] sm:$0x1] %vm226_vm1, %v3068_v0  ;;  %1439 = vst.msk [vmem:[#allocation3 + $0xc] sm:$0x1] %vm226_vm1, %v3068_v0  ;;  %v287_v7 = vshrl.u32 %v250_v3, 16  ;;  %v290_v8 = vshll.u32 %v250_v3, 16 }
  0x1e   : > { %1441 = vst.msk [vmem:[#allocation3 + $0x14] sm:$0x1] %vm226_vm1, %v3068_v0  ;;  %1443 = vst.msk [vmem:[#allocation3 + $0x1c] sm:$0x1] %vm226_vm1, %v3068_v0  ;;  %v247_v9 = vld [vmem:[%s3249_s11 + $0x4] sm:$0xf] }
  0x1f   : > { %1445 = vst.msk [vmem:[#allocation3 + $0x24] sm:$0x1] %vm226_vm1, %v3068_v0  ;;  %1447 = vst.msk [vmem:[#allocation3 + $0x2c] sm:$0x1] %vm226_vm1, %v3068_v0  ;;  %v255_v10 = vshrl.u32 %v246_v4, 16  ;;  %v258_v11 = vshll.u32 %v246_v4, 16 }
  0x20   : > { %1449 = vst.msk [vmem:[#allocation3 + $0x34] sm:$0x1] %vm226_vm1, %v3068_v0  ;;  %1451 = vst.msk [vmem:[#allocation3 + $0x3c] sm:$0x1] %vm226_vm1, %v3068_v0  ;;  %v281_v12 = vrot.slane %v279_v5, 7  ;;  %v3256_v13 = vrot.slane %v287_v7, 7 }
  0x21   : > { %1453 = vst.msk [vmem:[#allocation3 + $0x44] sm:$0x1] %vm226_vm1, %v3068_v0  ;;  %1455 = vst.msk [vmem:[#allocation3 + $0x4c] sm:$0x1] %vm226_vm1, %v3068_v0  ;;  %v263_v15 = vshrl.u32 %v247_v9, 16  ;;  %v257_v18 = vrot.slane %v255_v10, 7 }
  0x22   : > { %vm3260_vm6 = vmand %vm224_vm0, %vm336_vm2  ;;  %v266_v19 = vshll.u32 %v247_v9, 16  ;;  %v251_v20 = vld [vmem:[%s3249_s11 + $0x14] sm:$0xf]  ;;  %v284_v21 = vor.u32 %v282_v6, %v281_v12  ;;  %v285_v22 = vrot.slane %v281_v12, 4  ;;  %v292_v23 = vor.u32 %v290_v8, %v3256_v13  ;;  %v338_v25 = vld [vmem:[#allocation2 + $0x8] sm:$0xf] }
  0x23   : > { %v293_v24 = vrot.slane %v3256_v13, 4  ;;  %v248_v26 = vld [vmem:[%s3249_s11 + $0x8] sm:$0xf]  ;;  %v260_v27 = vor.u32 %v258_v11, %v257_v18  ;;  %v261_v28 = vrot.slane %v257_v18, 4  ;;  %v265_v29 = vrot.slane %v263_v15, 7  ;;  %vm3270_vm7 = vmand %vm226_vm1, %vm342_vm3  ;;  %v2973_v18 = vld [vmem:[%s3913_s1 + $0x18] sm:$0xff]  }
  0x24   : > { %v347_v30 = vld [vmem:[#allocation2 + $0x10] sm:$0xf]  ;;  %v295_v31 = vshrl.u32 %v251_v20, 16  ;;  %v360_v34 = vsel %vm3260_vm6, %v284_v21, %v359_v14  ;;  %v366_v35 = vsel %vm3260_vm6, %v292_v23, %v365_v17  ;;  %v298_v36 = vshll.u32 %v251_v20, 16  ;;  %v344_v39 = vld [vmem:[#allocation2 + $0xc] sm:$0x1]  ;;  %vm3311_vm8 = vmor %vm618_vm4, %vm619_vm5  ;;  %1370 = vmatpush1.bf16.msra.mxu0 %v2973_v18 }
  0x25   : > { %v371_v37 = vld [vmem:[#allocation2 + $0x30] sm:$0xf]  ;;  %v271_v38 = vshrl.u32 %v248_v26, 16  ;;  %v3281_v40 = vld [vmem:[#allocation2] sm:$0xe]  ;;  %v268_v41 = vor.u32 %v266_v19, %v265_v29  ;;  %v269_v42 = vrot.slane %v265_v29, 4  ;;  %v339_v43 = vsel %vm3260_vm6, %v260_v27, %v338_v25  ;;  %1371 = vmatprep.subr.bf16.mxu0 %v3068_v0  ;;  %vm3365_vm11 = vmor %vm442_vm9, %vm443_vm10 }
  0x26   : > { %361 = vst [vmem:[#allocation2 + $0x20] sm:$0xf] %v360_v34  ;;  %367 = vst [vmem:[#allocation2 + $0x28] sm:$0xf] %v366_v35  ;;  %v297_v44 = vrot.slane %v295_v31, 7  ;;  %v274_v48 = vshll.u32 %v248_v26, 16  ;;  %v345_v49 = vsel %vm3270_vm7, %v261_v28, %v344_v39 }
  0x27   : > { %v353_v45 = vld [vmem:[#allocation2 + $0x18] sm:$0xf]  ;;  %v587_v46 = vld [vmem:[#allocation2 + $0x4] sm:$0x1]  ;;  %340 = vst [vmem:[#allocation2 + $0x8] sm:$0xf] %v339_v43  ;;  %v348_v52 = vsel %vm3260_vm6, %v268_v41, %v347_v30 }
  0x28   : > { %v273_v47 = vrot.slane %v271_v38, 7  ;;  %v356_v50 = vld [vmem:[#allocation2 + $0x1c] sm:$0x1]  ;;  %v362_v51 = vld [vmem:[#allocation2 + $0x24] sm:$0x1]  ;;  %v300_v53 = vor.u32 %v298_v36, %v297_v44  ;;  %v301_v54 = vrot.slane %v297_v44, 4 }
  0x29   : > { %346 = vst [vmem:[#allocation2 + $0xc] sm:$0x1] %v345_v49  ;;  %v2750_v55 = vrot.slane %v3281_v40, 9  ;;  %v350_v56 = vld [vmem:[#allocation2 + $0x14] sm:$0x1]  ;;  %v363_v60 = vsel %vm3270_vm7, %v285_v22, %v362_v51  ;;  %v623_v3 = vrot.slane %v587_v46, 5 }
  0x2a   : > { %v368_v57 = vld [vmem:[#allocation2 + $0x2c] sm:$0x1]  ;;  %349 = vst [vmem:[#allocation2 + $0x10] sm:$0xf] %v348_v52  ;;  %v276_v58 = vor.u32 %v274_v48, %v273_v47  ;;  %v277_v59 = vrot.slane %v273_v47, 4  ;;  %v351_v61 = vsel %vm3270_vm7, %v269_v42, %v350_v56  ;;  %v372_v2 = vsel %vm3260_vm6, %v300_v53, %v371_v37  ;;  %s3072_s30 = smov 80  }
  0x2b   : > { %v426_v62 = vld [vmem:[#allocation2] sm:$0xf]  ;;  %v427_v63 = vld [vmem:[#allocation2 + $0x4] sm:$0x1]  ;;  %364 = vst [vmem:[#allocation2 + $0x24] sm:$0x1] %v363_v60  ;;  %v369_v4 = vsel %vm3270_vm7, %v293_v24, %v368_v57  ;;  %v624_v24 = vsel %vm3311_vm8, %v2750_v55, %v623_v3 }
  0x2c   : > { %352 = vst [vmem:[#allocation2 + $0x14] sm:$0x1] %v351_v61  ;;  %v446_v5 = vshrl.u32 %v426_v62, 16  ;;  %v374_v6 = vld [vmem:[#allocation2 + $0x34] sm:$0x1]  ;;  %v354_v8 = vsel %vm3260_vm6, %v276_v58, %v353_v45  ;;  %v357_v9 = vsel %vm3270_vm7, %v277_v59, %v356_v50  ;;  %v449_v10 = vshll.u32 %v426_v62, 16 }
  0x2d   : > { %v3303_v7 = vld [vmem:[%s3249_s11 + $0x18] sm:$0xf]  ;;  %373 = vst [vmem:[#allocation2 + $0x30] sm:$0xf] %v372_v2  ;;  %370 = vst [vmem:[#allocation2 + $0x2c] sm:$0x1] %v369_v4  ;;  %v375_v14 = vsel %vm3270_vm7, %v301_v54, %v374_v6 }
  0x2e   : > { %v455_v11 = vshll.u32 %v427_v63, 16  ;;  %355 = vst [vmem:[#allocation2 + $0x18] sm:$0xf] %v354_v8  ;;  %358 = vst [vmem:[#allocation2 + $0x1c] sm:$0x1] %v357_v9  ;;  %v3315_v13 = vrot.slane %v446_v5, 4 }
  0x2f   : > { %v303_v15 = vshrl.u32 %v3303_v7, 16  ;;  %v306_v17 = vshll.u32 %v3303_v7, 16  ;;  %v2962_v19 = vld [vmem:[#allocation2 + $0x20] ss:$8 sps:$4 sm:$0xff]   ;;  %376 = vst [vmem:[#allocation2 + $0x34] sm:$0x1] %v375_v14 }
  0x30   : > { %1008 = vrot.lane.b32.xlu0 %v2962_v19, %s3069_s23  ;;  %v588_v20 = vld [vmem:[#allocation2 + $0x8] sm:$0xe]  ;;  %v589_v21 = vld [vmem:[#allocation2 + $0xc] sm:$0x1]  ;;  %v890_v22 = vld [vmem:[#allocation2 + $0x20] sm:$0xe] }
  0x31   : > { %v2963_v23 = vld [vmem:[#allocation2 + $0x8] ss:$8 sps:$4 sm:$0xff]   ;;  %v2751_v25 = vrot.slane %v588_v20, 9  ;;  %v627_v26 = vrot.slane %v589_v21, 5  ;;  %v2773_v28 = vrot.slane %v890_v22, 9  ;;  %v3329_v29 = vrot.slane %v449_v10, 5 }
  0x32   : > { %v891_v27 = vld [vmem:[#allocation2 + $0x24] sm:$0x1]  ;;  %710 = vrot.lane.b32.xlu1 %v2963_v23, %s3070_s25  ;;  %v3332_v33 = vrot.slane %v455_v11, 5  ;;  %v884_v42 = vld [vmem:[#allocation2 + $0x8] sm:$0xe]  ;;  %s3073_s13 = smov 64  }
  0x33   : > { %v930_v31 = vrot.slane %v891_v27, 5  ;;  %v628_v35 = vsel %vm3311_vm8, %v2751_v25, %v627_v26  ;;  %v885_v43 = vld [vmem:[#allocation2 + $0xc] sm:$0x1]  ;;  %v886_v45 = vld [vmem:[#allocation2 + $0x10] sm:$0xe]  ;;  %v2770_v47 = vrot.slane %v884_v42, 9  ;;  %v452_v19 = vor.u32 %v3329_v29, %v3315_v13 }
  0x34   : > { %v2964_v30 = vld [vmem:[#allocation2 + $0x28] ss:$8 sps:$4 sm:$0xff]   ;;  %v2758_v37 = vcombine.low %v624_v24, %v628_v35  ;;  %v887_v46 = vld [vmem:[#allocation2 + $0x14] sm:$0x1]  ;;  %v918_v48 = vrot.slane %v885_v43, 5  ;;  %v2771_v50 = vrot.slane %v886_v45, 9 }
  0x35   : > { %v2965_v34 = vld [vmem:[#allocation2 + $0x10] ss:$8 sps:$4 sm:$0xff]   ;;  %714 = vrot.lane.b32.xlu0 %v2964_v30, %s3070_s25  ;;  %v889_v39 = vld [vmem:[#allocation2 + $0x1c] sm:$0x1]  ;;  %v931_v44 = vsel %vm3311_vm8, %v2773_v28, %v930_v31  ;;  %v922_v51 = vrot.slane %v887_v46, 5  ;;  %v2974_v13 = vld [vmem:[%s3913_s1 + $0x20] sm:$0xff]  }
  0x36   : > { %v2966_v36 = vld [vmem:[#allocation2 + $0x18] ss:$8 sps:$4 sm:$0xff]   ;;  %v926_v41 = vrot.slane %v889_v39, 5  ;;  %1006 = vrot.lane.b32.xlu1 %v2965_v34, %s3069_s23  ;;  %v595_v53 = vld [vmem:[#allocation2 + $0x24] sm:$0x1]  ;;  %v919_v54 = vsel %vm3311_vm8, %v2770_v47, %v918_v48  ;;  %v2975_v39 = vld [vmem:[%s3913_s1 + $0x28] sm:$0xff]   ;;  %1372 = vmatpush1.bf16.msra.mxu0 %v2974_v13 }
  0x37   : > { %v888_v38 = vld [vmem:[#allocation2 + $0x18] sm:$0xe]  ;;  %v594_v52 = vld [vmem:[#allocation2 + $0x20] sm:$0xe]  ;;  %v596_v55 = vld [vmem:[#allocation2 + $0x28] sm:$0xe]  ;;  %v923_v60 = vsel %vm3311_vm8, %v2771_v50, %v922_v51  ;;  %1373 = vmatprep.subr.bf16.mxu0 %v3068_v0 }
  0x38   : > { %v2772_v40 = vrot.slane %v888_v38, 9  ;;  %v597_v56 = vld [vmem:[#allocation2 + $0x2c] sm:$0x1]  ;;  %v2754_v57 = vrot.slane %v594_v52, 9  ;;  %v639_v58 = vrot.slane %v595_v53, 5  ;;  %v2755_v61 = vrot.slane %v596_v55, 9 }
  0x39   : > { %665 = vrot.lane.b32.xlu0 %v2758_v37, %s3071_s26  ;;  %v643_v62 = vrot.slane %v597_v56, 5  ;;  %v590_v63 = vld [vmem:[#allocation2 + $0x10] sm:$0xe]  ;;  %v591_v1 = vld [vmem:[#allocation2 + $0x14] sm:$0x1]  ;;  %v2778_v2 = vcombine.low %v919_v54, %v923_v60  ;;  %v453_v43 = vrot.slane %v452_v19, 4 }
  0x3a   : > { %v927_v49 = vsel %vm3311_vm8, %v2772_v40, %v926_v41  ;;  %712 = vrot.lane.b32.xlu1 %v2966_v36, %s3070_s25  ;;  %v640_v3 = vsel %vm3311_vm8, %v2754_v57, %v639_v58  ;;  %v592_v4 = vld [vmem:[#allocation2 + $0x18] sm:$0xe]  ;;  %v593_v5 = vld [vmem:[#allocation2 + $0x1c] sm:$0x1]  ;;  %v2752_v6 = vrot.slane %v590_v63, 9  ;;  %v631_v8 = vrot.slane %v591_v1, 5  ;;  %1374 = vmatpush1.bf16.msra.mxu0 %v2975_v39 }
  0x3b   : > { %v2779_v59 = vcombine.low %v927_v49, %v931_v44  ;;  %v644_v9 = vsel %vm3311_vm8, %v2755_v61, %v643_v62  ;;  %v2753_v10 = vrot.slane %v592_v4, 9  ;;  %v635_v11 = vrot.slane %v593_v5, 5  ;;  %v727_v14 = vld [vmem:[#allocation2 + $0x8] sm:$0xf]  ;;  %v728_v18 = vld [vmem:[#allocation2 + $0xc] sm:$0x1]  ;;  %1375 = vmatprep.subr.bf16.mxu0 %v3068_v0 }
  0x3c   : > { %v2760_v20 = vcombine.low %v640_v3, %v644_v9  ;;  %v632_v21 = vsel %vm3311_vm8, %v2752_v6, %v631_v8  ;;  %v729_v22 = vld [vmem:[#allocation2 + $0x10] sm:$0xf]  ;;  %v730_v23 = vld [vmem:[#allocation2 + $0x14] sm:$0x1]  ;;  %v744_v24 = vshrl.u32 %v727_v14, 16  ;;  %v747_v25 = vshll.u32 %v727_v14, 16 }
  0x3d   : > { %960 = vrot.lane.b32.xlu0 %v2778_v2, %s3072_s30  ;;  %v636_v26 = vsel %vm3311_vm8, %v2753_v10, %v635_v11  ;;  %v753_v27 = vshll.u32 %v728_v18, 16  ;;  %v758_v28 = vshrl.u32 %v729_v22, 16  ;;  %v761_v30 = vshll.u32 %v729_v22, 16  ;;  %v428_v31 = vld [vmem:[#allocation2 + $0x8] sm:$0xf]  ;;  %v2977_v1 = vld [vmem:[%s3913_s1 + $0x30] sm:$0xff]  }
  0x3e   : > { %962 = vrot.lane.b32.xlu1 %v2779_v59, %s3072_s30  ;;  %v2759_v29 = vcombine.low %v632_v21, %v636_v26  ;;  %v746_v35 = vrot.slane %v744_v24, 4  ;;  %v749_v36 = vrot.slane %v747_v25, 5  ;;  %v767_v37 = vshll.u32 %v730_v23, 16  ;;  %v429_v38 = vld [vmem:[#allocation2 + $0xc] sm:$0x1]  ;;  %1376 = vmatpush1.bf16.msra.mxu0 %v2977_v1  ;;  %s3074_s16 = smov 16  }
  0x3f   : > { %v755_v40 = vrot.slane %v753_v27, 5  ;;  %v760_v41 = vrot.slane %v758_v28, 4  ;;  %v763_v42 = vrot.slane %v761_v30, 5  ;;  %v430_v44 = vld [vmem:[#allocation2 + $0x10] sm:$0xf]  ;;  %v460_v47 = vshrl.u32 %v428_v31, 16  ;;  %1377 = vmatprep.subr.bf16.mxu0 %v3068_v0 }
  0x40   : > { %v750_v45 = vor.u32 %v749_v36, %v746_v35  ;;  %v769_v46 = vrot.slane %v767_v37, 5  ;;  %v463_v48 = vshll.u32 %v428_v31, 16  ;;  %v431_v49 = vld [vmem:[#allocation2 + $0x14] sm:$0x1]  ;;  %v458_v51 = vsel %vm3365_vm11, %v453_v43, %v3332_v33  ;;  %v432_v53 = vld [vmem:[#allocation2 + $0x18] sm:$0xf] }
  0x41   : > { %667 = vrot.lane.b32.xlu0 %v2759_v29, %s3071_s26  ;;  %v764_v50 = vor.u32 %v763_v42, %v760_v41  ;;  %v469_v52 = vshll.u32 %v429_v38, 16  ;;  %v474_v54 = vshrl.u32 %v430_v44, 16  ;;  %v462_v56 = vrot.slane %v460_v47, 4  ;;  %v433_v58 = vld [vmem:[#allocation2 + $0x1c] sm:$0x1]  ;;  %s3075_s7 = smov 112  }
  0x42   : > { %669 = vrot.lane.b32.xlu1 %v2760_v20, %s3071_s26  ;;  %v751_v55 = vrot.slane %v750_v45, 4  ;;  %v465_v57 = vrot.slane %v463_v48, 5  ;;  %v477_v59 = vshll.u32 %v430_v44, 16  ;;  %v483_v63 = vshll.u32 %v431_v49, 16  ;;  %v1023_v5 = vld [vmem:[#allocation2 + $0x10] sm:$0xf] }
  0x43   : > { %v765_v60 = vrot.slane %v764_v50, 4  ;;  %v471_v61 = vrot.slane %v469_v52, 5  ;;  %v476_v62 = vrot.slane %v474_v54, 4  ;;  %v488_v4 = vshrl.u32 %v432_v53, 16  ;;  %v1024_v6 = vld [vmem:[#allocation2 + $0x14] sm:$0x1] }
  0x44   : > { %v756_v33 = vsel %vm3365_vm11, %v751_v55, %v755_v40  ;;  %v466_v2 = vor.u32 %v465_v57, %v462_v56  ;;  %v479_v3 = vrot.slane %v477_v59, 5  ;;  %v485_v9 = vrot.slane %v483_v63, 5  ;;  %v1025_v14 = vld [vmem:[#allocation2 + $0x18] sm:$0xf]  ;;  %v1026_v24 = vld [vmem:[#allocation2 + $0x1c] sm:$0x1] }
  0x45   : > { %v770_v8 = vsel %vm3365_vm11, %v765_v60, %v769_v46  ;;  %v491_v10 = vshll.u32 %v432_v53, 16  ;;  %v497_v11 = vshll.u32 %v433_v58, 16  ;;  %v490_v21 = vrot.slane %v488_v4, 4  ;;  %v731_v13 = vld [vmem:[#allocation2 + $0x18] sm:$0xf]  ;;  %s3076_s15 = smov [#allocation6]  }
  0x46   : > { %v2766_v18 = vcombine.low %v756_v33, %v770_v8  ;;  %v467_v19 = vrot.slane %v466_v2, 4  ;;  %v480_v20 = vor.u32 %v479_v3, %v476_v62  ;;  %v1040_v25 = vshrl.u32 %v1023_v5, 16  ;;  %v2979_v29 = vld [vmem:[%s3913_s1 + $0x38] sm:$0xff]   ;;  %v733_v40 = vld [vmem:[#allocation2 + $0x20] sm:$0xf]  ;;  %s3008_s17 = sshll.u32 %s3076_s15, 4  ;;  %s3009_s17 = int_to_ptr.vmem [resolvable:$false] %s3008_s17 }
  0x47   : > { %v493_v22 = vrot.slane %v491_v10, 5  ;;  %v499_v23 = vrot.slane %v497_v11, 5  ;;  %v1043_v26 = vshll.u32 %v1023_v5, 16  ;;  %v1049_v30 = vshll.u32 %v1024_v6, 16  ;;  %v732_v39 = vld [vmem:[#allocation2 + $0x1c] sm:$0x1]  ;;  %1378 = vmatpush1.bf16.msra.mxu0 %v2979_v29 }
  0x48   : > { %867 = vrot.lane.b32.xlu1 %v2766_v18, %s3073_s13  ;;  %v472_v27 = vsel %vm3365_vm11, %v467_v19, %v471_v61  ;;  %v481_v28 = vrot.slane %v480_v20, 4  ;;  %v1054_v31 = vshrl.u32 %v1025_v14, 16  ;;  %v1042_v37 = vrot.slane %v1040_v25, 4  ;;  %v734_v50 = vld [vmem:[#allocation2 + $0x24] sm:$0x1]  ;;  %1379 = vmatprep.subr.bf16.mxu0 %v3068_v0  ;;  %s3010_s6 = scalar_lea.vmem %s3009_s17, 2048 }
  0x49   : > { %v2746_v35 = vcombine.low %v458_v51, %v472_v27  ;;  %v494_v36 = vor.u32 %v493_v22, %v490_v21  ;;  %v1045_v38 = vrot.slane %v1043_v26, 5  ;;  %v1051_v42 = vrot.slane %v1049_v30, 5  ;;  %v1027_v58 = vld [vmem:[#allocation2 + $0x20] sm:$0xf]  ;;  %v1028_v63 = vld [vmem:[#allocation2 + $0x24] sm:$0x1] }
  0x4a   : > { %v486_v41 = vsel %vm3365_vm11, %v481_v28, %v485_v9  ;;  %v1056_v43 = vrot.slane %v1054_v31, 4  ;;  %v1057_v44 = vshll.u32 %v1025_v14, 16  ;;  %v1063_v47 = vshll.u32 %v1026_v24, 16  ;;  %v1029_v1 = vld [vmem:[#allocation2 + $0x28] sm:$0xf]  ;;  %v2980_v26 = vld [vmem:[%s3913_s1 + $0x40] sm:$0xff]  }
  0x4b   : > { %569 = vrot.lane.b32.xlu0 %v2746_v35, %s3074_s16  ;;  %v495_v45 = vrot.slane %v494_v36, 4  ;;  %v1046_v46 = vor.u32 %v1045_v38, %v1042_v37  ;;  %v772_v48 = vshrl.u32 %v731_v13, 16  ;;  %v775_v51 = vshll.u32 %v731_v13, 16  ;;  %v1030_v8 = vld [vmem:[#allocation2 + $0x2c] sm:$0x1]  ;;  %1380 = vmatpush1.bf16.msra.mxu0 %v2980_v26 }
  0x4c   : > { %v1059_v49 = vrot.slane %v1057_v44, 5  ;;  %v781_v52 = vshll.u32 %v732_v39, 16  ;;  %v786_v53 = vshrl.u32 %v733_v40, 16  ;;  %v1065_v56 = vrot.slane %v1063_v47, 5  ;;  %v434_v20 = vld [vmem:[#allocation2 + $0x20] sm:$0xf] }
  0x4d   : > { %v500_v54 = vsel %vm3365_vm11, %v495_v45, %v499_v23  ;;  %v1047_v55 = vrot.slane %v1046_v46, 4  ;;  %v774_v57 = vrot.slane %v772_v48, 4  ;;  %v777_v61 = vrot.slane %v775_v51, 5  ;;  %v435_v25 = vld [vmem:[#allocation2 + $0x24] sm:$0x1] }
  0x4e   : > { %v2747_v59 = vcombine.low %v486_v41, %v500_v54  ;;  %v1060_v60 = vor.u32 %v1059_v49, %v1056_v43  ;;  %v783_v62 = vrot.slane %v781_v52, 5  ;;  %v788_v2 = vrot.slane %v786_v53, 4  ;;  %v436_v13 = vld [vmem:[#allocation2 + $0x28] sm:$0xf]  ;;  %v437_v38 = vld [vmem:[#allocation2 + $0x2c] sm:$0x1] }
  0x4f   : > { %v1052_v33 = vsel %vm3365_vm11, %v1047_v55, %v1051_v42  ;;  %v789_v3 = vshll.u32 %v733_v40, 16  ;;  %v795_v4 = vshll.u32 %v734_v50, 16  ;;  %v778_v6 = vor.u32 %v777_v61, %v774_v57  ;;  %v735_v43 = vld [vmem:[#allocation2 + $0x28] sm:$0xf]  ;;  %v736_v48 = vld [vmem:[#allocation2 + $0x2c] sm:$0x1] }
  0x50   : > { %571 = vrot.lane.b32.xlu1 %v2747_v59, %s3074_s16  ;;  %v1061_v5 = vrot.slane %v1060_v60, 4  ;;  %v1068_v9 = vshrl.u32 %v1027_v58, 16  ;;  %v1071_v10 = vshll.u32 %v1027_v58, 16  ;;  %v1077_v18 = vshll.u32 %v1028_v63, 16  ;;  %v737_v53 = vld [vmem:[#allocation2 + $0x30] sm:$0xf] }
  0x51   : > { %v791_v11 = vrot.slane %v789_v3, 5  ;;  %v797_v14 = vrot.slane %v795_v4, 5  ;;  %v1082_v19 = vshrl.u32 %v1029_v1, 16  ;;  %v779_v22 = vrot.slane %v778_v6, 4  ;;  %v738_v61 = vld [vmem:[#allocation2 + $0x34] sm:$0x1] }
  0x52   : > { %v1066_v21 = vsel %vm3365_vm11, %v1061_v5, %v1065_v56  ;;  %v1070_v23 = vrot.slane %v1068_v9, 4  ;;  %v1073_v24 = vrot.slane %v1071_v10, 5  ;;  %v1079_v30 = vrot.slane %v1077_v18, 5  ;;  %v892_v63 = vld [vmem:[#allocation2 + $0x28] sm:$0xe] }
  0x53   : > { %v2786_v27 = vcombine.low %v1052_v33, %v1066_v21  ;;  %v792_v28 = vor.u32 %v791_v11, %v788_v2  ;;  %v1084_v31 = vrot.slane %v1082_v19, 4  ;;  %v784_v29 = vsel %vm3365_vm11, %v779_v22, %v783_v62  ;;  %v894_v5 = vld [vmem:[#allocation2 + $0x30] sm:$0xe]  ;;  %v895_v11 = vld [vmem:[#allocation2 + $0x34] sm:$0x1] }
  0x54   : > { %v1074_v35 = vor.u32 %v1073_v24, %v1070_v23  ;;  %v1085_v36 = vshll.u32 %v1029_v1, 16  ;;  %v1091_v37 = vshll.u32 %v1030_v8, 16  ;;  %v502_v40 = vshrl.u32 %v434_v20, 16  ;;  %v893_v1 = vld [vmem:[#allocation2 + $0x2c] sm:$0x1] }
  0x55   : > { %1163 = vrot.lane.b32.xlu0 %v2786_v27, %s3075_s7  ;;  %v793_v39 = vrot.slane %v792_v28, 4  ;;  %v505_v41 = vshll.u32 %v434_v20, 16  ;;  %v511_v42 = vshll.u32 %v435_v25, 16  ;;  %v516_v47 = vshrl.u32 %v436_v13, 16  ;;  %v1031_v25 = vld [vmem:[#allocation2 + $0x30] sm:$0xf] }
  0x56   : > { %v1075_v44 = vrot.slane %v1074_v35, 4  ;;  %v1087_v45 = vrot.slane %v1085_v36, 5  ;;  %v1093_v46 = vrot.slane %v1091_v37, 5  ;;  %v504_v50 = vrot.slane %v502_v40, 4  ;;  %v377_v36 = vld [vmem:[#allocation2 + $0x38] sm:$0xf] }
  0x57   : > { %v798_v49 = vsel %vm3365_vm11, %v793_v39, %v797_v14  ;;  %v507_v51 = vrot.slane %v505_v41, 5  ;;  %v513_v52 = vrot.slane %v511_v42, 5  ;;  %v518_v57 = vrot.slane %v516_v47, 4  ;;  %v1032_v37 = vld [vmem:[#allocation2 + $0x34] sm:$0x1] }
  0x58   : > { %v2767_v54 = vcombine.low %v784_v29, %v798_v49  ;;  %v1080_v55 = vsel %vm3365_vm11, %v1075_v44, %v1079_v30  ;;  %v1088_v56 = vor.u32 %v1087_v45, %v1084_v31  ;;  %v519_v59 = vshll.u32 %v436_v13, 16  ;;  %v439_v44 = vld [vmem:[#allocation2 + $0x34] sm:$0x1] }
  0x59   : > { %v508_v58 = vor.u32 %v507_v51, %v504_v50  ;;  %v525_v60 = vshll.u32 %v437_v38, 16  ;;  %v800_v62 = vshrl.u32 %v735_v43, 16  ;;  %v803_v2 = vshll.u32 %v735_v43, 16  ;;  %v438_v38 = vld [vmem:[#allocation2 + $0x30] sm:$0xf] }
  0x5a   : > { %869 = vrot.lane.b32.xlu0 %v2767_v54, %s3073_s13  ;;  %v1089_v33 = vrot.slane %v1088_v56, 4  ;;  %v809_v3 = vshll.u32 %v736_v48, 16  ;;  %v814_v4 = vshrl.u32 %v737_v53, 16  ;;  %v521_v8 = vrot.slane %v519_v59, 5  ;;  %v380_v43 = vld [vmem:[#allocation2 + $0x3c] sm:$0x1] }
  0x5b   : > { %v509_v6 = vrot.slane %v508_v58, 4  ;;  %v527_v9 = vrot.slane %v525_v60, 5  ;;  %v802_v10 = vrot.slane %v800_v62, 4  ;;  %v805_v18 = vrot.slane %v803_v2, 5  ;;  %v253_v56 = vld [vmem:[%s3249_s11 + $0x1c] sm:$0xf] }
  0x5c   : > { %v1094_v14 = vsel %vm3365_vm11, %v1089_v33, %v1093_v46  ;;  %v811_v19 = vrot.slane %v809_v3, 5  ;;  %v816_v20 = vrot.slane %v814_v4, 4  ;;  %v522_v23 = vor.u32 %v521_v8, %v518_v57  ;;  %v3442_v33 = vld [vmem:[#allocation2 + $0x34] sm:$0x1]  ;;  %v3444_v2 = vld [vmem:[#allocation2 + $0x48] sm:$0xf] }
  0x5d   : > { %v2787_v21 = vcombine.low %v1080_v55, %v1094_v14  ;;  %v514_v22 = vsel %vm3365_vm11, %v509_v6, %v513_v52  ;;  %v817_v24 = vshll.u32 %v737_v53, 16  ;;  %v806_v26 = vor.u32 %v805_v18, %v802_v10  ;;  %v3446_v4 = vld [vmem:[#allocation2 + $0x4c] sm:$0x1]  ;;  %v2978_v6 = vld [vmem:[#allocation2 + $0x10] ss:$8 sps:$4 sm:$0xff]  }
  0x5e   : > { %v823_v27 = vshll.u32 %v738_v61, 16  ;;  %v2774_v28 = vrot.slane %v892_v63, 9  ;;  %v934_v30 = vrot.slane %v893_v1, 5  ;;  %v523_v31 = vrot.slane %v522_v23, 4  ;;  %v3440_v63 = vld [vmem:[#allocation2 + $0x30] sm:$0xe] }
  0x5f   : > { %1165 = vrot.lane.b32.xlu1 %v2787_v21, %s3075_s7  ;;  %v819_v13 = vrot.slane %v817_v24, 5  ;;  %v2775_v29 = vrot.slane %v894_v5, 9  ;;  %v938_v35 = vrot.slane %v895_v11, 5  ;;  %v807_v39 = vrot.slane %v806_v26, 4  ;;  %v2976_v5 = vld [vmem:[#allocation2] ss:$8 sps:$4 sm:$0xff]  }
  0x60   : > { %v825_v40 = vrot.slane %v823_v27, 5  ;;  %v935_v41 = vsel %vm3311_vm8, %v2774_v28, %v934_v30  ;;  %v305_v42 = vrot.slane %v303_v15, 7  ;;  %v528_v45 = vsel %vm3365_vm11, %v523_v31, %v527_v9  ;;  %422 = vst.msk [vmem:[#allocation4] sm:$0xff] %vm421_vm12, %v2976_v5  ;;  %423 = vst.msk [vmem:[#allocation4 + $0x10] sm:$0xff] %vm421_vm12, %v2978_v6 }
  0x61   : > { %v820_v46 = vor.u32 %v819_v13, %v816_v20  ;;  %v939_v47 = vsel %vm3311_vm8, %v2775_v29, %v938_v35  ;;  %v1096_v48 = vshrl.u32 %v1031_v25, 16  ;;  %v2748_v49 = vcombine.low %v514_v22, %v528_v45  ;;  %v383_v22 = vld [vmem:[#allocation2 + $0x40] sm:$0xf]  ;;  %v386_v13 = vld [vmem:[#allocation2 + $0x44] sm:$0x1] }
  0x62   : > { %v812_v50 = vsel %vm3365_vm11, %v807_v39, %v811_v19  ;;  %v2780_v51 = vcombine.low %v935_v41, %v939_v47  ;;  %v308_v52 = vor.u32 %v306_v17, %v305_v42  ;;  %v309_v15 = vrot.slane %v305_v42, 4 }
  0x63   : > { %v821_v53 = vrot.slane %v820_v46, 4  ;;  %v1098_v54 = vrot.slane %v1096_v48, 4  ;;  %v1099_v55 = vshll.u32 %v1031_v25, 16  ;;  %573 = vrot.lane.b32.xlu0 %v2748_v49, %s3074_s16  ;;  %v1105_v58 = vshll.u32 %v1032_v37, 16 }
  0x64   : > { %v378_v57 = vsel %vm3260_vm6, %v308_v52, %v377_v36  ;;  %v530_v59 = vshrl.u32 %v438_v38, 16  ;;  %v533_v60 = vshll.u32 %v438_v38, 16  ;;  %v381_v7 = vsel %vm3270_vm7, %v309_v15, %v380_v43 }
  0x65   : > { %v826_v61 = vsel %vm3365_vm11, %v821_v53, %v825_v40  ;;  %379 = vst [vmem:[#allocation2 + $0x38] sm:$0xf] %v378_v57  ;;  %v1101_v17 = vrot.slane %v1099_v55, 5  ;;  %v539_v62 = vshll.u32 %v439_v44, 16  ;;  %382 = vst [vmem:[#allocation2 + $0x3c] sm:$0x1] %v381_v7 }
  0x66   : > { %v2768_v1 = vcombine.low %v812_v50, %v826_v61  ;;  %v532_v8 = vrot.slane %v530_v59, 4  ;;  %v535_v9 = vrot.slane %v533_v60, 5  ;;  %v311_v10 = vshrl.u32 %v253_v56, 16 }
  0x67   : > { %v1102_v3 = vor.u32 %v1101_v17, %v1098_v54  ;;  %964 = vrot.lane.b32.xlu0 %v2780_v51, %s3072_s30  ;;  %v314_v11 = vshll.u32 %v253_v56, 16  ;;  %v3450_v14 = vrot.slane %v1105_v58, 5  ;;  %v3452_v18 = vrot.slane %v539_v62, 5 }
  0x68   : > { %871 = vrot.lane.b32.xlu1 %v2768_v1, %s3073_s13  ;;  %v2756_v19 = vrot.slane %v3440_v63, 9  ;;  %v647_v20 = vrot.slane %v3442_v33, 5  ;;  %v313_v21 = vrot.slane %v311_v10, 7  ;;  %v1138_v24 = vshrl.u32 %v3444_v2, 16 }
  0x69   : > { %v1103_v23 = vrot.slane %v1102_v3, 4  ;;  %v1141_v25 = vshll.u32 %v3444_v2, 16  ;;  %v1147_v26 = vshll.u32 %v3446_v4, 16  ;;  %v536_v30 = vor.u32 %v535_v9, %v532_v8  ;;  %v1181_v4 = vld [vmem:[#allocation2 + $0x14] sm:$0x1] }
  0x6a   : > { %v316_v31 = vor.u32 %v314_v11, %v313_v21  ;;  %v317_v42 = vrot.slane %v313_v21, 4  ;;  %v648_v62 = vsel %vm3311_vm8, %v2756_v19, %v647_v20  ;;  %v1140_v10 = vrot.slane %v1138_v24, 4 }
  0x6b   : > { %v537_v49 = vrot.slane %v536_v30, 4  ;;  %v1108_v7 = vsel %vm3365_vm11, %v1103_v23, %v3450_v14  ;;  %v1143_v11 = vrot.slane %v1141_v25, 5  ;;  %vm581_vm13 = vcmask 261248  }
  0x6c   : > { %v2967_v27 = vld [vmem:[#allocation2 + $0x30] ss:$8 sps:$4 sm:$0xff]   ;;  %v1034_v29 = vld [vmem:[#allocation2 + $0x3c] sm:$0x1]  ;;  %v384_v47 = vsel %vm3260_vm6, %v316_v31, %v383_v22  ;;  %v387_v55 = vsel %vm3270_vm7, %v317_v42, %v386_v13  ;;  %v2981_v22 = vld [vmem:[#allocation2 + $0x20] ss:$8 sps:$4 sm:$0xff]  }
  0x6d   : > { %v1033_v28 = vld [vmem:[#allocation2 + $0x38] sm:$0xf]  ;;  %1010 = vrot.lane.b32.xlu1 %v2967_v27, %s3069_s23  ;;  %v1119_v38 = vshll.u32 %v1034_v29, 16  ;;  %v441_v39 = vld [vmem:[#allocation2 + $0x3c] sm:$0x1]  ;;  %v542_v2 = vsel %vm3365_vm11, %v537_v49, %v3452_v18  ;;  %424 = vst.msk [vmem:[#allocation4 + $0x20] sm:$0xff] %vm421_vm12, %v2981_v22 }
  0x6e   : > { %v1110_v35 = vshrl.u32 %v1033_v28, 16  ;;  %v1113_v36 = vshll.u32 %v1033_v28, 16  ;;  %v440_v37 = vld [vmem:[#allocation2 + $0x38] sm:$0xf]  ;;  %v553_v45 = vshll.u32 %v441_v39, 16  ;;  %vm677_vm14 = vcmask 392448  }
  0x6f   : > { %v544_v40 = vshrl.u32 %v440_v37, 16  ;;  %v547_v41 = vshll.u32 %v440_v37, 16  ;;  %v600_v46 = vld [vmem:[#allocation2 + $0x38] sm:$0xe]  ;;  %v1121_v48 = vrot.slane %v1119_v38, 5  ;;  %v1144_v38 = vor.u32 %v1143_v11, %v1140_v10 }
  0x70   : > { %v1112_v43 = vrot.slane %v1110_v35, 4  ;;  %v1115_v44 = vrot.slane %v1113_v36, 5  ;;  %v601_v52 = vld [vmem:[#allocation2 + $0x3c] sm:$0x1]  ;;  %385 = vst [vmem:[#allocation2 + $0x40] sm:$0xf] %v384_v47 }
  0x71   : > { %v546_v50 = vrot.slane %v544_v40, 4  ;;  %v549_v51 = vrot.slane %v547_v41, 5  ;;  %v2757_v15 = vrot.slane %v600_v46, 9  ;;  %v651_v54 = vrot.slane %v601_v52, 5  ;;  %v739_v56 = vld [vmem:[#allocation2 + $0x38] sm:$0xf] }
  0x72   : > { %v1116_v53 = vor.u32 %v1115_v44, %v1112_v43  ;;  %v555_v58 = vrot.slane %v553_v45, 5  ;;  %388 = vst [vmem:[#allocation2 + $0x44] sm:$0x1] %v387_v55  ;;  %v740_v59 = vld [vmem:[#allocation2 + $0x3c] sm:$0x1]  ;;  %v828_v60 = vshrl.u32 %v739_v56, 16 }
  0x73   : > { %v550_v57 = vor.u32 %v549_v51, %v546_v50  ;;  %v831_v61 = vshll.u32 %v739_v56, 16  ;;  %v837_v63 = vshll.u32 %v740_v59, 16  ;;  %v896_v1 = vld [vmem:[#allocation2 + $0x38] sm:$0xe]  ;;  %v897_v33 = vld [vmem:[#allocation2 + $0x3c] sm:$0x1]  ;;  %v652_v9 = vsel %vm3311_vm8, %v2757_v15, %v651_v54 }
  0x74   : > { %v1117_v17 = vrot.slane %v1116_v53, 4  ;;  %v830_v5 = vrot.slane %v828_v60, 4  ;;  %v2776_v21 = vrot.slane %v896_v1, 9  ;;  %v942_v28 = vrot.slane %v897_v33, 5  ;;  %v1180_v46 = vld [vmem:[#allocation2 + $0x10] sm:$0xe] }
  0x75   : > { %v551_v3 = vrot.slane %v550_v57, 4  ;;  %v833_v6 = vrot.slane %v831_v61, 5  ;;  %v839_v27 = vrot.slane %v837_v63, 5  ;;  %v2761_v30 = vcombine.low %v648_v62, %v652_v9  ;;  %v1183_v59 = vld [vmem:[#allocation2 + $0x1c] sm:$0x1] }
  0x76   : > { %v1122_v8 = vsel %vm3365_vm11, %v1117_v17, %v1121_v48  ;;  %v943_v42 = vsel %vm3311_vm8, %v2776_v21, %v942_v28  ;;  %v1149_v45 = vrot.slane %v1147_v26, 5  ;;  %v1145_v54 = vrot.slane %v1144_v38, 4 }
  0x77   : > { %v2788_v14 = vcombine.low %v1108_v7, %v1122_v8  ;;  %v556_v19 = vsel %vm3365_vm11, %v551_v3, %v555_v58  ;;  %v834_v20 = vor.u32 %v833_v6, %v830_v5  ;;  %v741_v18 = vld [vmem:[#allocation2 + $0x40] sm:$0xf]  ;;  %v1182_v58 = vld [vmem:[#allocation2 + $0x18] sm:$0xe]  ;;  %v2790_v60 = vrot.slane %v1180_v46, 9 }
  0x78   : > { %v2749_v23 = vcombine.low %v542_v2, %v556_v19  ;;  %v2968_v31 = vld [vmem:[#allocation2 + $0x38] ss:$8 sps:$4 sm:$0xff]   ;;  %v842_v13 = vshrl.u32 %v741_v18, 16  ;;  %v845_v29 = vshll.u32 %v741_v18, 16  ;;  %v1214_v61 = vrot.slane %v1181_v4, 5 }
  0x79   : > { %1167 = vrot.lane.b32.xlu0 %v2788_v14, %s3075_s7  ;;  %v898_v35 = vld [vmem:[#allocation2 + $0x40] sm:$0xe]  ;;  %v742_v24 = vld [vmem:[#allocation2 + $0x44] sm:$0x1]  ;;  %v835_v25 = vrot.slane %v834_v20, 4  ;;  %v2791_v7 = vrot.slane %v1182_v58, 9  ;;  %v1150_v10 = vsel %vm3365_vm11, %v1145_v54, %v1149_v45 }
  0x7a   : > { %575 = vrot.lane.b32.xlu1 %v2749_v23, %s3074_s16  ;;  %v899_v36 = vld [vmem:[#allocation2 + $0x44] sm:$0x1]  ;;  %v2777_v37 = vrot.slane %v898_v35, 9  ;;  %v844_v39 = vrot.slane %v842_v13, 4  ;;  %v847_v40 = vrot.slane %v845_v29, 5  ;;  %v851_v41 = vshll.u32 %v742_v24, 16 }
  0x7b   : > { %v946_v43 = vrot.slane %v899_v36, 5  ;;  %v1035_v44 = vld [vmem:[#allocation2 + $0x40] sm:$0xf]  ;;  %v1036_v49 = vld [vmem:[#allocation2 + $0x44] sm:$0x1]  ;;  %v840_v52 = vsel %vm3365_vm11, %v835_v25, %v839_v27  ;;  %v1218_v1 = vrot.slane %v1183_v59, 5  ;;  %v1215_v3 = vsel %vm3311_vm8, %v2790_v60, %v1214_v61 }
  0x7c   : > { %v848_v47 = vor.u32 %v847_v40, %v844_v39  ;;  %v853_v48 = vrot.slane %v851_v41, 5  ;;  %v1124_v50 = vshrl.u32 %v1035_v44, 16  ;;  %v1127_v51 = vshll.u32 %v1035_v44, 16  ;;  %v2969_v2 = vld [vmem:[#allocation2 + $0x40] ss:$8 sps:$4 sm:$0xff]  }
  0x7d   : > { %671 = vrot.lane.b32.xlu0 %v2761_v30, %s3071_s26  ;;  %v947_v53 = vsel %vm3311_vm8, %v2777_v37, %v946_v43  ;;  %v1133_v15 = vshll.u32 %v1036_v49, 16  ;;  %v2982_v5 = vld [vmem:[#allocation2 + $0x30] ss:$8 sps:$4 sm:$0xff]   ;;  %v1184_v6 = vld [vmem:[#allocation2 + $0x20] sm:$0xe]  ;;  %v1219_v11 = vsel %vm3311_vm8, %v2791_v7, %v1218_v1  ;;  %vm722_vm15 = vcmask 523648  }
  0x7e   : > { %716 = vrot.lane.b32.xlu1 %v2968_v31, %s3070_s25  ;;  %v849_v26 = vrot.slane %v848_v47, 4  ;;  %v2781_v55 = vcombine.low %v943_v42, %v947_v53  ;;  %v1126_v56 = vrot.slane %v1124_v50, 4  ;;  %v1129_v57 = vrot.slane %v1127_v51, 5  ;;  %v1185_v8 = vld [vmem:[#allocation2 + $0x24] sm:$0x1]  ;;  %425 = vst.msk [vmem:[#allocation4 + $0x30] sm:$0xff] %vm421_vm12, %v2982_v5 }
  0x7f   : > { %v1135_v63 = vrot.slane %v1133_v15, 5  ;;  %v1186_v14 = vld [vmem:[#allocation2 + $0x28] sm:$0xe]  ;;  %v1187_v19 = vld [vmem:[#allocation2 + $0x2c] sm:$0x1]  ;;  %v2792_v20 = vrot.slane %v1184_v6, 9  ;;  %v2798_v21 = vcombine.low %v1215_v3, %v1219_v11 }
  0x80   : > { %v854_v17 = vsel %vm3365_vm11, %v849_v26, %v853_v48  ;;  %v1130_v62 = vor.u32 %v1129_v57, %v1126_v56  ;;  %v1222_v22 = vrot.slane %v1185_v8, 5  ;;  %v2793_v23 = vrot.slane %v1186_v14, 9  ;;  %v1188_v27 = vld [vmem:[#allocation2 + $0x30] sm:$0xe]  ;;  %v1189_v30 = vld [vmem:[#allocation2 + $0x34] sm:$0x1] }
  0x81   : > { %v2769_v33 = vcombine.low %v840_v52, %v854_v17  ;;  %v1226_v18 = vrot.slane %v1187_v19, 5  ;;  %v1190_v31 = vld [vmem:[#allocation2 + $0x38] sm:$0xe]  ;;  %v1191_v13 = vld [vmem:[#allocation2 + $0x3c] sm:$0x1]  ;;  %1260 = vst.msk [vmem:[#allocation4 + $0x8] sm:$0xff] %vm421_vm12, %v2798_v21 }
  0x82   : > { %966 = vrot.lane.b32.xlu1 %v2781_v55, %s3072_s30  ;;  %v1131_v9 = vrot.slane %v1130_v62, 4  ;;  %v1223_v35 = vsel %vm3311_vm8, %v2792_v20, %v1222_v22  ;;  %v2794_v25 = vrot.slane %v1188_v27, 9  ;;  %v1192_v36 = vld [vmem:[#allocation2 + $0x40] sm:$0xe]  ;;  %v1193_v37 = vld [vmem:[#allocation2 + $0x44] sm:$0x1] }
  0x83   : > { %873 = vrot.lane.b32.xlu0 %v2769_v33, %s3073_s13  ;;  %v1227_v24 = vsel %vm3311_vm8, %v2793_v23, %v1226_v18  ;;  %v1230_v39 = vrot.slane %v1189_v30, 5  ;;  %v2795_v40 = vrot.slane %v1190_v31, 9  ;;  %v1234_v41 = vrot.slane %v1191_v13, 5  ;;  %v1194_v42 = vld [vmem:[#allocation2 + $0x48] sm:$0xe]  ;;  %v2991_v13 = vld [vmem:[%s3915_s3] sm:$0xff]  }
  0x84   : > { %v1136_v28 = vsel %vm3365_vm11, %v1131_v9, %v1135_v63  ;;  %v2799_v38 = vcombine.low %v1223_v35, %v1227_v24  ;;  %v1195_v43 = vld [vmem:[#allocation2 + $0x4c] sm:$0x1]  ;;  %v2796_v44 = vrot.slane %v1192_v36, 9  ;;  %v1238_v45 = vrot.slane %v1193_v37, 5  ;;  %2578 = vmatpush1.bf16.msra.mxu1 %v2991_v13  ;;  %v3567_v35 = vld [vmem:[%s3914_s2] ss:$0 sm:$0xff] }
  0x85   : > { %v2789_v29 = vcombine.low %v1136_v28, %v1150_v10  ;;  %v2797_v46 = vrot.slane %v1194_v42, 9  ;;  %v1231_v47 = vsel %vm3311_vm8, %v2794_v25, %v1230_v39  ;;  %v1235_v48 = vsel %vm3311_vm8, %v2795_v40, %v1234_v41  ;;  %2579 = vmatprep.subr.bf16.mxu1 %v3068_v0  ;;  %v2252_v42 = vld [vmem:[#allocation3 + $0x48] sm:$0xf] }
  0x86   : > { %1261 = vst.msk [vmem:[#allocation4 + $0x18] sm:$0xff] %vm421_vm12, %v2799_v38  ;;  %v1242_v49 = vrot.slane %v1195_v43, 5  ;;  %v2800_v50 = vcombine.low %v1231_v47, %v1235_v48  ;;  %v1239_v51 = vsel %vm3311_vm8, %v2796_v44, %v1238_v45  ;;  %vm879_vm0 = vcmask 654848   ;;  %v1653_v38 = vld [vmem:[#allocation3] sm:$0xf] }
  0x87   : > { %1012 = vrot.lane.b32.xlu0 %v2969_v2, %s3069_s23  ;;  %1169 = vrot.lane.b32.xlu1 %v2789_v29, %s3075_s7  ;;  %vm972_vm1 = vcmask 786048   ;;  %vm1018_vm2 = vcmask 917248   ;;  %vm1175_vm3 = vcmask 1048448   ;;  %v2992_v29 = vld [vmem:[%s3915_s3 + $0x8] sm:$0xff]   ;;  %v1670_v45 = vshrl.u32 %v1653_v38, 16 }
  0x88   : > { %v1243_v52 = vsel %vm3311_vm8, %v2797_v46, %v1242_v49  ;;  %1262 = vst.msk [vmem:[#allocation4 + $0x28] sm:$0xff] %vm421_vm12, %v2800_v50  ;;  %v1265_v15 = vld [vmem:[#allocation4 + $0x8] sm:$0xff]  ;;  %2580 = vmatpush1.bf16.msra.mxu1 %v2992_v29  ;;  %v1673_v46 = vshll.u32 %v1653_v38, 16  ;;  %v2353_v47 = vshrl.u32 %v2252_v42, 16  ;;  %v2356_v48 = vshll.u32 %v2252_v42, 16 }
  0x89   : > { %v2801_v53 = vcombine.low %v1239_v51, %v1243_v52  ;;  %2812 = vmatprep.mubr.msk.bf16.mxu0 %vm421_vm12, %v1265_v15  ;;  %2581 = vmatprep.subr.bf16.mxu1 %v3068_v0  ;;  %v1569_v51 = vld [vmem:[#allocation3 + $0x8] sm:$0xf]  ;;  %v1572_v15 = vld [vmem:[#allocation3 + $0xc] sm:$0x1]  ;;  %vm2650_vm4 = vcmask 261120  }
  0x8b   : > { %1263 = vst.msk [vmem:[#allocation4 + $0x38] sm:$0xff] %vm421_vm12, %v2801_v53 }
  0x8d   : > { %v1267_v33 = vld [vmem:[#allocation4 + $0x18] sm:$0xff] }
  0x8f   : > { %v1269_v6 = vld [vmem:[#allocation4 + $0x28] sm:$0xff] }
  0x92   : > { %v1271_v22 = vld [vmem:[#allocation4 + $0x38] sm:$0xff] }
  0xa2   : > { %v1009_v54 = vpop.permute.xlu0 %1008 }
  0xa4   : > { %v711_v4 = vpop.permute.xlu1 %710 }
  0xa7   : > { %v715_v26 = vpop.permute.xlu0 %714 }
  0xa8   : > { %v1007_v55 = vpop.permute.xlu1 %1006 }
  0xab   : > { %v666_v56 = vpop.permute.xlu0 %665 }
  0xac   : > { %v713_v57 = vpop.permute.xlu1 %712 }
  0xaf   : > { %v961_v59 = vpop.permute.xlu0 %960 }
  0xb0   : > { %v963_v58 = vpop.permute.xlu1 %962 }
  0xb3   : > { %v668_v61 = vpop.permute.xlu0 %667 }
  0xb4   : > { %v670_v60 = vpop.permute.xlu1 %669 }
  0xba   : > { %v868_v7 = vpop.permute.xlu1 %867 }
  0xbd   : > { %v570_v17 = vpop.permute.xlu0 %569 }
  0xbe   : > { %582 = vst.msk [vmem:[#allocation4] sm:$0xff] %vm581_vm13, %v570_v17 }
  0xbf   : > { %678 = vst.msk [vmem:[#allocation4] sm:$0xff] %vm677_vm14, %v666_v56  ;;  %v1675_v56 = vrot.slane %v1673_v46, 5  ;;  %v1587_v46 = vld [vmem:[#allocation3 + $0x20] sm:$0xf] }
  0xc0   : > { %723 = vst.msk [vmem:[#allocation4] sm:$0xff] %vm722_vm15, %v711_v4  ;;  %v1672_v4 = vrot.slane %v1670_v45, 4 }
  0xc1   : > { %880 = vst.msk [vmem:[#allocation4] sm:$0xff] %vm879_vm0, %v868_v7  ;;  %v1575_v7 = vld [vmem:[#allocation3 + $0x10] sm:$0xf] }
  0xc2   : > { %v572_v62 = vpop.permute.xlu1 %571  ;;  %973 = vst.msk [vmem:[#allocation4] sm:$0xff] %vm972_vm1, %v961_v59 }
  0xc3   : > { %583 = vst.msk [vmem:[#allocation4 + $0x10] sm:$0xff] %vm581_vm13, %v572_v62 }
  0xc4   : > { %1019 = vst.msk [vmem:[#allocation4] sm:$0xff] %vm1018_vm2, %v1007_v55 }
  0xc5   : > { %679 = vst.msk [vmem:[#allocation4 + $0x10] sm:$0xff] %vm677_vm14, %v668_v61 }
  0xc6   : > { %724 = vst.msk [vmem:[#allocation4 + $0x10] sm:$0xff] %vm722_vm15, %v713_v57  ;;  %v2355_v57 = vrot.slane %v2353_v47, 4  ;;  %v1590_v47 = vld [vmem:[#allocation3 + $0x24] sm:$0x1] }
  0xc7   : > { %v1164_v63 = vpop.permute.xlu0 %1163 }
  0xc8   : > { %1176 = vst.msk [vmem:[#allocation4] sm:$0xff] %vm1175_vm3, %v1164_v63  ;;  %v1578_v63 = vld [vmem:[#allocation3 + $0x14] sm:$0x1] }
  0xcc   : > { %v870_v1 = vpop.permute.xlu0 %869 }
  0xcd   : > { %881 = vst.msk [vmem:[#allocation4 + $0x10] sm:$0xff] %vm879_vm0, %v870_v1 }
  0xce   : > { %974 = vst.msk [vmem:[#allocation4 + $0x10] sm:$0xff] %vm972_vm1, %v963_v58  ;;  %v2358_v58 = vrot.slane %v2356_v48, 5 }
  0xcf   : > { %1020 = vst.msk [vmem:[#allocation4 + $0x10] sm:$0xff] %vm1018_vm2, %v1009_v54  ;;  %v1264_v2 = vld [vmem:[#allocation4] sm:$0xff] }
  0xd0   : > { %1396 = vmatmul.mubr.bf16.vlgmr.msra.gmra.mrb[0].mxu0 %v1264_v2 }
  0xd1   : > { %v1166_v3 = vpop.permute.xlu1 %1165  ;;  %2813 = vmatprep.mubr.msk.bf16.mxu0 %vm421_vm12, %v1267_v33  ;;  %v1654_v33 = vld [vmem:[#allocation3 + $0x4] sm:$0x1] }
  0xd2   : > { %1177 = vst.msk [vmem:[#allocation4 + $0x10] sm:$0xff] %vm1175_vm3, %v1166_v3 }
  0xd5   : > { %v574_v5 = vpop.permute.xlu0 %573 }
  0xd6   : > { %584 = vst.msk [vmem:[#allocation4 + $0x20] sm:$0xff] %vm581_vm13, %v574_v5 }
  0xd7   : > { %680 = vst.msk [vmem:[#allocation4 + $0x20] sm:$0xff] %vm677_vm14, %v670_v60 }
  0xd8   : > { %725 = vst.msk [vmem:[#allocation4 + $0x20] sm:$0xff] %vm722_vm15, %v715_v26 }
  0xd9   : > { %v1266_v8 = vld [vmem:[#allocation4 + $0x10] sm:$0xff]  ;;  %v965_v10 = vpop.permute.xlu0 %964 }
  0xda   : > { %v872_v9 = vpop.permute.xlu1 %871  ;;  %1404 = vmatmul.mubr.bf16.gmra.mrb[4].mxu0 %v1266_v8 }
  0xdb   : > { %882 = vst.msk [vmem:[#allocation4 + $0x20] sm:$0xff] %vm879_vm0, %v872_v9  ;;  %2814 = vmatprep.mubr.msk.bf16.mxu0 %vm421_vm12, %v1269_v6 }
  0xdc   : > { %975 = vst.msk [vmem:[#allocation4 + $0x20] sm:$0xff] %vm972_vm1, %v965_v10 }
  0xdf   : > { %v1011_v11 = vpop.permute.xlu1 %1010 }
  0xe0   : > { %1021 = vst.msk [vmem:[#allocation4 + $0x20] sm:$0xff] %vm1018_vm2, %v1011_v11  ;;  %v1676_v11 = vor.u32 %v1675_v56, %v1672_v4  ;;  %v3600_v56 = vld [vmem:[#allocation3 + $0x48] sm:$0xe] }
  0xeb   : > { %v1168_v14 = vpop.permute.xlu0 %1167 }
  0xec   : > { %1178 = vst.msk [vmem:[#allocation4 + $0x20] sm:$0xff] %vm1175_vm3, %v1168_v14  ;;  %v576_v19 = vpop.permute.xlu1 %575  ;;  %v2993_v14 = vld [vmem:[%s3915_s3 + $0x10] sm:$0xff]  }
  0xed   : > { %585 = vst.msk [vmem:[#allocation4 + $0x30] sm:$0xff] %vm581_vm13, %v576_v19  ;;  %2582 = vmatpush1.bf16.msra.mxu1 %v2993_v14 }
  0xee   : > { %2583 = vmatprep.subr.bf16.mxu1 %v3068_v0 }
  0xef   : > { %v672_v20 = vpop.permute.xlu0 %671 }
  0xf0   : > { %681 = vst.msk [vmem:[#allocation4 + $0x30] sm:$0xff] %vm677_vm14, %v672_v20  ;;  %v717_v21 = vpop.permute.xlu1 %716 }
  0xf1   : > { %726 = vst.msk [vmem:[#allocation4 + $0x30] sm:$0xff] %vm722_vm15, %v717_v21  ;;  %v1809_v21 = vld [vmem:[#allocation3] sm:$0xe] }
  0xf3   : > { %v1268_v23 = vld [vmem:[#allocation4 + $0x20] sm:$0xff] }
  0xf4   : > { %v967_v18 = vpop.permute.xlu1 %966  ;;  %1412 = vmatmul.mubr.bf16.gmra.mrb[8].mxu0 %v1268_v23  ;;  %v1679_v23 = vshll.u32 %v1654_v33, 16 }
  0xf5   : > { %2815 = vmatprep.mubr.msk.bf16.mxu0 %vm421_vm12, %v1271_v22  ;;  %v874_v27 = vpop.permute.xlu0 %873  ;;  %v1810_v22 = vld [vmem:[#allocation3 + $0x4] sm:$0x1] }
  0xf6   : > { %883 = vst.msk [vmem:[#allocation4 + $0x30] sm:$0xff] %vm879_vm0, %v874_v27  ;;  %v3592_v38 = vrot.slane %v1679_v23, 5 }
  0xf7   : > { %976 = vst.msk [vmem:[#allocation4 + $0x30] sm:$0xff] %vm972_vm1, %v967_v18  ;;  %v2359_v18 = vor.u32 %v2358_v58, %v2355_v57 }
  0xf9   : > { %v1013_v28 = vpop.permute.xlu0 %1012  ;;  %v1170_v30 = vpop.permute.xlu1 %1169 }
  0xfa   : > { %1022 = vst.msk [vmem:[#allocation4 + $0x30] sm:$0xff] %vm1018_vm2, %v1013_v28 }
  0xfb   : > { %1179 = vst.msk [vmem:[#allocation4 + $0x30] sm:$0xff] %vm1175_vm3, %v1170_v30  ;;  %v3584_v30 = vld [vmem:[#allocation3 + $0x4c] sm:$0x1] }
 0x102   : > { %v1270_v31 = vld [vmem:[#allocation4 + $0x30] sm:$0xff] }
 0x103   : > { %1420 = vmatmul.mubr.bf16.gmra.mrb[12].mxu0 %v1270_v31  ;;  %v2994_v31 = vld [vmem:[%s3915_s3 + $0x18] sm:$0xff]  }
 0x104   : > { %2584 = vmatpush1.bf16.msra.mxu1 %v2994_v31 }
 0x105   : > { %2585 = vmatprep.subr.bf16.mxu1 %v3068_v0 }
 0x1a3   : > { %v1397_v24 = vpop.f32.mrb[0].mxu0 }
 0x1a4   : > { %v1398_v25 = vadd.f32 %v3567_v35, %v1397_v24  ;;  %v1399_v36 = vpop.f32.mrb[1].mxu0  ;;  %v2832_v24 = vrot.slane %v1809_v21, 9 }
 0x1a5   : > { %v1400_v37 = vpop.f32.mrb[2].mxu0  ;;  %v1581_v36 = vld [vmem:[#allocation3 + $0x18] sm:$0xf] }
 0x1a6   : > { %v1428_v39 = vmax.f32 %v1398_v25, 0.0  ;;  %v1401_v40 = vadd.f32 %v3567_v35, %v1400_v37  ;;  %v1402_v41 = vpop.f32.mrb[3].mxu0  ;;  %v1843_v25 = vrot.slane %v1810_v22, 5  ;;  %v3590_v37 = vrot.slane %v1676_v11, 4 }
 0x1a8   : > { %v2904_v43 = vpack.c.bf16 %v1428_v39, %v1428_v39  ;;  %v1429_v44 = vmax.f32 %v1401_v40, 0.0  ;;  %v3594_v39 = vrot.slane %v2359_v18, 4  ;;  %v2362_v40 = vshll.u32 %v3584_v30, 16 }
 0x1a9   : > { %v1844_v4 = vsel %vm3311_vm8, %v2832_v24, %v1843_v25  ;;  %v2997_v24 = vld [vmem:[%s3915_s3 + $0x28] sm:$0xff]  }
 0x1aa   : > { %v1489_v49 = vshrl.u32 %v2904_v43, 16  ;;  %v2905_v50 = vpack.c.bf16 %v1429_v44, %v1429_v44  ;;  %v1492_v53 = vshll.u32 %v2904_v43, 16  ;;  %v1584_v43 = vld [vmem:[#allocation3 + $0x1c] sm:$0x1] }
 0x1ac   : > { %v1491_v52 = vrot.slane %v1489_v49, 7  ;;  %v1497_v54 = vshrl.u32 %v2905_v50, 16  ;;  %v1500_v26 = vshll.u32 %v2905_v50, 16 }
 0x1ad   : > { %v1405_v55 = vpop.f32.mrb[4].mxu0 }
 0x1ae   : > { %v1494_v59 = vor.u32 %v1492_v53, %v1491_v52  ;;  %v1495_v60 = vrot.slane %v1491_v52, 4  ;;  %v1499_v61 = vrot.slane %v1497_v54, 7  ;;  %v1406_v17 = vadd.f32 %v3567_v35, %v1405_v55  ;;  %v1407_v62 = vpop.f32.mrb[5].mxu0 }
 0x1af   : > { %v1408_v1 = vpop.f32.mrb[6].mxu0 }
 0x1b0   : > { %v1570_v2 = vsel %vm3260_vm6, %v1494_v59, %v1569_v51  ;;  %v1573_v3 = vsel %vm3270_vm7, %v1495_v60, %v1572_v15  ;;  %v1502_v5 = vor.u32 %v1500_v26, %v1499_v61  ;;  %v1503_v6 = vrot.slane %v1499_v61, 4  ;;  %v1410_v8 = vpop.f32.mrb[7].mxu0 }
 0x1b1   : > { %1571 = vst [vmem:[#allocation3 + $0x8] sm:$0xf] %v1570_v2  ;;  %1574 = vst [vmem:[#allocation3 + $0xc] sm:$0x1] %v1573_v3  ;;  %v1430_v9 = vmax.f32 %v1406_v17, 0.0  ;;  %v1409_v10 = vadd.f32 %v3567_v35, %v1408_v1 }
 0x1b2   : > { %v1576_v19 = vsel %vm3260_vm6, %v1502_v5, %v1575_v7  ;;  %v1579_v20 = vsel %vm3270_vm7, %v1503_v6, %v1578_v63  ;;  %v3606_v17 = vld [vmem:[#allocation3 + $0x4c] sm:$0x1] }
 0x1b3   : > { %1577 = vst [vmem:[#allocation3 + $0x10] sm:$0xf] %v1576_v19  ;;  %1580 = vst [vmem:[#allocation3 + $0x14] sm:$0x1] %v1579_v20  ;;  %v2906_v27 = vpack.c.bf16 %v1430_v9, %v1430_v9  ;;  %v1431_v28 = vmax.f32 %v1409_v10, 0.0  ;;  %v2996_v20 = vld [vmem:[%s3915_s3 + $0x20] sm:$0xff]  }
 0x1b4   : > { %2586 = vmatpush1.bf16.msra.mxu1 %v2996_v20  ;;  %v2456_v25 = vrot.slane %v3606_v17, 5 }
 0x1b5   : > { %v1505_v13 = vshrl.u32 %v2906_v27, 16  ;;  %v2907_v29 = vpack.c.bf16 %v1431_v28, %v1431_v28  ;;  %v1508_v42 = vshll.u32 %v2906_v27, 16  ;;  %v3623_v27 = vrot.slane %v2362_v40, 5  ;;  %2587 = vmatprep.subr.bf16.mxu1 %v3068_v0 }
 0x1b6   : > { %v2879_v28 = vrot.slane %v3600_v56, 9 }
 0x1b7   : > { %v1507_v41 = vrot.slane %v1505_v13, 7  ;;  %v1513_v44 = vshrl.u32 %v2907_v29, 16  ;;  %v1516_v45 = vshll.u32 %v2907_v29, 16 }
 0x1b8   : > { %v1811_v48 = vld [vmem:[#allocation3 + $0x8] sm:$0xe]  ;;  %v1812_v49 = vld [vmem:[#allocation3 + $0xc] sm:$0x1]  ;;  %2588 = vmatpush1.bf16.msra.mxu1 %v2997_v24 }
 0x1b9   : > { %v1510_v50 = vor.u32 %v1508_v42, %v1507_v41  ;;  %v1511_v51 = vrot.slane %v1507_v41, 4  ;;  %v1515_v52 = vrot.slane %v1513_v44, 7  ;;  %v2833_v53 = vrot.slane %v1811_v48, 9  ;;  %v2101_v15 = vld [vmem:[#allocation3 + $0x8] sm:$0xe]  ;;  %2589 = vmatprep.subr.bf16.mxu1 %v3068_v0 }
 0x1ba   : > { %v2983_v54 = vld [vmem:[#allocation3 + $0x8] ss:$8 sps:$4 sm:$0xff]   ;;  %v1847_v26 = vrot.slane %v1812_v49, 5  ;;  %v2852_v55 = vrot.slane %v2101_v15, 9  ;;  %v2102_v61 = vld [vmem:[#allocation3 + $0xc] sm:$0x1] }
 0x1bb   : > { %v1582_v57 = vsel %vm3260_vm6, %v1510_v50, %v1581_v36  ;;  %v1585_v58 = vsel %vm3270_vm7, %v1511_v51, %v1584_v43  ;;  %v1518_v59 = vor.u32 %v1516_v45, %v1515_v52  ;;  %v1519_v60 = vrot.slane %v1515_v52, 4  ;;  %v2103_v7 = vld [vmem:[#allocation3 + $0x10] sm:$0xe]  ;;  %1929 = vrot.lane.b32.xlu0 %v2983_v54, %s3070_s25  ;;  %v2104_v63 = vld [vmem:[#allocation3 + $0x14] sm:$0x1] }
 0x1bc   : > { %1583 = vst [vmem:[#allocation3 + $0x18] sm:$0xf] %v1582_v57  ;;  %1586 = vst [vmem:[#allocation3 + $0x1c] sm:$0x1] %v1585_v58  ;;  %v1848_v62 = vsel %vm3311_vm8, %v2833_v53, %v1847_v26  ;;  %v2135_v1 = vrot.slane %v2102_v61, 5  ;;  %v2853_v33 = vrot.slane %v2103_v7, 9  ;;  %v1682_v51 = vsel %vm3365_vm11, %v3590_v37, %v3592_v38 }
 0x1bd   : > { %v1588_v2 = vsel %vm3260_vm6, %v1518_v59, %v1587_v46  ;;  %v1591_v3 = vsel %vm3270_vm7, %v1519_v60, %v1590_v47  ;;  %v2840_v5 = vcombine.low %v1844_v4, %v1848_v62  ;;  %v2139_v6 = vrot.slane %v2104_v63, 5  ;;  %v1655_v8 = vld [vmem:[#allocation3 + $0x8] sm:$0xf]  ;;  %v1656_v9 = vld [vmem:[#allocation3 + $0xc] sm:$0x1] }
 0x1be   : > { %1589 = vst [vmem:[#allocation3 + $0x20] sm:$0xf] %v1588_v2  ;;  %1592 = vst [vmem:[#allocation3 + $0x24] sm:$0x1] %v1591_v3  ;;  %v1684_v10 = vshrl.u32 %v1655_v8, 16  ;;  %v1687_v11 = vshll.u32 %v1655_v8, 16  ;;  %v2136_v21 = vsel %vm3311_vm8, %v2852_v55, %v2135_v1 }
 0x1bf   : > { %v1693_v14 = vshll.u32 %v1656_v9, 16  ;;  %v1813_v19 = vld [vmem:[#allocation3 + $0x10] sm:$0xe]  ;;  %1885 = vrot.lane.b32.xlu1 %v2840_v5, %s3071_s26  ;;  %v2140_v22 = vsel %vm3311_vm8, %v2853_v33, %v2139_v6  ;;  %v1814_v23 = vld [vmem:[#allocation3 + $0x14] sm:$0x1] }
 0x1c0   : > { %v1945_v18 = vld [vmem:[#allocation3 + $0x8] sm:$0xf]  ;;  %v2860_v30 = vcombine.low %v2136_v21, %v2140_v22  ;;  %v1686_v31 = vrot.slane %v1684_v10, 4  ;;  %v1689_v13 = vrot.slane %v1687_v11, 5  ;;  %v1946_v29 = vld [vmem:[#allocation3 + $0xc] sm:$0x1] }
 0x1c1   : > { %v1695_v36 = vrot.slane %v1693_v14, 5  ;;  %v2834_v41 = vrot.slane %v1813_v19, 9  ;;  %v1851_v42 = vrot.slane %v1814_v23, 5  ;;  %v1947_v43 = vld [vmem:[#allocation3 + $0x10] sm:$0xf]  ;;  %v1962_v44 = vshrl.u32 %v1945_v18, 16 }
 0x1c2   : > { %2177 = vrot.lane.b32.xlu0 %v2860_v30, %s3072_s30  ;;  %v1690_v40 = vor.u32 %v1689_v13, %v1686_v31  ;;  %v1965_v45 = vshll.u32 %v1945_v18, 16  ;;  %v1971_v46 = vshll.u32 %v1946_v29, 16  ;;  %v1976_v47 = vshrl.u32 %v1947_v43, 16  ;;  %v1948_v49 = vld [vmem:[#allocation3 + $0x14] sm:$0x1] }
 0x1c3   : > { %v2984_v48 = vld [vmem:[#allocation3 + $0x10] ss:$8 sps:$4 sm:$0xff]   ;;  %v1816_v15 = vld [vmem:[#allocation3 + $0x1c] sm:$0x1]  ;;  %v1964_v54 = vrot.slane %v1962_v44, 4  ;;  %v1852_v59 = vsel %vm3311_vm8, %v2834_v41, %v1851_v42  ;;  %v1979_v63 = vshll.u32 %v1947_v43, 16 }
 0x1c4   : > { %v2394_v50 = vld [vmem:[#allocation3 + $0x10] sm:$0xe]  ;;  %v1691_v52 = vrot.slane %v1690_v40, 4  ;;  %v1815_v53 = vld [vmem:[#allocation3 + $0x18] sm:$0xe]  ;;  %2222 = vrot.lane.b32.xlu1 %v2984_v48, %s3069_s23  ;;  %v1855_v55 = vrot.slane %v1816_v15, 5 }
 0x1c5   : > { %v2985_v4 = vld [vmem:[#allocation3 + $0x18] ss:$8 sps:$4 sm:$0xff]   ;;  %v2835_v26 = vrot.slane %v1815_v53, 9  ;;  %v1967_v37 = vrot.slane %v1965_v45, 5  ;;  %v1978_v38 = vrot.slane %v1976_v47, 4  ;;  %v1973_v5 = vrot.slane %v1971_v46, 5 }
 0x1c6   : > { %v1696_v58 = vsel %vm3365_vm11, %v1691_v52, %v1695_v36  ;;  %v2395_v1 = vld [vmem:[#allocation3 + $0x14] sm:$0x1]  ;;  %v2396_v33 = vld [vmem:[#allocation3 + $0x18] sm:$0xe]  ;;  %v1985_v6 = vshll.u32 %v1948_v49, 16  ;;  %v2872_v9 = vrot.slane %v2394_v50, 9 }
 0x1c7   : > { %v1413_v57 = vpop.f32.mrb[8].mxu0  ;;  %v2828_v7 = vcombine.low %v1682_v51, %v1696_v58  ;;  %v1856_v62 = vsel %vm3311_vm8, %v2835_v26, %v1855_v55  ;;  %v1968_v3 = vor.u32 %v1967_v37, %v1964_v54  ;;  %v2397_v8 = vld [vmem:[#allocation3 + $0x1c] sm:$0x1]  ;;  %v1981_v19 = vrot.slane %v1979_v63, 5  ;;  %v2105_v21 = vld [vmem:[#allocation3 + $0x18] sm:$0xe] }
 0x1c8   : > { %v1414_v60 = vadd.f32 %v3567_v35, %v1413_v57  ;;  %v1415_v61 = vpop.f32.mrb[9].mxu0  ;;  %1931 = vrot.lane.b32.xlu1 %v2985_v4, %s3070_s25  ;;  %v2428_v20 = vrot.slane %v2395_v1, 5  ;;  %v2841_v22 = vcombine.low %v1852_v59, %v1856_v62  ;;  %v2873_v18 = vrot.slane %v2396_v33, 9  ;;  %v2106_v31 = vld [vmem:[#allocation3 + $0x1c] sm:$0x1]  ;;  %v2998_v37 = vld [vmem:[%s3915_s3 + $0x30] sm:$0xff]  }
 0x1c9   : > { %v1416_v2 = vpop.f32.mrb[10].mxu0  ;;  %1793 = vrot.lane.b32.xlu0 %v2828_v7, %s3074_s16  ;;  %v1969_v23 = vrot.slane %v1968_v3, 4  ;;  %v2432_v30 = vrot.slane %v2397_v8, 5  ;;  %v1982_v24 = vor.u32 %v1981_v19, %v1978_v38  ;;  %v1987_v36 = vrot.slane %v1985_v6, 5  ;;  %v2107_v41 = vld [vmem:[#allocation3 + $0x20] sm:$0xe]  ;;  %2590 = vmatpush1.bf16.msra.mxu1 %v2998_v37 }
 0x1ca   : > { %v1432_v10 = vmax.f32 %v1414_v60, 0.0  ;;  %v1417_v11 = vadd.f32 %v3567_v35, %v1416_v2  ;;  %v1418_v14 = vpop.f32.mrb[11].mxu0  ;;  %v2108_v42 = vld [vmem:[#allocation3 + $0x24] sm:$0x1]  ;;  %v2429_v43 = vsel %vm3311_vm8, %v2872_v9, %v2428_v20  ;;  %v2854_v40 = vrot.slane %v2105_v21, 9  ;;  %2591 = vmatprep.subr.bf16.mxu1 %v3068_v0 }
 0x1cb   : > { %v2433_v44 = vsel %vm3311_vm8, %v2873_v18, %v2432_v30  ;;  %v2143_v45 = vrot.slane %v2106_v31, 5  ;;  %v1983_v49 = vrot.slane %v1982_v24, 4  ;;  %v2238_v50 = vld [vmem:[#allocation3 + $0x10] sm:$0xf]  ;;  %v1593_v51 = vld [vmem:[#allocation3 + $0x28] sm:$0xf]  ;;  %v1974_v52 = vsel %vm3365_vm11, %v1969_v23, %v1973_v5 }
 0x1cc   : > { %v2908_v13 = vpack.c.bf16 %v1432_v10, %v1432_v10  ;;  %v1433_v29 = vmax.f32 %v1417_v11, 0.0  ;;  %v2880_v53 = vcombine.low %v2429_v43, %v2433_v44  ;;  %v2855_v15 = vrot.slane %v2107_v41, 9  ;;  %v2239_v4 = vld [vmem:[#allocation3 + $0x14] sm:$0x1]  ;;  %v2240_v59 = vld [vmem:[#allocation3 + $0x18] sm:$0xf] }
 0x1cd   : > { %1887 = vrot.lane.b32.xlu0 %v2841_v22, %s3071_s26  ;;  %v2147_v54 = vrot.slane %v2108_v42, 5  ;;  %v1988_v58 = vsel %vm3365_vm11, %v1983_v49, %v1987_v36  ;;  %v1596_v38 = vld [vmem:[#allocation3 + $0x2c] sm:$0x1]  ;;  %v1599_v60 = vld [vmem:[#allocation3 + $0x30] sm:$0xf]  ;;  %v2144_v7 = vsel %vm3311_vm8, %v2854_v40, %v2143_v45  ;;  %v2255_v62 = vshrl.u32 %v2238_v50, 16 }
 0x1ce   : > { %v1521_v46 = vshrl.u32 %v2908_v13, 16  ;;  %v1524_v47 = vshll.u32 %v2908_v13, 16  ;;  %v2909_v48 = vpack.c.bf16 %v1433_v29, %v1433_v29  ;;  %v2848_v61 = vcombine.low %v1974_v52, %v1988_v58  ;;  %2474 = vst.msk [vmem:[#allocation5 + $0x8] sm:$0xff] %vm421_vm12, %v2880_v53  ;;  %v1602_v3 = vld [vmem:[#allocation3 + $0x34] sm:$0x1]  ;;  %v2999_v24 = vld [vmem:[%s3915_s3 + $0x38] sm:$0xff]  }
 0x1cf   : > { %v2258_v63 = vshll.u32 %v2238_v50, 16  ;;  %v2148_v5 = vsel %vm3311_vm8, %v2855_v15, %v2147_v54  ;;  %v2241_v6 = vld [vmem:[#allocation3 + $0x1c] sm:$0x1]  ;;  %v2257_v8 = vrot.slane %v2255_v62, 4  ;;  %v2264_v10 = vshll.u32 %v2239_v4, 16  ;;  %2592 = vmatpush1.bf16.msra.mxu1 %v2999_v24 }
 0x1d0   : > { %v1523_v26 = vrot.slane %v1521_v46, 7  ;;  %v1529_v55 = vshrl.u32 %v2909_v48, 16  ;;  %v1532_v57 = vshll.u32 %v2909_v48, 16  ;;  %2085 = vrot.lane.b32.xlu1 %v2848_v61, %s3073_s13  ;;  %v2269_v11 = vshrl.u32 %v2240_v59, 16  ;;  %v1657_v14 = vld [vmem:[#allocation3 + $0x10] sm:$0xf]  ;;  %2593 = vmatprep.subr.bf16.mxu1 %v3068_v0 }
 0x1d1   : > { %v2260_v9 = vrot.slane %v2258_v63, 5  ;;  %v1658_v23 = vld [vmem:[#allocation3 + $0x14] sm:$0x1]  ;;  %v2861_v18 = vcombine.low %v2144_v7, %v2148_v5  ;;  %v2272_v13 = vshll.u32 %v2240_v59, 16  ;;  %v1659_v29 = vld [vmem:[#allocation3 + $0x18] sm:$0xf] }
 0x1d2   : > { %v1526_v1 = vor.u32 %v1524_v47, %v1523_v26  ;;  %v1527_v33 = vrot.slane %v1523_v26, 4  ;;  %v1531_v2 = vrot.slane %v1529_v55, 7  ;;  %v2271_v31 = vrot.slane %v2269_v11, 4  ;;  %v1660_v45 = vld [vmem:[#allocation3 + $0x1c] sm:$0x1] }
 0x1d3   : > { %v2261_v30 = vor.u32 %v2260_v9, %v2257_v8  ;;  %v2278_v42 = vshll.u32 %v2241_v6, 16  ;;  %v1698_v43 = vshrl.u32 %v1657_v14, 16  ;;  %v2274_v40 = vrot.slane %v2272_v13, 5  ;;  %v1818_v61 = vld [vmem:[#allocation3 + $0x24] sm:$0x1] }
 0x1d4   : > { %v1594_v19 = vsel %vm3260_vm6, %v1526_v1, %v1593_v51  ;;  %v1597_v20 = vsel %vm3270_vm7, %v1527_v33, %v1596_v38  ;;  %v1534_v21 = vor.u32 %v1532_v57, %v1531_v2  ;;  %v1535_v22 = vrot.slane %v1531_v2, 4  ;;  %2179 = vrot.lane.b32.xlu1 %v2861_v18, %s3072_s30  ;;  %v1817_v57 = vld [vmem:[#allocation3 + $0x20] sm:$0xe]  ;;  %v1949_v5 = vld [vmem:[#allocation3 + $0x18] sm:$0xf] }
 0x1d5   : > { %1595 = vst [vmem:[#allocation3 + $0x28] sm:$0xf] %v1594_v19  ;;  %1598 = vst [vmem:[#allocation3 + $0x2c] sm:$0x1] %v1597_v20  ;;  %v1701_v46 = vshll.u32 %v1657_v14, 16  ;;  %v1707_v47 = vshll.u32 %v1658_v23, 16  ;;  %v2275_v4 = vor.u32 %v2274_v40, %v2271_v31  ;;  %v2365_v6 = vsel %vm3365_vm11, %v3594_v39, %v3623_v27 }
 0x1d6   : > { %v1600_v36 = vsel %vm3260_vm6, %v1534_v21, %v1599_v60  ;;  %v1603_v41 = vsel %vm3270_vm7, %v1535_v22, %v1602_v3  ;;  %v1421_v44 = vpop.f32.mrb[12].mxu0  ;;  %v2479_v50 = vld [vmem:[#allocation5 + $0x8] sm:$0xff]  ;;  %v2266_v51 = vrot.slane %v2264_v10, 5  ;;  %v1700_v52 = vrot.slane %v1698_v43, 4  ;;  %v1611_v43 = vld [vmem:[#allocation3 + $0x40] sm:$0xf] }
 0x1d7   : > { %1601 = vst [vmem:[#allocation3 + $0x30] sm:$0xf] %v1600_v36  ;;  %1604 = vst [vmem:[#allocation3 + $0x34] sm:$0x1] %v1603_v41  ;;  %v1422_v48 = vadd.f32 %v3567_v35, %v1421_v44  ;;  %v1423_v49 = vpop.f32.mrb[13].mxu0  ;;  %v1712_v53 = vshrl.u32 %v1659_v29, 16  ;;  %2894 = vmatprep.mubr.msk.bf16.mxu1 %vm421_vm12, %v2479_v50 }
 0x1d8   : > { %v1424_v15 = vpop.f32.mrb[14].mxu0  ;;  %v2262_v54 = vrot.slane %v2261_v30, 4  ;;  %v2280_v26 = vrot.slane %v2278_v42, 5  ;;  %v1703_v55 = vrot.slane %v1701_v46, 5  ;;  %v3683_v38 = vrot.slane %v1707_v47, 5  ;;  %v3001_v47 = vld [vmem:[%s3915_s3 + $0x40] sm:$0xff]  }
 0x1d9   : > { %v1434_v58 = vmax.f32 %v1422_v48, 0.0  ;;  %v1425_v59 = vadd.f32 %v3567_v35, %v1424_v15  ;;  %v1426_v37 = vpop.f32.mrb[15].mxu0  ;;  %v1715_v60 = vshll.u32 %v1659_v29, 16  ;;  %v2276_v7 = vrot.slane %v2275_v4, 4  ;;  %v1605_v22 = vld [vmem:[#allocation3 + $0x38] sm:$0xf]  ;;  %2594 = vmatpush1.bf16.msra.mxu1 %v3001_v47 }
 0x1da   : > { %v1704_v62 = vor.u32 %v1703_v55, %v1700_v52  ;;  %v1714_v63 = vrot.slane %v1712_v53, 4  ;;  %v1721_v0 = vshll.u32 %v1660_v45, 16  ;;  %v2267_v35 = vsel %vm3365_vm11, %v2262_v54, %v2266_v51  ;;  %v1608_v24 = vld [vmem:[#allocation3 + $0x3c] sm:$0x1]  ;;  %v1951_v53 = vld [vmem:[#allocation3 + $0x20] sm:$0xf] }
 0x1db   : > { %v2910_v1 = vpack.c.bf16 %v1434_v58, %v1434_v58  ;;  %v1435_v33 = vmax.f32 %v1425_v59, 0.0  ;;  %v1717_v3 = vrot.slane %v1715_v60, 5  ;;  %v2281_v8 = vsel %vm3365_vm11, %v2276_v7, %v2280_v26  ;;  %v1950_v52 = vld [vmem:[#allocation3 + $0x1c] sm:$0x1]  ;;  %v1614_v15 = vld [vmem:[#allocation3 + $0x44] sm:$0x1] }
 0x1dc   : > { %v2986_v2 = vld [vmem:[#allocation3 + $0x20] ss:$8 sps:$4 sm:$0xff]   ;;  %v1705_v9 = vrot.slane %v1704_v62, 4  ;;  %v2836_v11 = vrot.slane %v1817_v57, 9  ;;  %v1723_v21 = vrot.slane %v1721_v0, 5  ;;  %v2868_v23 = vcombine.low %v2267_v35, %v2281_v8 }
 0x1dd   : > { %v1819_v10 = vld [vmem:[#allocation3 + $0x28] sm:$0xe]  ;;  %v1537_v14 = vshrl.u32 %v2910_v1, 16  ;;  %v1540_v19 = vshll.u32 %v2910_v1, 16  ;;  %v2911_v20 = vpack.c.bf16 %v1435_v33, %v1435_v33  ;;  %2224 = vrot.lane.b32.xlu0 %v2986_v2, %s3069_s23  ;;  %v1718_v18 = vor.u32 %v1717_v3, %v1714_v63  ;;  %v1820_v30 = vld [vmem:[#allocation3 + $0x2c] sm:$0x1] }
 0x1de   : > { %v1859_v31 = vrot.slane %v1818_v61, 5  ;;  %v2837_v13 = vrot.slane %v1819_v10, 9  ;;  %v1863_v42 = vrot.slane %v1820_v30, 5  ;;  %v1710_v44 = vsel %vm3365_vm11, %v1705_v9, %v3683_v38  ;;  %v1952_v26 = vld [vmem:[#allocation3 + $0x24] sm:$0x1] }
 0x1df   : > { %v1539_v29 = vrot.slane %v1537_v14, 7  ;;  %v1545_v36 = vshrl.u32 %v2911_v20, 16  ;;  %v1548_v41 = vshll.u32 %v2911_v20, 16  ;;  %v1719_v40 = vrot.slane %v1718_v18, 4  ;;  %v2987_v60 = vld [vmem:[#allocation3 + $0x28] ss:$8 sps:$4 sm:$0xff]  }
 0x1e0   : > { %v1990_v45 = vshrl.u32 %v1949_v5, 16  ;;  %v1993_v46 = vshll.u32 %v1949_v5, 16  ;;  %v1860_v51 = vsel %vm3311_vm8, %v2836_v11, %v1859_v31  ;;  %v1864_v4 = vsel %vm3311_vm8, %v2837_v13, %v1863_v42  ;;  %v2109_v61 = vld [vmem:[#allocation3 + $0x28] sm:$0xe]  ;;  %v2242_v7 = vld [vmem:[#allocation3 + $0x20] sm:$0xf] }
 0x1e1   : > { %v1542_v48 = vor.u32 %v1540_v19, %v1539_v29  ;;  %v1543_v49 = vrot.slane %v1539_v29, 4  ;;  %v1547_v50 = vrot.slane %v1545_v36, 7  ;;  %2378 = vrot.lane.b32.xlu0 %v2868_v23, %s3075_s7  ;;  %v1724_v54 = vsel %vm3365_vm11, %v1719_v40, %v1723_v21  ;;  %v2110_v33 = vld [vmem:[#allocation3 + $0x2c] sm:$0x1]  ;;  %v2111_v2 = vld [vmem:[#allocation3 + $0x30] sm:$0xe] }
 0x1e2   : > { %v1992_v55 = vrot.slane %v1990_v45, 4  ;;  %v1995_v57 = vrot.slane %v1993_v46, 5  ;;  %v2829_v62 = vcombine.low %v1710_v44, %v1724_v54  ;;  %v1999_v0 = vshll.u32 %v1950_v52, 16  ;;  %v2112_v9 = vld [vmem:[#allocation3 + $0x34] sm:$0x1] }
 0x1e3   : > { %v1606_v58 = vsel %vm3260_vm6, %v1542_v48, %v1605_v22  ;;  %v1609_v59 = vsel %vm3270_vm7, %v1543_v49, %v1608_v24  ;;  %v1550_v37 = vor.u32 %v1548_v41, %v1547_v50  ;;  %v1551_v38 = vrot.slane %v1547_v50, 4  ;;  %v2243_v10 = vld [vmem:[#allocation3 + $0x24] sm:$0x1]  ;;  %v2244_v21 = vld [vmem:[#allocation3 + $0x28] sm:$0xf] }
 0x1e4   : > { %1607 = vst [vmem:[#allocation3 + $0x38] sm:$0xf] %v1606_v58  ;;  %1610 = vst [vmem:[#allocation3 + $0x3c] sm:$0x1] %v1609_v59  ;;  %v1996_v63 = vor.u32 %v1995_v57, %v1992_v55  ;;  %v2004_v1 = vshrl.u32 %v1951_v53, 16  ;;  %v2007_v35 = vshll.u32 %v1951_v53, 16  ;;  %1795 = vrot.lane.b32.xlu1 %v2829_v62, %s3074_s16  ;;  %v2842_v11 = vcombine.low %v1860_v51, %v1864_v4 }
 0x1e5   : > { %v1612_v3 = vsel %vm3260_vm6, %v1550_v37, %v1611_v43  ;;  %v1615_v5 = vsel %vm3270_vm7, %v1551_v38, %v1614_v15  ;;  %1933 = vrot.lane.b32.xlu0 %v2987_v60, %s3070_s25  ;;  %v2013_v8 = vshll.u32 %v1952_v26, 16  ;;  %v2856_v20 = vrot.slane %v2109_v61, 9  ;;  %v1661_v29 = vld [vmem:[#allocation3 + $0x20] sm:$0xf]  ;;  %v2245_v41 = vld [vmem:[#allocation3 + $0x2c] sm:$0x1] }
 0x1e6   : > { %1613 = vst [vmem:[#allocation3 + $0x40] sm:$0xf] %v1612_v3  ;;  %1616 = vst [vmem:[#allocation3 + $0x44] sm:$0x1] %v1615_v5  ;;  %v1997_v14 = vrot.slane %v1996_v63, 4  ;;  %v2006_v19 = vrot.slane %v2004_v1, 4 }
 0x1e7   : > { %v2001_v16 = vrot.slane %v1999_v0, 5  ;;  %v2009_v22 = vrot.slane %v2007_v35, 5  ;;  %v2151_v23 = vrot.slane %v2110_v33, 5  ;;  %v2857_v32 = vrot.slane %v2111_v2, 9  ;;  %v1662_v44 = vld [vmem:[#allocation3 + $0x24] sm:$0x1] }
 0x1e8   : > { %v2015_v18 = vrot.slane %v2013_v8, 5  ;;  %v2155_v30 = vrot.slane %v2112_v9, 5  ;;  %v2283_v31 = vshrl.u32 %v2242_v7, 16  ;;  %v2286_v13 = vshll.u32 %v2242_v7, 16  ;;  %1889 = vrot.lane.b32.xlu1 %v2842_v11, %s3071_s26  ;;  %v1663_v48 = vld [vmem:[#allocation3 + $0x28] sm:$0xf] }
 0x1e9   : > { %v2010_v24 = vor.u32 %v2009_v22, %v2006_v19  ;;  %v2152_v36 = vsel %vm3311_vm8, %v2856_v20, %v2151_v23  ;;  %v2292_v42 = vshll.u32 %v2243_v10, 16  ;;  %v2297_v43 = vshrl.u32 %v2244_v21, 16  ;;  %v1664_v15 = vld [vmem:[#allocation3 + $0x2c] sm:$0x1]  ;;  %v1821_v62 = vld [vmem:[#allocation3 + $0x30] sm:$0xe] }
 0x1ea   : > { %v2156_v40 = vsel %vm3311_vm8, %v2857_v32, %v2155_v30  ;;  %v2285_v45 = vrot.slane %v2283_v31, 4  ;;  %v2288_v46 = vrot.slane %v2286_v13, 5  ;;  %v2300_v47 = vshll.u32 %v2244_v21, 16  ;;  %v1822_v63 = vld [vmem:[#allocation3 + $0x34] sm:$0x1] }
 0x1eb   : > { %v2002_v49 = vsel %vm3365_vm11, %v1997_v14, %v2001_v16  ;;  %v2011_v50 = vrot.slane %v2010_v24, 4  ;;  %v2988_v51 = vld [vmem:[#allocation3 + $0x30] ss:$8 sps:$4 sm:$0xff]   ;;  %v2862_v52 = vcombine.low %v2152_v36, %v2156_v40  ;;  %v2294_v53 = vrot.slane %v2292_v42, 5  ;;  %v1953_v5 = vld [vmem:[#allocation3 + $0x28] sm:$0xf] }
 0x1ec   : > { %v2289_v54 = vor.u32 %v2288_v46, %v2285_v45  ;;  %v2299_v4 = vrot.slane %v2297_v43, 4  ;;  %v2302_v26 = vrot.slane %v2300_v47, 5  ;;  %v2306_v55 = vshll.u32 %v2245_v41, 16  ;;  %2226 = vrot.lane.b32.xlu1 %v2988_v51, %s3069_s23  ;;  %v1823_v3 = vld [vmem:[#allocation3 + $0x38] sm:$0xe] }
 0x1ed   : > { %v2016_v57 = vsel %vm3365_vm11, %v2011_v50, %v2015_v18  ;;  %v1726_v58 = vshrl.u32 %v1661_v29, 16  ;;  %v1729_v59 = vshll.u32 %v1661_v29, 16  ;;  %v1735_v37 = vshll.u32 %v1662_v44, 16  ;;  %v1824_v11 = vld [vmem:[#allocation3 + $0x3c] sm:$0x1] }
 0x1ee   : > { %v2849_v38 = vcombine.low %v2002_v49, %v2016_v57  ;;  %v2290_v60 = vrot.slane %v2289_v54, 4  ;;  %v2303_v61 = vor.u32 %v2302_v26, %v2299_v4  ;;  %v2308_v7 = vrot.slane %v2306_v55, 5  ;;  %v1954_v16 = vld [vmem:[#allocation3 + $0x2c] sm:$0x1]  ;;  %v1955_v30 = vld [vmem:[#allocation3 + $0x30] sm:$0xf] }
 0x1ef   : > { %v1728_v0 = vrot.slane %v1726_v58, 4  ;;  %v1731_v1 = vrot.slane %v1729_v59, 5  ;;  %v1737_v33 = vrot.slane %v1735_v37, 5  ;;  %v1740_v2 = vshrl.u32 %v1663_v48, 16  ;;  %v1956_v41 = vld [vmem:[#allocation3 + $0x34] sm:$0x1] }
 0x1f0   : > { %2087 = vrot.lane.b32.xlu0 %v2849_v38, %s3073_s13  ;;  %v2295_v35 = vsel %vm3365_vm11, %v2290_v60, %v2294_v53  ;;  %v2304_v8 = vrot.slane %v2303_v61, 4  ;;  %v1743_v9 = vshll.u32 %v1663_v48, 16  ;;  %v1749_v10 = vshll.u32 %v1664_v15, 16  ;;  %v2246_v48 = vld [vmem:[#allocation3 + $0x30] sm:$0xf] }
 0x1f1   : > { %v1732_v14 = vor.u32 %v1731_v1, %v1728_v0  ;;  %v1742_v19 = vrot.slane %v1740_v2, 4  ;;  %v2838_v20 = vrot.slane %v1821_v62, 9  ;;  %v1867_v21 = vrot.slane %v1822_v63, 5  ;;  %v2247_v49 = vld [vmem:[#allocation3 + $0x34] sm:$0x1] }
 0x1f2   : > { %v2309_v22 = vsel %vm3365_vm11, %v2304_v8, %v2308_v7  ;;  %v1745_v23 = vrot.slane %v1743_v9, 5  ;;  %v1751_v32 = vrot.slane %v1749_v10, 5  ;;  %v2839_v18 = vrot.slane %v1823_v3, 9  ;;  %v2989_v51 = vld [vmem:[#allocation3 + $0x38] ss:$8 sps:$4 sm:$0xff]  }
 0x1f3   : > { %v2869_v31 = vcombine.low %v2295_v35, %v2309_v22  ;;  %v1733_v13 = vrot.slane %v1732_v14, 4  ;;  %v3734_v29 = vsel %vm3311_vm8, %v2838_v20, %v1867_v21  ;;  %v1871_v24 = vrot.slane %v1824_v11, 5  ;;  %v2248_v57 = vld [vmem:[#allocation3 + $0x38] sm:$0xf]  ;;  %v2249_v37 = vld [vmem:[#allocation3 + $0x3c] sm:$0x1] }
 0x1f4   : > { %2181 = vrot.lane.b32.xlu0 %v2862_v52, %s3072_s30  ;;  %v1746_v36 = vor.u32 %v1745_v23, %v1742_v19  ;;  %v2018_v42 = vshrl.u32 %v1953_v5, 16  ;;  %v2021_v43 = vshll.u32 %v1953_v5, 16  ;;  %v2027_v44 = vshll.u32 %v1954_v16, 16  ;;  %v1665_v61 = vld [vmem:[#allocation3 + $0x30] sm:$0xf] }
 0x1f5   : > { %2380 = vrot.lane.b32.xlu1 %v2869_v31, %s3075_s7  ;;  %v1738_v40 = vsel %vm3365_vm11, %v1733_v13, %v1737_v33  ;;  %v1872_v45 = vsel %vm3311_vm8, %v2839_v18, %v1871_v24  ;;  %v2032_v46 = vshrl.u32 %v1955_v30, 16  ;;  %v2035_v47 = vshll.u32 %v1955_v30, 16  ;;  %v1666_v1 = vld [vmem:[#allocation3 + $0x34] sm:$0x1]  ;;  %v1667_v35 = vld [vmem:[#allocation3 + $0x38] sm:$0xf] }
 0x1f6   : > { %v1747_v50 = vrot.slane %v1746_v36, 4  ;;  %v2843_v52 = vcombine.low %v3734_v29, %v1872_v45  ;;  %v2020_v53 = vrot.slane %v2018_v42, 4  ;;  %v2023_v15 = vrot.slane %v2021_v43, 5  ;;  %v1668_v14 = vld [vmem:[#allocation3 + $0x3c] sm:$0x1] }
 0x1f7   : > { %v2029_v54 = vrot.slane %v2027_v44, 5  ;;  %v2034_v4 = vrot.slane %v2032_v46, 4  ;;  %v2037_v26 = vrot.slane %v2035_v47, 5  ;;  %v2041_v55 = vshll.u32 %v1956_v41, 16  ;;  %v1957_v19 = vld [vmem:[#allocation3 + $0x38] sm:$0xf] }
 0x1f8   : > { %v1752_v58 = vsel %vm3365_vm11, %v1747_v50, %v1751_v32  ;;  %v2024_v59 = vor.u32 %v2023_v15, %v2020_v53  ;;  %v2311_v38 = vshrl.u32 %v2246_v48, 16  ;;  %v2314_v60 = vshll.u32 %v2246_v48, 16  ;;  %v2995_v23 = vld [vmem:[#allocation3] ss:$8 sps:$4 sm:$0xff]   ;;  %v1958_v13 = vld [vmem:[#allocation3 + $0x3c] sm:$0x1] }
 0x1f9   : > { %v2830_v7 = vcombine.low %v1738_v40, %v1752_v58  ;;  %1935 = vrot.lane.b32.xlu1 %v2989_v51, %s3070_s25  ;;  %v2038_v62 = vor.u32 %v2037_v26, %v2034_v4  ;;  %v2043_v63 = vrot.slane %v2041_v55, 5  ;;  %v2320_v0 = vshll.u32 %v2247_v49, 16  ;;  %1649 = vst.msk [vmem:[#allocation5] sm:$0xff] %vm421_vm12, %v2995_v23  ;;  %v3000_v42 = vld [vmem:[#allocation3 + $0x10] ss:$8 sps:$4 sm:$0xff]  }
 0x1fa   : > { %v2025_v33 = vrot.slane %v2024_v59, 4  ;;  %v2313_v2 = vrot.slane %v2311_v38, 4  ;;  %v2316_v3 = vrot.slane %v2314_v60, 5  ;;  %v2325_v5 = vshrl.u32 %v2248_v57, 16  ;;  %v1959_v46 = vld [vmem:[#allocation3 + $0x40] sm:$0xf] }
 0x1fb   : > { %1797 = vrot.lane.b32.xlu0 %v2830_v7, %s3074_s16  ;;  %v2039_v8 = vrot.slane %v2038_v62, 4  ;;  %v2322_v9 = vrot.slane %v2320_v0, 5  ;;  %v2328_v10 = vshll.u32 %v2248_v57, 16  ;;  %v2334_v11 = vshll.u32 %v2249_v37, 16  ;;  %v1960_v50 = vld [vmem:[#allocation3 + $0x44] sm:$0x1] }
 0x1fc   : > { %v2030_v20 = vsel %vm3365_vm11, %v2025_v33, %v2029_v54  ;;  %v2317_v21 = vor.u32 %v2316_v3, %v2313_v2  ;;  %v2327_v16 = vrot.slane %v2325_v5, 4  ;;  %v1754_v22 = vshrl.u32 %v1665_v61, 16  ;;  %1650 = vst.msk [vmem:[#allocation5 + $0x10] sm:$0xff] %vm421_vm12, %v3000_v42  ;;  %v2113_v4 = vld [vmem:[#allocation3 + $0x38] sm:$0xe] }
 0x1fd   : > { %v2044_v32 = vsel %vm3365_vm11, %v2039_v8, %v2043_v63  ;;  %v2330_v18 = vrot.slane %v2328_v10, 5  ;;  %v2336_v30 = vrot.slane %v2334_v11, 5  ;;  %v1757_v31 = vshll.u32 %v1665_v61, 16  ;;  %v2114_v26 = vld [vmem:[#allocation3 + $0x3c] sm:$0x1] }
 0x1fe   : > { %v2850_v29 = vcombine.low %v2030_v20, %v2044_v32  ;;  %v2318_v24 = vrot.slane %v2317_v21, 4  ;;  %v1756_v36 = vrot.slane %v1754_v22, 4  ;;  %v1763_v41 = vshll.u32 %v1666_v1, 16  ;;  %v2115_v37 = vld [vmem:[#allocation3 + $0x40] sm:$0xe] }
 0x1ff   : > { %1891 = vrot.lane.b32.xlu0 %v2843_v52, %s3071_s26  ;;  %v2331_v43 = vor.u32 %v2330_v18, %v2327_v16  ;;  %v1759_v44 = vrot.slane %v1757_v31, 5  ;;  %v1768_v40 = vshrl.u32 %v1667_v35, 16  ;;  %v1771_v45 = vshll.u32 %v1667_v35, 16  ;;  %v2116_v38 = vld [vmem:[#allocation3 + $0x44] sm:$0x1] }
 0x200   : > { %2089 = vrot.lane.b32.xlu1 %v2850_v29, %s3073_s13  ;;  %v2323_v47 = vsel %vm3365_vm11, %v2318_v24, %v2322_v9  ;;  %v1765_v48 = vrot.slane %v1763_v41, 5  ;;  %v1777_v49 = vshll.u32 %v1668_v14, 16  ;;  %v2046_v51 = vshrl.u32 %v1957_v19, 16  ;;  %v2250_v2 = vld [vmem:[#allocation3 + $0x40] sm:$0xf] }
 0x201   : > { %v2332_v53 = vrot.slane %v2331_v43, 4  ;;  %v1760_v15 = vor.u32 %v1759_v44, %v1756_v36  ;;  %v1770_v54 = vrot.slane %v1768_v40, 4  ;;  %v1773_v52 = vrot.slane %v1771_v45, 5  ;;  %v2251_v3 = vld [vmem:[#allocation3 + $0x44] sm:$0x1] }
 0x202   : > { %v1779_v55 = vrot.slane %v1777_v49, 5  ;;  %v2048_v57 = vrot.slane %v2046_v51, 4  ;;  %v2049_v58 = vshll.u32 %v1957_v19, 16  ;;  %v2055_v59 = vshll.u32 %v1958_v13, 16  ;;  %v3002_v5 = vld [vmem:[#allocation3 + $0x20] ss:$8 sps:$4 sm:$0xff]  }
 0x203   : > { %v2337_v60 = vsel %vm3365_vm11, %v2332_v53, %v2336_v30  ;;  %v1761_v61 = vrot.slane %v1760_v15, 4  ;;  %v1774_v7 = vor.u32 %v1773_v52, %v1770_v54  ;;  %v2060_v62 = vshrl.u32 %v1959_v46, 16  ;;  %v2398_v11 = vld [vmem:[#allocation3 + $0x20] sm:$0xe]  ;;  %v2399_v16 = vld [vmem:[#allocation3 + $0x24] sm:$0x1] }
 0x204   : > { %v2870_v63 = vcombine.low %v2323_v47, %v2337_v60  ;;  %v2051_v0 = vrot.slane %v2049_v58, 5  ;;  %v2057_v1 = vrot.slane %v2055_v59, 5  ;;  %v2063_v33 = vshll.u32 %v1959_v46, 16  ;;  %1651 = vst.msk [vmem:[#allocation5 + $0x20] sm:$0xff] %vm421_vm12, %v3002_v5  ;;  %v2400_v30 = vld [vmem:[#allocation3 + $0x28] sm:$0xe] }
 0x205   : > { %v1766_v35 = vsel %vm3365_vm11, %v1761_v61, %v1765_v48  ;;  %v1775_v8 = vrot.slane %v1774_v7, 4  ;;  %v2062_v9 = vrot.slane %v2060_v62, 4  ;;  %v2069_v10 = vshll.u32 %v1960_v50, 16  ;;  %v2401_v31 = vld [vmem:[#allocation3 + $0x2c] sm:$0x1] }
 0x206   : > { %2382 = vrot.lane.b32.xlu0 %v2870_v63, %s3075_s7  ;;  %v2052_v14 = vor.u32 %v2051_v0, %v2048_v57  ;;  %v2065_v19 = vrot.slane %v2063_v33, 5  ;;  %v2858_v20 = vrot.slane %v2113_v4, 9  ;;  %v2159_v21 = vrot.slane %v2114_v26, 5  ;;  %v2402_v13 = vld [vmem:[#allocation3 + $0x30] sm:$0xe] }
 0x207   : > { %v1780_v22 = vsel %vm3365_vm11, %v1775_v8, %v1779_v55  ;;  %v2071_v23 = vrot.slane %v2069_v10, 5  ;;  %v2859_v32 = vrot.slane %v2115_v37, 9  ;;  %v2163_v18 = vrot.slane %v2116_v38, 5  ;;  %v2403_v42 = vld [vmem:[#allocation3 + $0x34] sm:$0x1] }
 0x208   : > { %v2831_v29 = vcombine.low %v1766_v35, %v1780_v22  ;;  %v2053_v24 = vrot.slane %v2052_v14, 4  ;;  %v2066_v36 = vor.u32 %v2065_v19, %v2062_v9  ;;  %v2160_v41 = vsel %vm3311_vm8, %v2858_v20, %v2159_v21  ;;  %v2404_v46 = vld [vmem:[#allocation3 + $0x38] sm:$0xe]  ;;  %v2405_v51 = vld [vmem:[#allocation3 + $0x3c] sm:$0x1] }
 0x209   : > { %v2164_v43 = vsel %vm3311_vm8, %v2859_v32, %v2163_v18  ;;  %v2339_v44 = vshrl.u32 %v2250_v2, 16  ;;  %v2342_v40 = vshll.u32 %v2250_v2, 16  ;;  %v2348_v45 = vshll.u32 %v2251_v3, 16  ;;  %v3003_v53 = vld [vmem:[#allocation3 + $0x30] ss:$8 sps:$4 sm:$0xff]  }
 0x20a   : > { %1799 = vrot.lane.b32.xlu1 %v2831_v29, %s3074_s16  ;;  %v2058_v47 = vsel %vm3365_vm11, %v2053_v24, %v2057_v1  ;;  %v2067_v48 = vrot.slane %v2066_v36, 4  ;;  %v2863_v49 = vcombine.low %v2160_v41, %v2164_v43  ;;  %v2874_v50 = vrot.slane %v2398_v11, 9  ;;  %v2406_v26 = vld [vmem:[#allocation3 + $0x40] sm:$0xe]  ;;  %1652 = vst.msk [vmem:[#allocation5 + $0x30] sm:$0xff] %vm421_vm12, %v3003_v53  ;;  %s2912_s16 = sshll.u32 %s3130_s22, 10 }
 0x20b   : > { %v2341_v15 = vrot.slane %v2339_v44, 4  ;;  %v2344_v54 = vrot.slane %v2342_v40, 5  ;;  %v2350_v52 = vrot.slane %v2348_v45, 5  ;;  %v2436_v4 = vrot.slane %v2399_v16, 5  ;;  %v2407_v37 = vld [vmem:[#allocation3 + $0x44] sm:$0x1]  ;;  %s3861_s12 = scalar_lea.hbm %s3917_s5, %s2912_s16 }
 0x20c   : > { %v2072_v55 = vsel %vm3365_vm11, %v2067_v48, %v2071_v23  ;;  %v2875_v57 = vrot.slane %v2400_v30, 9  ;;  %v2440_v58 = vrot.slane %v2401_v31, 5  ;;  %v2876_v59 = vrot.slane %v2402_v13, 9  ;;  %v2990_v9 = vld [vmem:[#allocation3 + $0x40] ss:$8 sps:$4 sm:$0xff]  }
 0x20d   : > { %v2851_v38 = vcombine.low %v2058_v47, %v2072_v55  ;;  %v2345_v60 = vor.u32 %v2344_v54, %v2341_v15  ;;  %v2437_v61 = vsel %vm3311_vm8, %v2874_v50, %v2436_v4  ;;  %v2444_v7 = vrot.slane %v2403_v42, 5  ;;  %v2884_v54 = vld [vmem:[%s3916_s4] ss:$0 sm:$0xff] }
 0x20e   : > { %2183 = vrot.lane.b32.xlu1 %v2863_v49, %s3072_s30  ;;  %v2441_v62 = vsel %vm3311_vm8, %v2875_v57, %v2440_v58  ;;  %v2877_v63 = vrot.slane %v2404_v46, 9  ;;  %v2448_v0 = vrot.slane %v2405_v51, 5  ;;  %v2878_v1 = vrot.slane %v2406_v26, 9 }
 0x20f   : > { %2091 = vrot.lane.b32.xlu0 %v2851_v38, %s3073_s13  ;;  %v2346_v33 = vrot.slane %v2345_v60, 4  ;;  %v2881_v2 = vcombine.low %v2437_v61, %v2441_v62  ;;  %v2452_v3 = vrot.slane %v2407_v37, 5  ;;  %v2457_v5 = vsel %vm3311_vm8, %v2879_v28, %v2456_v25 }
 0x210   : > { %v2445_v35 = vsel %vm3311_vm8, %v2876_v59, %v2444_v7  ;;  %v2449_v8 = vsel %vm3311_vm8, %v2877_v63, %v2448_v0 }
 0x211   : > { %v2351_v10 = vsel %vm3365_vm11, %v2346_v33, %v2350_v52  ;;  %2475 = vst.msk [vmem:[#allocation5 + $0x18] sm:$0xff] %vm421_vm12, %v2881_v2  ;;  %v2882_v11 = vcombine.low %v2445_v35, %v2449_v8  ;;  %v2453_v17 = vsel %vm3311_vm8, %v2878_v1, %v2452_v3 }
 0x212   : > { %v2871_v56 = vcombine.low %v2351_v10, %v2365_v6  ;;  %v2883_v28 = vcombine.low %v2453_v17, %v2457_v5 }
 0x213   : > { %2228 = vrot.lane.b32.xlu0 %v2990_v9, %s3069_s23  ;;  %2476 = vst.msk [vmem:[#allocation5 + $0x28] sm:$0xff] %vm421_vm12, %v2882_v11  ;;  %s215_s23 = sand.u32 1, %s3058_s19  }
 0x214   : > { %2384 = vrot.lane.b32.xlu1 %v2871_v56, %s3075_s7  ;;  %2477 = vst.msk [vmem:[#allocation5 + $0x38] sm:$0xff] %vm421_vm12, %v2883_v28  ;;  %s2739_s30 = sshll.u32 %s215_s23, 6  ;;  %s3871_s22 = scalar_lea.sflag [#allocation7], %s215_s23 }
 0x215   : > { %s3842_s13 = scalar_lea.vmem [#allocation6], %s2739_s30 }
 0x216   : > { %s2673_s7 = sshll.u32 %s3842_s13, 4  ;;  %s3863_s7 = int_to_ptr.vmem [resolvable:$true] %s2673_s7 }
 0x217   : > { %s3004_s14 = scalar_lea.vmem %s3863_s7, 1024  ;;  %p3011_p0 = scmp.lt.s32.totalorder %s3863_s7, %s3009_s17 }
 0x218   : > { %v2481_v30 = vld [vmem:[#allocation5 + $0x18] sm:$0xff]  ;;  %p3005_p11 = scmp.ne.s32.totalorder %s3863_s7, %s3004_s14  ;;  %p3012_p1 = scmp.lt.s32.totalorder %s3010_s6, %s3004_s14 }
 0x21a   : > { %v2483_v43 = vld [vmem:[#allocation5 + $0x28] sm:$0xff]  ;;  %p3006_p12 = pnand %p3005_p11, %p3147_p5  ;;  %p3013_p2 = por %p3012_p1, %p3011_p0 }
 0x21b   : > { %v2485_v50 = vld [vmem:[#allocation5 + $0x38] sm:$0xff] }
 0x21c   : > { %p3007_p13 = pneg %p3006_p12 }
 0x21e   : > { %p3014_p3 = pnand %p3013_p2, %p3007_p13 }
 0x22d   : > { %v1930_v25 = vpop.permute.xlu0 %1929 }
 0x231   : > { %v1886_v14 = vpop.permute.xlu1 %1885 }
 0x234   : > { %v2178_v19 = vpop.permute.xlu0 %2177 }
 0x236   : > { %v2223_v12 = vpop.permute.xlu1 %2222 }
 0x23a   : > { %v1932_v34 = vpop.permute.xlu1 %1931 }
 0x23b   : > { %v1794_v20 = vpop.permute.xlu0 %1793 }
 0x23c   : > { %1805 = vst.msk [vmem:[#allocation5] sm:$0xff] %vm581_vm13, %v1794_v20 }
 0x23d   : > { %1897 = vst.msk [vmem:[#allocation5] sm:$0xff] %vm677_vm14, %v1886_v14 }
 0x23e   : > { %1941 = vst.msk [vmem:[#allocation5] sm:$0xff] %vm722_vm15, %v1930_v25 }
 0x23f   : > { %v1888_v27 = vpop.permute.xlu0 %1887 }
 0x242   : > { %v2086_v39 = vpop.permute.xlu1 %2085 }
 0x243   : > { %2097 = vst.msk [vmem:[#allocation5] sm:$0xff] %vm879_vm0, %v2086_v39 }
 0x244   : > { %2189 = vst.msk [vmem:[#allocation5] sm:$0xff] %vm972_vm1, %v2178_v19 }
 0x245   : > { %2234 = vst.msk [vmem:[#allocation5] sm:$0xff] %vm1018_vm2, %v2223_v12 }
 0x246   : > { %v2180_v21 = vpop.permute.xlu1 %2179 }
 0x24f   : > { %v2225_v6 = vpop.permute.xlu0 %2224 }
 0x253   : > { %v2379_v16 = vpop.permute.xlu0 %2378 }
 0x254   : > { %2390 = vst.msk [vmem:[#allocation5] sm:$0xff] %vm1175_vm3, %v2379_v16 }
 0x256   : > { %v1796_v22 = vpop.permute.xlu1 %1795 }
 0x257   : > { %1806 = vst.msk [vmem:[#allocation5 + $0x10] sm:$0xff] %vm581_vm13, %v1796_v22  ;;  %v1934_v32 = vpop.permute.xlu0 %1933 }
 0x258   : > { %1898 = vst.msk [vmem:[#allocation5 + $0x10] sm:$0xff] %vm677_vm14, %v1888_v27 }
 0x259   : > { %1942 = vst.msk [vmem:[#allocation5 + $0x10] sm:$0xff] %vm722_vm15, %v1932_v34 }
 0x25a   : > { %v1890_v18 = vpop.permute.xlu1 %1889 }
 0x25b   : > { %v2478_v23 = vld [vmem:[#allocation5] sm:$0xff] }
 0x25c   : > { %2610 = vmatmul.mubr.bf16.vlgmr.msra.gmra.mrb[0].mxu1 %v2478_v23 }
 0x25d   : > { %2895 = vmatprep.mubr.msk.bf16.mxu1 %vm421_vm12, %v2481_v30 }
 0x25e   : > { %v2227_v31 = vpop.permute.xlu1 %2226 }
 0x262   : > { %v2088_v13 = vpop.permute.xlu0 %2087 }
 0x263   : > { %2098 = vst.msk [vmem:[#allocation5 + $0x10] sm:$0xff] %vm879_vm0, %v2088_v13 }
 0x264   : > { %2190 = vst.msk [vmem:[#allocation5 + $0x10] sm:$0xff] %vm972_vm1, %v2180_v21 }
 0x265   : > { %2235 = vst.msk [vmem:[#allocation5 + $0x10] sm:$0xff] %vm1018_vm2, %v2225_v6 }
 0x266   : > { %v2182_v29 = vpop.permute.xlu0 %2181 }
 0x267   : > { %v2381_v24 = vpop.permute.xlu1 %2380 }
 0x268   : > { %2391 = vst.msk [vmem:[#allocation5 + $0x10] sm:$0xff] %vm1175_vm3, %v2381_v24 }
 0x26b   : > { %v1936_v36 = vpop.permute.xlu1 %1935 }
 0x26d   : > { %v1798_v41 = vpop.permute.xlu0 %1797 }
 0x26e   : > { %1807 = vst.msk [vmem:[#allocation5 + $0x20] sm:$0xff] %vm581_vm13, %v1798_v41 }
 0x26f   : > { %1899 = vst.msk [vmem:[#allocation5 + $0x20] sm:$0xff] %vm677_vm14, %v1890_v18  ;;  %v2480_v42 = vld [vmem:[#allocation5 + $0x10] sm:$0xff] }
 0x270   : > { %1943 = vst.msk [vmem:[#allocation5 + $0x20] sm:$0xff] %vm722_vm15, %v1934_v32  ;;  %2618 = vmatmul.mubr.bf16.gmra.mrb[4].mxu1 %v2480_v42 }
 0x271   : > { %2896 = vmatprep.mubr.msk.bf16.mxu1 %vm421_vm12, %v2483_v43  ;;  %v1892_v44 = vpop.permute.xlu0 %1891 }
 0x272   : > { %v2090_v40 = vpop.permute.xlu1 %2089 }
 0x273   : > { %2099 = vst.msk [vmem:[#allocation5 + $0x20] sm:$0xff] %vm879_vm0, %v2090_v40 }
 0x274   : > { %2191 = vst.msk [vmem:[#allocation5 + $0x20] sm:$0xff] %vm972_vm1, %v2182_v29 }
 0x275   : > { %2236 = vst.msk [vmem:[#allocation5 + $0x20] sm:$0xff] %vm1018_vm2, %v2227_v31 }
 0x278   : > { %v2383_v45 = vpop.permute.xlu0 %2382 }
 0x279   : > { %2392 = vst.msk [vmem:[#allocation5 + $0x20] sm:$0xff] %vm1175_vm3, %v2383_v45 }
 0x27c   : > { %v1800_v46 = vpop.permute.xlu1 %1799 }
 0x27d   : > { %1808 = vst.msk [vmem:[#allocation5 + $0x30] sm:$0xff] %vm581_vm13, %v1800_v46 }
 0x27e   : > { %1900 = vst.msk [vmem:[#allocation5 + $0x30] sm:$0xff] %vm677_vm14, %v1892_v44 }
 0x27f   : > { %1944 = vst.msk [vmem:[#allocation5 + $0x30] sm:$0xff] %vm722_vm15, %v1936_v36 }
 0x280   : > { %v2184_v47 = vpop.permute.xlu1 %2183  ;;  %v2482_v48 = vld [vmem:[#allocation5 + $0x20] sm:$0xff] }
 0x281   : > { %v2092_v49 = vpop.permute.xlu0 %2091  ;;  %2626 = vmatmul.mubr.bf16.gmra.mrb[8].mxu1 %v2482_v48 }
 0x282   : > { %2100 = vst.msk [vmem:[#allocation5 + $0x30] sm:$0xff] %vm879_vm0, %v2092_v49  ;;  %2897 = vmatprep.mubr.msk.bf16.mxu1 %vm421_vm12, %v2485_v50 }
 0x283   : > { %2192 = vst.msk [vmem:[#allocation5 + $0x30] sm:$0xff] %vm972_vm1, %v2184_v47 }
 0x285   : > { %v2229_v51 = vpop.permute.xlu0 %2228 }
 0x286   : > { %2237 = vst.msk [vmem:[#allocation5 + $0x30] sm:$0xff] %vm1018_vm2, %v2229_v51  ;;  %v2385_v53 = vpop.permute.xlu1 %2384 }
 0x287   : > { %2393 = vst.msk [vmem:[#allocation5 + $0x30] sm:$0xff] %vm1175_vm3, %v2385_v53 }
 0x28e   : > { %v2484_v15 = vld [vmem:[#allocation5 + $0x30] sm:$0xff] }
 0x28f   : > { %2634 = vmatmul.mubr.bf16.gmra.mrb[12].mxu1 %v2484_v15 }
 0x32f   : > { %v2611_v52 = vpop.f32.mrb[0].mxu1 }
 0x330   : > { %v2612_v4 = vadd.f32 %v2884_v54, %v2611_v52  ;;  %v2613_v26 = vpop.f32.mrb[1].mxu1 }
 0x331   : > { %v2614_v55 = vpop.f32.mrb[2].mxu1 }
 0x332   : > { %v2642_v57 = vmax.f32 %v2612_v4, 0.0  ;;  %v2615_v58 = vadd.f32 %v2884_v54, %v2614_v55  ;;  %v2616_v59 = vpop.f32.mrb[3].mxu1 }
 0x334   : > { %2651 = vst.msk [vmem:[%s3842_s13] sm:$0xff] %vm2650_vm4, %v2642_v57  ;;  %v2643_v37 = vmax.f32 %v2615_v58, 0.0 }
 0x336   : > { %2652 = vst.msk [vmem:[%s3842_s13 + $0x8] sm:$0xff] %vm2650_vm4, %v2643_v37 }
 0x343   : > { %v2619_v38 = vpop.f32.mrb[4].mxu1 }
 0x344   : > { %v2620_v60 = vadd.f32 %v2884_v54, %v2619_v38  ;;  %v2621_v61 = vpop.f32.mrb[5].mxu1 }
 0x345   : > { %v2622_v7 = vpop.f32.mrb[6].mxu1 }
 0x346   : > { %v2644_v62 = vmax.f32 %v2620_v60, 0.0  ;;  %v2623_v63 = vadd.f32 %v2884_v54, %v2622_v7  ;;  %v2624_v0 = vpop.f32.mrb[7].mxu1 }
 0x348   : > { %2653 = vst.msk [vmem:[%s3842_s13 + $0x10] sm:$0xff] %vm2650_vm4, %v2644_v62  ;;  %v2645_v1 = vmax.f32 %v2623_v63, 0.0 }
 0x34a   : > { %2654 = vst.msk [vmem:[%s3842_s13 + $0x18] sm:$0xff] %vm2650_vm4, %v2645_v1 }
 0x354   : > { %v2627_v33 = vpop.f32.mrb[8].mxu1 }
 0x355   : > { %v2628_v2 = vadd.f32 %v2884_v54, %v2627_v33  ;;  %v2629_v3 = vpop.f32.mrb[9].mxu1 }
 0x356   : > { %v2630_v5 = vpop.f32.mrb[10].mxu1 }
 0x357   : > { %v2646_v35 = vmax.f32 %v2628_v2, 0.0  ;;  %v2631_v8 = vadd.f32 %v2884_v54, %v2630_v5  ;;  %v2632_v9 = vpop.f32.mrb[11].mxu1 }
 0x359   : > { %2655 = vst.msk [vmem:[%s3842_s13 + $0x20] sm:$0xff] %vm2650_vm4, %v2646_v35  ;;  %v2647_v10 = vmax.f32 %v2631_v8, 0.0 }
 0x35b   : > { %2656 = vst.msk [vmem:[%s3842_s13 + $0x28] sm:$0xff] %vm2650_vm4, %v2647_v10 }
 0x362   : > { %v2635_v11 = vpop.f32.mrb[12].mxu1 }
 0x363   : > { %v2636_v17 = vadd.f32 %v2884_v54, %v2635_v11  ;;  %v2637_v56 = vpop.f32.mrb[13].mxu1 }
 0x364   : > { %v2638_v28 = vpop.f32.mrb[14].mxu1 }
 0x365   : > { %v2648_v25 = vmax.f32 %v2636_v17, 0.0  ;;  %v2639_v14 = vadd.f32 %v2884_v54, %v2638_v28  ;;  %v2640_v19 = vpop.f32.mrb[15].mxu1 }
 0x367   : > { %2657 = vst.msk [vmem:[%s3842_s13 + $0x30] sm:$0xff] %vm2650_vm4, %v2648_v25  ;;  %v2649_v12 = vmax.f32 %v2639_v14, 0.0 }
 0x369   : > { %2658 = vst.msk [vmem:[%s3842_s13 + $0x38] sm:$0xff] %vm2650_vm4, %v2649_v12 }
 0x36a   : > { %3017 = shalt.err (!%p3014_p3)
}
 0x36b   : > { %s3018_s11 = scalar_lea.hbm %s3861_s12, 1024  ;;  %s3022_s25 = scalar_lea.hbm %s3917_s5, 2048 }
 0x36c   : > { %p3019_p4 = scmp.ne.s32.totalorder %s3861_s12, %s3018_s11  ;;  %p3023_p9 = scmp.lt.u32.totalorder %s3861_s12, %s3917_s5 }
 0x36d   : > { %p3024_p10 = scmp.lt.u32.totalorder %s3022_s25, %s3018_s11  ;;  %p3026_p12 = scmp.lt.u32.totalorder %s3018_s11, %s3861_s12 }
 0x36e   : > { %p3020_p7 = pnand %p3019_p4, %p3147_p5 }
 0x36f   : > { %p3025_p11 = por %p3024_p10, %p3023_p9 }
 0x370   : > { %p3021_p8 = pneg %p3020_p7 }
 0x371   : > { %p3027_p13 = por %p3026_p12, %p3025_p11 }
 0x373   : > { %p3028_p0 = pnand %p3027_p13, %p3021_p8 }
 0x375   : > { %3031 = shalt.err (!%p3028_p0)
}
 0x376   : > { %s3077_s13 = smov 128   ;;  %s3078_s16 = smov 8  }
 0x377   : > { %2913 = dma.vmem_to_hbm [thread:$0]  (%p3147_p5), %s3863_s7, 1024, %s3861_s12, %s3871_s22, %s3077_s13, %s3077_s13, %s3078_s16  }
 0x378 PF: > { %p2919_p1 = scmp.ge.s32.totalorder %s3066_s21, 2  ;;  %s2688_s9 = sand.u32 1, %s3054_s18  }
 0x379   : > { %s2689_s10 = scalar_lea.sflag [#allocation7], %s2688_s9 }
 0x37a   : > { %p2916_p2 = pnand %p2919_p1, %p3151_p6 }
 0x37c   : > { %3049 = dma.done.wait (!%p2916_p2), %s2689_s10, 1024  }
 0x37d   : > { %3051 = vsyncadd (!%p2916_p2), %s2689_s10, 4294966272  ;;  %p15_p3 = scmp.ge.s32.totalorder %s3134_s24, 4   ;;  %s3928_s18 = smov %s3058_s19 }
 0x37e   : > { %s3929_s19 = smov %s3062_s20  ;;  %s3930_s20 = smov %s3145_s27 }
 0x37f   : > { %s3931_s21 = smov %s3134_s24  ;;  %17 = sbr.rel (!%p15_p3) target bundleno = 3 (0x3), region = 79 }
 0x386   :  { %2694 = vsyncpa [#allocation7], 1 }
 0x387   :  { %2696 = vsyncpa [#allocation7 + $0x1], 1 }

// kernel: unet_encoder_forward.2
= control target key start
LH: loop header
LB: loop body
LE: loop exit
PB: predicated region body
PF: predicated region fallthrough
CT: control target
= control target key end

     0   :  { %s11276_s21 = smov 0   ;;  %s13984_s0 = inlined_call_operand.vmem [shape: f32[2,16,16,4], index: 0, kind: input, shape index: {}]   ;;  %s13985_s1 = inlined_call_operand.vmem [shape: bf16[36,8], index: 1, kind: input, shape index: {}]   ;;  %s13986_s2 = inlined_call_operand.vmem [shape: f32[1,8], index: 2, kind: input, shape index: {}]   ;;  %s13987_s3 = inlined_call_operand.vmem [shape: bf16[72,16], index: 3, kind: input, shape index: {}]   ;;  %s13988_s4 = inlined_call_operand.vmem [shape: f32[1,16], index: 4, kind: input, shape index: {}]   ;;  %s13989_s5 = inlined_call_operand.vmem [shape: f32[2,16,16,16], index: 5, kind: output, shape index: {0}]   ;;  %s13990_s6 = inlined_call_operand.vmem [shape: bf16[2,8,8,16], index: 6, kind: output, shape index: {1}]  }
   0x1 LB: > { %s10141_s22 = sadd.s32 4294967295, %s11225_s21   ;;  %p10145_p0 = scmp.ge.s32.totalorder %s11225_s21, 1  ;;  %s11225_s21 = sphi %s11276_s21, %s17_s21  }
   0x2   : > { %p215_p1 = scmp.lt.s32.totalorder %s11225_s21, 3 }
   0x4   : > { %p216_p2 = pnand %p10145_p0, %p215_p1 }
   0x5   : > { %vm266_vm0 = vcmask (!%p216_p2), 27648   ;;  %vm269_vm1 = vcmask (!%p216_p2), 24576   ;;  %v11227_v0 = vmov (!%p216_p2), 0   ;;  %p250_p3 = scmp.lt.s32.totalorder (!%p216_p2), %s10141_s22, 1  ;;  %vm1084_vm2 = vsmask.f32 (!%p216_p2), 3328 }
   0x6   : > { %219 = sbr.rel (%p216_p2) target bundleno = 1243 (0x4db), region = 40  ;;  %267 = vst.msk [vmem:[#allocation2] sm:$0xf] (!%p216_p2), %vm266_vm0, %v11227_v0  ;;  %268 = vst.msk [vmem:[#allocation2 + $0x4] sm:$0xf] (!%p216_p2), %vm266_vm0, %v11227_v0  ;;  %vm1680_vm5 = vcmask (!%p216_p2), 1042432  }
   0x7   : > { %270 = vst.msk [vmem:[#allocation2 + $0x8] sm:$0x1] (!%p216_p2), %vm269_vm1, %v11227_v0  ;;  %273 = vst.msk [vmem:[#allocation2 + $0x14] sm:$0x1] (!%p216_p2), %vm269_vm1, %v11227_v0  ;;  %vm1085_vm3 = vsmask.f32 (!%p216_p2), 7440 }
   0x8   : > { %271 = vst.msk [vmem:[#allocation2 + $0xc] sm:$0xf] (!%p216_p2), %vm266_vm0, %v11227_v0  ;;  %272 = vst.msk [vmem:[#allocation2 + $0x10] sm:$0xf] (!%p216_p2), %vm266_vm0, %v11227_v0  ;;  %vm13991_vm4 = vsmask.f32 (!%p216_p2), 256 }
   0x9   : > { %274 = vst.msk [vmem:[#allocation2 + $0x18] sm:$0xf] (!%p216_p2), %vm266_vm0, %v11227_v0  ;;  %275 = vst.msk [vmem:[#allocation2 + $0x1c] sm:$0xf] (!%p216_p2), %vm266_vm0, %v11227_v0  ;;  %vm451_vm6 = vsmask.f32 (!%p216_p2), 4368 }
   0xa   : > { %276 = vst.msk [vmem:[#allocation2 + $0x20] sm:$0x1] (!%p216_p2), %vm269_vm1, %v11227_v0  ;;  %279 = vst.msk [vmem:[#allocation2 + $0x2c] sm:$0x1] (!%p216_p2), %vm269_vm1, %v11227_v0  ;;  %vm1681_vm7 = vcmask (!%p216_p2), 1046532   ;;  %s11228_s27 = smov (!%p216_p2), 8  }
   0xb   : > { %277 = vst.msk [vmem:[#allocation2 + $0x24] sm:$0xf] (!%p216_p2), %vm266_vm0, %v11227_v0  ;;  %278 = vst.msk [vmem:[#allocation2 + $0x28] sm:$0xf] (!%p216_p2), %vm266_vm0, %v11227_v0  ;;  %vm13992_vm8 = vsmask.f32 (!%p216_p2), 7938 }
   0xc   : > { %280 = vst.msk [vmem:[#allocation2 + $0x30] sm:$0xf] (!%p216_p2), %vm266_vm0, %v11227_v0  ;;  %281 = vst.msk [vmem:[#allocation2 + $0x34] sm:$0xf] (!%p216_p2), %vm266_vm0, %v11227_v0  ;;  %s11229_s28 = smov (!%p216_p2), 4   ;;  %s11230_s29 = smov (!%p216_p2), 12  }
   0xd   : > { %282 = vst.msk [vmem:[#allocation2 + $0x38] sm:$0x1] %vm269_vm1, %v11227_v0  ;;  %285 = vst.msk [vmem:[#allocation2 + $0x44] sm:$0x1] %vm269_vm1, %v11227_v0  ;;  %s14015_s22 = smov (!%p250_p3, %s10141_s22), 1  ;;  %s11231_s30 = smov 24  }
   0xe   : > { %283 = vst.msk [vmem:[#allocation2 + $0x3c] sm:$0xf] %vm266_vm0, %v11227_v0  ;;  %284 = vst.msk [vmem:[#allocation2 + $0x40] sm:$0xf] %vm266_vm0, %v11227_v0  ;;  %s10836_s23 = sshll.u32 %s14015_s22, 8  ;;  %s11232_s7 = smov 20  }
   0xf   : > { %286 = vst.msk [vmem:[#allocation2 + $0x48] sm:$0xf] %vm266_vm0, %v11227_v0  ;;  %287 = vst.msk [vmem:[#allocation2 + $0x4c] sm:$0xf] %vm266_vm0, %v11227_v0  ;;  %s11404_s26 = scalar_lea.vmem %s13984_s0, %s10836_s23  ;;  %v1036_v4 = vld [vmem:[#allocation2] sm:$0xf] }
  0x10   : > { %288 = vst.msk [vmem:[#allocation2 + $0x50] sm:$0x1] %vm269_vm1, %v11227_v0  ;;  %291 = vst.msk [vmem:[#allocation2 + $0x5c] sm:$0x1] %vm269_vm1, %v11227_v0  ;;  %v322_v1 = vld [vmem:[%s11404_s26] sm:$0xff]  ;;  %v323_v2 = vld [vmem:[%s11404_s26 + $0x8] sm:$0xff] }
  0x11   : > { %289 = vst.msk [vmem:[#allocation2 + $0x54] sm:$0xf] %vm266_vm0, %v11227_v0  ;;  %290 = vst.msk [vmem:[#allocation2 + $0x58] sm:$0xf] %vm266_vm0, %v11227_v0  ;;  %v324_v3 = vld [vmem:[%s11404_s26 + $0x10] sm:$0xff]  ;;  %v10839_v7 = vpack.c.bf16 %v322_v1, %v322_v1  ;;  %v10840_v8 = vpack.c.bf16 %v323_v2, %v323_v2  ;;  %v1088_v9 = vshrl.u32 %v1036_v4, 16 }
  0x12   : > { %292 = vst.msk [vmem:[#allocation2 + $0x60] sm:$0xf] %vm266_vm0, %v11227_v0  ;;  %293 = vst.msk [vmem:[#allocation2 + $0x64] sm:$0xf] %vm266_vm0, %v11227_v0  ;;  %v1037_v5 = vld [vmem:[#allocation2 + $0x4] sm:$0xf]  ;;  %v10841_v18 = vpack.c.bf16 %v324_v3, %v324_v3 }
  0x13   : > { %294 = vst.msk [vmem:[#allocation2 + $0x68] sm:$0x1] %vm269_vm1, %v11227_v0  ;;  %297 = vst.msk [vmem:[#allocation2 + $0x74] sm:$0x1] %vm269_vm1, %v11227_v0  ;;  %v1038_v6 = vld [vmem:[#allocation2 + $0x8] sm:$0x1] }
  0x14   : > { %295 = vst.msk [vmem:[#allocation2 + $0x6c] sm:$0xf] %vm266_vm0, %v11227_v0  ;;  %296 = vst.msk [vmem:[#allocation2 + $0x70] sm:$0xf] %vm266_vm0, %v11227_v0  ;;  %v1091_v10 = vshll.u32 %v1036_v4, 16  ;;  %v1097_v11 = vshll.u32 %v1037_v5, 16 }
  0x15   : > { %298 = vst.msk [vmem:[#allocation2 + $0x78] sm:$0xf] %vm266_vm0, %v11227_v0  ;;  %299 = vst.msk [vmem:[#allocation2 + $0x7c] sm:$0xf] %vm266_vm0, %v11227_v0  ;;  %v1101_v12 = vshrl.u32 %v1037_v5, 16  ;;  %v1107_v14 = vshll.u32 %v1038_v6, 16 }
  0x16   : > { %300 = vst.msk [vmem:[#allocation2 + $0x80] sm:$0x1] %vm269_vm1, %v11227_v0  ;;  %303 = vst.msk [vmem:[#allocation2 + $0x8c] sm:$0x1] %vm269_vm1, %v11227_v0  ;;  %v1584_v13 = vld [vmem:[#allocation2] sm:$0xe] }
  0x17   : > { %301 = vst.msk [vmem:[#allocation2 + $0x84] sm:$0xf] %vm266_vm0, %v11227_v0  ;;  %302 = vst.msk [vmem:[#allocation2 + $0x88] sm:$0xf] %vm266_vm0, %v11227_v0  ;;  %v1585_v15 = vld [vmem:[#allocation2 + $0x4] sm:$0xf] }
  0x18   : > { %304 = vst.msk [vmem:[#allocation2 + $0x90] sm:$0xf] %vm266_vm0, %v11227_v0  ;;  %305 = vst.msk [vmem:[#allocation2 + $0x94] sm:$0xf] %vm266_vm0, %v11227_v0  ;;  %v1586_v16 = vld [vmem:[#allocation2 + $0x8] sm:$0x1] }
  0x19   : > { %306 = vst.msk [vmem:[#allocation2 + $0x98] sm:$0x1] %vm269_vm1, %v11227_v0  ;;  %309 = vst.msk [vmem:[#allocation2 + $0xa4] sm:$0x1] %vm269_vm1, %v11227_v0  ;;  %v10216_v17 = vrot.slane %v1584_v13, 9  ;;  %v1090_v19 = vrot.slane %v1088_v9, 4 }
  0x1a   : > { %307 = vst.msk [vmem:[#allocation2 + $0x9c] sm:$0xf] %vm266_vm0, %v11227_v0  ;;  %308 = vst.msk [vmem:[#allocation2 + $0xa0] sm:$0xf] %vm266_vm0, %v11227_v0  ;;  %v1093_v20 = vrot.slane %v1091_v10, 5  ;;  %v1099_v21 = vrot.slane %v1097_v11, 5 }
  0x1b   : > { %310 = vst.msk [vmem:[#allocation2 + $0xa8] sm:$0xf] %vm266_vm0, %v11227_v0  ;;  %311 = vst.msk [vmem:[#allocation2 + $0xac] sm:$0xf] %vm266_vm0, %v11227_v0  ;;  %v1103_v22 = vrot.slane %v1101_v12, 4  ;;  %v1109_v24 = vrot.slane %v1107_v14, 5 }
  0x1c   : > { %312 = vst.msk [vmem:[#allocation2 + $0xb0] sm:$0x1] %vm269_vm1, %v11227_v0  ;;  %315 = vst.msk [vmem:[#allocation2 + $0xbc] sm:$0x1] %vm269_vm1, %v11227_v0  ;;  %v1685_v25 = vrot.slane %v1585_v15, 5  ;;  %v1688_v26 = vrot.slane %v1586_v16, 5  ;;  %v1094_v30 = vor.u32 %v1093_v20, %v1090_v19 }
  0x1d   : > { %313 = vst.msk [vmem:[#allocation2 + $0xb4] sm:$0xf] %vm266_vm0, %v11227_v0  ;;  %314 = vst.msk [vmem:[#allocation2 + $0xb8] sm:$0xf] %vm266_vm0, %v11227_v0  ;;  %v454_v27 = vshrl.u32 %v10839_v7, 16  ;;  %v325_v28 = vld [vmem:[%s11404_s26 + $0x18] sm:$0xff]  ;;  %v1104_v31 = vor.u32 %v1103_v22, %v1099_v21 }
  0x1e   : > { %316 = vst.msk [vmem:[#allocation2 + $0xc0] sm:$0xf] %vm266_vm0, %v11227_v0  ;;  %317 = vst.msk [vmem:[#allocation2 + $0xc4] sm:$0xf] %vm266_vm0, %v11227_v0  ;;  %v457_v32 = vshll.u32 %v10839_v7, 16  ;;  %v462_v33 = vshrl.u32 %v10840_v8, 16  ;;  %v10842_v44 = vpack.c.bf16 %v325_v28, %v325_v28 }
  0x1f   : > { %318 = vst.msk [vmem:[#allocation2 + $0xc8] sm:$0x1] %vm269_vm1, %v11227_v0  ;;  %321 = vst.msk [vmem:[#allocation2 + $0xd4] sm:$0x1] %vm269_vm1, %v11227_v0  ;;  %v1687_v35 = vrot.slane %v1685_v25, 4  ;;  %v456_v37 = vrot.slane %v454_v27, 7 }
  0x20   : > { %319 = vst.msk [vmem:[#allocation2 + $0xcc] sm:$0xf] %vm266_vm0, %v11227_v0  ;;  %320 = vst.msk [vmem:[#allocation2 + $0xd0] sm:$0xf] %vm266_vm0, %v11227_v0  ;;  %v465_v38 = vshll.u32 %v10840_v8, 16  ;;  %v1095_v39 = vrot.slane %v1094_v30, 4 }
  0x21   : > { %vm11411_vm9 = vmor %vm1680_vm5, %vm1681_vm7  ;;  %v1105_v40 = vrot.slane %v1104_v31, 4  ;;  %v464_v41 = vrot.slane %v462_v33, 7  ;;  %v777_v43 = vld [vmem:[#allocation2 + $0xc] sm:$0xf]  ;;  %v459_v46 = vor.u32 %v457_v32, %v456_v37  ;;  %v460_v47 = vrot.slane %v456_v37, 4  ;;  %v326_v54 = vld [vmem:[%s11404_s26 + $0x20] sm:$0xff] }
  0x22   : > { %vm11418_vm10 = vmor %vm1084_vm2, %vm1085_vm3  ;;  %v1686_v34 = vsel %vm11411_vm9, %v10216_v17, %v1685_v25  ;;  %v1689_v45 = vsel %vm11411_vm9, %v1687_v35, %v1688_v26  ;;  %v471_v48 = vshrl.u32 %v10841_v18, 16  ;;  %v327_v55 = vld [vmem:[%s11404_s26 + $0x28] sm:$0xff]  ;;  %v783_v56 = vld [vmem:[#allocation2 + $0x14] sm:$0x1]  ;;  %v474_v1 = vshll.u32 %v10841_v18, 16  ;;  %s11233_s8 = smov 32  }
  0x23   : > { %vm11426_vm11 = vmor %vm13991_vm4, %vm451_vm6  ;;  %v1100_v50 = vsel %vm11418_vm10, %v1095_v39, %v1099_v21  ;;  %v1110_v51 = vsel %vm11418_vm10, %v1105_v40, %v1109_v24  ;;  %v10232_v52 = vcombine.low %v1686_v34, %v1689_v45  ;;  %v467_v53 = vor.u32 %v465_v38, %v464_v41  ;;  %v328_v61 = vld [vmem:[%s11404_s26 + $0x30] sm:$0xff]  ;;  %v329_v62 = vld [vmem:[%s11404_s26 + $0x38] sm:$0xff]  ;;  %s11234_s9 = smov 16   ;;  %s11235_s10 = smov 28  }
  0x24   : > { %vm11432_vm12 = vmand %vm266_vm0, %vm13992_vm8  ;;  %v10200_v57 = vcombine.low %v1100_v50, %v1110_v51  ;;  %v469_v58 = vrot.slane %v464_v41, 4  ;;  %v473_v60 = vrot.slane %v471_v48, 7  ;;  %v479_v2 = vshrl.u32 %v10842_v44, 16  ;;  %v786_v5 = vld [vmem:[#allocation2 + $0x18] sm:$0xf]  ;;  %s11236_s19 = smov 48  }
  0x25   : > { %vm11440_vm13 = vmand %vm269_vm1, %vm13991_vm4  ;;  %v778_v59 = vsel %vm11432_vm12, %v459_v46, %v777_v43  ;;  %1843 = vrot.lane.b32.xlu1 %v10232_v52, %s11228_s27  ;;  %v468_v63 = vsel %vm11426_vm11, %v460_v47, %v467_v53  ;;  %v482_v3 = vshll.u32 %v10842_v44, 16  ;;  %v10843_v6 = vpack.c.bf16 %v326_v54, %v326_v54  ;;  %v790_v17 = vld [vmem:[#allocation2 + $0x20] sm:$0x1]  ;;  %v793_v21 = vld [vmem:[#allocation2 + $0x24] sm:$0xf]  ;;  %s11237_s20 = smov 40  }
  0x26   : > { %779 = vst [vmem:[#allocation2 + $0xc] sm:$0xf] %v778_v59  ;;  %1519 = vrot.lane.b32.xlu0 %v10200_v57, %s11229_s28  ;;  %780 = vst.msk [vmem:[#allocation2 + $0x10] sm:$0xf] %vm266_vm0, %v468_v63  ;;  %v477_v4 = vrot.slane %v473_v60, 4  ;;  %v10844_v7 = vpack.c.bf16 %v327_v55, %v327_v55  ;;  %v784_v8 = vsel %vm11440_vm13, %v469_v58, %v783_v56  ;;  %v481_v10 = vrot.slane %v479_v2, 7 }
  0x27   : > { %v476_v9 = vor.u32 %v474_v1, %v473_v60  ;;  %785 = vst [vmem:[#allocation2 + $0x14] sm:$0x1] %v784_v8  ;;  %v10845_v11 = vpack.c.bf16 %v328_v61, %v328_v61  ;;  %v11461_v12 = vpack.c.bf16 %v329_v62, %v329_v62  ;;  %v488_v13 = vshrl.u32 %v10843_v6, 16  ;;  %v797_v22 = vld [vmem:[#allocation2 + $0x2c] sm:$0x1]  ;;  %v330_v61 = vld [vmem:[%s11404_s26 + $0x40] sm:$0xff] }
  0x28   : > { %v491_v14 = vshll.u32 %v10843_v6, 16  ;;  %v496_v15 = vshrl.u32 %v10844_v7, 16  ;;  %v499_v16 = vshll.u32 %v10844_v7, 16  ;;  %v484_v18 = vor.u32 %v482_v3, %v481_v10  ;;  %v800_v28 = vld [vmem:[#allocation2 + $0x30] sm:$0xf]  ;;  %s11238_s24 = smov 64  }
  0x29   : > { %v486_v19 = vrot.slane %v481_v10, 4  ;;  %v787_v20 = vsel %vm11432_vm12, %v476_v9, %v786_v5  ;;  %v505_v24 = vshrl.u32 %v10845_v11, 16  ;;  %v490_v25 = vrot.slane %v488_v13, 7  ;;  %s11239_s25 = smov 56  }
  0x2a   : > { %788 = vst [vmem:[#allocation2 + $0x18] sm:$0xf] %v787_v20  ;;  %v498_v26 = vrot.slane %v496_v15, 7  ;;  %v508_v27 = vshll.u32 %v10845_v11, 16  ;;  %v485_v30 = vsel %vm11426_vm11, %v477_v4, %v484_v18  ;;  %v513_v33 = vshrl.u32 %v11461_v12, 16  ;;  %v331_v4 = vld [vmem:[%s11404_s26 + $0x48] sm:$0xff] }
  0x2b   : > { %v791_v31 = vsel %vm11440_vm13, %v486_v19, %v790_v17  ;;  %v11469_v32 = vrot.slane %v505_v24, 7  ;;  %789 = vst.msk [vmem:[#allocation2 + $0x1c] sm:$0xf] %vm266_vm0, %v485_v30  ;;  %v493_v34 = vor.u32 %v491_v14, %v490_v25  ;;  %v494_v35 = vrot.slane %v490_v25, 4 }
  0x2c   : > { %v501_v37 = vor.u32 %v499_v16, %v498_v26  ;;  %v503_v38 = vrot.slane %v498_v26, 4  ;;  %792 = vst [vmem:[#allocation2 + $0x20] sm:$0x1] %v791_v31  ;;  %v516_v44 = vshll.u32 %v11461_v12, 16  ;;  %v11492_v18 = vpack.c.bf16 %v330_v61, %v330_v61 }
  0x2d   : > { %v2630_v39 = vld [vmem:[#allocation2 + $0xc] sm:$0xe]  ;;  %v2631_v41 = vld [vmem:[#allocation2 + $0x10] sm:$0xf]  ;;  %v510_v43 = vor.u32 %v508_v27, %v11469_v32  ;;  %v794_v46 = vsel %vm11432_vm12, %v493_v34, %v793_v21  ;;  %v11501_v34 = vpack.c.bf16 %v331_v4, %v331_v4  ;;  %vm1019_vm14 = vcmask 31744  }
  0x2e   : > { %v11111_v40 = vld [vmem:[#allocation2 + $0xc] sm:$0xff]   ;;  %v502_v45 = vsel %vm11426_vm11, %v494_v35, %v501_v37  ;;  %v2632_v47 = vld [vmem:[#allocation2 + $0x14] sm:$0x1]  ;;  %v2728_v48 = vrot.slane %v2631_v41, 5  ;;  %v798_v51 = vsel %vm11440_vm13, %v503_v38, %v797_v22  ;;  %795 = vst [vmem:[#allocation2 + $0x24] sm:$0xf] %v794_v46 }
  0x2f   : > { %v1587_v50 = vld [vmem:[#allocation2 + $0xc] sm:$0xe]  ;;  %2020 = vrot.lane.b32.xlu0 %v11111_v40, %s11230_s29  ;;  %796 = vst.msk [vmem:[#allocation2 + $0x28] sm:$0xf] %vm266_vm0, %v502_v45  ;;  %v10280_v52 = vrot.slane %v2630_v39, 9  ;;  %v2731_v53 = vrot.slane %v2632_v47, 5  ;;  %v801_v56 = vsel %vm11432_vm12, %v510_v43, %v800_v28 }
  0x30   : > { %v1588_v54 = vld [vmem:[#allocation2 + $0x10] sm:$0xf]  ;;  %v1589_v55 = vld [vmem:[#allocation2 + $0x14] sm:$0x1]  ;;  %799 = vst [vmem:[#allocation2 + $0x2c] sm:$0x1] %v798_v51 }
  0x31   : > { %v2730_v57 = vrot.slane %v2728_v48, 4  ;;  %v10217_v58 = vrot.slane %v1587_v50, 9  ;;  %v1692_v59 = vrot.slane %v1588_v54, 5  ;;  %v1695_v60 = vrot.slane %v1589_v55, 5  ;;  %802 = vst [vmem:[#allocation2 + $0x30] sm:$0xf] %v801_v56 }
  0x32   : > { %v3674_v62 = vld [vmem:[#allocation2 + $0x18] sm:$0xe]  ;;  %v2729_v6 = vsel %vm11411_vm9, %v10280_v52, %v2728_v48  ;;  %v3675_v10 = vld [vmem:[#allocation2 + $0x1c] sm:$0xf]  ;;  %v1039_v31 = vld [vmem:[#allocation2 + $0xc] sm:$0xf] }
  0x33   : > { %v1694_v63 = vrot.slane %v1692_v59, 4  ;;  %v10344_v1 = vrot.slane %v3674_v62, 9  ;;  %v2633_v2 = vld [vmem:[#allocation2 + $0x18] sm:$0xe]  ;;  %v2732_v7 = vsel %vm11411_vm9, %v2730_v57, %v2731_v53  ;;  %v3676_v11 = vld [vmem:[#allocation2 + $0x20] sm:$0x1]  ;;  %v1693_v21 = vsel %vm11411_vm9, %v10217_v58, %v1692_v59 }
  0x34   : > { %v2088_v3 = vld [vmem:[#allocation2 + $0x18] sm:$0xf]  ;;  %v10281_v8 = vrot.slane %v2633_v2, 9  ;;  %v3772_v14 = vrot.slane %v3675_v10, 5  ;;  %v3775_v15 = vrot.slane %v3676_v11, 5  ;;  %v10296_v20 = vcombine.low %v2729_v6, %v2732_v7 }
  0x35   : > { %v11112_v5 = vld [vmem:[#allocation2 + $0x18] sm:$0xff]   ;;  %v2158_v13 = vshrl.u32 %v2088_v3, 16  ;;  %v2635_v17 = vld [vmem:[#allocation2 + $0x20] sm:$0x1]  ;;  %v1696_v22 = vsel %vm11411_vm9, %v1694_v63, %v1695_v60  ;;  %v3677_v28 = vld [vmem:[#allocation2 + $0x24] sm:$0xe] }
  0x36   : > { %v11113_v9 = vld [vmem:[#allocation2 + $0x18] sm:$0xff]   ;;  %2022 = vrot.lane.b32.xlu1 %v11112_v5, %s11230_s29  ;;  %v11114_v19 = vld [vmem:[#allocation2 + $0x24] sm:$0xff]   ;;  %v3773_v25 = vsel %vm11411_vm9, %v10344_v1, %v3772_v14  ;;  %v3774_v26 = vrot.slane %v3772_v14, 4  ;;  %v2738_v27 = vrot.slane %v2635_v17, 5  ;;  %v10345_v39 = vrot.slane %v3677_v28, 9 }
  0x37   : > { %v2634_v16 = vld [vmem:[#allocation2 + $0x1c] sm:$0xf]  ;;  %3064 = vrot.lane.b32.xlu0 %v11113_v9, %s11231_s30  ;;  %v3678_v30 = vld [vmem:[#allocation2 + $0x28] sm:$0xf]  ;;  %v3679_v38 = vld [vmem:[#allocation2 + $0x2c] sm:$0x1]  ;;  %v10233_v41 = vcombine.low %v1693_v21, %v1696_v22 }
  0x38   : > { %v2735_v24 = vrot.slane %v2634_v16, 5  ;;  %v3779_v40 = vrot.slane %v3678_v30, 5  ;;  %v3776_v43 = vsel %vm11411_vm9, %v3774_v26, %v3775_v15  ;;  %v3782_v45 = vrot.slane %v3679_v38, 5  ;;  %v2089_v46 = vld [vmem:[#allocation2 + $0x1c] sm:$0xf] }
  0x39   : > { %v2090_v47 = vld [vmem:[#allocation2 + $0x20] sm:$0x1]  ;;  %v2160_v48 = vrot.slane %v2158_v13, 4  ;;  %v10360_v50 = vcombine.low %v3773_v25, %v3776_v43  ;;  %v2161_v55 = vshll.u32 %v2088_v3, 16  ;;  %v2167_v56 = vshll.u32 %v2089_v46, 16 }
  0x3a   : > { %v2736_v35 = vsel %vm11411_vm9, %v10281_v8, %v2735_v24  ;;  %v2737_v37 = vrot.slane %v2735_v24, 4  ;;  %3066 = vrot.lane.b32.xlu1 %v11114_v19, %s11231_s30  ;;  %v3780_v52 = vsel %vm11411_vm9, %v10345_v39, %v3779_v40  ;;  %v3781_v53 = vrot.slane %v3779_v40, 4  ;;  %v1040_v58 = vld [vmem:[#allocation2 + $0x10] sm:$0xf]  ;;  %v1041_v61 = vld [vmem:[#allocation2 + $0x14] sm:$0x1] }
  0x3b   : > { %2886 = vrot.lane.b32.xlu0 %v10296_v20, %s11232_s7  ;;  %v2171_v57 = vshrl.u32 %v2089_v46, 16  ;;  %v2177_v60 = vshll.u32 %v2090_v47, 16  ;;  %v1112_v62 = vshrl.u32 %v1039_v31, 16  ;;  %v1115_v63 = vshll.u32 %v1039_v31, 16  ;;  %v3132_v6 = vld [vmem:[#allocation2 + $0x24] sm:$0xf] }
  0x3c   : > { %v2739_v51 = vsel %vm11411_vm9, %v2737_v37, %v2738_v27  ;;  %v3783_v59 = vsel %vm11411_vm9, %v3781_v53, %v3782_v45  ;;  %v2163_v2 = vrot.slane %v2161_v55, 5  ;;  %v2169_v4 = vrot.slane %v2167_v56, 5  ;;  %v3133_v15 = vld [vmem:[#allocation2 + $0x28] sm:$0xf]  ;;  %v3134_v26 = vld [vmem:[#allocation2 + $0x2c] sm:$0x1] }
  0x3d   : > { %v10297_v54 = vcombine.low %v2736_v35, %v2739_v51  ;;  %v10361_v1 = vcombine.low %v3780_v52, %v3783_v59  ;;  %v2173_v5 = vrot.slane %v2171_v57, 4  ;;  %v2179_v3 = vrot.slane %v2177_v60, 5  ;;  %v2085_v35 = vld [vmem:[#allocation2 + $0xc] sm:$0xf]  ;;  %v2087_v52 = vld [vmem:[#allocation2 + $0x14] sm:$0x1] }
  0x3e   : > { %1845 = vrot.lane.b32.xlu1 %v10233_v41, %s11228_s27  ;;  %v1114_v7 = vrot.slane %v1112_v62, 4  ;;  %v1117_v8 = vrot.slane %v1115_v63, 5  ;;  %v1121_v9 = vshll.u32 %v1040_v58, 16  ;;  %v2164_v10 = vor.u32 %v2163_v2, %v2160_v48  ;;  %v2086_v41 = vld [vmem:[#allocation2 + $0x10] sm:$0xf] }
  0x3f   : > { %3930 = vrot.lane.b32.xlu0 %v10360_v50, %s11233_s8  ;;  %v2174_v11 = vor.u32 %v2173_v5, %v2169_v4  ;;  %v1125_v13 = vshrl.u32 %v1040_v58, 16  ;;  %v1131_v14 = vshll.u32 %v1041_v61, 16  ;;  %v3202_v19 = vshrl.u32 %v3132_v6, 16  ;;  %v1042_v58 = vld [vmem:[#allocation2 + $0x18] sm:$0xf] }
  0x40   : > { %v1118_v16 = vor.u32 %v1117_v8, %v1114_v7  ;;  %v1123_v17 = vrot.slane %v1121_v9, 5  ;;  %v3205_v20 = vshll.u32 %v3132_v6, 16  ;;  %v2165_v21 = vrot.slane %v2164_v10, 4  ;;  %v1043_v63 = vld [vmem:[#allocation2 + $0x1c] sm:$0xf] }
  0x41   : > { %v2175_v22 = vrot.slane %v2174_v11, 4  ;;  %v1127_v24 = vrot.slane %v1125_v13, 4  ;;  %v1133_v25 = vrot.slane %v1131_v14, 5  ;;  %v3204_v28 = vrot.slane %v3202_v19, 4  ;;  %v1044_v6 = vld [vmem:[#allocation2 + $0x20] sm:$0x1] }
  0x42   : > { %2888 = vrot.lane.b32.xlu1 %v10297_v54, %s11232_s7  ;;  %v1119_v27 = vrot.slane %v1118_v16, 4  ;;  %v3207_v30 = vrot.slane %v3205_v20, 5  ;;  %v3211_v31 = vshll.u32 %v3133_v15, 16  ;;  %v2170_v37 = vsel %vm11418_vm10, %v2165_v21, %v2169_v4  ;;  %v3129_v10 = vld [vmem:[#allocation2 + $0x18] sm:$0xf] }
  0x43   : > { %3932 = vrot.lane.b32.xlu0 %v10361_v1, %s11233_s8  ;;  %v2180_v38 = vsel %vm11418_vm10, %v2175_v22, %v2179_v3  ;;  %v1128_v39 = vor.u32 %v1127_v24, %v1123_v17  ;;  %v3215_v40 = vshrl.u32 %v3133_v15, 16  ;;  %v3221_v51 = vshll.u32 %v3134_v26, 16  ;;  %v3130_v16 = vld [vmem:[#allocation2 + $0x1c] sm:$0xf] }
  0x44   : > { %v10265_v43 = vcombine.low %v2170_v37, %v2180_v38  ;;  %v1124_v45 = vsel %vm11418_vm10, %v1119_v27, %v1123_v17  ;;  %v3208_v46 = vor.u32 %v3207_v30, %v3204_v28  ;;  %v3213_v47 = vrot.slane %v3211_v31, 5  ;;  %v3131_v38 = vld [vmem:[#allocation2 + $0x20] sm:$0x1] }
  0x45   : > { %v1129_v48 = vrot.slane %v1128_v39, 4  ;;  %v3217_v50 = vrot.slane %v3215_v40, 4  ;;  %v2134_v53 = vshrl.u32 %v2085_v35, 16  ;;  %v2137_v55 = vshll.u32 %v2085_v35, 16 }
  0x46   : > { %2567 = vrot.lane.b32.xlu1 %v10265_v43, %s11234_s9  ;;  %v3209_v54 = vrot.slane %v3208_v46, 4  ;;  %v2143_v56 = vshll.u32 %v2086_v41, 16  ;;  %v2147_v57 = vshrl.u32 %v2086_v41, 16  ;;  %v3223_v61 = vrot.slane %v3221_v51, 5  ;;  %v1045_v41 = vld [vmem:[#allocation2 + $0x24] sm:$0xf] }
  0x47   : > { %v1134_v59 = vsel %vm11418_vm10, %v1129_v48, %v1133_v25  ;;  %v3218_v60 = vor.u32 %v3217_v50, %v3213_v47  ;;  %v2136_v62 = vrot.slane %v2134_v53, 4  ;;  %v2139_v4 = vrot.slane %v2137_v55, 5  ;;  %v1046_v48 = vld [vmem:[#allocation2 + $0x28] sm:$0xf] }
  0x48   : > { %v10201_v1 = vcombine.low %v1124_v45, %v1134_v59  ;;  %v3214_v2 = vsel %vm11418_vm10, %v3209_v54, %v3213_v47  ;;  %v2145_v5 = vrot.slane %v2143_v56, 5  ;;  %v2149_v7 = vrot.slane %v2147_v57, 4  ;;  %v1047_v54 = vld [vmem:[#allocation2 + $0x2c] sm:$0x1]  ;;  %v1590_v59 = vld [vmem:[#allocation2 + $0x18] sm:$0xe] }
  0x49   : > { %v3219_v3 = vrot.slane %v3218_v60, 4  ;;  %v2153_v8 = vshll.u32 %v2087_v52, 16  ;;  %v1136_v9 = vshrl.u32 %v1042_v58, 16  ;;  %v2140_v11 = vor.u32 %v2139_v4, %v2136_v62 }
  0x4a   : > { %1521 = vrot.lane.b32.xlu0 %v10201_v1, %s11229_s28  ;;  %v1139_v13 = vshll.u32 %v1042_v58, 16  ;;  %v1145_v14 = vshll.u32 %v1043_v63, 16  ;;  %v1149_v15 = vshrl.u32 %v1043_v63, 16  ;;  %v2150_v19 = vor.u32 %v2149_v7, %v2145_v5  ;;  %v1591_v1 = vld [vmem:[#allocation2 + $0x1c] sm:$0xf] }
  0x4b   : > { %v3224_v17 = vsel %vm11418_vm10, %v3219_v3, %v3223_v61  ;;  %v2155_v20 = vrot.slane %v2153_v8, 5  ;;  %v1138_v21 = vrot.slane %v1136_v9, 4  ;;  %v2141_v24 = vrot.slane %v2140_v11, 4  ;;  %v1592_v3 = vld [vmem:[#allocation2 + $0x20] sm:$0x1] }
  0x4c   : > { %v10329_v22 = vcombine.low %v3214_v2, %v3224_v17  ;;  %v1141_v25 = vrot.slane %v1139_v13, 5  ;;  %v1147_v26 = vrot.slane %v1145_v14, 5  ;;  %v2151_v27 = vrot.slane %v2150_v19, 4  ;;  %v1593_v11 = vld [vmem:[#allocation2 + $0x24] sm:$0xe] }
  0x4d   : > { %v1151_v28 = vrot.slane %v1149_v15, 4  ;;  %v1155_v30 = vshll.u32 %v1044_v6, 16  ;;  %v3178_v31 = vshrl.u32 %v3129_v10, 16  ;;  %v2146_v35 = vsel %vm11418_vm10, %v2141_v24, %v2145_v5  ;;  %v1594_v17 = vld [vmem:[#allocation2 + $0x28] sm:$0xf] }
  0x4e   : > { %3611 = vrot.lane.b32.xlu1 %v10329_v22, %s11235_s10  ;;  %v1142_v37 = vor.u32 %v1141_v25, %v1138_v21  ;;  %v3181_v39 = vshll.u32 %v3129_v10, 16  ;;  %v3187_v40 = vshll.u32 %v3130_v16, 16  ;;  %v2156_v43 = vsel %vm11418_vm10, %v2151_v27, %v2155_v20  ;;  %v1595_v24 = vld [vmem:[#allocation2 + $0x2c] sm:$0x1] }
  0x4f   : > { %v1152_v45 = vor.u32 %v1151_v28, %v1147_v26  ;;  %v1157_v46 = vrot.slane %v1155_v30, 5  ;;  %v3180_v47 = vrot.slane %v3178_v31, 4  ;;  %v10264_v50 = vcombine.low %v2146_v35, %v2156_v43 }
  0x50   : > { %v1143_v51 = vrot.slane %v1142_v37, 4  ;;  %v3183_v52 = vrot.slane %v3181_v39, 5  ;;  %v3189_v53 = vrot.slane %v3187_v40, 5  ;;  %v3191_v56 = vshrl.u32 %v3130_v16, 16 }
  0x51   : > { %v1153_v55 = vrot.slane %v1152_v45, 4  ;;  %v3197_v57 = vshll.u32 %v3131_v38, 16  ;;  %v1160_v58 = vshrl.u32 %v1045_v41, 16  ;;  %2565 = vrot.lane.b32.xlu0 %v10264_v50, %s11234_s9  ;;  %v1163_v62 = vshll.u32 %v1045_v41, 16  ;;  %v2091_v38 = vld [vmem:[#allocation2 + $0x24] sm:$0xf] }
  0x52   : > { %v1148_v60 = vsel %vm11418_vm10, %v1143_v51, %v1147_v26  ;;  %v3184_v61 = vor.u32 %v3183_v52, %v3180_v47  ;;  %v1169_v63 = vshll.u32 %v1046_v48, 16  ;;  %v3193_v4 = vrot.slane %v3191_v56, 4  ;;  %v2092_v45 = vld [vmem:[#allocation2 + $0x28] sm:$0xf]  ;;  %v2093_v51 = vld [vmem:[#allocation2 + $0x2c] sm:$0x1] }
  0x53   : > { %v1158_v2 = vsel %vm11418_vm10, %v1153_v55, %v1157_v46  ;;  %v3199_v5 = vrot.slane %v3197_v57, 5  ;;  %v1162_v6 = vrot.slane %v1160_v58, 4  ;;  %v1165_v9 = vrot.slane %v1163_v62, 5  ;;  %v804_v56 = vld [vmem:[#allocation2 + $0x38] sm:$0x1] }
  0x54   : > { %v10202_v7 = vcombine.low %v1148_v60, %v1158_v2  ;;  %v3185_v8 = vrot.slane %v3184_v61, 4  ;;  %v1171_v10 = vrot.slane %v1169_v63, 5  ;;  %v3194_v13 = vor.u32 %v3193_v4, %v3189_v53  ;;  %v2636_v61 = vld [vmem:[#allocation2 + $0x24] sm:$0xe]  ;;  %v2637_v62 = vld [vmem:[#allocation2 + $0x28] sm:$0xf] }
  0x55   : > { %v1173_v14 = vshrl.u32 %v1046_v48, 16  ;;  %v1179_v15 = vshll.u32 %v1047_v54, 16  ;;  %v10218_v16 = vrot.slane %v1590_v59, 9  ;;  %v1166_v20 = vor.u32 %v1165_v9, %v1162_v6  ;;  %v2638_v4 = vld [vmem:[#allocation2 + $0x2c] sm:$0x1] }
  0x56   : > { %1523 = vrot.lane.b32.xlu1 %v10202_v7, %s11229_s28  ;;  %v3190_v19 = vsel %vm11418_vm10, %v3185_v8, %v3189_v53  ;;  %v1699_v21 = vrot.slane %v1591_v1, 5  ;;  %v1702_v22 = vrot.slane %v1592_v3, 5  ;;  %v3195_v25 = vrot.slane %v3194_v13, 4  ;;  %v11115_v13 = vld [vmem:[#allocation2 + $0x24] sm:$0xff]  }
  0x57   : > { %v1175_v26 = vrot.slane %v1173_v14, 4  ;;  %v1181_v27 = vrot.slane %v1179_v15, 5  ;;  %v10219_v28 = vrot.slane %v1593_v11, 9  ;;  %v1167_v30 = vrot.slane %v1166_v20, 4 }
  0x58   : > { %v1700_v31 = vsel %vm11411_vm9, %v10218_v16, %v1699_v21  ;;  %v1701_v35 = vrot.slane %v1699_v21, 4  ;;  %v1706_v37 = vrot.slane %v1594_v17, 5  ;;  %v3200_v39 = vsel %vm11418_vm10, %v3195_v25, %v3199_v5 }
  0x59   : > { %v1176_v40 = vor.u32 %v1175_v26, %v1171_v10  ;;  %v1709_v41 = vrot.slane %v1595_v24, 5  ;;  %v511_v43 = vrot.slane %v11469_v32, 4  ;;  %v10328_v46 = vcombine.low %v3190_v19, %v3200_v39  ;;  %v2094_v32 = vld [vmem:[#allocation2 + $0x30] sm:$0xf] }
  0x5a   : > { %v1172_v47 = vsel %vm11418_vm10, %v1167_v30, %v1171_v10  ;;  %v1703_v48 = vsel %vm11411_vm9, %v1701_v35, %v1702_v22  ;;  %v1707_v50 = vsel %vm11411_vm9, %v10219_v28, %v1706_v37  ;;  %v1708_v54 = vrot.slane %v1706_v37, 4  ;;  %v2639_v28 = vld [vmem:[#allocation2 + $0x30] sm:$0xe] }
  0x5b   : > { %v1177_v52 = vrot.slane %v1176_v40, 4  ;;  %v10234_v53 = vcombine.low %v1700_v31, %v1703_v48  ;;  %v515_v55 = vrot.slane %v513_v33, 7  ;;  %3609 = vrot.lane.b32.xlu0 %v10328_v46, %s11235_s10  ;;  %v2182_v57 = vshrl.u32 %v2091_v38, 16  ;;  %v332_v48 = vld [vmem:[%s11404_s26 + $0x50] sm:$0xff] }
  0x5c   : > { %v2185_v58 = vshll.u32 %v2091_v38, 16  ;;  %v2191_v59 = vshll.u32 %v2092_v45, 16  ;;  %v2195_v60 = vshrl.u32 %v2092_v45, 16  ;;  %v1710_v1 = vsel %vm11411_vm9, %v1708_v54, %v1709_v41 }
  0x5d   : > { %v1182_v63 = vsel %vm11418_vm10, %v1177_v52, %v1181_v27  ;;  %v518_v2 = vor.u32 %v516_v44, %v515_v55  ;;  %v520_v33 = vrot.slane %v515_v55, 4  ;;  %v10235_v6 = vcombine.low %v1707_v50, %v1710_v1  ;;  %v333_v50 = vld [vmem:[%s11404_s26 + $0x58] sm:$0xff] }
  0x5e   : > { %v10203_v5 = vcombine.low %v1172_v47, %v1182_v63  ;;  %v2184_v3 = vrot.slane %v2182_v57, 4  ;;  %v2187_v7 = vrot.slane %v2185_v58, 5  ;;  %v2193_v9 = vrot.slane %v2191_v59, 5 }
  0x5f   : > { %v519_v8 = vsel %vm11426_vm11, %v511_v43, %v518_v2  ;;  %v2197_v10 = vrot.slane %v2195_v60, 4  ;;  %v2201_v11 = vshll.u32 %v2093_v51, 16  ;;  %1847 = vrot.lane.b32.xlu0 %v10234_v53, %s11228_s27  ;;  %v805_v44 = vsel %vm11440_vm13, %v520_v33, %v804_v56 }
  0x60   : > { %1525 = vrot.lane.b32.xlu1 %v10203_v5, %s11229_s28  ;;  %803 = vst.msk [vmem:[#allocation2 + $0x34] sm:$0xf] %vm266_vm0, %v519_v8  ;;  %v2188_v12 = vor.u32 %v2187_v7, %v2184_v3  ;;  %v2206_v14 = vshrl.u32 %v2094_v32, 16  ;;  %v2209_v15 = vshll.u32 %v2094_v32, 16  ;;  %806 = vst [vmem:[#allocation2 + $0x38] sm:$0x1] %v805_v44 }
  0x61   : > { %v2198_v16 = vor.u32 %v2197_v10, %v2193_v9  ;;  %v2203_v17 = vrot.slane %v2201_v11, 5  ;;  %v10282_v19 = vrot.slane %v2636_v61, 9  ;;  %v2742_v20 = vrot.slane %v2637_v62, 5  ;;  %v811_v5 = vld [vmem:[#allocation2 + $0x44] sm:$0x1] }
  0x62   : > { %v2189_v21 = vrot.slane %v2188_v12, 4  ;;  %v2208_v22 = vrot.slane %v2206_v14, 4  ;;  %v2211_v24 = vrot.slane %v2209_v15, 5  ;;  %v2745_v25 = vrot.slane %v2638_v4, 5  ;;  %v3135_v4 = vld [vmem:[#allocation2 + $0x30] sm:$0xf] }
  0x63   : > { %v2199_v26 = vrot.slane %v2198_v16, 4  ;;  %v2744_v27 = vrot.slane %v2742_v20, 4  ;;  %2024 = vrot.lane.b32.xlu0 %v11115_v13, %s11230_s29  ;;  %v2743_v31 = vsel %vm11411_vm9, %v10282_v19, %v2742_v20  ;;  %v522_v35 = vshrl.u32 %v11492_v18, 16  ;;  %v3680_v15 = vld [vmem:[#allocation2 + $0x30] sm:$0xe] }
  0x64   : > { %1849 = vrot.lane.b32.xlu1 %v10235_v6, %s11228_s27  ;;  %v2194_v30 = vsel %vm11418_vm10, %v2189_v21, %v2193_v9  ;;  %v525_v37 = vshll.u32 %v11492_v18, 16  ;;  %v530_v40 = vshrl.u32 %v11501_v34, 16  ;;  %v533_v41 = vshll.u32 %v11501_v34, 16  ;;  %v807_v18 = vld [vmem:[#allocation2 + $0x3c] sm:$0xf] }
  0x65   : > { %v2204_v38 = vsel %vm11418_vm10, %v2199_v26, %v2203_v17  ;;  %v2746_v39 = vsel %vm11411_vm9, %v2744_v27, %v2745_v25  ;;  %v2212_v45 = vor.u32 %v2211_v24, %v2208_v22  ;;  %v10283_v46 = vrot.slane %v2639_v28, 9 }
  0x66   : > { %v10266_v43 = vcombine.low %v2194_v30, %v2204_v38  ;;  %v524_v47 = vrot.slane %v522_v35, 7  ;;  %v532_v53 = vrot.slane %v530_v40, 7  ;;  %v10298_v32 = vcombine.low %v2743_v31, %v2746_v39 }
  0x67   : > { %v11116_v51 = vld [vmem:[#allocation2 + $0x30] sm:$0xff]   ;;  %v2096_v54 = vld [vmem:[#allocation2 + $0x38] sm:$0x1]  ;;  %v11591_v62 = vpack.c.bf16 %v332_v48, %v332_v48  ;;  %v2213_v63 = vrot.slane %v2212_v45, 4  ;;  %v11593_v9 = vpack.c.bf16 %v333_v50, %v333_v50  ;;  %v3226_v17 = vshrl.u32 %v3135_v4, 16  ;;  %v334_v50 = vld [vmem:[%s11404_s26 + $0x60] sm:$0xff] }
  0x68   : > { %v2095_v52 = vld [vmem:[#allocation2 + $0x34] sm:$0xf]  ;;  %2569 = vrot.lane.b32.xlu0 %v10266_v43, %s11234_s9  ;;  %v527_v58 = vor.u32 %v525_v37, %v524_v47  ;;  %2026 = vrot.lane.b32.xlu1 %v11116_v51, %s11230_s29  ;;  %v2225_v34 = vshll.u32 %v2096_v54, 16  ;;  %v2641_v59 = vld [vmem:[#allocation2 + $0x38] sm:$0x1]  ;;  %v535_v61 = vor.u32 %v533_v41, %v532_v53  ;;  %v528_v33 = vrot.slane %v524_v47, 4 }
  0x69   : > { %v2215_v55 = vshll.u32 %v2095_v52, 16  ;;  %v2219_v56 = vshrl.u32 %v2095_v52, 16  ;;  %v2640_v57 = vld [vmem:[#allocation2 + $0x34] sm:$0xf]  ;;  %v2752_v3 = vrot.slane %v2641_v59, 5  ;;  %v537_v7 = vrot.slane %v532_v53, 4 }
  0x6a   : > { %v2749_v60 = vrot.slane %v2640_v57, 5  ;;  %v2227_v6 = vrot.slane %v2225_v34, 5  ;;  %v3136_v8 = vld [vmem:[#allocation2 + $0x34] sm:$0xf]  ;;  %v536_v12 = vsel %vm11426_vm11, %v528_v33, %v535_v61  ;;  %v808_v44 = vsel %vm11432_vm12, %v527_v58, %v807_v18  ;;  %v3137_v14 = vld [vmem:[#allocation2 + $0x38] sm:$0x1] }
  0x6b   : > { %v2217_v1 = vrot.slane %v2215_v55, 5  ;;  %v2221_v2 = vrot.slane %v2219_v56, 4  ;;  %v11117_v13 = vld [vmem:[#allocation2 + $0x30] sm:$0xff]   ;;  %809 = vst [vmem:[#allocation2 + $0x3c] sm:$0xf] %v808_v44  ;;  %v3229_v19 = vshll.u32 %v3135_v4, 16  ;;  %v812_v35 = vsel %vm11440_vm13, %v537_v7, %v811_v5 }
  0x6c   : > { %2890 = vrot.lane.b32.xlu0 %v10298_v32, %s11232_s7  ;;  %v2751_v11 = vrot.slane %v2749_v60, 4  ;;  %v2750_v16 = vsel %vm11411_vm9, %v10283_v46, %v2749_v60  ;;  %810 = vst.msk [vmem:[#allocation2 + $0x40] sm:$0xf] %vm266_vm0, %v536_v12  ;;  %v3235_v20 = vshll.u32 %v3136_v8, 16  ;;  %v3681_v21 = vld [vmem:[#allocation2 + $0x34] sm:$0xf]  ;;  %v11616_v59 = vpack.c.bf16 %v334_v50, %v334_v50 }
  0x6d   : > { %v2222_v10 = vor.u32 %v2221_v2, %v2217_v1  ;;  %v2218_v22 = vsel %vm11418_vm10, %v2213_v63, %v2217_v1  ;;  %v3239_v25 = vshrl.u32 %v3136_v8, 16  ;;  %v3245_v26 = vshll.u32 %v3137_v14, 16  ;;  %v3682_v27 = vld [vmem:[#allocation2 + $0x38] sm:$0x1]  ;;  %v1048_v37 = vld [vmem:[#allocation2 + $0x30] sm:$0xf] }
  0x6e   : > { %v3228_v28 = vrot.slane %v3226_v17, 4  ;;  %v3231_v30 = vrot.slane %v3229_v19, 5  ;;  %v3237_v31 = vrot.slane %v3235_v20, 5  ;;  %v2753_v39 = vsel %vm11411_vm9, %v2751_v11, %v2752_v3  ;;  %813 = vst [vmem:[#allocation2 + $0x44] sm:$0x1] %v812_v35 }
  0x6f   : > { %v2223_v24 = vrot.slane %v2222_v10, 4  ;;  %v3241_v40 = vrot.slane %v3239_v25, 4  ;;  %v10346_v41 = vrot.slane %v3680_v15, 9  ;;  %v1049_v43 = vld [vmem:[#allocation2 + $0x34] sm:$0xf]  ;;  %v3786_v47 = vrot.slane %v3681_v21, 5 }
  0x70   : > { %3068 = vrot.lane.b32.xlu0 %v11117_v13, %s11231_s30  ;;  %v3232_v46 = vor.u32 %v3231_v30, %v3228_v28  ;;  %v3789_v48 = vrot.slane %v3682_v27, 5  ;;  %v3247_v52 = vrot.slane %v3245_v26, 5  ;;  %v1184_v53 = vshrl.u32 %v1048_v37, 16  ;;  %v1050_v2 = vld [vmem:[#allocation2 + $0x38] sm:$0x1] }
  0x71   : > { %v2228_v38 = vsel %vm11418_vm10, %v2223_v24, %v2227_v6  ;;  %v3242_v51 = vor.u32 %v3241_v40, %v3237_v31  ;;  %v1187_v18 = vshll.u32 %v1048_v37, 16  ;;  %v10299_v54 = vcombine.low %v2750_v16, %v2753_v39 }
  0x72   : > { %v10267_v45 = vcombine.low %v2218_v22, %v2228_v38  ;;  %v3233_v55 = vrot.slane %v3232_v46, 4  ;;  %v3788_v56 = vrot.slane %v3786_v47, 4  ;;  %v1193_v32 = vshll.u32 %v1049_v43, 16  ;;  %v3138_v61 = vld [vmem:[#allocation2 + $0x3c] sm:$0xf] }
  0x73   : > { %v3243_v57 = vrot.slane %v3242_v51, 4  ;;  %v3787_v58 = vsel %vm11411_vm9, %v10346_v41, %v3786_v47  ;;  %v1197_v34 = vshrl.u32 %v1049_v43, 16  ;;  %v3139_v63 = vld [vmem:[#allocation2 + $0x40] sm:$0xf]  ;;  %v1186_v33 = vrot.slane %v1184_v53, 4 }
  0x74   : > { %2571 = vrot.lane.b32.xlu1 %v10267_v45, %s11234_s9  ;;  %v3238_v60 = vsel %vm11418_vm10, %v3233_v55, %v3237_v31  ;;  %v3790_v1 = vsel %vm11411_vm9, %v3788_v56, %v3789_v48  ;;  %v1189_v4 = vrot.slane %v1187_v18, 5  ;;  %v3250_v6 = vshrl.u32 %v3138_v61, 16  ;;  %v3683_v8 = vld [vmem:[#allocation2 + $0x3c] sm:$0xe]  ;;  %v3684_v15 = vld [vmem:[#allocation2 + $0x40] sm:$0xf] }
  0x75   : > { %v3248_v5 = vsel %vm11418_vm10, %v3243_v57, %v3247_v52  ;;  %v3253_v3 = vshll.u32 %v3138_v61, 16  ;;  %v3259_v7 = vshll.u32 %v3139_v63, 16  ;;  %v11118_v10 = vld [vmem:[#allocation2 + $0x3c] sm:$0xff]   ;;  %v3140_v13 = vld [vmem:[#allocation2 + $0x44] sm:$0x1]  ;;  %v3263_v12 = vshrl.u32 %v3139_v63, 16 }
  0x76   : > { %v10330_v11 = vcombine.low %v3238_v60, %v3248_v5  ;;  %v10362_v44 = vcombine.low %v3787_v58, %v3790_v1  ;;  %v1190_v14 = vor.u32 %v1189_v4, %v1186_v33  ;;  %v3252_v16 = vrot.slane %v3250_v6, 4  ;;  %v3685_v21 = vld [vmem:[#allocation2 + $0x44] sm:$0x1]  ;;  %v1051_v27 = vld [vmem:[#allocation2 + $0x3c] sm:$0xf] }
  0x77   : > { %v3255_v17 = vrot.slane %v3253_v3, 5  ;;  %v3261_v19 = vrot.slane %v3259_v7, 5  ;;  %v3269_v20 = vshll.u32 %v3140_v13, 16  ;;  %v3265_v22 = vrot.slane %v3263_v12, 4  ;;  %v1052_v41 = vld [vmem:[#allocation2 + $0x40] sm:$0xf] }
  0x78   : > { %2892 = vrot.lane.b32.xlu1 %v10299_v54, %s11232_s7  ;;  %3613 = vrot.lane.b32.xlu0 %v10330_v11, %s11235_s10  ;;  %v1191_v24 = vrot.slane %v1190_v14, 4  ;;  %v1195_v25 = vrot.slane %v1193_v32, 5  ;;  %v1199_v26 = vrot.slane %v1197_v34, 4  ;;  %v1203_v31 = vshll.u32 %v1050_v2, 16  ;;  %v1596_v48 = vld [vmem:[#allocation2 + $0x30] sm:$0xe] }
  0x79   : > { %v3256_v28 = vor.u32 %v3255_v17, %v3252_v16  ;;  %v3271_v30 = vrot.slane %v3269_v20, 5  ;;  %v10347_v35 = vrot.slane %v3683_v8, 9  ;;  %v3266_v37 = vor.u32 %v3265_v22, %v3261_v19  ;;  %v1053_v18 = vld [vmem:[#allocation2 + $0x44] sm:$0x1]  ;;  %v1597_v54 = vld [vmem:[#allocation2 + $0x34] sm:$0xf] }
  0x7a   : > { %v1196_v38 = vsel %vm11418_vm10, %v1191_v24, %v1195_v25  ;;  %v1200_v39 = vor.u32 %v1199_v26, %v1195_v25  ;;  %v3793_v40 = vrot.slane %v3684_v15, 5  ;;  %v1205_v45 = vrot.slane %v1203_v31, 5  ;;  %v1598_v55 = vld [vmem:[#allocation2 + $0x38] sm:$0x1]  ;;  %v11132_v34 = vld [vmem:[%s13985_s1] sm:$0xff]   ;;  %v11135_v16 = vld [vmem:[%s13985_s1 + $0x8] sm:$0xff]  }
  0x7b   : > { %v3257_v43 = vrot.slane %v3256_v28, 4  ;;  %v3796_v46 = vrot.slane %v3685_v21, 5  ;;  %v1208_v47 = vshrl.u32 %v1051_v27, 16  ;;  %v3267_v50 = vrot.slane %v3266_v37, 4  ;;  %v1599_v2 = vld [vmem:[#allocation2 + $0x3c] sm:$0xe]  ;;  %11007 = vmatprep.subr.bf16.mxu0 %v11132_v34 }
  0x7c   : > { %3070 = vrot.lane.b32.xlu1 %v11118_v10, %s11231_s30  ;;  %3934 = vrot.lane.b32.xlu0 %v10362_v44, %s11233_s8  ;;  %v1201_v51 = vrot.slane %v1200_v39, 4  ;;  %v3794_v52 = vsel %vm11411_vm9, %v10347_v35, %v3793_v40  ;;  %v3795_v53 = vrot.slane %v3793_v40, 4  ;;  %v1211_v57 = vshll.u32 %v1051_v27, 16  ;;  %v1600_v3 = vld [vmem:[#allocation2 + $0x40] sm:$0xf] }
  0x7d   : > { %v3262_v56 = vsel %vm11418_vm10, %v3257_v43, %v3261_v19  ;;  %v1210_v32 = vrot.slane %v1208_v47, 4  ;;  %v1217_v58 = vshll.u32 %v1052_v41, 16  ;;  %v3272_v60 = vsel %vm11418_vm10, %v3267_v50, %v3271_v30  ;;  %v1601_v7 = vld [vmem:[#allocation2 + $0x44] sm:$0x1]  ;;  %11008 = vmatpush3.bf16.msra.mxu0 %v11132_v34  ;;  %v2097_v27 = vld [vmem:[#allocation2 + $0x3c] sm:$0xf] }
  0x7e   : > { %v1206_v61 = vsel %vm11418_vm10, %v1201_v51, %v1205_v45  ;;  %v3797_v63 = vsel %vm11411_vm9, %v3795_v53, %v3796_v46  ;;  %v1221_v1 = vshrl.u32 %v1052_v41, 16  ;;  %v10331_v33 = vcombine.low %v3262_v56, %v3272_v60  ;;  %11009 = vmatprep.subr.bf16.mxu0 %v11135_v16  ;;  %v2098_v37 = vld [vmem:[#allocation2 + $0x40] sm:$0xf]  ;;  %v2099_v50 = vld [vmem:[#allocation2 + $0x44] sm:$0x1] }
  0x7f   : > { %v10204_v4 = vcombine.low %v1196_v38, %v1206_v61  ;;  %v10363_v5 = vcombine.low %v3794_v52, %v3797_v63  ;;  %v1213_v6 = vrot.slane %v1211_v57, 5  ;;  %v1219_v8 = vrot.slane %v1217_v58, 5  ;;  %v335_v38 = vld [vmem:[%s11404_s26 + $0x68] sm:$0xff]  ;;  %v11119_v52 = vld [vmem:[#allocation2 + $0x3c] sm:$0xff]  }
  0x80   : > { %v1223_v10 = vrot.slane %v1221_v1, 4  ;;  %v1227_v11 = vshll.u32 %v1053_v18, 16  ;;  %v10220_v13 = vrot.slane %v1596_v48, 9  ;;  %3615 = vrot.lane.b32.xlu1 %v10331_v33, %s11235_s10  ;;  %v1713_v44 = vrot.slane %v1597_v54, 5  ;;  %v814_v48 = vld [vmem:[#allocation2 + $0x48] sm:$0xf] }
  0x81   : > { %3936 = vrot.lane.b32.xlu0 %v10363_v5, %s11233_s8  ;;  %v1214_v12 = vor.u32 %v1213_v6, %v1210_v32  ;;  %v1716_v14 = vrot.slane %v1598_v55, 5  ;;  %v10221_v15 = vrot.slane %v1599_v2, 9  ;;  %v1720_v20 = vrot.slane %v1600_v3, 5  ;;  %11010 = vmatpush3.bf16.msra.mxu0 %v11135_v16  ;;  %v2642_v54 = vld [vmem:[#allocation2 + $0x3c] sm:$0xe] }
  0x82   : > { %v1224_v17 = vor.u32 %v1223_v10, %v1219_v8  ;;  %v1229_v19 = vrot.slane %v1227_v11, 5  ;;  %v1723_v21 = vrot.slane %v1601_v7, 5  ;;  %v1714_v24 = vsel %vm11411_vm9, %v10220_v13, %v1713_v44  ;;  %v2643_v34 = vld [vmem:[#allocation2 + $0x40] sm:$0xf]  ;;  %v818_v1 = vld [vmem:[#allocation2 + $0x50] sm:$0x1] }
  0x83   : > { %v1215_v22 = vrot.slane %v1214_v12, 4  ;;  %v1715_v25 = vrot.slane %v1713_v44, 4  ;;  %v539_v26 = vshrl.u32 %v11591_v62, 16  ;;  %v1721_v30 = vsel %vm11411_vm9, %v10221_v15, %v1720_v20  ;;  %v2644_v6 = vld [vmem:[#allocation2 + $0x44] sm:$0x1] }
  0x84   : > { %v1225_v28 = vrot.slane %v1224_v17, 4  ;;  %v1722_v31 = vrot.slane %v1720_v20, 4  ;;  %v542_v35 = vshll.u32 %v11591_v62, 16  ;;  %1527 = vrot.lane.b32.xlu1 %v10204_v4, %s11229_s28  ;;  %v547_v43 = vshrl.u32 %v11593_v9, 16 }
  0x85   : > { %v1220_v39 = vsel %vm11418_vm10, %v1215_v22, %v1219_v8  ;;  %v1717_v40 = vsel %vm11411_vm9, %v1715_v25, %v1716_v14  ;;  %v541_v41 = vrot.slane %v539_v26, 7  ;;  %v550_v47 = vshll.u32 %v11593_v9, 16 }
  0x86   : > { %v1230_v45 = vsel %vm11418_vm10, %v1225_v28, %v1229_v19  ;;  %v10236_v46 = vcombine.low %v1714_v24, %v1717_v40  ;;  %v1724_v62 = vsel %vm11411_vm9, %v1722_v31, %v1723_v21  ;;  %v10852_v55 = vpack.c.bf16 %v335_v38, %v335_v38  ;;  %v821_v28 = vld [vmem:[#allocation2 + $0x54] sm:$0xf]  ;;  %v825_v40 = vld [vmem:[#allocation2 + $0x5c] sm:$0x1] }
  0x87   : > { %v10205_v51 = vcombine.low %v1220_v39, %v1230_v45  ;;  %v544_v53 = vor.u32 %v542_v35, %v541_v41  ;;  %v545_v18 = vrot.slane %v541_v41, 4  ;;  %v549_v56 = vrot.slane %v547_v43, 7 }
  0x88   : > { %1851 = vrot.lane.b32.xlu0 %v10236_v46, %s11228_s27  ;;  %v2230_v32 = vshrl.u32 %v2097_v27, 16  ;;  %v2233_v57 = vshll.u32 %v2097_v27, 16  ;;  %v2239_v58 = vshll.u32 %v2098_v37, 16  ;;  %v10237_v60 = vcombine.low %v1721_v30, %v1724_v62  ;;  %v336_v30 = vld [vmem:[%s11404_s26 + $0x70] sm:$0xff] }
  0x89   : > { %1529 = vrot.lane.b32.xlu1 %v10205_v51, %s11229_s28  ;;  %v815_v9 = vsel %vm11432_vm12, %v544_v53, %v814_v48  ;;  %v2243_v61 = vshrl.u32 %v2098_v37, 16  ;;  %v2249_v63 = vshll.u32 %v2099_v50, 16  ;;  %v552_v2 = vor.u32 %v550_v47, %v549_v56  ;;  %v338_v53 = vld [vmem:[%s11404_s26 + $0x80] sm:$0xff] }
  0x8a   : > { %v554_v33 = vrot.slane %v549_v56, 4  ;;  %816 = vst [vmem:[#allocation2 + $0x48] sm:$0xf] %v815_v9  ;;  %v2232_v4 = vrot.slane %v2230_v32, 4  ;;  %v2235_v5 = vrot.slane %v2233_v57, 5  ;;  %v2241_v3 = vrot.slane %v2239_v58, 5 }
  0x8b   : > { %v2245_v7 = vrot.slane %v2243_v61, 4  ;;  %v10284_v8 = vrot.slane %v2642_v54, 9  ;;  %v2756_v10 = vrot.slane %v2643_v34, 5  ;;  %v553_v11 = vsel %vm11426_vm11, %v545_v18, %v552_v2  ;;  %v339_v61 = vld [vmem:[%s11404_s26 + $0x88] sm:$0xff] }
  0x8c   : > { %2028 = vrot.lane.b32.xlu0 %v11119_v52, %s11230_s29  ;;  %v2236_v13 = vor.u32 %v2235_v5, %v2232_v4  ;;  %v2251_v12 = vrot.slane %v2249_v63, 5  ;;  %v819_v44 = vsel %vm11440_vm13, %v554_v33, %v818_v1  ;;  %817 = vst.msk [vmem:[#allocation2 + $0x4c] sm:$0xf] %vm266_vm0, %v553_v11  ;;  %v2759_v16 = vrot.slane %v2644_v6, 5  ;;  %v337_v52 = vld [vmem:[%s11404_s26 + $0x78] sm:$0xff] }
  0x8d   : > { %1853 = vrot.lane.b32.xlu1 %v10237_v60, %s11228_s27  ;;  %v2246_v14 = vor.u32 %v2245_v7, %v2241_v3  ;;  %820 = vst [vmem:[#allocation2 + $0x50] sm:$0x1] %v819_v44  ;;  %v2758_v15 = vrot.slane %v2756_v10, 4  ;;  %v556_v17 = vshrl.u32 %v11616_v59, 16  ;;  %v559_v20 = vshll.u32 %v11616_v59, 16 }
  0x8e   : > { %v2237_v19 = vrot.slane %v2236_v13, 4  ;;  %v564_v21 = vshrl.u32 %v10852_v55, 16  ;;  %v567_v25 = vshll.u32 %v10852_v55, 16  ;;  %v2757_v37 = vsel %vm11411_vm9, %v10284_v8, %v2756_v10 }
  0x8f   : > { %v2247_v22 = vrot.slane %v2246_v14, 4  ;;  %v558_v24 = vrot.slane %v556_v17, 7  ;;  %v2760_v59 = vsel %vm11411_vm9, %v2758_v15, %v2759_v16  ;;  %v11693_v32 = vpack.c.bf16 %v336_v30, %v336_v30 }
  0x90   : > { %v2242_v26 = vsel %vm11418_vm10, %v2237_v19, %v2241_v3  ;;  %v566_v27 = vrot.slane %v564_v21, 7  ;;  %v10300_v56 = vcombine.low %v2757_v37, %v2760_v59  ;;  %v11702_v5 = vpack.c.bf16 %v337_v52, %v337_v52 }
  0x91   : > { %v2252_v31 = vsel %vm11418_vm10, %v2247_v22, %v2251_v12  ;;  %v2100_v35 = vld [vmem:[#allocation2 + $0x48] sm:$0xf]  ;;  %v561_v39 = vor.u32 %v559_v20, %v558_v24  ;;  %v562_v62 = vrot.slane %v558_v24, 4  ;;  %v11705_v14 = vpack.c.bf16 %v338_v53, %v338_v53 }
  0x92   : > { %v2645_v38 = vld [vmem:[#allocation2 + $0x48] sm:$0xe]  ;;  %v10268_v41 = vcombine.low %v2242_v26, %v2252_v31  ;;  %v2254_v43 = vshrl.u32 %v2100_v35, 16  ;;  %v2257_v45 = vshll.u32 %v2100_v35, 16  ;;  %v569_v47 = vor.u32 %v567_v25, %v566_v27 }
  0x93   : > { %v10285_v46 = vrot.slane %v2645_v38, 9  ;;  %v571_v48 = vrot.slane %v566_v27, 4  ;;  %v822_v50 = vsel %vm11432_vm12, %v561_v39, %v821_v28  ;;  %v3141_v51 = vld [vmem:[#allocation2 + $0x48] sm:$0xf]  ;;  %v2101_v54 = vld [vmem:[#allocation2 + $0x4c] sm:$0xf]  ;;  %v11707_v15 = vpack.c.bf16 %v339_v61, %v339_v61 }
  0x94   : > { %v11120_v18 = vld [vmem:[#allocation2 + $0x48] sm:$0xff]   ;;  %2573 = vrot.lane.b32.xlu0 %v10268_v41, %s11234_s9  ;;  %v2256_v55 = vrot.slane %v2254_v43, 4  ;;  %823 = vst [vmem:[#allocation2 + $0x54] sm:$0xf] %v822_v50  ;;  %v2102_v57 = vld [vmem:[#allocation2 + $0x50] sm:$0x1]  ;;  %v570_v9 = vsel %vm11426_vm11, %v562_v62, %v569_v47 }
  0x95   : > { %v2259_v58 = vrot.slane %v2257_v45, 5  ;;  %v2263_v34 = vshll.u32 %v2101_v54, 16  ;;  %v2267_v60 = vshrl.u32 %v2101_v54, 16  ;;  %2030 = vrot.lane.b32.xlu1 %v11120_v18, %s11230_s29  ;;  %v2273_v63 = vshll.u32 %v2102_v57, 16  ;;  %v2646_v1 = vld [vmem:[#allocation2 + $0x4c] sm:$0xf] }
  0x96   : > { %v2647_v2 = vld [vmem:[#allocation2 + $0x50] sm:$0x1]  ;;  %824 = vst.msk [vmem:[#allocation2 + $0x58] sm:$0xf] %vm266_vm0, %v570_v9  ;;  %v3274_v33 = vshrl.u32 %v3141_v51, 16  ;;  %v826_v4 = vsel %vm11440_vm13, %v571_v48, %v825_v40  ;;  %v2763_v8 = vrot.slane %v2646_v1, 5 }
  0x97   : > { %v2260_v6 = vor.u32 %v2259_v58, %v2256_v55  ;;  %v2265_v3 = vrot.slane %v2263_v34, 5  ;;  %v2269_v7 = vrot.slane %v2267_v60, 4  ;;  %v11121_v10 = vld [vmem:[#allocation2 + $0x48] sm:$0xff]   ;;  %827 = vst [vmem:[#allocation2 + $0x5c] sm:$0x1] %v826_v4  ;;  %v2275_v11 = vrot.slane %v2273_v63, 5  ;;  %v11723_v63 = vpop.permute.xlu1 %1843 }
  0x98   : > { %2894 = vrot.lane.b32.xlu0 %v10300_v56, %s11232_s7  ;;  %v2766_v13 = vrot.slane %v2647_v2, 5  ;;  %v3142_v12 = vld [vmem:[#allocation2 + $0x4c] sm:$0xf]  ;;  %v3143_v44 = vld [vmem:[#allocation2 + $0x50] sm:$0x1]  ;;  %v2764_v19 = vsel %vm11411_vm9, %v10285_v46, %v2763_v8  ;;  %v2765_v20 = vrot.slane %v2763_v8, 4  ;;  %v11715_v35 = vpop.permute.xlu0 %1519 }
  0x99   : > { %v2261_v16 = vrot.slane %v2260_v6, 4  ;;  %v2270_v17 = vor.u32 %v2269_v7, %v2265_v3  ;;  %v3276_v21 = vrot.slane %v3274_v33, 4  ;;  %v3277_v22 = vshll.u32 %v3141_v51, 16  ;;  %v3686_v39 = vld [vmem:[#allocation2 + $0x48] sm:$0xe] }
  0x9a   : > { %v3283_v24 = vshll.u32 %v3142_v12, 16  ;;  %v3287_v25 = vshrl.u32 %v3142_v12, 16  ;;  %v2767_v28 = vsel %vm11411_vm9, %v2765_v20, %v2766_v13  ;;  %v3293_v30 = vshll.u32 %v3143_v44, 16  ;;  %v3687_v53 = vld [vmem:[#allocation2 + $0x4c] sm:$0xf] }
  0x9b   : > { %v2266_v26 = vsel %vm11418_vm10, %v2261_v16, %v2265_v3  ;;  %v2271_v27 = vrot.slane %v2270_v17, 4  ;;  %v3144_v31 = vld [vmem:[#allocation2 + $0x54] sm:$0xf]  ;;  %v3279_v37 = vrot.slane %v3277_v22, 5  ;;  %v573_v40 = vshrl.u32 %v11693_v32, 16 }
  0x9c   : > { %3072 = vrot.lane.b32.xlu0 %v11121_v10, %s11231_s30  ;;  %v3285_v59 = vrot.slane %v3283_v24, 5  ;;  %v3289_v38 = vrot.slane %v3287_v25, 4  ;;  %v10301_v43 = vcombine.low %v2764_v19, %v2767_v28  ;;  %v3295_v45 = vrot.slane %v3293_v30, 5  ;;  %v3688_v57 = vld [vmem:[#allocation2 + $0x50] sm:$0x1] }
  0x9d   : > { %v2276_v41 = vsel %vm11418_vm10, %v2271_v27, %v2275_v11  ;;  %v3145_v46 = vld [vmem:[#allocation2 + $0x58] sm:$0xf]  ;;  %v576_v62 = vshll.u32 %v11693_v32, 16  ;;  %v3280_v48 = vor.u32 %v3279_v37, %v3276_v21  ;;  %v3298_v52 = vshrl.u32 %v3144_v31, 16  ;;  %v1054_v61 = vld [vmem:[#allocation2 + $0x48] sm:$0xf] }
  0x9e   : > { %v10269_v47 = vcombine.low %v2266_v26, %v2276_v41  ;;  %v3290_v50 = vor.u32 %v3289_v38, %v3285_v59  ;;  %v3146_v51 = vld [vmem:[#allocation2 + $0x5c] sm:$0x1]  ;;  %v3301_v18 = vshll.u32 %v3144_v31, 16  ;;  %v3307_v54 = vshll.u32 %v3145_v46, 16  ;;  %v1055_v6 = vld [vmem:[#allocation2 + $0x4c] sm:$0xf] }
  0x9f   : > { %v3311_v55 = vshrl.u32 %v3145_v46, 16  ;;  %v3317_v56 = vshll.u32 %v3146_v51, 16  ;;  %v3281_v58 = vrot.slane %v3280_v48, 4  ;;  %v3300_v60 = vrot.slane %v3298_v52, 4  ;;  %v1056_v16 = vld [vmem:[#allocation2 + $0x50] sm:$0x1] }
  0xa0   : > { %2575 = vrot.lane.b32.xlu1 %v10269_v47, %s11234_s9  ;;  %v3291_v34 = vrot.slane %v3290_v50, 4  ;;  %v10348_v9 = vrot.slane %v3686_v39, 9  ;;  %v3303_v1 = vrot.slane %v3301_v18, 5  ;;  %v3309_v2 = vrot.slane %v3307_v54, 5  ;;  %v3689_v19 = vld [vmem:[#allocation2 + $0x54] sm:$0xe] }
  0xa1   : > { %v3313_v33 = vrot.slane %v3311_v55, 4  ;;  %v3319_v4 = vrot.slane %v3317_v56, 5  ;;  %v11725_v3 = vpop.permute.xlu0 %2020  ;;  %v3286_v7 = vsel %vm11418_vm10, %v3281_v58, %v3285_v59  ;;  %v3800_v10 = vrot.slane %v3687_v53, 5  ;;  %v11122_v20 = vld [vmem:[#allocation2 + $0x54] sm:$0xff]   ;;  %v3691_v37 = vld [vmem:[#allocation2 + $0x5c] sm:$0x1] }
  0xa2   : > { %v3296_v8 = vsel %vm11418_vm10, %v3291_v34, %v3295_v45  ;;  %v3803_v11 = vrot.slane %v3688_v57, 5  ;;  %v3304_v12 = vor.u32 %v3303_v1, %v3300_v60  ;;  %v1232_v17 = vshrl.u32 %v1054_v61, 16  ;;  %v3690_v26 = vld [vmem:[#allocation2 + $0x58] sm:$0xf]  ;;  %v1059_v56 = vld [vmem:[#allocation2 + $0x5c] sm:$0x1] }
  0xa3   : > { %v10332_v13 = vcombine.low %v3286_v7, %v3296_v8  ;;  %v3314_v44 = vor.u32 %v3313_v33, %v3309_v2  ;;  %v3801_v21 = vsel %vm11411_vm9, %v10348_v9, %v3800_v10  ;;  %v3802_v22 = vrot.slane %v3800_v10, 4  ;;  %v1058_v51 = vld [vmem:[#allocation2 + $0x58] sm:$0xf]  ;;  %v1602_v9 = vld [vmem:[#allocation2 + $0x48] sm:$0xe] }
  0xa4   : > { %2896 = vrot.lane.b32.xlu1 %v10301_v43, %s11232_s7  ;;  %v1235_v24 = vshll.u32 %v1054_v61, 16  ;;  %v1241_v25 = vshll.u32 %v1055_v6, 16  ;;  %v3305_v27 = vrot.slane %v3304_v12, 4  ;;  %v1234_v30 = vrot.slane %v1232_v17, 4  ;;  %v1057_v43 = vld [vmem:[#allocation2 + $0x54] sm:$0xf] }
  0xa5   : > { %3617 = vrot.lane.b32.xlu0 %v10332_v13, %s11235_s10  ;;  %v3315_v28 = vrot.slane %v3314_v44, 4  ;;  %v1245_v31 = vshrl.u32 %v1055_v6, 16  ;;  %v3804_v59 = vsel %vm11411_vm9, %v3802_v22, %v3803_v11  ;;  %v1251_v41 = vshll.u32 %v1056_v16, 16  ;;  %v1604_v13 = vld [vmem:[#allocation2 + $0x50] sm:$0x1] }
  0xa6   : > { %v1237_v38 = vrot.slane %v1235_v24, 5  ;;  %v1243_v39 = vrot.slane %v1241_v25, 5  ;;  %v3310_v46 = vsel %vm11418_vm10, %v3305_v27, %v3309_v2  ;;  %v10364_v48 = vcombine.low %v3801_v21, %v3804_v59  ;;  %v1607_v27 = vld [vmem:[#allocation2 + $0x5c] sm:$0x1] }
  0xa7   : > { %v3320_v47 = vsel %vm11418_vm10, %v3315_v28, %v3319_v4  ;;  %v1247_v50 = vrot.slane %v1245_v31, 4  ;;  %v1253_v54 = vrot.slane %v1251_v41, 5  ;;  %v10349_v55 = vrot.slane %v3689_v19, 9  ;;  %v1603_v4 = vld [vmem:[#allocation2 + $0x4c] sm:$0xf] }
  0xa8   : > { %v11737_v45 = vpop.permute.xlu1 %2022  ;;  %3074 = vrot.lane.b32.xlu1 %v11122_v20, %s11231_s30  ;;  %v10333_v53 = vcombine.low %v3310_v46, %v3320_v47  ;;  %v1238_v18 = vor.u32 %v1237_v38, %v1234_v30  ;;  %v3807_v58 = vrot.slane %v3690_v26, 5  ;;  %v3810_v34 = vrot.slane %v3691_v37, 5  ;;  %v1605_v20 = vld [vmem:[#allocation2 + $0x54] sm:$0xe]  ;;  %v1606_v26 = vld [vmem:[#allocation2 + $0x58] sm:$0xf] }
  0xa9   : > { %v11743_v52 = vpop.permute.xlu0 %3064  ;;  %3938 = vrot.lane.b32.xlu0 %v10364_v48, %s11233_s8  ;;  %v1248_v57 = vor.u32 %v1247_v50, %v1243_v39  ;;  %v1256_v60 = vshrl.u32 %v1057_v43, 16  ;;  %v1259_v1 = vshll.u32 %v1057_v43, 16  ;;  %v1265_v2 = vshll.u32 %v1058_v51, 16 }
  0xaa   : > { %v1239_v61 = vrot.slane %v1238_v18, 4  ;;  %v1269_v33 = vshrl.u32 %v1058_v51, 16  ;;  %v3808_v8 = vsel %vm11411_vm9, %v10349_v55, %v3807_v58  ;;  %v3809_v10 = vrot.slane %v3807_v58, 4  ;;  %v2103_v18 = vld [vmem:[#allocation2 + $0x54] sm:$0xf] }
  0xab   : > { %v1249_v7 = vrot.slane %v1248_v57, 4  ;;  %v1258_v11 = vrot.slane %v1256_v60, 4  ;;  %v1261_v16 = vrot.slane %v1259_v1, 5  ;;  %v1267_v17 = vrot.slane %v1265_v2, 5  ;;  %v2104_v58 = vld [vmem:[#allocation2 + $0x58] sm:$0xf] }
  0xac   : > { %v11747_v6 = vpop.permute.xlu1 %3066  ;;  %3619 = vrot.lane.b32.xlu1 %v10333_v53, %s11235_s10  ;;  %v1244_v44 = vsel %vm11418_vm10, %v1239_v61, %v1243_v39  ;;  %v1271_v19 = vrot.slane %v1269_v33, 4  ;;  %v3811_v22 = vsel %vm11411_vm9, %v3809_v10, %v3810_v34  ;;  %v1275_v24 = vshll.u32 %v1059_v56, 16  ;;  %v828_v53 = vld [vmem:[#allocation2 + $0x60] sm:$0xf] }
  0xad   : > { %v11751_v12 = vpop.permute.xlu0 %2886  ;;  %v1254_v21 = vsel %vm11418_vm10, %v1249_v7, %v1253_v54  ;;  %v10222_v25 = vrot.slane %v1602_v9, 9  ;;  %v10365_v30 = vcombine.low %v3808_v8, %v3811_v22  ;;  %v1262_v31 = vor.u32 %v1261_v16, %v1258_v11 }
  0xae   : > { %v10206_v28 = vcombine.low %v1244_v44, %v1254_v21  ;;  %v1272_v37 = vor.u32 %v1271_v19, %v1267_v17  ;;  %v1277_v59 = vrot.slane %v1275_v24, 5  ;;  %v1727_v38 = vrot.slane %v1603_v4, 5  ;;  %v832_v4 = vld [vmem:[#allocation2 + $0x68] sm:$0x1]  ;;  %v2648_v44 = vld [vmem:[#allocation2 + $0x54] sm:$0xe] }
  0xaf   : > { %v1730_v39 = vrot.slane %v1604_v13, 5  ;;  %v10223_v41 = vrot.slane %v1605_v20, 9  ;;  %3940 = vrot.lane.b32.xlu0 %v10365_v30, %s11233_s8  ;;  %v1263_v47 = vrot.slane %v1262_v31, 4  ;;  %v1734_v50 = vrot.slane %v1606_v26, 5  ;;  %v2105_v13 = vld [vmem:[#allocation2 + $0x5c] sm:$0x1] }
  0xb0   : > { %v11760_v43 = vpop.permute.xlu1 %1845  ;;  %1531 = vrot.lane.b32.xlu1 %v10206_v28, %s11229_s28  ;;  %v1273_v48 = vrot.slane %v1272_v37, 4  ;;  %v1737_v51 = vrot.slane %v1607_v27, 5  ;;  %v1728_v54 = vsel %vm11411_vm9, %v10222_v25, %v1727_v38  ;;  %v1729_v55 = vrot.slane %v1727_v38, 4  ;;  %v11125_v20 = vld [vmem:[#allocation2] sm:$0xff]   ;;  %v11130_v24 = vld [vmem:[#allocation2 + $0xc] sm:$0xff]   ;;  %v11131_v25 = vld [vmem:[#allocation2 + $0x18] sm:$0xff]  }
  0xb1   : > { %v11762_v46 = vpop.permute.xlu0 %3930  ;;  %v575_v56 = vrot.slane %v573_v40, 7  ;;  %v581_v57 = vshrl.u32 %v11702_v5, 16  ;;  %v1268_v34 = vsel %vm11418_vm10, %v1263_v47, %v1267_v17  ;;  %v1735_v9 = vsel %vm11411_vm9, %v10223_v41, %v1734_v50  ;;  %v11133_v26 = vld [vmem:[#allocation2 + $0x24] sm:$0xff]   ;;  %v2650_v37 = vld [vmem:[#allocation2 + $0x5c] sm:$0x1]  ;;  %v11140_v47 = vld [vmem:[#allocation2 + $0x30] sm:$0xff]  }
  0xb2   : > { %v1278_v60 = vsel %vm11418_vm10, %v1273_v48, %v1277_v59  ;;  %v1736_v61 = vrot.slane %v1734_v50, 4  ;;  %v1731_v2 = vsel %vm11411_vm9, %v1729_v55, %v1730_v39  ;;  %v584_v11 = vshll.u32 %v11702_v5, 16  ;;  %v11123_v5 = vld [vmem:[#allocation2 + $0x54] sm:$0xff]   ;;  %v11141_v48 = vld [vmem:[#allocation2 + $0x3c] sm:$0xff]   ;;  %1020 = vst.msk [vmem:[#allocation4] sm:$0xff] %vm1019_vm14, %v11125_v20  ;;  %1021 = vst.msk [vmem:[#allocation4 + $0x8] sm:$0xff] %vm1019_vm14, %v11130_v24 }
  0xb3   : > { %v10207_v1 = vcombine.low %v1268_v34, %v1278_v60  ;;  %v578_v40 = vor.u32 %v576_v62, %v575_v56  ;;  %v579_v33 = vrot.slane %v575_v56, 4  ;;  %v10238_v7 = vcombine.low %v1728_v54, %v1731_v2  ;;  %v2649_v62 = vld [vmem:[#allocation2 + $0x58] sm:$0xf]  ;;  %1022 = vst.msk [vmem:[#allocation4 + $0x10] sm:$0xff] %vm1019_vm14, %v11131_v25  ;;  %1023 = vst.msk [vmem:[#allocation4 + $0x18] sm:$0xff] %vm1019_vm14, %v11133_v26 }
  0xb4   : > { %v1738_v8 = vsel %vm11411_vm9, %v1736_v61, %v1737_v51  ;;  %v583_v10 = vrot.slane %v581_v57, 7  ;;  %v2278_v19 = vshrl.u32 %v2103_v18, 16  ;;  %v2281_v32 = vshll.u32 %v2103_v18, 16  ;;  %v11787_v21 = vpop.permute.xlu1 %2888  ;;  %1024 = vst.msk [vmem:[#allocation4 + $0x20] sm:$0xff] %vm1019_vm14, %v11140_v47  ;;  %1025 = vst.msk [vmem:[#allocation4 + $0x28] sm:$0xff] %vm1019_vm14, %v11141_v48  ;;  %v341_v20 = vld [vmem:[%s11404_s26 + $0x98] sm:$0xff] }
  0xb5   : > { %1533 = vrot.lane.b32.xlu1 %v10207_v1, %s11229_s28  ;;  %v10239_v16 = vcombine.low %v1735_v9, %v1738_v8  ;;  %v829_v17 = vsel %vm11432_vm12, %v578_v40, %v828_v53  ;;  %v11789_v22 = vpop.permute.xlu0 %3932  ;;  %1855 = vrot.lane.b32.xlu0 %v10238_v7, %s11228_s27  ;;  %v2287_v30 = vshll.u32 %v2104_v58, 16  ;;  %v2291_v31 = vshrl.u32 %v2104_v58, 16 }
  0xb6   : > { %v586_v27 = vor.u32 %v584_v11, %v583_v10  ;;  %v588_v28 = vrot.slane %v583_v10, 4  ;;  %830 = vst [vmem:[#allocation2 + $0x60] sm:$0xf] %v829_v17  ;;  %v2280_v59 = vrot.slane %v2278_v19, 4  ;;  %v2283_v38 = vrot.slane %v2281_v32, 5 }
  0xb7   : > { %v2297_v39 = vshll.u32 %v2105_v13, 16  ;;  %v10286_v41 = vrot.slane %v2648_v44, 9  ;;  %v2289_v51 = vrot.slane %v2287_v30, 5  ;;  %v2293_v53 = vrot.slane %v2291_v31, 4  ;;  %v835_v30 = vld [vmem:[#allocation2 + $0x6c] sm:$0xf] }
  0xb8   : > { %v587_v50 = vsel %vm11426_vm11, %v579_v33, %v586_v27  ;;  %v833_v18 = vsel %vm11440_vm13, %v588_v28, %v832_v4  ;;  %v2284_v54 = vor.u32 %v2283_v38, %v2280_v59  ;;  %v2770_v56 = vrot.slane %v2649_v62, 5  ;;  %v11801_v61 = vpop.permute.xlu1 %2567  ;;  %v340_v4 = vld [vmem:[%s11404_s26 + $0x90] sm:$0xff] }
  0xb9   : > { %1857 = vrot.lane.b32.xlu1 %v10239_v16, %s11228_s27  ;;  %831 = vst.msk [vmem:[#allocation2 + $0x64] sm:$0xf] %vm266_vm0, %v587_v50  ;;  %v2299_v55 = vrot.slane %v2297_v39, 5  ;;  %834 = vst [vmem:[#allocation2 + $0x68] sm:$0x1] %v833_v18  ;;  %v2773_v57 = vrot.slane %v2650_v37, 5  ;;  %2032 = vrot.lane.b32.xlu0 %v11123_v5, %s11230_s29  ;;  %v2294_v58 = vor.u32 %v2293_v53, %v2289_v51 }
  0xba   : > { %vm1567_vm15 = vcmask 64544   ;;  %vm1891_vm1 = vcmask 97344   ;;  %v2285_v34 = vrot.slane %v2284_v54, 4  ;;  %v2772_v60 = vrot.slane %v2770_v56, 4 }
  0xbb   : > { %v590_v9 = vshrl.u32 %v11705_v14, 16  ;;  %v2295_v2 = vrot.slane %v2294_v58, 4  ;;  %v2771_v40 = vsel %vm11411_vm9, %v10286_v41, %v2770_v56  ;;  %1568 = vst.msk [vmem:[#allocation4] sm:$0xff] %vm1567_vm15, %v11715_v35  ;;  %v598_v33 = vshrl.u32 %v11707_v15, 16  ;;  %v839_v58 = vld [vmem:[#allocation2 + $0x74] sm:$0x1] }
  0xbc   : > { %v1522_v1 = vpop.permute.xlu0 %1521  ;;  %v2290_v7 = vsel %vm11418_vm10, %v2285_v34, %v2289_v51  ;;  %v2774_v10 = vsel %vm11411_vm9, %v2772_v60, %v2773_v57  ;;  %1892 = vst.msk [vmem:[#allocation4] sm:$0xff] %vm1891_vm1, %v11723_v63  ;;  %v593_v11 = vshll.u32 %v11705_v14, 16  ;;  %v601_v35 = vshll.u32 %v11707_v15, 16 }
  0xbd   : > { %1569 = vst.msk [vmem:[#allocation4 + $0x8] sm:$0xff] %vm1567_vm15, %v1522_v1  ;;  %v2106_v8 = vld [vmem:[#allocation2 + $0x60] sm:$0xf]  ;;  %v2300_v13 = vsel %vm11418_vm10, %v2295_v2, %v2299_v55  ;;  %v592_v32 = vrot.slane %v590_v9, 7  ;;  %v11827_v62 = vrot.slane %v598_v33, 7  ;;  %v10302_v14 = vcombine.low %v2771_v40, %v2774_v10 }
  0xbe   : > { %1893 = vst.msk [vmem:[#allocation4 + $0x8] sm:$0xff] %vm1891_vm1, %v11760_v43  ;;  %v2302_v44 = vshrl.u32 %v2106_v8, 16  ;;  %v2305_v16 = vshll.u32 %v2106_v8, 16  ;;  %v2651_v17 = vld [vmem:[#allocation2 + $0x60] sm:$0xe]  ;;  %v10270_v19 = vcombine.low %v2290_v7, %v2300_v13  ;;  %v11830_v26 = vpack.c.bf16 %v340_v4, %v340_v4 }
  0xbf   : > { %v10287_v28 = vrot.slane %v2651_v17, 9  ;;  %v3147_v31 = vld [vmem:[#allocation2 + $0x60] sm:$0xf]  ;;  %v595_v41 = vor.u32 %v593_v11, %v592_v32  ;;  %v596_v47 = vrot.slane %v592_v32, 4  ;;  %v603_v48 = vor.u32 %v601_v35, %v11827_v62 }
  0xc0   : > { %v11124_v24 = vld [vmem:[#allocation2 + $0x60] sm:$0xff]   ;;  %v2304_v25 = vrot.slane %v2302_v44, 4  ;;  %2577 = vrot.lane.b32.xlu0 %v10270_v19, %s11234_s9  ;;  %v2108_v15 = vld [vmem:[#allocation2 + $0x68] sm:$0x1]  ;;  %v2307_v43 = vrot.slane %v2305_v16, 5  ;;  %v11833_v37 = vpop.permute.xlu1 %3611  ;;  %v11839_v34 = vpack.c.bf16 %v341_v20, %v341_v20  ;;  %v605_v40 = vrot.slane %v11827_v62, 4 }
  0xc1   : > { %v2107_v63 = vld [vmem:[#allocation2 + $0x64] sm:$0xf]  ;;  %2034 = vrot.lane.b32.xlu1 %v11124_v24, %s11230_s29  ;;  %v2321_v59 = vshll.u32 %v2108_v15, 16  ;;  %v2653_v39 = vld [vmem:[#allocation2 + $0x68] sm:$0x1]  ;;  %v604_v56 = vsel %vm11426_vm11, %v596_v47, %v603_v48  ;;  %v836_v4 = vsel %vm11432_vm12, %v595_v41, %v835_v30  ;;  %vm2068_vm2 = vcmask 130144  }
  0xc2   : > { %v2311_v5 = vshll.u32 %v2107_v63, 16  ;;  %v2315_v27 = vshrl.u32 %v2107_v63, 16  ;;  %v2652_v38 = vld [vmem:[#allocation2 + $0x64] sm:$0xf]  ;;  %v2308_v50 = vor.u32 %v2307_v43, %v2304_v25  ;;  %v2780_v55 = vrot.slane %v2653_v39, 5  ;;  %2069 = vst.msk [vmem:[#allocation4] sm:$0xff] %vm2068_vm2, %v11725_v3 }
  0xc3   : > { %v2777_v18 = vrot.slane %v2652_v38, 5  ;;  %v2323_v54 = vrot.slane %v2321_v59, 5  ;;  %v3148_v57 = vld [vmem:[#allocation2 + $0x64] sm:$0xf]  ;;  %838 = vst.msk [vmem:[#allocation2 + $0x70] sm:$0xf] %vm266_vm0, %v604_v56  ;;  %v11854_v19 = vpop.permute.xlu0 %2565  ;;  %v840_v15 = vsel %vm11440_vm13, %v605_v40, %v839_v58 }
  0xc4   : > { %v2313_v51 = vrot.slane %v2311_v5, 5  ;;  %v2317_v53 = vrot.slane %v2315_v27, 4  ;;  %v2309_v60 = vrot.slane %v2308_v50, 4  ;;  %2898 = vrot.lane.b32.xlu0 %v10302_v14, %s11232_s7  ;;  %v11126_v2 = vld [vmem:[#allocation2 + $0x60] sm:$0xff]   ;;  %v3149_v7 = vld [vmem:[#allocation2 + $0x68] sm:$0x1] }
  0xc5   : > { %v2779_v1 = vrot.slane %v2777_v18, 4  ;;  %v3692_v33 = vld [vmem:[#allocation2 + $0x60] sm:$0xe]  ;;  %v3322_v8 = vshrl.u32 %v3147_v31, 16  ;;  %v3325_v10 = vshll.u32 %v3147_v31, 16  ;;  %v2778_v13 = vsel %vm11411_vm9, %v10287_v28, %v2777_v18  ;;  %2070 = vst.msk [vmem:[#allocation4 + $0x8] sm:$0xff] %vm2068_vm2, %v11737_v45 }
  0xc6   : > { %v2318_v9 = vor.u32 %v2317_v53, %v2313_v51  ;;  %v2314_v11 = vsel %vm11418_vm10, %v2309_v60, %v2313_v51  ;;  %837 = vst [vmem:[#allocation2 + $0x6c] sm:$0xf] %v836_v4  ;;  %v3331_v44 = vshll.u32 %v3148_v57, 16  ;;  %v3693_v16 = vld [vmem:[#allocation2 + $0x64] sm:$0xf]  ;;  %v3335_v63 = vshrl.u32 %v3148_v57, 16 }
  0xc7   : > { %v3694_v17 = vld [vmem:[#allocation2 + $0x68] sm:$0x1]  ;;  %v2781_v62 = vsel %vm11411_vm9, %v2779_v1, %v2780_v55  ;;  %v3324_v20 = vrot.slane %v3322_v8, 4  ;;  %v3327_v24 = vrot.slane %v3325_v10, 5  ;;  %v1060_v25 = vld [vmem:[#allocation2 + $0x60] sm:$0xf] }
  0xc8   : > { %v2319_v35 = vrot.slane %v2318_v9, 4  ;;  %v1524_v32 = vpop.permute.xlu1 %1523  ;;  %3076 = vrot.lane.b32.xlu0 %v11126_v2, %s11231_s30  ;;  %v3333_v45 = vrot.slane %v3331_v44, 5  ;;  %v3341_v14 = vshll.u32 %v3149_v7, 16  ;;  %v3337_v27 = vrot.slane %v3335_v63, 4  ;;  %841 = vst [vmem:[#allocation2 + $0x74] sm:$0x1] %v840_v15 }
  0xc9   : > { %1570 = vst.msk [vmem:[#allocation4 + $0x10] sm:$0xff] %vm1567_vm15, %v1524_v32  ;;  %v3328_v5 = vor.u32 %v3327_v24, %v3324_v20  ;;  %v10350_v28 = vrot.slane %v3692_v33, 9  ;;  %v342_v30 = vld [vmem:[%s11404_s26 + $0xa0] sm:$0xff]  ;;  %v3814_v59 = vrot.slane %v3693_v16, 5  ;;  %v3817_v38 = vrot.slane %v3694_v17, 5  ;;  %v343_v41 = vld [vmem:[%s11404_s26 + $0xa8] sm:$0xff] }
  0xca   : > { %v2324_v3 = vsel %vm11418_vm10, %v2319_v35, %v2323_v54  ;;  %v3343_v31 = vrot.slane %v3341_v14, 5  ;;  %v1280_v39 = vshrl.u32 %v1060_v25, 16  ;;  %v10303_v47 = vcombine.low %v2778_v13, %v2781_v62  ;;  %v3151_v51 = vld [vmem:[#allocation2 + $0x70] sm:$0xf]  ;;  %v1061_v8 = vld [vmem:[#allocation2 + $0x64] sm:$0xf] }
  0xcb   : > { %v10271_v43 = vcombine.low %v2314_v11, %v2324_v3  ;;  %v3329_v48 = vrot.slane %v3328_v5, 4  ;;  %v3338_v50 = vor.u32 %v3337_v27, %v3333_v45  ;;  %v1283_v53 = vshll.u32 %v1060_v25, 16  ;;  %v1062_v13 = vld [vmem:[#allocation2 + $0x68] sm:$0x1]  ;;  %v3696_v5 = vld [vmem:[#allocation2 + $0x70] sm:$0xf] }
  0xcc   : > { %v3355_v18 = vshll.u32 %v3151_v51, 16  ;;  %v3359_v54 = vshrl.u32 %v3151_v51, 16  ;;  %v3816_v55 = vrot.slane %v3814_v59, 4  ;;  %v11869_v57 = vpack.c.bf16 %v342_v30, %v342_v30 }
  0xcd   : > { %2579 = vrot.lane.b32.xlu1 %v10271_v43, %s11234_s9  ;;  %v11867_v56 = vpop.permute.xlu0 %3609  ;;  %v3334_v58 = vsel %vm11418_vm10, %v3329_v48, %v3333_v45  ;;  %v3339_v60 = vrot.slane %v3338_v50, 4  ;;  %v3150_v9 = vld [vmem:[#allocation2 + $0x6c] sm:$0xf]  ;;  %v3815_v1 = vsel %vm11411_vm9, %v10350_v28, %v3814_v59  ;;  %v11875_v2 = vpack.c.bf16 %v343_v41, %v343_v41  ;;  %v1064_v50 = vld [vmem:[#allocation2 + $0x70] sm:$0xf] }
  0xce   : > { %v3346_v40 = vshrl.u32 %v3150_v9, 16  ;;  %v3349_v33 = vshll.u32 %v3150_v9, 16  ;;  %v3357_v4 = vrot.slane %v3355_v18, 5  ;;  %v3361_v7 = vrot.slane %v3359_v54, 4  ;;  %v11127_v10 = vld [vmem:[#allocation2 + $0x6c] sm:$0xff]  }
  0xcf   : > { %v3344_v11 = vsel %vm11418_vm10, %v3339_v60, %v3343_v31  ;;  %v3818_v35 = vsel %vm11411_vm9, %v3816_v55, %v3817_v38  ;;  %v1282_v44 = vrot.slane %v1280_v39, 4  ;;  %v1285_v16 = vrot.slane %v1283_v53, 5  ;;  %v3152_v32 = vld [vmem:[#allocation2 + $0x74] sm:$0x1]  ;;  %v3695_v63 = vld [vmem:[#allocation2 + $0x6c] sm:$0xe] }
  0xd0   : > { %v10334_v17 = vcombine.low %v3334_v58, %v3344_v11  ;;  %v3348_v62 = vrot.slane %v3346_v40, 4  ;;  %v3351_v20 = vrot.slane %v3349_v33, 5  ;;  %v3362_v24 = vor.u32 %v3361_v7, %v3357_v4  ;;  %v1063_v27 = vld [vmem:[#allocation2 + $0x6c] sm:$0xf]  ;;  %v3697_v38 = vld [vmem:[#allocation2 + $0x74] sm:$0x1] }
  0xd1   : > { %2900 = vrot.lane.b32.xlu1 %v10303_v47, %s11232_s7  ;;  %v1848_v3 = vpop.permute.xlu0 %1847  ;;  %v3365_v45 = vshll.u32 %v3152_v32, 16  ;;  %v10366_v14 = vcombine.low %v3815_v1, %v3818_v35  ;;  %v1286_v15 = vor.u32 %v1285_v16, %v1282_v44  ;;  %v1289_v43 = vshll.u32 %v1061_v8, 16  ;;  %v1065_v40 = vld [vmem:[#allocation2 + $0x74] sm:$0x1]  ;;  %v1608_v35 = vld [vmem:[#allocation2 + $0x60] sm:$0xe] }
  0xd2   : > { %v1526_v25 = vpop.permute.xlu1 %1525  ;;  %1894 = vst.msk [vmem:[#allocation4 + $0x10] sm:$0xff] %vm1891_vm1, %v1848_v3  ;;  %3621 = vrot.lane.b32.xlu0 %v10334_v17, %s11235_s10  ;;  %v3352_v28 = vor.u32 %v3351_v20, %v3348_v62  ;;  %v3363_v30 = vrot.slane %v3362_v24, 4  ;;  %v1293_v31 = vshrl.u32 %v1061_v8, 16  ;;  %v1299_v59 = vshll.u32 %v1062_v13, 16  ;;  %v1609_v13 = vld [vmem:[#allocation2 + $0x64] sm:$0xf] }
  0xd3   : > { %1571 = vst.msk [vmem:[#allocation4 + $0x18] sm:$0xff] %vm1567_vm15, %v1526_v25  ;;  %v3367_v39 = vrot.slane %v3365_v45, 5  ;;  %v1287_v41 = vrot.slane %v1286_v15, 4  ;;  %v1291_v47 = vrot.slane %v1289_v43, 5  ;;  %v10351_v48 = vrot.slane %v3695_v63, 9  ;;  %v11146_v44 = vld [vmem:[#allocation2 + $0x48] sm:$0xff]  }
  0xd4   : > { %v3353_v51 = vrot.slane %v3352_v28, 4  ;;  %v1295_v53 = vrot.slane %v1293_v31, 4  ;;  %v1301_v18 = vrot.slane %v1299_v59, 5  ;;  %v3821_v54 = vrot.slane %v3696_v5, 5  ;;  %v1610_v20 = vld [vmem:[#allocation2 + $0x68] sm:$0x1] }
  0xd5   : > { %3078 = vrot.lane.b32.xlu1 %v11127_v10, %s11231_s30  ;;  %v2025_v58 = vpop.permute.xlu0 %2024  ;;  %v3368_v60 = vsel %vm11418_vm10, %v3363_v30, %v3367_v39  ;;  %v1292_v9 = vsel %vm11418_vm10, %v1287_v41, %v1291_v47  ;;  %v3824_v1 = vrot.slane %v3697_v38, 5  ;;  %v1304_v33 = vshrl.u32 %v1063_v27, 16  ;;  %v1611_v3 = vld [vmem:[#allocation2 + $0x6c] sm:$0xe]  ;;  %1026 = vst.msk [vmem:[#allocation4 + $0x30] sm:$0xff] %vm1019_vm14, %v11146_v44 }
  0xd6   : > { %v1850_v55 = vpop.permute.xlu1 %1849  ;;  %2071 = vst.msk [vmem:[#allocation4 + $0x10] sm:$0xff] %vm2068_vm2, %v2025_v58  ;;  %v3358_v7 = vsel %vm11418_vm10, %v3353_v51, %v3357_v4  ;;  %3942 = vrot.lane.b32.xlu0 %v10366_v14, %s11233_s8  ;;  %v1296_v8 = vor.u32 %v1295_v53, %v1291_v47  ;;  %v3822_v10 = vsel %vm11411_vm9, %v10351_v48, %v3821_v54  ;;  %v3823_v11 = vrot.slane %v3821_v54, 4  ;;  %v11147_v14 = vld [vmem:[#allocation2 + $0x54] sm:$0xff]  }
  0xd7   : > { %1895 = vst.msk [vmem:[#allocation4 + $0x18] sm:$0xff] %vm1891_vm1, %v1850_v55  ;;  %v10335_v16 = vcombine.low %v3358_v7, %v3368_v60  ;;  %v1306_v17 = vrot.slane %v1304_v33, 4  ;;  %v1307_v32 = vshll.u32 %v1063_v27, 16  ;;  %v1313_v62 = vshll.u32 %v1064_v50, 16  ;;  %v1612_v27 = vld [vmem:[#allocation2 + $0x70] sm:$0xf] }
  0xd8   : > { %v1297_v24 = vrot.slane %v1296_v8, 4  ;;  %v3825_v63 = vsel %vm11411_vm9, %v3823_v11, %v3824_v1  ;;  %v1317_v4 = vshrl.u32 %v1064_v50, 16  ;;  %v1323_v25 = vshll.u32 %v1065_v40, 16  ;;  %v1613_v41 = vld [vmem:[#allocation2 + $0x74] sm:$0x1]  ;;  %1027 = vst.msk [vmem:[#allocation4 + $0x38] sm:$0xff] %vm1019_vm14, %v11147_v14 }
  0xd9   : > { %3623 = vrot.lane.b32.xlu1 %v10335_v16, %s11235_s10  ;;  %v10367_v15 = vcombine.low %v3822_v10, %v3825_v63  ;;  %v1309_v43 = vrot.slane %v1307_v32, 5  ;;  %v1315_v5 = vrot.slane %v1313_v62, 5  ;;  %v10224_v28 = vrot.slane %v1608_v35, 9  ;;  %v842_v32 = vld [vmem:[#allocation2 + $0x78] sm:$0xf]  ;;  %v11128_v63 = vld [vmem:[#allocation2 + $0x6c] sm:$0xff]  }
  0xda   : > { %v2570_v45 = vpop.permute.xlu0 %2569  ;;  %v2027_v30 = vpop.permute.xlu1 %2026  ;;  %v1302_v31 = vsel %vm11418_vm10, %v1297_v24, %v1301_v18  ;;  %v1319_v59 = vrot.slane %v1317_v4, 4  ;;  %v1325_v38 = vrot.slane %v1323_v25, 5  ;;  %v1741_v39 = vrot.slane %v1609_v13, 5  ;;  %v2109_v62 = vld [vmem:[#allocation2 + $0x6c] sm:$0xf] }
  0xdb   : > { %2072 = vst.msk [vmem:[#allocation4 + $0x18] sm:$0xff] %vm2068_vm2, %v2027_v30  ;;  %v10208_v47 = vcombine.low %v1292_v9, %v1302_v31  ;;  %3944 = vrot.lane.b32.xlu0 %v10367_v15, %s11233_s8  ;;  %v1310_v48 = vor.u32 %v1309_v43, %v1306_v17  ;;  %v1744_v50 = vrot.slane %v1610_v20, 5  ;;  %v10225_v51 = vrot.slane %v1611_v3, 9  ;;  %v2110_v3 = vld [vmem:[#allocation2 + $0x70] sm:$0xf] }
  0xdc   : > { %v1320_v53 = vor.u32 %v1319_v59, %v1315_v5  ;;  %v1742_v54 = vsel %vm11411_vm9, %v10224_v28, %v1741_v39  ;;  %v1743_v55 = vrot.slane %v1741_v39, 4  ;;  %v1748_v18 = vrot.slane %v1612_v27, 5  ;;  %v2111_v14 = vld [vmem:[#allocation2 + $0x74] sm:$0x1]  ;;  %v846_v15 = vld [vmem:[#allocation2 + $0x80] sm:$0x1] }
  0xdd   : > { %1535 = vrot.lane.b32.xlu1 %v10208_v47, %s11229_s28  ;;  %v1311_v60 = vrot.slane %v1310_v48, 4  ;;  %v1751_v1 = vrot.slane %v1613_v41, 5  ;;  %v607_v40 = vshrl.u32 %v11830_v26, 16  ;;  %v610_v9 = vshll.u32 %v11830_v26, 16 }
  0xde   : > { %v2891_v58 = vpop.permute.xlu0 %2890  ;;  %v1321_v33 = vrot.slane %v1320_v53, 4  ;;  %v1745_v7 = vsel %vm11411_vm9, %v1743_v55, %v1744_v50  ;;  %v1749_v8 = vsel %vm11411_vm9, %v10225_v51, %v1748_v18  ;;  %v1750_v10 = vrot.slane %v1748_v18, 4 }
  0xdf   : > { %v1316_v11 = vsel %vm11418_vm10, %v1311_v60, %v1315_v5  ;;  %v10240_v35 = vcombine.low %v1742_v54, %v1745_v7  ;;  %v609_v13 = vrot.slane %v607_v40, 7  ;;  %v615_v44 = vshrl.u32 %v11839_v34, 16  ;;  %v2654_v5 = vld [vmem:[#allocation2 + $0x6c] sm:$0xe] }
  0xe0   : > { %v1326_v16 = vsel %vm11418_vm10, %v1321_v33, %v1325_v38  ;;  %v1752_v26 = vsel %vm11411_vm9, %v1750_v10, %v1751_v1  ;;  %v618_v17 = vshll.u32 %v11839_v34, 16  ;;  %vm2613_vm3 = vcmask 162944   ;;  %v344_v10 = vld [vmem:[%s11404_s26 + $0xb0] sm:$0xff] }
  0xe1   : > { %v10209_v20 = vcombine.low %v1316_v11, %v1326_v16  ;;  %1859 = vrot.lane.b32.xlu0 %v10240_v35, %s11228_s27  ;;  %v10241_v24 = vcombine.low %v1749_v8, %v1752_v26  ;;  %v612_v4 = vor.u32 %v610_v9, %v609_v13  ;;  %v613_v25 = vrot.slane %v609_v13, 4  ;;  %2615 = vst.msk [vmem:[#allocation4 + $0x8] sm:$0xff] %vm2613_vm3, %v11801_v61 }
  0xe2   : > { %2614 = vst.msk [vmem:[#allocation4] sm:$0xff] %vm2613_vm3, %v11854_v19  ;;  %2616 = vst.msk [vmem:[#allocation4 + $0x10] sm:$0xff] %vm2613_vm3, %v2570_v45  ;;  %v3069_v34 = vpop.permute.xlu0 %3068  ;;  %v617_v43 = vrot.slane %v615_v44, 7  ;;  %vm2934_vm5 = vcmask 195744   ;;  %vm3112_vm6 = vcmask 228544   ;;  %vm3657_vm7 = vcmask 261344  }
  0xe3   : > { %1537 = vrot.lane.b32.xlu1 %v10209_v20, %s11229_s28  ;;  %v843_v28 = vsel %vm11432_vm12, %v612_v4, %v842_v32  ;;  %vm13993_vm4 = vcmask 294144   ;;  %2936 = vst.msk [vmem:[#allocation4 + $0x8] sm:$0xff] %vm2934_vm5, %v11787_v21  ;;  %v2326_v61 = vshrl.u32 %v2109_v62, 16  ;;  %v2329_v27 = vshll.u32 %v2109_v62, 16  ;;  %2935 = vst.msk [vmem:[#allocation4] sm:$0xff] %vm2934_vm5, %v11751_v12 }
  0xe4   : > { %v2655_v19 = vld [vmem:[#allocation2 + $0x70] sm:$0xf]  ;;  %2937 = vst.msk [vmem:[#allocation4 + $0x10] sm:$0xff] %vm2934_vm5, %v2891_v58  ;;  %v620_v30 = vor.u32 %v618_v17, %v617_v43  ;;  %v622_v31 = vrot.slane %v617_v43, 4  ;;  %844 = vst [vmem:[#allocation2 + $0x78] sm:$0xf] %v843_v28  ;;  %v11982_v28 = vpack.c.bf16 %v344_v10, %v344_v10 }
  0xe5   : > { %3114 = vst.msk [vmem:[#allocation4 + $0x8] sm:$0xff] %vm3112_vm6, %v11747_v6  ;;  %v2335_v59 = vshll.u32 %v2110_v3, 16  ;;  %v2339_v38 = vshrl.u32 %v2110_v3, 16  ;;  %3113 = vst.msk [vmem:[#allocation4] sm:$0xff] %vm3112_vm6, %v11743_v52  ;;  %v2656_v21 = vld [vmem:[#allocation2 + $0x74] sm:$0x1]  ;;  %2036 = vrot.lane.b32.xlu0 %v11128_v63, %s11230_s29 }
  0xe6   : > { %v2572_v45 = vpop.permute.xlu1 %2571  ;;  %3115 = vst.msk [vmem:[#allocation4 + $0x10] sm:$0xff] %vm3112_vm6, %v3069_v34  ;;  %v2328_v12 = vrot.slane %v2326_v61, 4  ;;  %v2331_v39 = vrot.slane %v2329_v27, 5  ;;  %v2345_v41 = vshll.u32 %v2111_v14, 16  ;;  %v621_v6 = vsel %vm11426_vm11, %v613_v25, %v620_v30  ;;  %v849_v32 = vld [vmem:[#allocation2 + $0x84] sm:$0xf] }
  0xe7   : > { %2617 = vst.msk [vmem:[#allocation4 + $0x18] sm:$0xff] %vm2613_vm3, %v2572_v45  ;;  %v2337_v52 = vrot.slane %v2335_v59, 5  ;;  %v2341_v47 = vrot.slane %v2339_v38, 4  ;;  %v847_v48 = vsel %vm11440_vm13, %v622_v31, %v846_v15  ;;  %1861 = vrot.lane.b32.xlu1 %v10241_v24, %s11228_s27  ;;  %v2784_v50 = vrot.slane %v2655_v19, 5  ;;  %v853_v4 = vld [vmem:[#allocation2 + $0x8c] sm:$0x1] }
  0xe8   : > { %3659 = vst.msk [vmem:[#allocation4 + $0x8] sm:$0xff] %vm3657_vm7, %v11833_v37  ;;  %3658 = vst.msk [vmem:[#allocation4] sm:$0xff] %vm3657_vm7, %v11867_v56  ;;  %v2332_v37 = vor.u32 %v2331_v39, %v2328_v12  ;;  %v10288_v56 = vrot.slane %v2654_v5, 9  ;;  %v2787_v51 = vrot.slane %v2656_v21, 5  ;;  %v2347_v55 = vrot.slane %v2345_v41, 5  ;;  %v345_v25 = vld [vmem:[%s11404_s26 + $0xb8] sm:$0xff] }
  0xe9   : > { %3980 = vst.msk [vmem:[#allocation4 + $0x8] sm:$0xff] %vm13993_vm4, %v11789_v22  ;;  %3979 = vst.msk [vmem:[#allocation4] sm:$0xff] %vm13993_vm4, %v11762_v46  ;;  %v11961_v22 = vld [vmem:[%s13985_s1 + $0x10] ss:$0 sps:$4 sm:$0x33]   ;;  %v2342_v54 = vor.u32 %v2341_v47, %v2337_v52  ;;  %v624_v46 = vshrl.u32 %v11869_v57, 16 }
  0xea   : > { %845 = vst.msk [vmem:[#allocation2 + $0x7c] sm:$0xf] %vm266_vm0, %v621_v6  ;;  %848 = vst [vmem:[#allocation2 + $0x80] sm:$0x1] %v847_v48  ;;  %v2893_v53 = vpop.permute.xlu1 %2892  ;;  %v632_v18 = vshrl.u32 %v11875_v2, 16  ;;  %v2333_v58 = vrot.slane %v2332_v37, 4  ;;  %v3614_v9 = vpop.permute.xlu0 %3613  ;;  %v2785_v13 = vsel %vm11411_vm9, %v10288_v56, %v2784_v50  ;;  %v11992_v6 = vpack.c.bf16 %v345_v25, %v345_v25 }
  0xeb   : > { %2938 = vst.msk [vmem:[#allocation4 + $0x18] sm:$0xff] %vm2934_vm5, %v2893_v53  ;;  %v2786_v60 = vrot.slane %v2784_v50, 4  ;;  %v627_v1 = vshll.u32 %v11869_v57, 16  ;;  %v635_v40 = vshll.u32 %v11875_v2, 16  ;;  %v2343_v33 = vrot.slane %v2342_v54, 4  ;;  %v346_v59 = vld [vmem:[%s11404_s26 + $0xc0] sm:$0xff] }
  0xec   : > { %v626_v7 = vrot.slane %v624_v46, 7  ;;  %v634_v8 = vrot.slane %v632_v18, 7  ;;  %vm4087_vm8 = vcmask 1041408   ;;  %3660 = vst.msk [vmem:[#allocation4 + $0x10] sm:$0xff] %vm3657_vm7, %v3614_v9  ;;  %v2338_v11 = vsel %vm11418_vm10, %v2333_v58, %v2337_v52  ;;  %v2112_v35 = vld [vmem:[#allocation2 + $0x78] sm:$0xf] }
  0xed   : > { %v2788_v57 = vsel %vm11411_vm9, %v2786_v60, %v2787_v51  ;;  %v2657_v2 = vld [vmem:[#allocation2 + $0x78] sm:$0xe]  ;;  %11087 = vmatprep.subr.msk.bf16.mxu0 %vm4087_vm8, %v11961_v22  ;;  %v2348_v16 = vsel %vm11418_vm10, %v2343_v33, %v2347_v55  ;;  %v2350_v26 = vshrl.u32 %v2112_v35, 16  ;;  %v2353_v17 = vshll.u32 %v2112_v35, 16  ;;  %v347_v33 = vld [vmem:[%s11404_s26 + $0xc8] sm:$0xff]  ;;  %v348_v35 = vld [vmem:[%s11404_s26 + $0xd0] sm:$0xff] }
  0xee   : > { %v3071_v44 = vpop.permute.xlu1 %3070  ;;  %v10272_v62 = vcombine.low %v2338_v11, %v2348_v16  ;;  %v10289_v20 = vrot.slane %v2657_v2, 9  ;;  %v629_v24 = vor.u32 %v627_v1, %v626_v7  ;;  %v630_v63 = vrot.slane %v626_v7, 4  ;;  %v3935_v3 = vpop.permute.xlu0 %3934  ;;  %v3153_v31 = vld [vmem:[#allocation2 + $0x78] sm:$0xf] }
  0xef   : > { %3116 = vst.msk [vmem:[#allocation4 + $0x18] sm:$0xff] %vm3112_vm6, %v3071_v44  ;;  %v2352_v34 = vrot.slane %v2350_v26, 4  ;;  %v10304_v43 = vcombine.low %v2785_v13, %v2788_v57  ;;  %v637_v5 = vor.u32 %v635_v40, %v634_v8  ;;  %v2355_v27 = vrot.slane %v2353_v17, 5 }
  0xf0   : > { %3981 = vst.msk [vmem:[#allocation4 + $0x10] sm:$0xff] %vm13993_vm4, %v3935_v3  ;;  %2581 = vrot.lane.b32.xlu0 %v10272_v62, %s11234_s9  ;;  %v850_v30 = vsel %vm11432_vm12, %v629_v24, %v849_v32  ;;  %v639_v41 = vrot.slane %v634_v8, 4  ;;  %v11997_v18 = vpack.c.bf16 %v346_v59, %v346_v59  ;;  %v3370_v7 = vshrl.u32 %v3153_v31, 16  ;;  %v3698_v32 = vld [vmem:[#allocation2 + $0x78] sm:$0xe] }
  0xf1   : > { %v11129_v14 = vld [vmem:[#allocation2 + $0x78] sm:$0xff]   ;;  %v2114_v61 = vld [vmem:[#allocation2 + $0x80] sm:$0x1]  ;;  %v638_v39 = vsel %vm11426_vm11, %v630_v63, %v637_v5  ;;  %851 = vst [vmem:[#allocation2 + $0x84] sm:$0xf] %v850_v30  ;;  %v2356_v52 = vor.u32 %v2355_v27, %v2352_v34  ;;  %v3373_v8 = vshll.u32 %v3153_v31, 16 }
  0xf2   : > { %v2113_v15 = vld [vmem:[#allocation2 + $0x7c] sm:$0xf]  ;;  %2038 = vrot.lane.b32.xlu1 %v11129_v14, %s11230_s29  ;;  %v2369_v38 = vshll.u32 %v2114_v61, 16  ;;  %v2659_v12 = vld [vmem:[#allocation2 + $0x80] sm:$0x1]  ;;  %v854_v54 = vsel %vm11440_vm13, %v639_v41, %v853_v4  ;;  %v3616_v55 = vpop.permute.xlu1 %3615  ;;  %v3372_v16 = vrot.slane %v3370_v7, 4  ;;  %v12019_v14 = vpack.c.bf16 %v348_v35, %v348_v35 }
  0xf3   : > { %v2359_v19 = vshll.u32 %v2113_v15, 16  ;;  %v2363_v45 = vshrl.u32 %v2113_v15, 16  ;;  %v2658_v21 = vld [vmem:[#allocation2 + $0x7c] sm:$0xf]  ;;  %852 = vst.msk [vmem:[#allocation2 + $0x88] sm:$0xf] %vm266_vm0, %v638_v39  ;;  %v3937_v46 = vpop.permute.xlu0 %3936 }
  0xf4   : > { %v2791_v37 = vrot.slane %v2658_v21, 5  ;;  %v2371_v56 = vrot.slane %v2369_v38, 5  ;;  %v2794_v50 = vrot.slane %v2659_v12, 5  ;;  %v3154_v51 = vld [vmem:[#allocation2 + $0x7c] sm:$0xf]  ;;  %v2357_v58 = vrot.slane %v2356_v52, 4  ;;  %2902 = vrot.lane.b32.xlu0 %v10304_v43, %s11232_s7 }
  0xf5   : > { %v2361_v47 = vrot.slane %v2359_v19, 5  ;;  %v2365_v48 = vrot.slane %v2363_v45, 4  ;;  %v3155_v53 = vld [vmem:[#allocation2 + $0x80] sm:$0x1]  ;;  %v11134_v9 = vld [vmem:[#allocation2 + $0x78] sm:$0xff]   ;;  %3661 = vst.msk [vmem:[#allocation4 + $0x18] sm:$0xff] %vm3657_vm7, %v3616_v55 }
  0xf6   : > { %v12002_v1 = vsel %vm11411_vm9, %v10289_v20, %v2791_v37  ;;  %v2793_v40 = vrot.slane %v2791_v37, 4  ;;  %855 = vst [vmem:[#allocation2 + $0x8c] sm:$0x1] %v854_v54  ;;  %v3379_v10 = vshll.u32 %v3154_v51, 16  ;;  %v3383_v11 = vshrl.u32 %v3154_v51, 16  ;;  %3982 = vst.msk [vmem:[#allocation4 + $0x18] sm:$0xff] %vm13993_vm4, %v3937_v46  ;;  %v1528_v62 = vpop.permute.xlu1 %1527 }
  0xf7   : > { %v2366_v60 = vor.u32 %v2365_v48, %v2361_v47  ;;  %v2362_v13 = vsel %vm11418_vm10, %v2357_v58, %v2361_v47  ;;  %v3389_v44 = vshll.u32 %v3155_v53, 16  ;;  %v3375_v26 = vrot.slane %v3373_v8, 5  ;;  %v3699_v3 = vld [vmem:[#allocation2 + $0x7c] sm:$0xf]  ;;  %1572 = vst.msk [vmem:[#allocation4 + $0x20] sm:$0xff] %vm1567_vm15, %v1528_v62 }
  0xf8   : > { %v2795_v2 = vsel %vm11411_vm9, %v2793_v40, %v2794_v50  ;;  %v3381_v17 = vrot.slane %v3379_v10, 5  ;;  %v12012_v20 = vpack.c.bf16 %v347_v33, %v347_v33  ;;  %3080 = vrot.lane.b32.xlu0 %v11134_v9, %s11231_s30  ;;  %v3385_v4 = vrot.slane %v3383_v11, 4  ;;  %v3156_v25 = vld [vmem:[#allocation2 + $0x84] sm:$0xf]  ;;  %v3700_v31 = vld [vmem:[#allocation2 + $0x80] sm:$0x1] }
  0xf9   : > { %v2367_v57 = vrot.slane %v2366_v60, 4  ;;  %v10305_v63 = vcombine.low %v12002_v1, %v2795_v2  ;;  %v3376_v34 = vor.u32 %v3375_v26, %v3372_v16  ;;  %v3391_v43 = vrot.slane %v3389_v44, 5  ;;  %v3995_v50 = vld [vmem:[#allocation4] sm:$0xff]  ;;  %v1066_v46 = vld [vmem:[#allocation2 + $0x78] sm:$0xf]  ;;  %v3997_v9 = vld [vmem:[#allocation4 + $0x10] sm:$0xff] }
  0xfa   : > { %v3157_v5 = vld [vmem:[#allocation2 + $0x88] sm:$0xf]  ;;  %v3394_v61 = vshrl.u32 %v3156_v25, 16  ;;  %v3386_v27 = vor.u32 %v3385_v4, %v3381_v17  ;;  %v3397_v19 = vshll.u32 %v3156_v25, 16  ;;  %v1852_v59 = vpop.permute.xlu0 %1851  ;;  %v4089_v39 = vsel %vm4087_vm8, %v11961_v22, 0 }
  0xfb   : > { %v2372_v24 = vsel %vm11418_vm10, %v2367_v57, %v2371_v56  ;;  %v3403_v45 = vshll.u32 %v3157_v5, 16  ;;  %v3407_v30 = vshrl.u32 %v3157_v5, 16  ;;  %v3377_v38 = vrot.slane %v3376_v34, 4  ;;  %v1530_v52 = vpop.permute.xlu1 %1529  ;;  %1896 = vst.msk [vmem:[#allocation4 + $0x20] sm:$0xff] %vm1891_vm1, %v1852_v59  ;;  %11012 = vmatpush3.bf16.msra.mxu0 %v4089_v39  ;;  %v1067_v1 = vld [vmem:[#allocation2 + $0x7c] sm:$0xf] }
  0xfc   : > { %v10273_v15 = vcombine.low %v2362_v13, %v2372_v24  ;;  %v3396_v12 = vrot.slane %v3394_v61, 4  ;;  %v10352_v41 = vrot.slane %v3698_v32, 9  ;;  %v3387_v47 = vrot.slane %v3386_v27, 4  ;;  %1573 = vst.msk [vmem:[#allocation4 + $0x28] sm:$0xff] %vm1567_vm15, %v1530_v52  ;;  %v1068_v40 = vld [vmem:[#allocation2 + $0x80] sm:$0x1] }
  0xfd   : > { %v3158_v21 = vld [vmem:[#allocation2 + $0x8c] sm:$0x1]  ;;  %v3399_v48 = vrot.slane %v3397_v19, 5  ;;  %v3405_v37 = vrot.slane %v3403_v45, 5  ;;  %v3409_v56 = vrot.slane %v3407_v30, 4  ;;  %v3382_v51 = vsel %vm11418_vm10, %v3377_v38, %v3381_v17  ;;  %v11136_v7 = vld [vmem:[#allocation2 + $0x84] sm:$0xff]  }
  0xfe   : > { %2583 = vrot.lane.b32.xlu1 %v10273_v15, %s11234_s9  ;;  %v3413_v53 = vshll.u32 %v3158_v21, 16  ;;  %v3828_v54 = vrot.slane %v3699_v3, 5  ;;  %v3831_v55 = vrot.slane %v3700_v31, 5  ;;  %v3392_v22 = vsel %vm11418_vm10, %v3387_v47, %v3391_v43  ;;  %v2029_v33 = vpop.permute.xlu0 %2028  ;;  %v3996_v13 = vld [vmem:[#allocation4 + $0x8] sm:$0xff]  ;;  %v3701_v57 = vld [vmem:[#allocation2 + $0x84] sm:$0xe] }
  0xff   : > { %v3400_v58 = vor.u32 %v3399_v48, %v3396_v12  ;;  %v3410_v60 = vor.u32 %v3409_v56, %v3405_v37  ;;  %vm4038_vm8 = vcmask 293888   ;;  %v10336_v8 = vcombine.low %v3382_v51, %v3392_v22  ;;  %v1854_v2 = vpop.permute.xlu1 %1853  ;;  %2073 = vst.msk [vmem:[#allocation4 + $0x20] sm:$0xff] %vm2068_vm2, %v2029_v33  ;;  %v3702_v32 = vld [vmem:[#allocation2 + $0x88] sm:$0xf]  ;;  %v3703_v25 = vld [vmem:[#allocation2 + $0x8c] sm:$0x1] }
 0x100   : > { %v3415_v10 = vrot.slane %v3413_v53, 5  ;;  %v3829_v11 = vsel %vm11411_vm9, %v10352_v41, %v3828_v54  ;;  %v3830_v35 = vrot.slane %v3828_v54, 4  ;;  %11013 = vmatprep.mubr.msk.bf16.mxu0 %vm4038_vm8, %v3995_v50  ;;  %v1328_v26 = vshrl.u32 %v1066_v46, 16  ;;  %1897 = vst.msk [vmem:[#allocation4 + $0x28] sm:$0xff] %vm1891_vm1, %v1854_v2  ;;  %v1069_v5 = vld [vmem:[#allocation2 + $0x84] sm:$0xf] }
 0x101   : > { %v3401_v44 = vrot.slane %v3400_v58, 4  ;;  %v3411_v16 = vrot.slane %v3410_v60, 4  ;;  %v1331_v17 = vshll.u32 %v1066_v46, 16  ;;  %11014 = vmatmul.mubr.msk.bf16.vlgmr.msra.gmra.mrb[0].mxu0 %vm4038_vm8, %v3996_v13  ;;  %3625 = vrot.lane.b32.xlu0 %v10336_v8, %s11235_s10  ;;  %v1337_v24 = vshll.u32 %v1067_v1, 16  ;;  %v1070_v61 = vld [vmem:[#allocation2 + $0x88] sm:$0xf] }
 0x102   : > { %2904 = vrot.lane.b32.xlu1 %v10305_v63, %s11232_s7  ;;  %v3832_v62 = vsel %vm11411_vm9, %v3830_v35, %v3831_v55  ;;  %v1341_v63 = vshrl.u32 %v1067_v1, 16  ;;  %v1347_v4 = vshll.u32 %v1068_v40, 16  ;;  %11017 = vmatprep.mubr.msk.bf16.mxu0 %vm4038_vm8, %v3997_v9  ;;  %v1330_v43 = vrot.slane %v1328_v26, 4  ;;  %v11152_v27 = vld [vmem:[#allocation2 + $0x60] sm:$0xff]   ;;  %v1071_v52 = vld [vmem:[#allocation2 + $0x8c] sm:$0x1] }
 0x103   : > { %v3406_v3 = vsel %vm11418_vm10, %v3401_v44, %v3405_v37  ;;  %v3416_v15 = vsel %vm11418_vm10, %v3411_v16, %v3415_v10  ;;  %v10368_v34 = vcombine.low %v3829_v11, %v3832_v62  ;;  %v1333_v45 = vrot.slane %v1331_v17, 5  ;;  %1028 = vst.msk [vmem:[#allocation4 + $0x40] sm:$0xff] %vm1019_vm14, %v11152_v27  ;;  %v1614_v37 = vld [vmem:[#allocation2 + $0x78] sm:$0xe]  ;;  %v3998_v56 = vld [vmem:[#allocation4 + $0x18] sm:$0xff] }
 0x104   : > { %v10337_v19 = vcombine.low %v3406_v3, %v3416_v15  ;;  %v1339_v30 = vrot.slane %v1337_v24, 5  ;;  %v1343_v31 = vrot.slane %v1341_v63, 4  ;;  %v1349_v59 = vrot.slane %v1347_v4, 5  ;;  %v1615_v55 = vld [vmem:[#allocation2 + $0x7c] sm:$0xf]  ;;  %v11153_v22 = vld [vmem:[#allocation2 + $0x6c] sm:$0xff]  }
 0x105   : > { %v10353_v38 = vrot.slane %v3701_v57, 9  ;;  %v3835_v21 = vrot.slane %v3702_v32, 5  ;;  %v3838_v12 = vrot.slane %v3703_v25, 5  ;;  %3946 = vrot.lane.b32.xlu0 %v10368_v34, %s11233_s8  ;;  %v1334_v39 = vor.u32 %v1333_v45, %v1330_v43  ;;  %v1616_v9 = vld [vmem:[#allocation2 + $0x80] sm:$0x1]  ;;  %1029 = vst.msk [vmem:[#allocation4 + $0x48] sm:$0xff] %vm1019_vm14, %v11153_v22 }
 0x106   : > { %3082 = vrot.lane.b32.xlu1 %v11136_v7, %s11231_s30  ;;  %v1344_v41 = vor.u32 %v1343_v31, %v1339_v30  ;;  %v1352_v47 = vshrl.u32 %v1069_v5, 16  ;;  %v1355_v48 = vshll.u32 %v1069_v5, 16  ;;  %v1361_v53 = vshll.u32 %v1070_v61, 16  ;;  %v2574_v46 = vpop.permute.xlu0 %2573  ;;  %v1617_v11 = vld [vmem:[#allocation2 + $0x84] sm:$0xe] }
 0x107   : > { %v3836_v50 = vsel %vm11411_vm9, %v10353_v38, %v3835_v21  ;;  %v3837_v51 = vrot.slane %v3835_v21, 4  ;;  %v1365_v54 = vshrl.u32 %v1070_v61, 16  ;;  %v1335_v58 = vrot.slane %v1334_v39, 4  ;;  %2618 = vst.msk [vmem:[#allocation4 + $0x20] sm:$0xff] %vm2613_vm3, %v2574_v46  ;;  %v2031_v35 = vpop.permute.xlu1 %2030  ;;  %v1618_v16 = vld [vmem:[#allocation2 + $0x88] sm:$0xf] }
 0x108   : > { %v1345_v60 = vrot.slane %v1344_v41, 4  ;;  %v1354_v1 = vrot.slane %v1352_v47, 4  ;;  %v1357_v40 = vrot.slane %v1355_v48, 5  ;;  %v1363_v7 = vrot.slane %v1361_v53, 5  ;;  %v1619_v26 = vld [vmem:[#allocation2 + $0x8c] sm:$0x1] }
 0x109   : > { %v3839_v33 = vsel %vm11411_vm9, %v3837_v51, %v3838_v12  ;;  %v1367_v8 = vrot.slane %v1365_v54, 4  ;;  %v1371_v10 = vshll.u32 %v1071_v52, 16  ;;  %11018 = vmatmul.mubr.msk.bf16.gmra.mrb[4].mxu0 %vm4038_vm8, %v3998_v56  ;;  %v1340_v13 = vsel %vm11418_vm10, %v1335_v58, %v1339_v30  ;;  %2074 = vst.msk [vmem:[#allocation4 + $0x28] sm:$0xff] %vm2068_vm2, %v2031_v35  ;;  %v2115_v27 = vld [vmem:[#allocation2 + $0x84] sm:$0xf] }
 0x10a   : > { %3627 = vrot.lane.b32.xlu1 %v10337_v19, %s11235_s10  ;;  %v1350_v57 = vsel %vm11418_vm10, %v1345_v60, %v1349_v59  ;;  %v10369_v2 = vcombine.low %v3836_v50, %v3839_v33  ;;  %v1358_v44 = vor.u32 %v1357_v40, %v1354_v1  ;;  %v10226_v24 = vrot.slane %v1614_v37, 9  ;;  %v2895_v63 = vpop.permute.xlu0 %2894  ;;  %v856_v59 = vld [vmem:[#allocation2 + $0x90] sm:$0xf]  ;;  %v2116_v38 = vld [vmem:[#allocation2 + $0x88] sm:$0xf] }
 0x10b   : > { %v10210_v17 = vcombine.low %v1340_v13, %v1350_v57  ;;  %v1368_v32 = vor.u32 %v1367_v8, %v1363_v7  ;;  %v1373_v62 = vrot.slane %v1371_v10, 5  ;;  %v1755_v25 = vrot.slane %v1615_v55, 5  ;;  %2939 = vst.msk [vmem:[#allocation4 + $0x20] sm:$0xff] %vm2934_vm5, %v2895_v63  ;;  %v2117_v21 = vld [vmem:[#allocation2 + $0x8c] sm:$0x1]  ;;  %v11157_v35 = vld [vmem:[#allocation2 + $0x84] sm:$0xff]  }
 0x10c   : > { %3948 = vrot.lane.b32.xlu0 %v10369_v2, %s11233_s8  ;;  %v1359_v4 = vrot.slane %v1358_v44, 4  ;;  %v1758_v3 = vrot.slane %v1616_v9, 5  ;;  %v10227_v15 = vrot.slane %v1617_v11, 9  ;;  %v1762_v43 = vrot.slane %v1618_v16, 5  ;;  %v860_v55 = vld [vmem:[#allocation2 + $0x98] sm:$0x1] }
 0x10d   : > { %v1369_v34 = vrot.slane %v1368_v32, 4  ;;  %v1765_v5 = vrot.slane %v1619_v26, 5  ;;  %v641_v61 = vshrl.u32 %v11982_v28, 16  ;;  %v1756_v45 = vsel %vm11411_vm9, %v10226_v24, %v1755_v25  ;;  %v2660_v46 = vld [vmem:[#allocation2 + $0x84] sm:$0xe]  ;;  %v11156_v11 = vld [vmem:[#allocation2 + $0x78] sm:$0xff]  }
 0x10e   : > { %1539 = vrot.lane.b32.xlu1 %v10210_v17, %s11229_s28  ;;  %v1364_v19 = vsel %vm11418_vm10, %v1359_v4, %v1363_v7  ;;  %v1757_v30 = vrot.slane %v1755_v25, 4  ;;  %v644_v31 = vshll.u32 %v11982_v28, 16  ;;  %v1763_v39 = vsel %vm11411_vm9, %v10227_v15, %v1762_v43  ;;  %v3073_v47 = vpop.permute.xlu0 %3072  ;;  %v2661_v40 = vld [vmem:[#allocation2 + $0x88] sm:$0xf]  ;;  %v2662_v16 = vld [vmem:[#allocation2 + $0x8c] sm:$0x1] }
 0x10f   : > { %v1374_v12 = vsel %vm11418_vm10, %v1369_v34, %v1373_v62  ;;  %v1764_v41 = vrot.slane %v1762_v43, 4  ;;  %v643_v52 = vrot.slane %v641_v61, 7  ;;  %v649_v56 = vshrl.u32 %v11992_v6, 16  ;;  %3117 = vst.msk [vmem:[#allocation4 + $0x20] sm:$0xff] %vm3112_vm6, %v3073_v47 }
 0x110   : > { %v10211_v48 = vcombine.low %v1364_v19, %v1374_v12  ;;  %v1759_v37 = vsel %vm11411_vm9, %v1757_v30, %v1758_v3  ;;  %v652_v28 = vshll.u32 %v11992_v6, 16  ;;  %v2374_v60 = vshrl.u32 %v2115_v27, 16  ;;  %v11138_v6 = vld [vmem:[#allocation2 + $0x84] sm:$0xff]   ;;  %1030 = vst.msk [vmem:[#allocation4 + $0x50] sm:$0xff] %vm1019_vm14, %v11156_v11  ;;  %1031 = vst.msk [vmem:[#allocation4 + $0x58] sm:$0xff] %vm1019_vm14, %v11157_v35 }
 0x111   : > { %v10242_v50 = vcombine.low %v1756_v45, %v1759_v37  ;;  %v1766_v51 = vsel %vm11411_vm9, %v1764_v41, %v1765_v5  ;;  %v646_v53 = vor.u32 %v644_v31, %v643_v52  ;;  %v647_v54 = vrot.slane %v643_v52, 4  ;;  %v863_v12 = vld [vmem:[#allocation2 + $0x9c] sm:$0xf]  ;;  %v867_v37 = vld [vmem:[#allocation2 + $0xa4] sm:$0x1] }
 0x112   : > { %1541 = vrot.lane.b32.xlu1 %v10211_v48, %s11229_s28  ;;  %v10243_v22 = vcombine.low %v1763_v39, %v1766_v51  ;;  %v651_v58 = vrot.slane %v649_v56, 7  ;;  %v2377_v1 = vshll.u32 %v2115_v27, 16  ;;  %v2383_v33 = vshll.u32 %v2116_v38, 16  ;;  %v2576_v10 = vpop.permute.xlu1 %2575 }
 0x113   : > { %1863 = vrot.lane.b32.xlu0 %v10242_v50, %s11228_s27  ;;  %v857_v9 = vsel %vm11432_vm12, %v646_v53, %v856_v59  ;;  %v2387_v7 = vshrl.u32 %v2116_v38, 16  ;;  %v2393_v8 = vshll.u32 %v2117_v21, 16  ;;  %v2376_v2 = vrot.slane %v2374_v60, 4  ;;  %2619 = vst.msk [vmem:[#allocation4 + $0x28] sm:$0xff] %vm2613_vm3, %v2576_v10 }
 0x114   : > { %v654_v13 = vor.u32 %v652_v28, %v651_v58  ;;  %v656_v57 = vrot.slane %v651_v58, 4  ;;  %858 = vst [vmem:[#allocation2 + $0x90] sm:$0xf] %v857_v9  ;;  %v2379_v44 = vrot.slane %v2377_v1, 5  ;;  %v2385_v26 = vrot.slane %v2383_v33, 5  ;;  %v349_v1 = vld [vmem:[%s11404_s26 + $0xd8] sm:$0xff] }
 0x115   : > { %v2389_v17 = vrot.slane %v2387_v7, 4  ;;  %v2395_v32 = vrot.slane %v2393_v8, 5  ;;  %v10290_v62 = vrot.slane %v2660_v46, 9  ;;  %v2798_v25 = vrot.slane %v2661_v40, 5 }
 0x116   : > { %1865 = vrot.lane.b32.xlu1 %v10243_v22, %s11228_s27  ;;  %v655_v24 = vsel %vm11426_vm11, %v647_v54, %v654_v13  ;;  %v2380_v63 = vor.u32 %v2379_v44, %v2376_v2  ;;  %v861_v4 = vsel %vm11440_vm13, %v656_v57, %v860_v55  ;;  %v2801_v15 = vrot.slane %v2662_v16, 5  ;;  %v2897_v5 = vpop.permute.xlu1 %2896  ;;  %v350_v57 = vld [vmem:[%s11404_s26 + $0xe0] sm:$0xff] }
 0x117   : > { %2040 = vrot.lane.b32.xlu0 %v11138_v6, %s11230_s29  ;;  %859 = vst.msk [vmem:[#allocation2 + $0x94] sm:$0xf] %vm266_vm0, %v655_v24  ;;  %v2390_v3 = vor.u32 %v2389_v17, %v2385_v26  ;;  %862 = vst [vmem:[#allocation2 + $0x98] sm:$0x1] %v861_v4  ;;  %v658_v34 = vshrl.u32 %v11997_v18, 16  ;;  %v661_v43 = vshll.u32 %v11997_v18, 16  ;;  %v3618_v45 = vpop.permute.xlu0 %3617  ;;  %v2799_v52 = vsel %vm11411_vm9, %v10290_v62, %v2798_v25 }
 0x118   : > { %v2381_v61 = vrot.slane %v2380_v63, 4  ;;  %v2800_v27 = vrot.slane %v2798_v25, 4  ;;  %v666_v19 = vshrl.u32 %v12012_v20, 16  ;;  %2940 = vst.msk [vmem:[#allocation4 + $0x28] sm:$0xff] %vm2934_vm5, %v2897_v5  ;;  %v669_v59 = vshll.u32 %v12012_v20, 16 }
 0x119   : > { %v2391_v30 = vrot.slane %v2390_v3, 4  ;;  %v660_v31 = vrot.slane %v658_v34, 7  ;;  %3662 = vst.msk [vmem:[#allocation4 + $0x20] sm:$0xff] %vm3657_vm7, %v3618_v45  ;;  %v675_v18 = vshrl.u32 %v12019_v14, 16  ;;  %v12127_v5 = vpack.c.bf16 %v350_v57, %v350_v57 }
 0x11a   : > { %v2386_v38 = vsel %vm11418_vm10, %v2381_v61, %v2385_v26  ;;  %v668_v21 = vrot.slane %v666_v19, 7  ;;  %v2802_v47 = vsel %vm11411_vm9, %v2800_v27, %v2801_v15  ;;  %v3075_v56 = vpop.permute.xlu1 %3074 }
 0x11b   : > { %v2396_v39 = vsel %vm11418_vm10, %v2391_v30, %v2395_v32  ;;  %v2118_v41 = vld [vmem:[#allocation2 + $0x90] sm:$0xf]  ;;  %v663_v48 = vor.u32 %v661_v43, %v660_v31  ;;  %3118 = vst.msk [vmem:[#allocation4 + $0x28] sm:$0xff] %vm3112_vm6, %v3075_v56  ;;  %v3939_v54 = vpop.permute.xlu0 %3938  ;;  %v664_v55 = vrot.slane %v660_v31, 4  ;;  %v10306_v33 = vcombine.low %v2799_v52, %v2802_v47 }
 0x11c   : > { %v2663_v20 = vld [vmem:[#allocation2 + $0x90] sm:$0xe]  ;;  %v10274_v28 = vcombine.low %v2386_v38, %v2396_v39  ;;  %v2398_v50 = vshrl.u32 %v2118_v41, 16  ;;  %v2401_v51 = vshll.u32 %v2118_v41, 16  ;;  %v671_v46 = vor.u32 %v669_v59, %v668_v21  ;;  %3983 = vst.msk [vmem:[#allocation4 + $0x20] sm:$0xff] %vm13993_vm4, %v3939_v54  ;;  %v351_v59 = vld [vmem:[%s11404_s26 + $0xe8] sm:$0xff] }
 0x11d   : > { %v10291_v53 = vrot.slane %v2663_v20, 9  ;;  %v673_v22 = vrot.slane %v668_v21, 4  ;;  %v864_v58 = vsel %vm11432_vm12, %v663_v48, %v863_v12  ;;  %v3159_v60 = vld [vmem:[#allocation2 + $0x90] sm:$0xf]  ;;  %v12125_v43 = vpack.c.bf16 %v349_v1, %v349_v1 }
 0x11e   : > { %v11139_v40 = vld [vmem:[#allocation2 + $0x90] sm:$0xff]   ;;  %2585 = vrot.lane.b32.xlu0 %v10274_v28, %s11234_s9  ;;  %v2400_v9 = vrot.slane %v2398_v50, 4  ;;  %865 = vst [vmem:[#allocation2 + $0x9c] sm:$0xf] %v864_v58  ;;  %v2120_v7 = vld [vmem:[#allocation2 + $0x98] sm:$0x1]  ;;  %v672_v35 = vsel %vm11426_vm11, %v664_v55, %v671_v46  ;;  %v3620_v13 = vpop.permute.xlu1 %3619 }
 0x11f   : > { %v2119_v6 = vld [vmem:[#allocation2 + $0x94] sm:$0xf]  ;;  %v2403_v8 = vrot.slane %v2401_v51, 5  ;;  %2042 = vrot.lane.b32.xlu1 %v11139_v40, %s11230_s29  ;;  %v2417_v2 = vshll.u32 %v2120_v7, 16  ;;  %v2665_v16 = vld [vmem:[#allocation2 + $0x98] sm:$0x1]  ;;  %v868_v17 = vsel %vm11440_vm13, %v673_v22, %v867_v37  ;;  %v12141_v51 = vpack.c.bf16 %v351_v59, %v351_v59 }
 0x120   : > { %v2407_v10 = vshll.u32 %v2119_v6, 16  ;;  %v2411_v11 = vshrl.u32 %v2119_v6, 16  ;;  %v2664_v44 = vld [vmem:[#allocation2 + $0x94] sm:$0xf]  ;;  %866 = vst.msk [vmem:[#allocation2 + $0xa0] sm:$0xf] %vm266_vm0, %v672_v35 }
 0x121   : > { %v3418_v26 = vshrl.u32 %v3159_v60, 16  ;;  %3663 = vst.msk [vmem:[#allocation4 + $0x28] sm:$0xff] %vm3657_vm7, %v3620_v13  ;;  %v2404_v32 = vor.u32 %v2403_v8, %v2400_v9  ;;  %v2805_v63 = vrot.slane %v2664_v44, 5  ;;  %v11142_v4 = vld [vmem:[#allocation2 + $0x90] sm:$0xff]   ;;  %869 = vst [vmem:[#allocation2 + $0xa4] sm:$0x1] %v868_v17  ;;  %v3941_v31 = vpop.permute.xlu0 %3940 }
 0x122   : > { %v2409_v62 = vrot.slane %v2407_v10, 5  ;;  %v2413_v24 = vrot.slane %v2411_v11, 4  ;;  %v2419_v25 = vrot.slane %v2417_v2, 5  ;;  %2906 = vrot.lane.b32.xlu0 %v10306_v33, %s11232_s7  ;;  %v2808_v3 = vrot.slane %v2665_v16, 5  ;;  %v3160_v15 = vld [vmem:[#allocation2 + $0x94] sm:$0xf]  ;;  %v1532_v30 = vpop.permute.xlu1 %1531 }
 0x123   : > { %v3161_v34 = vld [vmem:[#allocation2 + $0x98] sm:$0x1]  ;;  %v2405_v61 = vrot.slane %v2404_v32, 4  ;;  %v12131_v19 = vsel %vm11411_vm9, %v10291_v53, %v2805_v63  ;;  %v2807_v45 = vrot.slane %v2805_v63, 4  ;;  %v3420_v38 = vrot.slane %v3418_v26, 4  ;;  %1574 = vst.msk [vmem:[#allocation4 + $0x30] sm:$0xff] %vm1567_vm15, %v1532_v30 }
 0x124   : > { %v2414_v27 = vor.u32 %v2413_v24, %v2409_v62  ;;  %v3421_v21 = vshll.u32 %v3159_v60, 16  ;;  %v3427_v12 = vshll.u32 %v3160_v15, 16  ;;  %v3431_v39 = vshrl.u32 %v3160_v15, 16  ;;  %3984 = vst.msk [vmem:[#allocation4 + $0x28] sm:$0xff] %vm13993_vm4, %v3941_v31  ;;  %v3704_v50 = vld [vmem:[#allocation2 + $0x90] sm:$0xe] }
 0x125   : > { %v2410_v41 = vsel %vm11418_vm10, %v2405_v61, %v2409_v62  ;;  %v2809_v47 = vsel %vm11411_vm9, %v2807_v45, %v2808_v3  ;;  %v3437_v20 = vshll.u32 %v3161_v34, 16  ;;  %v3162_v48 = vld [vmem:[#allocation2 + $0x9c] sm:$0xf]  ;;  %v3999_v53 = vld [vmem:[#allocation4 + $0x20] sm:$0xff]  ;;  %v678_v58 = vshll.u32 %v12019_v14, 16 }
 0x126   : > { %v2415_v52 = vrot.slane %v2414_v27, 4  ;;  %3084 = vrot.lane.b32.xlu0 %v11142_v4, %s11231_s30  ;;  %v3423_v37 = vrot.slane %v3421_v21, 5  ;;  %v3429_v56 = vrot.slane %v3427_v12, 5  ;;  %v3433_v28 = vrot.slane %v3431_v39, 4  ;;  %11021 = vmatprep.mubr.msk.bf16.mxu0 %vm4038_vm8, %v3999_v53  ;;  %v3705_v33 = vld [vmem:[#allocation2 + $0x94] sm:$0xf] }
 0x127   : > { %v10307_v55 = vcombine.low %v12131_v19, %v2809_v47  ;;  %v3439_v46 = vrot.slane %v3437_v20, 5  ;;  %v3163_v22 = vld [vmem:[#allocation2 + $0xa0] sm:$0xf]  ;;  %v3442_v9 = vshrl.u32 %v3162_v48, 16  ;;  %v1534_v7 = vpop.permute.xlu1 %1533  ;;  %v3445_v8 = vshll.u32 %v3162_v48, 16  ;;  %v1856_v57 = vpop.permute.xlu0 %1855  ;;  %v11158_v48 = vld [vmem:[#allocation2 + $0x90] sm:$0xff]  }
 0x128   : > { %v2420_v54 = vsel %vm11418_vm10, %v2415_v52, %v2419_v25  ;;  %v3424_v1 = vor.u32 %v3423_v37, %v3420_v38  ;;  %v3434_v40 = vor.u32 %v3433_v28, %v3429_v56  ;;  %v3164_v6 = vld [vmem:[#allocation2 + $0xa4] sm:$0x1]  ;;  %v3451_v10 = vshll.u32 %v3163_v22, 16  ;;  %v3706_v13 = vld [vmem:[#allocation2 + $0x98] sm:$0x1]  ;;  %1575 = vst.msk [vmem:[#allocation4 + $0x38] sm:$0xff] %vm1567_vm15, %v1534_v7 }
 0x129   : > { %v10275_v60 = vcombine.low %v2410_v41, %v2420_v54  ;;  %v3455_v11 = vshrl.u32 %v3163_v22, 16  ;;  %v3461_v35 = vshll.u32 %v3164_v6, 16  ;;  %v3444_v16 = vrot.slane %v3442_v9, 4  ;;  %v1072_v17 = vld [vmem:[#allocation2 + $0x90] sm:$0xf]  ;;  %1898 = vst.msk [vmem:[#allocation4 + $0x30] sm:$0xff] %vm1891_vm1, %v1856_v57 }
 0x12a   : > { %v3425_v2 = vrot.slane %v3424_v1, 4  ;;  %v3435_v44 = vrot.slane %v3434_v40, 4  ;;  %v10354_v26 = vrot.slane %v3704_v50, 9  ;;  %v3447_v32 = vrot.slane %v3445_v8, 5  ;;  %v1073_v4 = vld [vmem:[#allocation2 + $0x94] sm:$0xf] }
 0x12b   : > { %2587 = vrot.lane.b32.xlu1 %v10275_v60, %s11234_s9  ;;  %v3453_v62 = vrot.slane %v3451_v10, 5  ;;  %v3457_v24 = vrot.slane %v3455_v11, 4  ;;  %v3463_v63 = vrot.slane %v3461_v35, 5  ;;  %v11143_v25 = vld [vmem:[#allocation2 + $0x9c] sm:$0xff]   ;;  %v3842_v34 = vrot.slane %v3705_v33, 5  ;;  %v1858_v27 = vpop.permute.xlu1 %1857  ;;  %v2033_v21 = vpop.permute.xlu0 %2032  ;;  %1032 = vst.msk [vmem:[#allocation4 + $0x60] sm:$0xff] %vm1019_vm14, %v11158_v48 }
 0x12c   : > { %v3430_v3 = vsel %vm11418_vm10, %v3425_v2, %v3429_v56  ;;  %v3440_v15 = vsel %vm11418_vm10, %v3435_v44, %v3439_v46  ;;  %v3845_v61 = vrot.slane %v3706_v13, 5  ;;  %v3448_v45 = vor.u32 %v3447_v32, %v3444_v16  ;;  %v1074_v31 = vld [vmem:[#allocation2 + $0x98] sm:$0x1]  ;;  %v3707_v38 = vld [vmem:[#allocation2 + $0x9c] sm:$0xe]  ;;  %1899 = vst.msk [vmem:[#allocation4 + $0x38] sm:$0xff] %vm1891_vm1, %v1858_v27 }
 0x12d   : > { %v10338_v19 = vcombine.low %v3430_v3, %v3440_v15  ;;  %v3458_v30 = vor.u32 %v3457_v24, %v3453_v62  ;;  %v1376_v59 = vshrl.u32 %v1072_v17, 16  ;;  %v4000_v12 = vld [vmem:[#allocation4 + $0x28] sm:$0xff]  ;;  %v3843_v39 = vsel %vm11411_vm9, %v10354_v26, %v3842_v34  ;;  %v3708_v20 = vld [vmem:[#allocation2 + $0xa0] sm:$0xf]  ;;  %2075 = vst.msk [vmem:[#allocation4 + $0x30] sm:$0xff] %vm2068_vm2, %v2033_v21 }
 0x12e   : > { %v3844_v41 = vrot.slane %v3842_v34, 4  ;;  %v1379_v52 = vshll.u32 %v1072_v17, 16  ;;  %v1385_v47 = vshll.u32 %v1073_v4, 16  ;;  %11022 = vmatmul.mubr.msk.bf16.gmra.mrb[8].mxu0 %vm4038_vm8, %v4000_v12  ;;  %v3449_v37 = vrot.slane %v3448_v45, 4  ;;  %v3709_v53 = vld [vmem:[#allocation2 + $0xa4] sm:$0x1] }
 0x12f   : > { %2908 = vrot.lane.b32.xlu1 %v10307_v55, %s11232_s7  ;;  %3629 = vrot.lane.b32.xlu0 %v10338_v19, %s11235_s10  ;;  %v3459_v56 = vrot.slane %v3458_v30, 4  ;;  %v1378_v28 = vrot.slane %v1376_v59, 4  ;;  %v1389_v50 = vshrl.u32 %v1073_v4, 16  ;;  %v1395_v22 = vshll.u32 %v1074_v31, 16  ;;  %v1075_v60 = vld [vmem:[#allocation2 + $0x9c] sm:$0xf] }
 0x130   : > { %v3846_v54 = vsel %vm11411_vm9, %v3844_v41, %v3845_v61  ;;  %v1381_v55 = vrot.slane %v1379_v52, 5  ;;  %v1387_v46 = vrot.slane %v1385_v47, 5  ;;  %v11159_v1 = vld [vmem:[#allocation2 + $0x9c] sm:$0xff]   ;;  %v3454_v40 = vsel %vm11418_vm10, %v3449_v37, %v3453_v62  ;;  %v1077_v13 = vld [vmem:[#allocation2 + $0xa4] sm:$0x1] }
 0x131   : > { %v3464_v6 = vsel %vm11418_vm10, %v3459_v56, %v3463_v63  ;;  %v10370_v9 = vcombine.low %v3843_v39, %v3846_v54  ;;  %v1391_v33 = vrot.slane %v1389_v50, 4  ;;  %v1076_v7 = vld [vmem:[#allocation2 + $0xa0] sm:$0xf]  ;;  %v1397_v11 = vrot.slane %v1395_v22, 5  ;;  %1033 = vst.msk [vmem:[#allocation4 + $0x68] sm:$0xff] %vm1019_vm14, %v11159_v1 }
 0x132   : > { %v10339_v8 = vcombine.low %v3454_v40, %v3464_v6  ;;  %v1382_v10 = vor.u32 %v1381_v55, %v1378_v28  ;;  %v10355_v35 = vrot.slane %v3707_v38, 9  ;;  %v3849_v2 = vrot.slane %v3708_v20, 5  ;;  %v1620_v26 = vld [vmem:[#allocation2 + $0x90] sm:$0xe]  ;;  %v1621_v63 = vld [vmem:[#allocation2 + $0x94] sm:$0xf]  ;;  %v2578_v4 = vpop.permute.xlu0 %2577 }
 0x133   : > { %3086 = vrot.lane.b32.xlu1 %v11143_v25, %s11231_s30  ;;  %3950 = vrot.lane.b32.xlu0 %v10370_v9, %s11233_s8  ;;  %v1392_v57 = vor.u32 %v1391_v33, %v1387_v46  ;;  %v3852_v44 = vrot.slane %v3709_v53, 5  ;;  %v1400_v16 = vshrl.u32 %v1075_v60, 16  ;;  %v1403_v32 = vshll.u32 %v1075_v60, 16  ;;  %v1622_v61 = vld [vmem:[#allocation2 + $0x98] sm:$0x1]  ;;  %v2035_v27 = vpop.permute.xlu1 %2034  ;;  %2620 = vst.msk [vmem:[#allocation4 + $0x30] sm:$0xff] %vm2613_vm3, %v2578_v4 }
 0x134   : > { %v1383_v17 = vrot.slane %v1382_v10, 4  ;;  %v1409_v62 = vshll.u32 %v1076_v7, 16  ;;  %v1413_v24 = vshrl.u32 %v1076_v7, 16  ;;  %v3850_v3 = vsel %vm11411_vm9, %v10355_v35, %v3849_v2  ;;  %v1623_v59 = vld [vmem:[#allocation2 + $0x9c] sm:$0xe]  ;;  %2076 = vst.msk [vmem:[#allocation4 + $0x38] sm:$0xff] %vm2068_vm2, %v2035_v27 }
 0x135   : > { %v1393_v25 = vrot.slane %v1392_v57, 4  ;;  %v3851_v15 = vrot.slane %v3849_v2, 4  ;;  %v1402_v34 = vrot.slane %v1400_v16, 4  ;;  %v1405_v45 = vrot.slane %v1403_v32, 5  ;;  %v1624_v41 = vld [vmem:[#allocation2 + $0xa0] sm:$0xf] }
 0x136   : > { %v1388_v19 = vsel %vm11418_vm10, %v1383_v17, %v1387_v46  ;;  %v1411_v30 = vrot.slane %v1409_v62, 5  ;;  %v1415_v31 = vrot.slane %v1413_v24, 4  ;;  %v1419_v12 = vshll.u32 %v1077_v13, 16  ;;  %v1625_v52 = vld [vmem:[#allocation2 + $0xa4] sm:$0x1]  ;;  %v2899_v56 = vpop.permute.xlu0 %2898 }
 0x137   : > { %3631 = vrot.lane.b32.xlu1 %v10339_v8, %s11235_s10  ;;  %v1398_v38 = vsel %vm11418_vm10, %v1393_v25, %v1397_v11  ;;  %v3853_v21 = vsel %vm11411_vm9, %v3851_v15, %v3852_v44  ;;  %v10228_v39 = vrot.slane %v1620_v26, 9  ;;  %v1406_v48 = vor.u32 %v1405_v45, %v1402_v34  ;;  %2941 = vst.msk [vmem:[#allocation4 + $0x30] sm:$0xff] %vm2934_vm5, %v2899_v56  ;;  %v870_v11 = vld [vmem:[#allocation2 + $0xa8] sm:$0xf]  ;;  %v2121_v35 = vld [vmem:[#allocation2 + $0x9c] sm:$0xf] }
 0x138   : > { %v10212_v47 = vcombine.low %v1388_v19, %v1398_v38  ;;  %v10371_v20 = vcombine.low %v3850_v3, %v3853_v21  ;;  %v1416_v37 = vor.u32 %v1415_v31, %v1411_v30  ;;  %v1421_v28 = vrot.slane %v1419_v12, 5  ;;  %v2122_v16 = vld [vmem:[#allocation2 + $0xa0] sm:$0xf]  ;;  %v2123_v24 = vld [vmem:[#allocation2 + $0xa4] sm:$0x1] }
 0x139   : > { %v1769_v50 = vrot.slane %v1621_v63, 5  ;;  %v1772_v53 = vrot.slane %v1622_v61, 5  ;;  %v10229_v54 = vrot.slane %v1623_v59, 9  ;;  %v1407_v55 = vrot.slane %v1406_v48, 4  ;;  %v874_v63 = vld [vmem:[#allocation2 + $0xb0] sm:$0x1] }
 0x13a   : > { %3952 = vrot.lane.b32.xlu0 %v10371_v20, %s11233_s8  ;;  %v1417_v46 = vrot.slane %v1416_v37, 4  ;;  %v1776_v22 = vrot.slane %v1624_v41, 5  ;;  %v1779_v60 = vrot.slane %v1625_v52, 5  ;;  %v677_v6 = vrot.slane %v675_v18, 7  ;;  %v3077_v13 = vpop.permute.xlu0 %3076  ;;  %v2666_v3 = vld [vmem:[#allocation2 + $0x9c] sm:$0xe] }
 0x13b   : > { %1543 = vrot.lane.b32.xlu1 %v10212_v47, %s11229_s28  ;;  %v1770_v1 = vsel %vm11411_vm9, %v10228_v39, %v1769_v50  ;;  %v1771_v40 = vrot.slane %v1769_v50, 4  ;;  %v683_v9 = vshrl.u32 %v12125_v43, 16  ;;  %v1412_v33 = vsel %vm11418_vm10, %v1407_v55, %v1411_v30  ;;  %3119 = vst.msk [vmem:[#allocation4 + $0x30] sm:$0xff] %vm3112_vm6, %v3077_v13  ;;  %v2667_v15 = vld [vmem:[#allocation2 + $0xa0] sm:$0xf] }
 0x13c   : > { %v1422_v7 = vsel %vm11418_vm10, %v1417_v46, %v1421_v28  ;;  %v1777_v8 = vsel %vm11411_vm9, %v10229_v54, %v1776_v22  ;;  %v1778_v10 = vrot.slane %v1776_v22, 4  ;;  %v680_v18 = vor.u32 %v678_v58, %v677_v6  ;;  %v11144_v61 = vld [vmem:[#allocation2 + $0x9c] sm:$0xff]   ;;  %v2668_v30 = vld [vmem:[#allocation2 + $0xa4] sm:$0x1]  ;;  %v877_v13 = vld [vmem:[#allocation2 + $0xb4] sm:$0xf] }
 0x13d   : > { %v10213_v57 = vcombine.low %v1412_v33, %v1422_v7  ;;  %v1773_v2 = vsel %vm11411_vm9, %v1771_v40, %v1772_v53  ;;  %v681_v44 = vrot.slane %v677_v6, 4  ;;  %v685_v32 = vrot.slane %v683_v9, 7 }
 0x13e   : > { %v10244_v26 = vcombine.low %v1770_v1, %v1773_v2  ;;  %v1780_v17 = vsel %vm11411_vm9, %v1778_v10, %v1779_v60  ;;  %v686_v62 = vshll.u32 %v12125_v43, 16  ;;  %v871_v14 = vsel %vm11432_vm12, %v680_v18, %v870_v11 }
 0x13f   : > { %1545 = vrot.lane.b32.xlu1 %v10213_v57, %s11229_s28  ;;  %v10245_v4 = vcombine.low %v1777_v8, %v1780_v17  ;;  %v2422_v58 = vshrl.u32 %v2121_v35, 16  ;;  %v2425_v25 = vshll.u32 %v2121_v35, 16  ;;  %v2580_v34 = vpop.permute.xlu1 %2579  ;;  %v690_v19 = vrot.slane %v685_v32, 4  ;;  %872 = vst [vmem:[#allocation2 + $0xa8] sm:$0xf] %v871_v14 }
 0x140   : > { %1867 = vrot.lane.b32.xlu0 %v10244_v26, %s11228_s27  ;;  %v688_v27 = vor.u32 %v686_v62, %v685_v32  ;;  %v2431_v43 = vshll.u32 %v2122_v16, 16  ;;  %v2435_v45 = vshrl.u32 %v2122_v16, 16  ;;  %2621 = vst.msk [vmem:[#allocation4 + $0x38] sm:$0xff] %vm2613_vm3, %v2580_v34  ;;  %v2441_v38 = vshll.u32 %v2123_v24, 16  ;;  %v881_v16 = vld [vmem:[#allocation2 + $0xbc] sm:$0x1] }
 0x141   : > { %v2424_v31 = vrot.slane %v2422_v58, 4  ;;  %v2427_v59 = vrot.slane %v2425_v25, 5  ;;  %v875_v41 = vsel %vm11440_vm13, %v690_v19, %v874_v63  ;;  %v10292_v47 = vrot.slane %v2666_v3, 9  ;;  %v352_v34 = vld [vmem:[%s11404_s26 + $0xf0] sm:$0xff] }
 0x142   : > { %v689_v21 = vsel %vm11426_vm11, %v681_v44, %v688_v27  ;;  %v2433_v12 = vrot.slane %v2431_v43, 5  ;;  %v2437_v39 = vrot.slane %v2435_v45, 4  ;;  %876 = vst [vmem:[#allocation2 + $0xb0] sm:$0x1] %v875_v41  ;;  %v2812_v20 = vrot.slane %v2667_v15, 5 }
 0x143   : > { %1869 = vrot.lane.b32.xlu1 %v10245_v4, %s11228_s27  ;;  %873 = vst.msk [vmem:[#allocation2 + $0xac] sm:$0xf] %vm266_vm0, %v689_v21  ;;  %v2428_v52 = vor.u32 %v2427_v59, %v2424_v31  ;;  %v2815_v48 = vrot.slane %v2668_v30, 5  ;;  %v2901_v37 = vpop.permute.xlu1 %2900  ;;  %v2443_v28 = vrot.slane %v2441_v38, 5  ;;  %v692_v50 = vshrl.u32 %v12127_v5, 16 }
 0x144   : > { %2044 = vrot.lane.b32.xlu0 %v11144_v61, %s11230_s29  ;;  %v2438_v56 = vor.u32 %v2437_v39, %v2433_v12  ;;  %v700_v53 = vshrl.u32 %v12141_v51, 16  ;;  %2942 = vst.msk [vmem:[#allocation4 + $0x38] sm:$0xff] %vm2934_vm5, %v2901_v37  ;;  %v2814_v55 = vrot.slane %v2812_v20, 4  ;;  %v695_v46 = vshll.u32 %v12127_v5, 16  ;;  %v3622_v6 = vpop.permute.xlu0 %3621 }
 0x145   : > { %v2429_v54 = vrot.slane %v2428_v52, 4  ;;  %v694_v60 = vrot.slane %v692_v50, 7  ;;  %v703_v40 = vshll.u32 %v12141_v51, 16  ;;  %v2813_v7 = vsel %vm11411_vm9, %v10292_v47, %v2812_v20  ;;  %3664 = vst.msk [vmem:[#allocation4 + $0x30] sm:$0xff] %vm3657_vm7, %v3622_v6 }
 0x146   : > { %v2439_v22 = vrot.slane %v2438_v56, 4  ;;  %v702_v1 = vrot.slane %v700_v53, 7  ;;  %v2124_v33 = vld [vmem:[#allocation2 + $0xa8] sm:$0xf]  ;;  %v2816_v8 = vsel %vm11411_vm9, %v2814_v55, %v2815_v48  ;;  %v12243_v20 = vpack.c.bf16 %v352_v34, %v352_v34  ;;  %v353_v53 = vld [vmem:[%s11404_s26 + $0xf8] sm:$0xff] }
 0x147   : > { %v2434_v9 = vsel %vm11418_vm10, %v2429_v54, %v2433_v12  ;;  %v2669_v10 = vld [vmem:[#allocation2 + $0xa8] sm:$0xe]  ;;  %v3079_v11 = vpop.permute.xlu1 %3078  ;;  %v2446_v35 = vshrl.u32 %v2124_v33, 16  ;;  %v2449_v51 = vshll.u32 %v2124_v33, 16  ;;  %v697_v18 = vor.u32 %v695_v46, %v694_v60 }
 0x148   : > { %v2444_v5 = vsel %vm11418_vm10, %v2439_v22, %v2443_v28  ;;  %3120 = vst.msk [vmem:[#allocation4 + $0x38] sm:$0xff] %vm3112_vm6, %v3079_v11  ;;  %v10293_v2 = vrot.slane %v2669_v10, 9  ;;  %v698_v44 = vrot.slane %v694_v60, 4  ;;  %v10308_v62 = vcombine.low %v2813_v7, %v2816_v8  ;;  %v3943_v63 = vpop.permute.xlu0 %3942  ;;  %v3165_v15 = vld [vmem:[#allocation2 + $0xa8] sm:$0xf] }
 0x149   : > { %v10276_v57 = vcombine.low %v2434_v9, %v2444_v5  ;;  %v2448_v32 = vrot.slane %v2446_v35, 4  ;;  %v705_v24 = vor.u32 %v703_v40, %v702_v1  ;;  %v2126_v4 = vld [vmem:[#allocation2 + $0xb0] sm:$0x1]  ;;  %v2451_v14 = vrot.slane %v2449_v51, 5  ;;  %3985 = vst.msk [vmem:[#allocation4 + $0x30] sm:$0xff] %vm13993_vm4, %v3943_v63 }
 0x14a   : > { %v11145_v26 = vld [vmem:[#allocation2 + $0xa8] sm:$0xff]   ;;  %v878_v3 = vsel %vm11432_vm12, %v697_v18, %v877_v13  ;;  %v2465_v61 = vshll.u32 %v2126_v4, 16  ;;  %v2671_v19 = vld [vmem:[#allocation2 + $0xb0] sm:$0x1]  ;;  %v707_v45 = vrot.slane %v702_v1, 4  ;;  %v3466_v55 = vshrl.u32 %v3165_v15, 16 }
 0x14b   : > { %v2125_v17 = vld [vmem:[#allocation2 + $0xac] sm:$0xf]  ;;  %2589 = vrot.lane.b32.xlu0 %v10276_v57, %s11234_s9  ;;  %2046 = vrot.lane.b32.xlu1 %v11145_v26, %s11230_s29  ;;  %v706_v43 = vsel %vm11426_vm11, %v698_v44, %v705_v24  ;;  %879 = vst [vmem:[#allocation2 + $0xb4] sm:$0xf] %v878_v3  ;;  %v2452_v30 = vor.u32 %v2451_v14, %v2448_v32  ;;  %v3624_v21 = vpop.permute.xlu1 %3623  ;;  %v2822_v39 = vrot.slane %v2671_v19, 5  ;;  %v3469_v46 = vshll.u32 %v3165_v15, 16 }
 0x14c   : > { %v2455_v58 = vshll.u32 %v2125_v17, 16  ;;  %v2459_v25 = vshrl.u32 %v2125_v17, 16  ;;  %v2670_v27 = vld [vmem:[#allocation2 + $0xac] sm:$0xf]  ;;  %880 = vst.msk [vmem:[#allocation2 + $0xb8] sm:$0xf] %vm266_vm0, %v706_v43  ;;  %v882_v47 = vsel %vm11440_vm13, %v707_v45, %v881_v16  ;;  %v12257_v35 = vpack.c.bf16 %v353_v53, %v353_v53 }
 0x14d   : > { %v2819_v38 = vrot.slane %v2670_v27, 5  ;;  %v2467_v12 = vrot.slane %v2465_v61, 5  ;;  %v3166_v41 = vld [vmem:[#allocation2 + $0xac] sm:$0xf]  ;;  %v3167_v52 = vld [vmem:[#allocation2 + $0xb0] sm:$0x1]  ;;  %v3945_v54 = vpop.permute.xlu0 %3944 }
 0x14e   : > { %v2457_v31 = vrot.slane %v2455_v58, 5  ;;  %v2461_v59 = vrot.slane %v2459_v25, 4  ;;  %3665 = vst.msk [vmem:[#allocation4 + $0x38] sm:$0xff] %vm3657_vm7, %v3624_v21  ;;  %v2453_v48 = vrot.slane %v2452_v30, 4  ;;  %v11148_v50 = vld [vmem:[#allocation2 + $0xa8] sm:$0xff]   ;;  %v3475_v22 = vshll.u32 %v3166_v41, 16 }
 0x14f   : > { %2910 = vrot.lane.b32.xlu0 %v10308_v62, %s11232_s7  ;;  %v12249_v56 = vsel %vm11411_vm9, %v10293_v2, %v2819_v38  ;;  %v2821_v28 = vrot.slane %v2819_v38, 4  ;;  %883 = vst [vmem:[#allocation2 + $0xbc] sm:$0x1] %v882_v47  ;;  %v3479_v60 = vshrl.u32 %v3166_v41, 16  ;;  %3986 = vst.msk [vmem:[#allocation4 + $0x38] sm:$0xff] %vm13993_vm4, %v3945_v54  ;;  %v3485_v9 = vshll.u32 %v3167_v52, 16  ;;  %v1536_v7 = vpop.permute.xlu1 %1535 }
 0x150   : > { %v2462_v37 = vor.u32 %v2461_v59, %v2457_v31  ;;  %v2458_v1 = vsel %vm11418_vm10, %v2453_v48, %v2457_v31  ;;  %v3710_v33 = vld [vmem:[#allocation2 + $0xa8] sm:$0xe]  ;;  %v3468_v8 = vrot.slane %v3466_v55, 4  ;;  %v3471_v10 = vrot.slane %v3469_v46, 5  ;;  %v3711_v5 = vld [vmem:[#allocation2 + $0xac] sm:$0xf] }
 0x151   : > { %v2823_v6 = vsel %vm11411_vm9, %v2821_v28, %v2822_v39  ;;  %v3477_v11 = vrot.slane %v3475_v22, 5  ;;  %1576 = vst.msk [vmem:[#allocation4 + $0x40] sm:$0xff] %vm1567_vm15, %v1536_v7  ;;  %v4001_v51 = vld [vmem:[#allocation4 + $0x30] sm:$0xff]  ;;  %v3481_v2 = vrot.slane %v3479_v60, 4  ;;  %v709_v44 = vshrl.u32 %v12243_v20, 16 }
 0x152   : > { %v2463_v40 = vrot.slane %v2462_v37, 4  ;;  %v10309_v57 = vcombine.low %v12249_v56, %v2823_v6  ;;  %v3168_v18 = vld [vmem:[#allocation2 + $0xb4] sm:$0xf]  ;;  %11025 = vmatprep.mubr.msk.bf16.mxu0 %vm4038_vm8, %v4001_v51  ;;  %v3472_v26 = vor.u32 %v3471_v10, %v3468_v8  ;;  %v3487_v17 = vrot.slane %v3485_v9, 5  ;;  %v3712_v58 = vld [vmem:[#allocation2 + $0xb0] sm:$0x1] }
 0x153   : > { %3088 = vrot.lane.b32.xlu0 %v11148_v50, %s11231_s30  ;;  %v3169_v32 = vld [vmem:[#allocation2 + $0xb8] sm:$0xf]  ;;  %v3490_v62 = vshrl.u32 %v3168_v18, 16  ;;  %v3482_v24 = vor.u32 %v3481_v2, %v3477_v11  ;;  %v3493_v63 = vshll.u32 %v3168_v18, 16  ;;  %v1860_v25 = vpop.permute.xlu0 %1859  ;;  %v10356_v61 = vrot.slane %v3710_v33, 9 }
 0x154   : > { %v2468_v13 = vsel %vm11418_vm10, %v2463_v40, %v2467_v12  ;;  %v3499_v4 = vshll.u32 %v3169_v32, 16  ;;  %v3503_v14 = vshrl.u32 %v3169_v32, 16  ;;  %v3473_v3 = vrot.slane %v3472_v26, 4  ;;  %1900 = vst.msk [vmem:[#allocation4 + $0x40] sm:$0xff] %vm1891_vm1, %v1860_v25  ;;  %v1078_v31 = vld [vmem:[#allocation2 + $0xa8] sm:$0xf] }
 0x155   : > { %v10277_v16 = vcombine.low %v2458_v1, %v2468_v13  ;;  %v3492_v34 = vrot.slane %v3490_v62, 4  ;;  %v3856_v27 = vrot.slane %v3711_v5, 5  ;;  %v3483_v19 = vrot.slane %v3482_v24, 4  ;;  %v1538_v59 = vpop.permute.xlu1 %1537  ;;  %v1079_v41 = vld [vmem:[#allocation2 + $0xac] sm:$0xf]  ;;  %v11149_v47 = vld [vmem:[#allocation2 + $0xb4] sm:$0xff]  }
 0x156   : > { %v3170_v15 = vld [vmem:[#allocation2 + $0xbc] sm:$0x1]  ;;  %v3495_v43 = vrot.slane %v3493_v63, 5  ;;  %v3501_v45 = vrot.slane %v3499_v4, 5  ;;  %v3505_v30 = vrot.slane %v3503_v14, 4  ;;  %v3478_v38 = vsel %vm11418_vm10, %v3473_v3, %v3477_v11  ;;  %1577 = vst.msk [vmem:[#allocation4 + $0x48] sm:$0xff] %vm1567_vm15, %v1538_v59 }
 0x157   : > { %2591 = vrot.lane.b32.xlu1 %v10277_v16, %s11234_s9  ;;  %v3509_v21 = vshll.u32 %v3170_v15, 16  ;;  %v3857_v12 = vsel %vm11411_vm9, %v10356_v61, %v3856_v27  ;;  %v3858_v39 = vrot.slane %v3856_v27, 4  ;;  %v1080_v52 = vld [vmem:[#allocation2 + $0xb0] sm:$0x1]  ;;  %v3488_v48 = vsel %vm11418_vm10, %v3483_v19, %v3487_v17  ;;  %v3713_v50 = vld [vmem:[#allocation2 + $0xb4] sm:$0xe]  ;;  %v2037_v53 = vpop.permute.xlu0 %2036 }
 0x158   : > { %v3496_v37 = vor.u32 %v3495_v43, %v3492_v34  ;;  %v3506_v56 = vor.u32 %v3505_v30, %v3501_v45  ;;  %v3859_v28 = vrot.slane %v3712_v58, 5  ;;  %v4002_v54 = vld [vmem:[#allocation4 + $0x38] sm:$0xff]  ;;  %v10340_v55 = vcombine.low %v3478_v38, %v3488_v48  ;;  %v3714_v1 = vld [vmem:[#allocation2 + $0xb8] sm:$0xf]  ;;  %2077 = vst.msk [vmem:[#allocation4 + $0x40] sm:$0xff] %vm2068_vm2, %v2037_v53 }
 0x159   : > { %v3511_v46 = vrot.slane %v3509_v21, 5  ;;  %v1424_v22 = vshrl.u32 %v1078_v31, 16  ;;  %v1427_v60 = vshll.u32 %v1078_v31, 16  ;;  %11026 = vmatmul.mubr.msk.bf16.gmra.mrb[12].mxu0 %vm4038_vm8, %v4002_v54  ;;  %v11160_v40 = vld [vmem:[#allocation2 + $0xa8] sm:$0xff]   ;;  %v1433_v7 = vshll.u32 %v1079_v41, 16  ;;  %v1862_v10 = vpop.permute.xlu1 %1861  ;;  %v11161_v11 = vld [vmem:[#allocation2 + $0xb4] sm:$0xff]  }
 0x15a   : > { %v3497_v6 = vrot.slane %v3496_v37, 4  ;;  %v3507_v9 = vrot.slane %v3506_v56, 4  ;;  %v3860_v33 = vsel %vm11411_vm9, %v3858_v39, %v3859_v28  ;;  %v3715_v8 = vld [vmem:[#allocation2 + $0xbc] sm:$0x1]  ;;  %3633 = vrot.lane.b32.xlu0 %v10340_v55, %s11235_s10  ;;  %v1081_v2 = vld [vmem:[#allocation2 + $0xb4] sm:$0xf] }
 0x15b   : > { %2912 = vrot.lane.b32.xlu1 %v10309_v57, %s11232_s7  ;;  %v10372_v5 = vcombine.low %v3857_v12, %v3860_v33  ;;  %v1426_v51 = vrot.slane %v1424_v22, 4  ;;  %v1429_v13 = vrot.slane %v1427_v60, 5  ;;  %v1437_v57 = vshrl.u32 %v1079_v41, 16  ;;  %1901 = vst.msk [vmem:[#allocation4 + $0x48] sm:$0xff] %vm1891_vm1, %v1862_v10  ;;  %v1082_v32 = vld [vmem:[#allocation2 + $0xb8] sm:$0xf] }
 0x15c   : > { %1034 = vst.msk [vmem:[#allocation4 + $0x70] sm:$0xff] %vm1019_vm14, %v11160_v40  ;;  %v3502_v18 = vsel %vm11418_vm10, %v3497_v6, %v3501_v45  ;;  %v3512_v16 = vsel %vm11418_vm10, %v3507_v9, %v3511_v46  ;;  %v1435_v26 = vrot.slane %v1433_v7, 5  ;;  %v1443_v17 = vshll.u32 %v1080_v52, 16  ;;  %1035 = vst.msk [vmem:[#allocation4 + $0x78] sm:$0xff] %vm1019_vm14, %v11161_v11  ;;  %v1626_v14 = vld [vmem:[#allocation2 + $0xa8] sm:$0xe] }
 0x15d   : > { %v10341_v62 = vcombine.low %v3502_v18, %v3512_v16  ;;  %v1430_v24 = vor.u32 %v1429_v13, %v1426_v51  ;;  %v1439_v63 = vrot.slane %v1437_v57, 4  ;;  %v10357_v4 = vrot.slane %v3713_v50, 9  ;;  %v1083_v15 = vld [vmem:[#allocation2 + $0xbc] sm:$0x1]  ;;  %v1627_v61 = vld [vmem:[#allocation2 + $0xac] sm:$0xf] }
 0x15e   : > { %v1445_v58 = vrot.slane %v1443_v17, 5  ;;  %v3863_v25 = vrot.slane %v3714_v1, 5  ;;  %v3866_v3 = vrot.slane %v3715_v8, 5  ;;  %v1448_v34 = vshrl.u32 %v1081_v2, 16  ;;  %3954 = vrot.lane.b32.xlu0 %v10372_v5, %s11233_s8  ;;  %v1628_v30 = vld [vmem:[#allocation2 + $0xb0] sm:$0x1] }
 0x15f   : > { %3090 = vrot.lane.b32.xlu1 %v11149_v47, %s11231_s30  ;;  %v1431_v27 = vrot.slane %v1430_v24, 4  ;;  %v1440_v19 = vor.u32 %v1439_v63, %v1435_v26  ;;  %v1451_v43 = vshll.u32 %v1081_v2, 16  ;;  %v1457_v45 = vshll.u32 %v1082_v32, 16  ;;  %v1629_v12 = vld [vmem:[#allocation2 + $0xb4] sm:$0xe] }
 0x160   : > { %v3864_v31 = vsel %vm11411_vm9, %v10357_v4, %v3863_v25  ;;  %v3865_v59 = vrot.slane %v3863_v25, 4  ;;  %v1450_v38 = vrot.slane %v1448_v34, 4  ;;  %v1461_v21 = vshrl.u32 %v1082_v32, 16  ;;  %v1630_v48 = vld [vmem:[#allocation2 + $0xb8] sm:$0xf] }
 0x161   : > { %v1436_v39 = vsel %vm11418_vm10, %v1431_v27, %v1435_v26  ;;  %v1441_v41 = vrot.slane %v1440_v19, 4  ;;  %v1453_v52 = vrot.slane %v1451_v43, 5  ;;  %v1459_v47 = vrot.slane %v1457_v45, 5  ;;  %v1631_v53 = vld [vmem:[#allocation2 + $0xbc] sm:$0x1] }
 0x162   : > { %v3867_v37 = vsel %vm11411_vm9, %v3865_v59, %v3866_v3  ;;  %v1463_v56 = vrot.slane %v1461_v21, 4  ;;  %v1467_v28 = vshll.u32 %v1083_v15, 16  ;;  %v10230_v50 = vrot.slane %v1626_v14, 9  ;;  %v2582_v54 = vpop.permute.xlu0 %2581  ;;  %v2127_v32 = vld [vmem:[#allocation2 + $0xb4] sm:$0xf] }
 0x163   : > { %3635 = vrot.lane.b32.xlu1 %v10341_v62, %s11235_s10  ;;  %v1446_v55 = vsel %vm11418_vm10, %v1441_v41, %v1445_v58  ;;  %v10373_v46 = vcombine.low %v3864_v31, %v3867_v37  ;;  %v1454_v22 = vor.u32 %v1453_v52, %v1450_v38  ;;  %v1783_v60 = vrot.slane %v1627_v61, 5  ;;  %2622 = vst.msk [vmem:[#allocation4 + $0x40] sm:$0xff] %vm2613_vm3, %v2582_v54  ;;  %v884_v4 = vld [vmem:[#allocation2 + $0xc0] sm:$0xf]  ;;  %v2128_v14 = vld [vmem:[#allocation2 + $0xb8] sm:$0xf] }
 0x164   : > { %v2039_v1 = vpop.permute.xlu1 %2038  ;;  %v10214_v40 = vcombine.low %v1436_v39, %v1446_v55  ;;  %v1464_v6 = vor.u32 %v1463_v56, %v1459_v47  ;;  %v1469_v9 = vrot.slane %v1467_v28, 5  ;;  %v1786_v33 = vrot.slane %v1628_v30, 5  ;;  %v11150_v61 = vld [vmem:[#allocation2 + $0xb4] sm:$0xff]   ;;  %v2129_v19 = vld [vmem:[#allocation2 + $0xbc] sm:$0x1] }
 0x165   : > { %2078 = vst.msk [vmem:[#allocation4 + $0x48] sm:$0xff] %vm2068_vm2, %v2039_v1  ;;  %3956 = vrot.lane.b32.xlu0 %v10373_v46, %s11233_s8  ;;  %v1455_v7 = vrot.slane %v1454_v22, 4  ;;  %v1784_v8 = vsel %vm11411_vm9, %v10230_v50, %v1783_v60  ;;  %v1785_v10 = vrot.slane %v1783_v60, 4  ;;  %v10231_v11 = vrot.slane %v1629_v12, 9  ;;  %v3174_v30 = vld [vmem:[#allocation2 + $0xcc] sm:$0xf] }
 0x166   : > { %v1465_v5 = vrot.slane %v1464_v6, 4  ;;  %v1790_v51 = vrot.slane %v1630_v48, 5  ;;  %v1793_v13 = vrot.slane %v1631_v53, 5  ;;  %v711_v57 = vrot.slane %v709_v44, 7  ;;  %v2903_v2 = vpop.permute.xlu0 %2902  ;;  %v2672_v39 = vld [vmem:[#allocation2 + $0xb4] sm:$0xe] }
 0x167   : > { %1547 = vrot.lane.b32.xlu1 %v10214_v40, %s11229_s28  ;;  %v1460_v18 = vsel %vm11418_vm10, %v1455_v7, %v1459_v47  ;;  %v1787_v16 = vsel %vm11411_vm9, %v1785_v10, %v1786_v33  ;;  %v712_v26 = vshll.u32 %v12243_v20, 16  ;;  %v717_v17 = vshrl.u32 %v12257_v35, 16  ;;  %2943 = vst.msk [vmem:[#allocation4 + $0x40] sm:$0xff] %vm2934_vm5, %v2903_v2  ;;  %v888_v20 = vld [vmem:[#allocation2 + $0xc8] sm:$0x1] }
 0x168   : > { %v1470_v62 = vsel %vm11418_vm10, %v1465_v5, %v1469_v9  ;;  %v10246_v24 = vcombine.low %v1784_v8, %v1787_v16  ;;  %v1791_v44 = vsel %vm11411_vm9, %v10231_v11, %v1790_v51  ;;  %v1792_v63 = vrot.slane %v1790_v51, 4  ;;  %v2673_v41 = vld [vmem:[#allocation2 + $0xb8] sm:$0xf]  ;;  %v2674_v37 = vld [vmem:[#allocation2 + $0xbc] sm:$0x1] }
 0x169   : > { %v10215_v58 = vcombine.low %v1460_v18, %v1470_v62  ;;  %v714_v25 = vor.u32 %v712_v26, %v711_v57  ;;  %v715_v3 = vrot.slane %v711_v57, 4  ;;  %v719_v15 = vrot.slane %v717_v17, 7  ;;  %v12334_v7 = vld [vmem:[#allocation2 + $0xd0] sm:$0xf] }
 0x16a   : > { %1871 = vrot.lane.b32.xlu0 %v10246_v24, %s11228_s27  ;;  %v1794_v34 = vsel %vm11411_vm9, %v1792_v63, %v1793_v13  ;;  %v720_v27 = vshll.u32 %v12257_v35, 16  ;;  %v2470_v43 = vshrl.u32 %v2127_v32, 16  ;;  %v2473_v45 = vshll.u32 %v2127_v32, 16  ;;  %v3081_v31 = vpop.permute.xlu0 %3080 }
 0x16b   : > { %1549 = vrot.lane.b32.xlu1 %v10215_v58, %s11229_s28  ;;  %v10247_v59 = vcombine.low %v1791_v44, %v1794_v34  ;;  %v724_v38 = vrot.slane %v719_v15, 4  ;;  %v885_v21 = vsel %vm11432_vm12, %v714_v25, %v884_v4  ;;  %v2479_v12 = vshll.u32 %v2128_v14, 16  ;;  %3121 = vst.msk [vmem:[#allocation4 + $0x40] sm:$0xff] %vm3112_vm6, %v3081_v31 }
 0x16c   : > { %v722_v52 = vor.u32 %v720_v27, %v719_v15  ;;  %886 = vst [vmem:[#allocation2 + $0xc0] sm:$0xf] %v885_v21  ;;  %v2472_v35 = vrot.slane %v2470_v43, 4  ;;  %v2475_v47 = vrot.slane %v2473_v45, 5  ;;  %v2483_v48 = vshrl.u32 %v2128_v14, 16 }
 0x16d   : > { %v2481_v56 = vrot.slane %v2479_v12, 5  ;;  %v2489_v28 = vshll.u32 %v2129_v19, 16  ;;  %v889_v50 = vsel %vm11440_vm13, %v724_v38, %v888_v20  ;;  %v2826_v46 = vrot.slane %v2673_v41, 5  ;;  %v12353_v43 = vld [vmem:[#allocation2 + $0xd4] sm:$0x1] }
 0x16e   : > { %2048 = vrot.lane.b32.xlu0 %v11150_v61, %s11230_s29  ;;  %v723_v42 = vsel %vm11426_vm11, %v715_v3, %v722_v52  ;;  %v2476_v54 = vor.u32 %v2475_v47, %v2472_v35  ;;  %v2485_v55 = vrot.slane %v2483_v48, 4  ;;  %890 = vst [vmem:[#allocation2 + $0xc8] sm:$0x1] %v889_v50  ;;  %v10294_v22 = vrot.slane %v2672_v39, 9 }
 0x16f   : > { %1873 = vrot.lane.b32.xlu1 %v10247_v59, %s11228_s27  ;;  %887 = vst.msk [vmem:[#allocation2 + $0xc4] sm:$0xf] %vm266_vm0, %v723_v42  ;;  %v2829_v60 = vrot.slane %v2674_v37, 5  ;;  %v3538_v49 = vshrl.u32 %v3174_v30, 16  ;;  %v3541_v1 = vshll.u32 %v3174_v30, 16  ;;  %v2491_v9 = vrot.slane %v2489_v28, 5 }
 0x170   : > { %v2584_v53 = vpop.permute.xlu1 %2583  ;;  %v2477_v40 = vrot.slane %v2476_v54, 4  ;;  %v2486_v6 = vor.u32 %v2485_v55, %v2481_v56  ;;  %v2828_v33 = vrot.slane %v2826_v46, 4  ;;  %v2827_v13 = vsel %vm11411_vm9, %v10294_v22, %v2826_v46 }
 0x171   : > { %2623 = vst.msk [vmem:[#allocation4 + $0x48] sm:$0xff] %vm2613_vm3, %v2584_v53  ;;  %v12338_v5 = vrot.slane %v3538_v49, 4  ;;  %v12345_v2 = vrot.slane %v3541_v1, 5  ;;  %v3547_v18 = vshll.u32 %v12334_v7, 16  ;;  %v3551_v38 = vshrl.u32 %v12334_v7, 16 }
 0x172   : > { %v2482_v10 = vsel %vm11418_vm10, %v2477_v40, %v2481_v56  ;;  %v2487_v11 = vrot.slane %v2486_v6, 4  ;;  %v2830_v57 = vsel %vm11411_vm9, %v2828_v33, %v2829_v60  ;;  %v3557_v60 = vshll.u32 %v12353_v43, 16  ;;  %v12407_v43 = vld [vmem:[#allocation2 + $0xd4] sm:$0x1] }
 0x173   : > { %v2130_v51 = vld [vmem:[#allocation2 + $0xc0] sm:$0xf]  ;;  %v3626_v16 = vpop.permute.xlu0 %3625  ;;  %v10310_v15 = vcombine.low %v2827_v13, %v2830_v57  ;;  %v3544_v6 = vor.u32 %v12345_v2, %v12338_v5  ;;  %vm4284_vm0 = vcmask 60416   ;;  %vm4287_vm12 = vcmask 57344  }
 0x174   : > { %v2905_v8 = vpop.permute.xlu1 %2904  ;;  %v2492_v26 = vsel %vm11418_vm10, %v2487_v11, %v2491_v9  ;;  %v2494_v17 = vshrl.u32 %v2130_v51, 16  ;;  %v2497_v32 = vshll.u32 %v2130_v51, 16  ;;  %v2675_v62 = vld [vmem:[#allocation2 + $0xc0] sm:$0xe]  ;;  %3666 = vst.msk [vmem:[#allocation4 + $0x40] sm:$0xff] %vm3657_vm7, %v3626_v16  ;;  %v12371_v11 = vrot.slane %v3547_v18, 5 }
 0x175   : > { %2944 = vst.msk [vmem:[#allocation4 + $0x48] sm:$0xff] %vm2934_vm5, %v2905_v8  ;;  %v10278_v24 = vcombine.low %v2482_v10, %v2492_v26  ;;  %v2132_v44 = vld [vmem:[#allocation2 + $0xc8] sm:$0x1]  ;;  %v3171_v4 = vld [vmem:[#allocation2 + $0xc0] sm:$0xf]  ;;  %v10295_v30 = vrot.slane %v2675_v62, 9 }
 0x176   : > { %v2677_v63 = vld [vmem:[#allocation2 + $0xc8] sm:$0x1]  ;;  %v11151_v58 = vld [vmem:[#allocation2 + $0xc0] sm:$0xff]   ;;  %v2496_v3 = vrot.slane %v2494_v17, 4  ;;  %v2499_v20 = vrot.slane %v2497_v32, 5  ;;  %v2513_v27 = vshll.u32 %v2132_v44, 16 }
 0x177   : > { %v2131_v25 = vld [vmem:[#allocation2 + $0xc4] sm:$0xf]  ;;  %2593 = vrot.lane.b32.xlu0 %v10278_v24, %s11234_s9  ;;  %v3947_v45 = vpop.permute.xlu0 %3946  ;;  %2050 = vrot.lane.b32.xlu1 %v11151_v58, %s11230_s29  ;;  %v3514_v59 = vshrl.u32 %v3171_v4, 16  ;;  %v2836_v41 = vrot.slane %v2677_v63, 5  ;;  %v3173_v37 = vld [vmem:[#allocation2 + $0xc8] sm:$0x1] }
 0x178   : > { %v3083_v14 = vpop.permute.xlu1 %3082  ;;  %v2503_v34 = vshll.u32 %v2131_v25, 16  ;;  %v2507_v61 = vshrl.u32 %v2131_v25, 16  ;;  %v2676_v19 = vld [vmem:[#allocation2 + $0xc4] sm:$0xf]  ;;  %3987 = vst.msk [vmem:[#allocation4 + $0x40] sm:$0xff] %vm13993_vm4, %v3947_v45  ;;  %v2500_v21 = vor.u32 %v2499_v20, %v2496_v3  ;;  %v2515_v47 = vrot.slane %v2513_v27, 5 }
 0x179   : > { %3122 = vst.msk [vmem:[#allocation4 + $0x48] sm:$0xff] %vm3112_vm6, %v3083_v14  ;;  %v2833_v31 = vrot.slane %v2676_v19, 5  ;;  %v3172_v52 = vld [vmem:[#allocation2 + $0xc4] sm:$0xf]  ;;  %v3516_v56 = vrot.slane %v3514_v59, 4  ;;  %v3517_v28 = vshll.u32 %v3171_v4, 16 }
 0x17a   : > { %v2505_v12 = vrot.slane %v2503_v34, 5  ;;  %v2509_v39 = vrot.slane %v2507_v61, 4  ;;  %v2501_v50 = vrot.slane %v2500_v21, 4  ;;  %v11154_v42 = vld [vmem:[#allocation2 + $0xc0] sm:$0xff]   ;;  %v3523_v54 = vshll.u32 %v3172_v52, 16 }
 0x17b   : > { %v2835_v48 = vrot.slane %v2833_v31, 4  ;;  %2914 = vrot.lane.b32.xlu0 %v10310_v15, %s11232_s7  ;;  %v3527_v55 = vshrl.u32 %v3172_v52, 16  ;;  %v3519_v46 = vrot.slane %v3517_v28, 5  ;;  %v3533_v22 = vshll.u32 %v3173_v37, 16  ;;  %v3716_v9 = vld [vmem:[#allocation2 + $0xc0] sm:$0xe] }
 0x17c   : > { %v3628_v35 = vpop.permute.xlu1 %3627  ;;  %v2510_v53 = vor.u32 %v2509_v39, %v2505_v12  ;;  %v2506_v49 = vsel %vm11418_vm10, %v2501_v50, %v2505_v12  ;;  %v12363_v40 = vrot.slane %v3523_v54, 5  ;;  %v12369_v7 = vsel %vm11411_vm9, %v10295_v30, %v2833_v31  ;;  %v3717_v51 = vld [vmem:[#allocation2 + $0xc4] sm:$0xf]  ;;  %v12373_v13 = vld [vmem:[#allocation2 + $0xc8] sm:$0x1]  ;;  %v11155_v39 = vld [vmem:[#allocation2 + $0xcc] sm:$0xff]  }
 0x17d   : > { %3667 = vst.msk [vmem:[#allocation4 + $0x48] sm:$0xff] %vm3657_vm7, %v3628_v35  ;;  %v3520_v8 = vor.u32 %v3519_v46, %v3516_v56  ;;  %v3529_v10 = vrot.slane %v3527_v55, 4  ;;  %v12380_v5 = vsel %vm11411_vm9, %v2835_v48, %v2836_v41  ;;  %v12383_v2 = vrot.slane %v3533_v22, 5  ;;  %v12385_v18 = vld [vmem:[#allocation2 + $0xd0] sm:$0xf] }
 0x17e   : > { %v2511_v1 = vrot.slane %v2510_v53, 4  ;;  %v3949_v33 = vpop.permute.xlu0 %3948  ;;  %v3553_v26 = vrot.slane %v3551_v38, 4  ;;  %v10358_v44 = vrot.slane %v3716_v9, 9  ;;  %v12390_v63 = vrot.slane %v3544_v6, 4  ;;  %v12400_v20 = vld [vmem:[#allocation2 + $0xcc] sm:$0xe] }
 0x17f   : > { %3988 = vst.msk [vmem:[#allocation4 + $0x48] sm:$0xff] %vm13993_vm4, %v3949_v33  ;;  %3092 = vrot.lane.b32.xlu0 %v11154_v42, %s11231_s30  ;;  %v4003_v17 = vld [vmem:[#allocation4 + $0x40] sm:$0xff]  ;;  %v3521_v62 = vrot.slane %v3520_v8, 4  ;;  %v3530_v24 = vor.u32 %v3529_v10, %v12363_v40  ;;  %v3870_v14 = vrot.slane %v3717_v51, 5  ;;  %v3873_v58 = vrot.slane %v12373_v13, 5 }
 0x180   : > { %v1540_v57 = vpop.permute.xlu1 %1539  ;;  %v2516_v16 = vsel %vm11418_vm10, %v2511_v1, %v2515_v47  ;;  %11029 = vmatprep.mubr.msk.bf16.mxu0 %vm4038_vm8, %v4003_v17  ;;  %v3554_v4 = vor.u32 %v3553_v26, %v12371_v11  ;;  %v10311_v25 = vcombine.low %v12369_v7, %v12380_v5  ;;  %v3877_v34 = vrot.slane %v12385_v18, 5  ;;  %4292 = vst.msk [vmem:[#allocation3 + $0x18] sm:$0xf] %vm4284_vm0, %v11227_v0 }
 0x181   : > { %1578 = vst.msk [vmem:[#allocation4 + $0x50] sm:$0xff] %vm1567_vm15, %v1540_v57  ;;  %v10279_v32 = vcombine.low %v2506_v49, %v2516_v16  ;;  %v3526_v3 = vsel %vm11418_vm10, %v3521_v62, %v12363_v40  ;;  %v3531_v15 = vrot.slane %v3530_v24, 4  ;;  %v12405_v27 = vrot.slane %v3557_v60, 5 }
 0x182   : > { %v12403_v61 = vrot.slane %v3554_v4, 4  ;;  %v3872_v19 = vrot.slane %v3870_v14, 4  ;;  %v12414_v31 = vsel %vm11411_vm9, %v10358_v44, %v3870_v14  ;;  %4285 = vst.msk [vmem:[#allocation3] sm:$0xf] %vm4284_vm0, %v11227_v0  ;;  %4286 = vst.msk [vmem:[#allocation3 + $0x4] sm:$0xf] %vm4284_vm0, %v11227_v0  ;;  %v3550_v47 = vsel %vm11418_vm10, %v12390_v63, %v12371_v11 }
 0x183   : > { %2595 = vrot.lane.b32.xlu1 %v10279_v32, %s11234_s9  ;;  %v3536_v30 = vsel %vm11418_vm10, %v3531_v15, %v12383_v2  ;;  %4289 = vst.msk [vmem:[#allocation3 + $0xc] sm:$0xf] %vm4284_vm0, %v11227_v0  ;;  %4290 = vst.msk [vmem:[#allocation3 + $0x10] sm:$0xf] %vm4284_vm0, %v11227_v0  ;;  %v10359_v41 = vrot.slane %v12400_v20, 9  ;;  %v3879_v52 = vrot.slane %v3877_v34, 4 }
 0x184   : > { %v1542_v45 = vpop.permute.xlu1 %1541  ;;  %4293 = vst.msk [vmem:[#allocation3 + $0x1c] sm:$0xf] %vm4284_vm0, %v11227_v0  ;;  %4295 = vst.msk [vmem:[#allocation3 + $0x24] sm:$0xf] %vm4284_vm0, %v11227_v0  ;;  %v10342_v38 = vcombine.low %v3526_v3, %v3536_v30  ;;  %v3874_v21 = vsel %vm11411_vm9, %v3872_v19, %v3873_v58  ;;  %v3880_v35 = vrot.slane %v12407_v43, 5  ;;  %v3560_v48 = vsel %vm11418_vm10, %v12403_v61, %v12405_v27 }
 0x185   : > { %1579 = vst.msk [vmem:[#allocation4 + $0x58] sm:$0xff] %vm1567_vm15, %v1542_v45  ;;  %v1864_v59 = vpop.permute.xlu0 %1863  ;;  %v10374_v37 = vcombine.low %v12414_v31, %v3874_v21  ;;  %v3878_v50 = vsel %vm11411_vm9, %v10359_v41, %v3877_v34  ;;  %vm14005_vm13 = vsmask.f32 7938 }
 0x186   : > { %4296 = vst.msk [vmem:[#allocation3 + $0x28] sm:$0xf] %vm4284_vm0, %v11227_v0  ;;  %4298 = vst.msk [vmem:[#allocation3 + $0x30] sm:$0xf] %vm4284_vm0, %v11227_v0  ;;  %v4004_v12 = vld [vmem:[#allocation4 + $0x48] sm:$0xff]  ;;  %3637 = vrot.lane.b32.xlu0 %v10342_v38, %s11235_s10  ;;  %v3881_v53 = vsel %vm11411_vm9, %v3879_v52, %v3880_v35 }
 0x187   : > { %4299 = vst.msk [vmem:[#allocation3 + $0x34] sm:$0xf] %vm4284_vm0, %v11227_v0  ;;  %4301 = vst.msk [vmem:[#allocation3 + $0x3c] sm:$0xf] %vm4284_vm0, %v11227_v0  ;;  %2916 = vrot.lane.b32.xlu1 %v10311_v25, %s11232_s7  ;;  %11030 = vmatmul.mubr.msk.bf16.gmra.mrb[16].mxu0 %vm4038_vm8, %v4004_v12  ;;  %v10375_v22 = vcombine.low %v3878_v50, %v3881_v53 }
 0x188   : > { %4302 = vst.msk [vmem:[#allocation3 + $0x40] sm:$0xf] %vm4284_vm0, %v11227_v0  ;;  %4304 = vst.msk [vmem:[#allocation3 + $0x48] sm:$0xf] %vm4284_vm0, %v11227_v0  ;;  %v1866_v56 = vpop.permute.xlu1 %1865 }
 0x189   : > { %4305 = vst.msk [vmem:[#allocation3 + $0x4c] sm:$0xf] %vm4284_vm0, %v11227_v0  ;;  %4307 = vst.msk [vmem:[#allocation3 + $0x54] sm:$0xf] %vm4284_vm0, %v11227_v0  ;;  %v2041_v28 = vpop.permute.xlu0 %2040  ;;  %v5018_v42 = vld [vmem:[#allocation3] sm:$0xf] }
 0x18a   : > { %4308 = vst.msk [vmem:[#allocation3 + $0x58] sm:$0xf] %vm4284_vm0, %v11227_v0  ;;  %4310 = vst.msk [vmem:[#allocation3 + $0x60] sm:$0xf] %vm4284_vm0, %v11227_v0  ;;  %3958 = vrot.lane.b32.xlu0 %v10374_v37, %s11233_s8  ;;  %v5019_v54 = vld [vmem:[#allocation3 + $0x4] sm:$0xf] }
 0x18b   : > { %4311 = vst.msk [vmem:[#allocation3 + $0x64] sm:$0xf] %vm4284_vm0, %v11227_v0  ;;  %4313 = vst.msk [vmem:[#allocation3 + $0x6c] sm:$0xf] %vm4284_vm0, %v11227_v0  ;;  %3094 = vrot.lane.b32.xlu1 %v11155_v39, %s11231_s30  ;;  %v5067_v55 = vshrl.u32 %v5018_v42, 16  ;;  %v5070_v46 = vshll.u32 %v5018_v42, 16 }
 0x18c   : > { %4314 = vst.msk [vmem:[#allocation3 + $0x70] sm:$0xf] %vm4284_vm0, %v11227_v0  ;;  %4316 = vst.msk [vmem:[#allocation3 + $0x78] sm:$0xf] %vm4284_vm0, %v11227_v0  ;;  %v5076_v40 = vshll.u32 %v5019_v54, 16  ;;  %v5080_v6 = vshrl.u32 %v5019_v54, 16 }
 0x18d   : > { %4317 = vst.msk [vmem:[#allocation3 + $0x7c] sm:$0xf] %vm4284_vm0, %v11227_v0  ;;  %4319 = vst.msk [vmem:[#allocation3 + $0x84] sm:$0xf] %vm4284_vm0, %v11227_v0  ;;  %v5069_v49 = vrot.slane %v5067_v55, 4  ;;  %v5072_v1 = vrot.slane %v5070_v46, 5 }
 0x18e   : > { %4320 = vst.msk [vmem:[#allocation3 + $0x88] sm:$0xf] %vm4284_vm0, %v11227_v0  ;;  %4322 = vst.msk [vmem:[#allocation3 + $0x90] sm:$0xf] %vm4284_vm0, %v11227_v0  ;;  %v5563_v9 = vld [vmem:[#allocation3] sm:$0xe] }
 0x18f   : > { %4323 = vst.msk [vmem:[#allocation3 + $0x94] sm:$0xf] %vm4284_vm0, %v11227_v0  ;;  %4325 = vst.msk [vmem:[#allocation3 + $0x9c] sm:$0xf] %vm4284_vm0, %v11227_v0  ;;  %v5564_v8 = vld [vmem:[#allocation3 + $0x4] sm:$0xf]  ;;  %v5073_v11 = vor.u32 %v5072_v1, %v5069_v49 }
 0x190   : > { %4326 = vst.msk [vmem:[#allocation3 + $0xa0] sm:$0xf] %vm4284_vm0, %v11227_v0  ;;  %4328 = vst.msk [vmem:[#allocation3 + $0xa8] sm:$0xf] %vm4284_vm0, %v11227_v0  ;;  %v2586_v33 = vpop.permute.xlu0 %2585  ;;  %v5078_v51 = vrot.slane %v5076_v40, 5  ;;  %v5082_v13 = vrot.slane %v5080_v6, 4 }
 0x191   : > { %4329 = vst.msk [vmem:[#allocation3 + $0xac] sm:$0xf] %vm4284_vm0, %v11227_v0  ;;  %4331 = vst.msk [vmem:[#allocation3 + $0xb4] sm:$0xf] %vm4284_vm0, %v11227_v0  ;;  %v5661_v57 = vrot.slane %v5564_v8, 5  ;;  %v2043_v16 = vpop.permute.xlu1 %2042  ;;  %v10460_v2 = vrot.slane %v5563_v9, 9 }
 0x192   : > { %4332 = vst.msk [vmem:[#allocation3 + $0xb8] sm:$0xf] %vm4284_vm0, %v11227_v0  ;;  %4334 = vst.msk [vmem:[#allocation3 + $0xc0] sm:$0xf] %vm4284_vm0, %v11227_v0  ;;  %v5074_v26 = vrot.slane %v5073_v11, 4  ;;  %v5083_v18 = vor.u32 %v5082_v13, %v5078_v51 }
 0x193   : > { %4335 = vst.msk [vmem:[#allocation3 + $0xc4] sm:$0xf] %vm4284_vm0, %v11227_v0  ;;  %4337 = vst.msk [vmem:[#allocation3 + $0xcc] sm:$0xf] %vm4284_vm0, %v11227_v0  ;;  %v5663_v17 = vrot.slane %v5661_v57, 4  ;;  %v5662_v4 = vsel %vm11411_vm9, %v10460_v2, %v5661_v57 }
 0x194   : > { %4338 = vst.msk [vmem:[#allocation3 + $0xd0] sm:$0xf] %vm4284_vm0, %v11227_v0  ;;  %v2907_v62 = vpop.permute.xlu0 %2906  ;;  %v5079_v24 = vsel %vm11418_vm10, %v5074_v26, %v5078_v51  ;;  %v5084_v44 = vrot.slane %v5083_v18, 4  ;;  %vm12610_vm14 = vmand %vm4284_vm0, %vm14005_vm13  ;;  %vm14008_vm13 = vsmask.f32 256 }
 0x195   : > { %1902 = vst.msk [vmem:[#allocation4 + $0x50] sm:$0xff] %vm1891_vm1, %v1864_v59  ;;  %1903 = vst.msk [vmem:[#allocation4 + $0x58] sm:$0xff] %vm1891_vm1, %v1866_v56 }
 0x196   : > { %4294 = vst.msk [vmem:[#allocation3 + $0x20] sm:$0x1] %vm4287_vm12, %v11227_v0  ;;  %4288 = vst.msk [vmem:[#allocation3 + $0x8] sm:$0x1] %vm4287_vm12, %v11227_v0 }
 0x197   : > { %4291 = vst.msk [vmem:[#allocation3 + $0x14] sm:$0x1] %vm4287_vm12, %v11227_v0  ;;  %4297 = vst.msk [vmem:[#allocation3 + $0x2c] sm:$0x1] %vm4287_vm12, %v11227_v0 }
 0x198   : > { %4300 = vst.msk [vmem:[#allocation3 + $0x38] sm:$0x1] %vm4287_vm12, %v11227_v0  ;;  %4303 = vst.msk [vmem:[#allocation3 + $0x44] sm:$0x1] %vm4287_vm12, %v11227_v0  ;;  %v3085_v58 = vpop.permute.xlu0 %3084 }
 0x199   : > { %4306 = vst.msk [vmem:[#allocation3 + $0x50] sm:$0x1] %vm4287_vm12, %v11227_v0  ;;  %4309 = vst.msk [vmem:[#allocation3 + $0x5c] sm:$0x1] %vm4287_vm12, %v11227_v0 }
 0x19a   : > { %4312 = vst.msk [vmem:[#allocation3 + $0x68] sm:$0x1] %vm4287_vm12, %v11227_v0  ;;  %4315 = vst.msk [vmem:[#allocation3 + $0x74] sm:$0x1] %vm4287_vm12, %v11227_v0 }
 0x19b   : > { %4318 = vst.msk [vmem:[#allocation3 + $0x80] sm:$0x1] %vm4287_vm12, %v11227_v0  ;;  %4321 = vst.msk [vmem:[#allocation3 + $0x8c] sm:$0x1] %vm4287_vm12, %v11227_v0 }
 0x19c   : > { %4324 = vst.msk [vmem:[#allocation3 + $0x98] sm:$0x1] %vm4287_vm12, %v11227_v0  ;;  %4327 = vst.msk [vmem:[#allocation3 + $0xa4] sm:$0x1] %vm4287_vm12, %v11227_v0 }
 0x19d   : > { %4330 = vst.msk [vmem:[#allocation3 + $0xb0] sm:$0x1] %vm4287_vm12, %v11227_v0  ;;  %4333 = vst.msk [vmem:[#allocation3 + $0xbc] sm:$0x1] %vm4287_vm12, %v11227_v0  ;;  %v5020_v60 = vld [vmem:[#allocation3 + $0x8] sm:$0x1]  ;;  %v2588_v15 = vpop.permute.xlu1 %2587 }
 0x19e   : > { %4336 = vst.msk [vmem:[#allocation3 + $0xc8] sm:$0x1] %vm4287_vm12, %v11227_v0  ;;  %4339 = vst.msk [vmem:[#allocation3 + $0xd4] sm:$0x1] %vm4287_vm12, %v11227_v0  ;;  %v10343_v0 = vcombine.low %v3550_v47, %v3560_v48  ;;  %v5086_v7 = vshll.u32 %v5020_v60, 16 }
 0x19f   : > { %2079 = vst.msk [vmem:[#allocation4 + $0x50] sm:$0xff] %vm2068_vm2, %v2041_v28  ;;  %v5565_v10 = vld [vmem:[#allocation3 + $0x8] sm:$0x1]  ;;  %2080 = vst.msk [vmem:[#allocation4 + $0x58] sm:$0xff] %vm2068_vm2, %v2043_v16 }
 0x1a0   : > { %3639 = vrot.lane.b32.xlu1 %v10343_v0, %s11235_s10  ;;  %2624 = vst.msk [vmem:[#allocation4 + $0x50] sm:$0xff] %vm2613_vm3, %v2586_v33  ;;  %v5088_v5 = vrot.slane %v5086_v7, 5  ;;  %v5664_v32 = vrot.slane %v5565_v10, 5  ;;  %2625 = vst.msk [vmem:[#allocation4 + $0x58] sm:$0xff] %vm2613_vm3, %v2588_v15  ;;  %v12595_v0 = vld [vmem:[%s13986_s2] ss:$0 sm:$0xff] }
 0x1a1   : > { %2945 = vst.msk [vmem:[#allocation4 + $0x50] sm:$0xff] %vm2934_vm5, %v2907_v62  ;;  %v2909_v20 = vpop.permute.xlu1 %2908  ;;  %v3630_v34 = vpop.permute.xlu0 %3629 }
 0x1a2   : > { %v5089_v63 = vsel %vm11418_vm10, %v5084_v44, %v5088_v5  ;;  %v5665_v14 = vsel %vm11411_vm9, %v5663_v17, %v5664_v32  ;;  %3123 = vst.msk [vmem:[#allocation4 + $0x50] sm:$0xff] %vm3112_vm6, %v3085_v58 }
 0x1a3   : > { %v10444_v25 = vcombine.low %v5079_v24, %v5089_v63  ;;  %v10476_v3 = vcombine.low %v5662_v4, %v5665_v14  ;;  %2946 = vst.msk [vmem:[#allocation4 + $0x58] sm:$0xff] %vm2934_vm5, %v2909_v20  ;;  %v4768_v14 = vld [vmem:[#allocation3 + $0x18] sm:$0xf] }
 0x1a4   : > { %3960 = vrot.lane.b32.xlu1 %v10375_v22, %s11233_s8  ;;  %3668 = vst.msk [vmem:[#allocation4 + $0x50] sm:$0xff] %vm3657_vm7, %v3630_v34 }
 0x1a5   : > { %5498 = vrot.lane.b32.xlu0 %v10444_v25, %s11228_s27  ;;  %v3087_v61 = vpop.permute.xlu1 %3086  ;;  %v3951_v27 = vpop.permute.xlu0 %3950 }
 0x1a6   : > { %3124 = vst.msk [vmem:[#allocation4 + $0x58] sm:$0xff] %vm3112_vm6, %v3087_v61 }
 0x1a7   : > { %3989 = vst.msk [vmem:[#allocation4 + $0x50] sm:$0xff] %vm13993_vm4, %v3951_v27  ;;  %v4759_v27 = vld [vmem:[#allocation3 + $0xc] sm:$0xf] }
 0x1a9   : > { %5819 = vrot.lane.b32.xlu0 %v10476_v3, %s11234_s9  ;;  %v3632_v19 = vpop.permute.xlu1 %3631 }
 0x1aa   : > { %3669 = vst.msk [vmem:[#allocation4 + $0x58] sm:$0xff] %vm3657_vm7, %v3632_v19 }
 0x1ac   : > { %v3953_v45 = vpop.permute.xlu0 %3952 }
 0x1ad   : > { %v1544_v43 = vpop.permute.xlu1 %1543  ;;  %3990 = vst.msk [vmem:[#allocation4 + $0x58] sm:$0xff] %vm13993_vm4, %v3953_v45 }
 0x1ae   : > { %1580 = vst.msk [vmem:[#allocation4 + $0x60] sm:$0xff] %vm1567_vm15, %v1544_v43  ;;  %v4005_v30 = vld [vmem:[#allocation4 + $0x50] sm:$0xff] }
 0x1af   : > { %11033 = vmatprep.mubr.msk.bf16.mxu0 %vm4038_vm8, %v4005_v30 }
 0x1b1   : > { %v1546_v31 = vpop.permute.xlu1 %1545 }
 0x1b2   : > { %1581 = vst.msk [vmem:[#allocation4 + $0x68] sm:$0xff] %vm1567_vm15, %v1546_v31  ;;  %v1868_v59 = vpop.permute.xlu0 %1867 }
 0x1b3   : > { %1904 = vst.msk [vmem:[#allocation4 + $0x60] sm:$0xff] %vm1891_vm1, %v1868_v59 }
 0x1b4   : > { %v4006_v38 = vld [vmem:[#allocation4 + $0x58] sm:$0xff] }
 0x1b5   : > { %v1870_v21 = vpop.permute.xlu1 %1869  ;;  %11034 = vmatmul.mubr.msk.bf16.gmra.mrb[20].mxu0 %vm4038_vm8, %v4006_v38 }
 0x1b6   : > { %1905 = vst.msk [vmem:[#allocation4 + $0x68] sm:$0xff] %vm1891_vm1, %v1870_v21  ;;  %v2045_v12 = vpop.permute.xlu0 %2044  ;;  %v4772_v21 = vld [vmem:[#allocation3 + $0x20] sm:$0x1] }
 0x1b7   : > { %2081 = vst.msk [vmem:[#allocation4 + $0x60] sm:$0xff] %vm2068_vm2, %v2045_v12 }
 0x1bd   : > { %v2590_v39 = vpop.permute.xlu0 %2589  ;;  %v2047_v41 = vpop.permute.xlu1 %2046 }
 0x1be   : > { %2626 = vst.msk [vmem:[#allocation4 + $0x60] sm:$0xff] %vm2613_vm3, %v2590_v39 }
 0x1bf   : > { %2082 = vst.msk [vmem:[#allocation4 + $0x68] sm:$0xff] %vm2068_vm2, %v2047_v41 }
 0x1c1   : > { %v2911_v52 = vpop.permute.xlu0 %2910 }
 0x1c2   : > { %2947 = vst.msk [vmem:[#allocation4 + $0x60] sm:$0xff] %vm2934_vm5, %v2911_v52 }
 0x1c5   : > { %v3089_v35 = vpop.permute.xlu0 %3088 }
 0x1c6   : > { %3125 = vst.msk [vmem:[#allocation4 + $0x60] sm:$0xff] %vm3112_vm6, %v3089_v35 }
 0x1c9   : > { %v2592_v47 = vpop.permute.xlu1 %2591 }
 0x1ca   : > { %2627 = vst.msk [vmem:[#allocation4 + $0x68] sm:$0xff] %vm2613_vm3, %v2592_v47 }
 0x1cc   : > { %v3634_v37 = vpop.permute.xlu0 %3633 }
 0x1cd   : > { %v2913_v48 = vpop.permute.xlu1 %2912  ;;  %3670 = vst.msk [vmem:[#allocation4 + $0x60] sm:$0xff] %vm3657_vm7, %v3634_v37 }
 0x1ce   : > { %2948 = vst.msk [vmem:[#allocation4 + $0x68] sm:$0xff] %vm2934_vm5, %v2913_v48  ;;  %v4765_v48 = vld [vmem:[#allocation3 + $0x14] sm:$0x1] }
 0x1d0   : > { %v3955_v28 = vpop.permute.xlu0 %3954 }
 0x1d1   : > { %v3091_v56 = vpop.permute.xlu1 %3090  ;;  %3991 = vst.msk [vmem:[#allocation4 + $0x60] sm:$0xff] %vm13993_vm4, %v3955_v28 }
 0x1d2   : > { %3126 = vst.msk [vmem:[#allocation4 + $0x68] sm:$0xff] %vm3112_vm6, %v3091_v56 }
 0x1d4   : > { %v11015_v53 = vpop.f32.mrb[0].mxu0 }
 0x1d5   : > { %v3636_v50 = vpop.permute.xlu1 %3635  ;;  %v4134_v42 = vadd.f32 %v11015_v53, %v12595_v0  ;;  %v4125_v54 = vpop.f32.mrb[1].mxu0 }
 0x1d6   : > { %3671 = vst.msk [vmem:[#allocation4 + $0x68] sm:$0xff] %vm3657_vm7, %v3636_v50  ;;  %v4126_v55 = vadd.f32 %v12595_v0, %v4125_v54  ;;  %v11016_v46 = vpop.f32.mrb[2].mxu0 }
 0x1d7   : > { %v4254_v22 = vmax.f32 %v4134_v42, 0.0  ;;  %v4137_v60 = vadd.f32 %v11016_v46, %v12595_v0  ;;  %v4128_v49 = vpop.f32.mrb[3].mxu0  ;;  %v3957_v1 = vpop.permute.xlu0 %3956 }
 0x1d8   : > { %v4252_v40 = vmax.f32 %v4126_v55, 0.0  ;;  %v4129_v6 = vadd.f32 %v12595_v0, %v4128_v49  ;;  %3992 = vst.msk [vmem:[#allocation4 + $0x68] sm:$0xff] %vm13993_vm4, %v3957_v1  ;;  %v4007_v8 = vld [vmem:[#allocation4 + $0x60] sm:$0xff]  ;;  %vm12618_vm4 = vmand %vm4287_vm12, %vm14008_vm13  ;;  %vm7088_vm12 = vcmask 458112   ;;  %vm7633_vm13 = vcmask 523712  }
 0x1d9   : > { %v1548_v9 = vpop.permute.xlu1 %1547  ;;  %v10873_v33 = vpack.c.bf16 %v4254_v22, %v4254_v22  ;;  %v4255_v7 = vmax.f32 %v4137_v60, 0.0  ;;  %11037 = vmatprep.mubr.msk.bf16.mxu0 %vm4038_vm8, %v4007_v8 }
 0x1da   : > { %1582 = vst.msk [vmem:[#allocation4 + $0x70] sm:$0xff] %vm1567_vm15, %v1548_v9  ;;  %v10871_v10 = vpack.c.bf16 %v4252_v40, %v4252_v40  ;;  %v4253_v11 = vmax.f32 %v4129_v6, 0.0 }
 0x1db   : > { %v4454_v51 = vshrl.u32 %v10873_v33, 16  ;;  %v10874_v13 = vpack.c.bf16 %v4255_v7, %v4255_v7  ;;  %v4457_v57 = vshll.u32 %v10873_v33, 16  ;;  %v4782_v33 = vld [vmem:[#allocation3 + $0x30] sm:$0xf] }
 0x1dc   : > { %v4437_v16 = vshrl.u32 %v10871_v10, 16  ;;  %v4440_v5 = vshll.u32 %v10871_v10, 16  ;;  %v10872_v2 = vpack.c.bf16 %v4253_v11, %v4253_v11  ;;  %v11019_v26 = vpop.f32.mrb[4].mxu0  ;;  %v1872_v18 = vpop.permute.xlu0 %1871  ;;  %v4775_v11 = vld [vmem:[#allocation3 + $0x24] sm:$0xf] }
 0x1dd   : > { %v4456_v17 = vrot.slane %v4454_v51, 7  ;;  %v4462_v32 = vshrl.u32 %v10874_v13, 16  ;;  %v4465_v62 = vshll.u32 %v10874_v13, 16  ;;  %v4150_v24 = vadd.f32 %v11019_v26, %v12595_v0  ;;  %v4141_v44 = vpop.f32.mrb[5].mxu0  ;;  %v1550_v63 = vpop.permute.xlu1 %1549  ;;  %1906 = vst.msk [vmem:[#allocation4 + $0x70] sm:$0xff] %vm1891_vm1, %v1872_v18 }
 0x1de   : > { %v4439_v58 = vrot.slane %v4437_v16, 7  ;;  %v4445_v25 = vshrl.u32 %v10872_v2, 16  ;;  %v4448_v3 = vshll.u32 %v10872_v2, 16  ;;  %v4142_v15 = vadd.f32 %v12595_v0, %v4141_v44  ;;  %v11020_v20 = vpop.f32.mrb[6].mxu0  ;;  %1583 = vst.msk [vmem:[#allocation4 + $0x78] sm:$0xff] %vm1567_vm15, %v1550_v63 }
 0x1df   : > { %v4459_v34 = vor.u32 %v4457_v57, %v4456_v17  ;;  %v4460_v61 = vrot.slane %v4456_v17, 4  ;;  %v4464_v19 = vrot.slane %v4462_v32, 7  ;;  %v4258_v43 = vmax.f32 %v4150_v24, 0.0  ;;  %v4144_v45 = vpop.f32.mrb[7].mxu0  ;;  %v4008_v30 = vld [vmem:[#allocation4 + $0x68] sm:$0xff] }
 0x1e0   : > { %v4442_v31 = vor.u32 %v4440_v5, %v4439_v58  ;;  %v4443_v59 = vrot.slane %v4439_v58, 4  ;;  %v4447_v12 = vrot.slane %v4445_v25, 7  ;;  %v4256_v39 = vmax.f32 %v4142_v15, 0.0  ;;  %v2049_v41 = vpop.permute.xlu0 %2048  ;;  %11038 = vmatmul.mubr.msk.bf16.gmra.mrb[24].mxu0 %vm4038_vm8, %v4008_v30  ;;  %v4786_v25 = vld [vmem:[#allocation3 + $0x38] sm:$0x1] }
 0x1e1   : > { %v4769_v52 = vsel %vm12610_vm14, %v4459_v34, %v4768_v14  ;;  %v4467_v35 = vor.u32 %v4465_v62, %v4464_v19  ;;  %v4469_v47 = vrot.slane %v4464_v19, 4  ;;  %v10877_v37 = vpack.c.bf16 %v4258_v43, %v4258_v43  ;;  %v1874_v56 = vpop.permute.xlu1 %1873  ;;  %2083 = vst.msk [vmem:[#allocation4 + $0x70] sm:$0xff] %vm2068_vm2, %v2049_v41  ;;  %v4779_v19 = vld [vmem:[#allocation3 + $0x2c] sm:$0x1] }
 0x1e2   : > { %4770 = vst [vmem:[#allocation3 + $0x18] sm:$0xf] %v4769_v52  ;;  %v4760_v28 = vsel %vm12610_vm14, %v4442_v31, %v4759_v27  ;;  %v4450_v50 = vor.u32 %v4448_v3, %v4447_v12  ;;  %v4452_v53 = vrot.slane %v4447_v12, 4  ;;  %v10875_v42 = vpack.c.bf16 %v4256_v39, %v4256_v39  ;;  %1907 = vst.msk [vmem:[#allocation4 + $0x78] sm:$0xff] %vm1891_vm1, %v1874_v56 }
 0x1e3   : > { %4761 = vst [vmem:[#allocation3 + $0xc] sm:$0xf] %v4760_v28  ;;  %v4468_v54 = vsel %vm11426_vm11, %v4460_v61, %v4467_v35  ;;  %v4773_v55 = vsel %vm12618_vm4, %v4469_v47, %v4772_v21  ;;  %v4488_v46 = vshrl.u32 %v10877_v37, 16  ;;  %v4491_v40 = vshll.u32 %v10877_v37, 16 }
 0x1e4   : > { %4771 = vst.msk [vmem:[#allocation3 + $0x1c] sm:$0xf] %vm4284_vm0, %v4468_v54  ;;  %4774 = vst [vmem:[#allocation3 + $0x20] sm:$0x1] %v4773_v55  ;;  %v4451_v22 = vsel %vm11426_vm11, %v4443_v59, %v4450_v50  ;;  %v4766_v60 = vsel %vm12618_vm4, %v4452_v53, %v4765_v48  ;;  %v4471_v49 = vshrl.u32 %v10875_v42, 16  ;;  %v4153_v6 = vadd.f32 %v11020_v20, %v12595_v0 }
 0x1e5   : > { %4762 = vst.msk [vmem:[#allocation3 + $0x10] sm:$0xf] %vm4284_vm0, %v4451_v22  ;;  %4767 = vst [vmem:[#allocation3 + $0x14] sm:$0x1] %v4766_v60  ;;  %v12639_v1 = vrot.slane %v4488_v46, 7  ;;  %v4145_v9 = vadd.f32 %v12595_v0, %v4144_v45  ;;  %v4474_v8 = vshll.u32 %v10875_v42, 16 }
 0x1e6   : > { %v12643_v7 = vrot.slane %v4471_v49, 7  ;;  %v4259_v51 = vmax.f32 %v4153_v6, 0.0  ;;  %vm13994_vm15 = vcmask 64512   ;;  %v11177_v60 = vld [vmem:[#allocation3] sm:$0xff]   ;;  %vm14011_vm1 = vcmask 294144  }
 0x1e7   : > { %v4493_v10 = vor.u32 %v4491_v40, %v12639_v1  ;;  %v4257_v13 = vmax.f32 %v4145_v9, 0.0  ;;  %v4494_v17 = vrot.slane %v12639_v1, 4  ;;  %5002 = vst.msk [vmem:[#allocation5] sm:$0xff] %vm13994_vm15, %v11177_v60 }
 0x1e8   : > { %v4476_v57 = vor.u32 %v4474_v8, %v12643_v7  ;;  %v10878_v2 = vpack.c.bf16 %v4259_v51, %v4259_v51  ;;  %v4477_v62 = vrot.slane %v12643_v7, 4 }
 0x1e9   : > { %v4783_v16 = vsel %vm12610_vm14, %v4493_v10, %v4782_v33  ;;  %v6609_v5 = vld [vmem:[#allocation3 + $0x18] sm:$0xe]  ;;  %v10876_v26 = vpack.c.bf16 %v4257_v13, %v4257_v13  ;;  %v2594_v18 = vpop.permute.xlu0 %2593  ;;  %v2051_v44 = vpop.permute.xlu1 %2050 }
 0x1ea   : > { %4784 = vst [vmem:[#allocation3 + $0x30] sm:$0xf] %v4783_v16  ;;  %v10525_v32 = vrot.slane %v6609_v5, 9  ;;  %v4776_v24 = vsel %vm12610_vm14, %v4476_v57, %v4775_v11  ;;  %2628 = vst.msk [vmem:[#allocation4 + $0x70] sm:$0xff] %vm2613_vm3, %v2594_v18  ;;  %v4496_v14 = vshrl.u32 %v10878_v2, 16  ;;  %v4499_v27 = vshll.u32 %v10878_v2, 16 }
 0x1eb   : > { %v11162_v63 = vld [vmem:[#allocation3 + $0x18] sm:$0xff]   ;;  %4777 = vst [vmem:[#allocation3 + $0x24] sm:$0xf] %v4776_v24  ;;  %2084 = vst.msk [vmem:[#allocation4 + $0x78] sm:$0xff] %vm2068_vm2, %v2051_v44  ;;  %v4479_v3 = vshrl.u32 %v10876_v26, 16  ;;  %v4482_v59 = vshll.u32 %v10876_v26, 16 }
 0x1ec   : > { %v11163_v58 = vld [vmem:[#allocation3 + $0x18] sm:$0xff]   ;;  %7040 = vrot.lane.b32.xlu0 %v11162_v63, %s11236_s19  ;;  %v6611_v34 = vld [vmem:[#allocation3 + $0x20] sm:$0x1]  ;;  %v4498_v61 = vrot.slane %v4496_v14, 7  ;;  %v11164_v12 = vld [vmem:[#allocation3 + $0xc] sm:$0xff]   ;;  %vm5546_vm2 = vcmask 130112  }
 0x1ed   : > { %v7650_v15 = vld [vmem:[#allocation3 + $0x18] sm:$0xe]  ;;  %v6610_v20 = vld [vmem:[#allocation3 + $0x1c] sm:$0xf]  ;;  %v2915_v43 = vpop.permute.xlu0 %2914  ;;  %5998 = vrot.lane.b32.xlu1 %v11163_v58, %s11231_s30  ;;  %v6714_v30 = vrot.slane %v6611_v34, 5  ;;  %v4481_v31 = vrot.slane %v4479_v3, 7 }
 0x1ee   : > { %v6711_v45 = vrot.slane %v6610_v20, 5  ;;  %v7651_v21 = vld [vmem:[#allocation3 + $0x1c] sm:$0xf]  ;;  %2949 = vst.msk [vmem:[#allocation4 + $0x70] sm:$0xff] %vm2934_vm5, %v2915_v43  ;;  %v4501_v39 = vor.u32 %v4499_v27, %v4498_v61  ;;  %v4503_v41 = vrot.slane %v4498_v61, 4  ;;  %v10588_v35 = vrot.slane %v7650_v15, 9 }
 0x1ef   : > { %v7652_v52 = vld [vmem:[#allocation3 + $0x20] sm:$0x1]  ;;  %v7748_v47 = vrot.slane %v7651_v21, 5  ;;  %v4484_v37 = vor.u32 %v4482_v59, %v4481_v31  ;;  %v4486_v56 = vrot.slane %v4481_v31, 4  ;;  %v5566_v28 = vld [vmem:[#allocation3 + $0xc] sm:$0xe] }
 0x1f0   : > { %v6713_v48 = vrot.slane %v6711_v45, 4  ;;  %v5567_v50 = vld [vmem:[#allocation3 + $0x10] sm:$0xf]  ;;  %5996 = vrot.lane.b32.xlu0 %v11164_v12, %s11231_s30  ;;  %v6712_v53 = vsel %vm11411_vm9, %v10525_v32, %v6711_v45  ;;  %v4502_v42 = vsel %vm11426_vm11, %v4494_v17, %v4501_v39  ;;  %v4787_v54 = vsel %vm12618_vm4, %v4503_v41, %v4786_v25  ;;  %v5568_v46 = vld [vmem:[#allocation3 + $0x14] sm:$0x1]  ;;  %v11182_v7 = vld [vmem:[#allocation3 + $0x18] sm:$0xff]  }
 0x1f1   : > { %v7750_v55 = vrot.slane %v7748_v47, 4  ;;  %v5570_v22 = vld [vmem:[#allocation3 + $0x1c] sm:$0xf]  ;;  %v3093_v49 = vpop.permute.xlu0 %3092  ;;  %4785 = vst.msk [vmem:[#allocation3 + $0x34] sm:$0xf] %vm4284_vm0, %v4502_v42  ;;  %v4485_v40 = vsel %vm11426_vm11, %v4477_v62, %v4484_v37  ;;  %v4780_v6 = vsel %vm12618_vm4, %v4486_v56, %v4779_v19  ;;  %v7751_v9 = vrot.slane %v7652_v52, 5 }
 0x1f2   : > { %v6715_v1 = vsel %vm11411_vm9, %v6713_v48, %v6714_v30  ;;  %4788 = vst [vmem:[#allocation3 + $0x38] sm:$0x1] %v4787_v54  ;;  %v5569_v33 = vld [vmem:[#allocation3 + $0x18] sm:$0xe]  ;;  %3127 = vst.msk [vmem:[#allocation4 + $0x70] sm:$0xff] %vm3112_vm6, %v3093_v49  ;;  %v7749_v10 = vsel %vm11411_vm9, %v10588_v35, %v7748_v47  ;;  %v5668_v11 = vrot.slane %v5567_v50, 5 }
 0x1f3   : > { %v10541_v8 = vcombine.low %v6712_v53, %v6715_v1  ;;  %4778 = vst.msk [vmem:[#allocation3 + $0x28] sm:$0xf] %vm4284_vm0, %v4485_v40  ;;  %4781 = vst [vmem:[#allocation3 + $0x2c] sm:$0x1] %v4780_v6  ;;  %v5571_v51 = vld [vmem:[#allocation3 + $0x20] sm:$0x1]  ;;  %v7752_v16 = vsel %vm11411_vm9, %v7750_v55, %v7751_v9 }
 0x1f4   : > { %v6607_v13 = vld [vmem:[#allocation3 + $0x10] sm:$0xf]  ;;  %v10461_v5 = vrot.slane %v5566_v28, 9  ;;  %v5671_v2 = vrot.slane %v5568_v46, 5  ;;  %v5675_v26 = vrot.slane %v5570_v22, 5  ;;  %5004 = vst.msk [vmem:[#allocation5 + $0x10] sm:$0xff] %vm13994_vm15, %v11182_v7  ;;  %v10604_v62 = vcombine.low %v7749_v10, %v7752_v16 }
 0x1f5   : > { %v11185_v57 = vld [vmem:[#allocation3 + $0xc] sm:$0xff]   ;;  %v6608_v17 = vld [vmem:[#allocation3 + $0x14] sm:$0x1]  ;;  %v2596_v32 = vpop.permute.xlu1 %2595  ;;  %6864 = vrot.lane.b32.xlu1 %v10541_v8, %s11237_s20  ;;  %v5670_v24 = vrot.slane %v5668_v11, 4  ;;  %v10462_v44 = vrot.slane %v5569_v33, 9  ;;  %v5678_v58 = vrot.slane %v5571_v51, 5 }
 0x1f6   : > { %v6606_v18 = vld [vmem:[#allocation3 + $0xc] sm:$0xe]  ;;  %5003 = vst.msk [vmem:[#allocation5 + $0x8] sm:$0xff] %vm13994_vm15, %v11185_v57  ;;  %v5669_v63 = vsel %vm11411_vm9, %v10461_v5, %v5668_v11  ;;  %v5677_v14 = vrot.slane %v5675_v26, 4  ;;  %v6704_v25 = vrot.slane %v6607_v13, 5  ;;  %7906 = vrot.lane.b32.xlu0 %v10604_v62, %s11238_s24  ;;  %v6707_v31 = vrot.slane %v6608_v17, 5 }
 0x1f7   : > { %2629 = vst.msk [vmem:[#allocation4 + $0x78] sm:$0xff] %vm2613_vm3, %v2596_v32  ;;  %v7105_v3 = vld [vmem:[#allocation3 + $0x18] sm:$0xf]  ;;  %v5672_v15 = vsel %vm11411_vm9, %v5670_v24, %v5671_v2  ;;  %v5676_v20 = vsel %vm11411_vm9, %v10462_v44, %v5675_v26  ;;  %v7106_v34 = vld [vmem:[#allocation3 + $0x1c] sm:$0xf]  ;;  %v10524_v41 = vrot.slane %v6606_v18, 9  ;;  %vm14012_vm3 = vmmov %vm14011_vm1 }
 0x1f8   : > { %v7107_v61 = vld [vmem:[#allocation3 + $0x20] sm:$0x1]  ;;  %v7154_v27 = vshrl.u32 %v7105_v3, 16  ;;  %v7157_v19 = vshll.u32 %v7105_v3, 16  ;;  %v10477_v43 = vcombine.low %v5669_v63, %v5672_v15  ;;  %v5679_v45 = vsel %vm11411_vm9, %v5677_v14, %v5678_v58  ;;  %v6064_v59 = vld [vmem:[#allocation3 + $0x18] sm:$0xf]  ;;  %v3638_v35 = vpop.permute.xlu0 %3637 }
 0x1f9   : > { %v6706_v30 = vrot.slane %v6704_v25, 4  ;;  %v6065_v21 = vld [vmem:[#allocation3 + $0x1c] sm:$0xf]  ;;  %v2917_v12 = vpop.permute.xlu1 %2916  ;;  %v10478_v39 = vcombine.low %v5676_v20, %v5679_v45  ;;  %v11166_v48 = vld [vmem:[#allocation3 + $0x30] sm:$0xff]   ;;  %v7163_v56 = vshll.u32 %v7106_v34, 16  ;;  %v7167_v28 = vshrl.u32 %v7106_v34, 16 }
 0x1fa   : > { %v7156_v52 = vrot.slane %v7154_v27, 4  ;;  %2950 = vst.msk [vmem:[#allocation4 + $0x78] sm:$0xff] %vm2934_vm5, %v2917_v12  ;;  %5821 = vrot.lane.b32.xlu1 %v10477_v43, %s11234_s9  ;;  %v7159_v37 = vrot.slane %v7157_v19, 5  ;;  %v6066_v50 = vld [vmem:[#allocation3 + $0x20] sm:$0x1]  ;;  %v6705_v53 = vsel %vm11411_vm9, %v10524_v41, %v6704_v25  ;;  %v7173_v42 = vshll.u32 %v7107_v61, 16 }
 0x1fb   : > { %v6708_v47 = vsel %vm11411_vm9, %v6706_v30, %v6707_v31  ;;  %3672 = vst.msk [vmem:[#allocation4 + $0x70] sm:$0xff] %vm3657_vm7, %v3638_v35  ;;  %5823 = vrot.lane.b32.xlu0 %v10478_v39, %s11234_s9  ;;  %v6134_v54 = vshrl.u32 %v6064_v59, 16  ;;  %v6137_v55 = vshll.u32 %v6064_v59, 16  ;;  %v7165_v22 = vrot.slane %v7163_v56, 5  ;;  %v11165_v8 = vld [vmem:[#allocation3 + $0x30] sm:$0xff]  }
 0x1fc   : > { %v7160_v46 = vor.u32 %v7159_v37, %v7156_v52  ;;  %v7169_v60 = vrot.slane %v7167_v28, 4  ;;  %v6143_v49 = vshll.u32 %v6065_v21, 16  ;;  %v10540_v40 = vcombine.low %v6705_v53, %v6708_v47  ;;  %v3959_v7 = vpop.permute.xlu0 %3958  ;;  %v6061_v2 = vld [vmem:[#allocation3 + $0xc] sm:$0xf]  ;;  %v6062_v26 = vld [vmem:[#allocation3 + $0x10] sm:$0xf] }
 0x1fd   : > { %v3095_v1 = vpop.permute.xlu1 %3094  ;;  %v6136_v6 = vrot.slane %v6134_v54, 4  ;;  %v6139_v9 = vrot.slane %v6137_v55, 5  ;;  %v6147_v33 = vshrl.u32 %v6065_v21, 16  ;;  %v6153_v13 = vshll.u32 %v6066_v50, 16  ;;  %3993 = vst.msk [vmem:[#allocation4 + $0x70] sm:$0xff] %vm14011_vm1, %v3959_v7  ;;  %v11190_v27 = vld [vmem:[#allocation3 + $0x30] sm:$0xff]  }
 0x1fe   : > { %3128 = vst.msk [vmem:[#allocation4 + $0x78] sm:$0xff] %vm3112_vm6, %v3095_v1  ;;  %6002 = vrot.lane.b32.xlu1 %v11166_v48, %s11231_s30  ;;  %v7161_v10 = vrot.slane %v7160_v46, 4  ;;  %v7170_v11 = vor.u32 %v7169_v60, %v7165_v22  ;;  %v6145_v51 = vrot.slane %v6143_v49, 5  ;;  %v7175_v57 = vrot.slane %v7173_v42, 5  ;;  %v6063_v39 = vld [vmem:[#allocation3 + $0x14] sm:$0x1] }
 0x1ff   : > { %6862 = vrot.lane.b32.xlu0 %v10540_v40, %s11237_s20  ;;  %v6140_v16 = vor.u32 %v6139_v9, %v6136_v6  ;;  %v6149_v5 = vrot.slane %v6147_v33, 4  ;;  %v6155_v32 = vrot.slane %v6153_v13, 5  ;;  %v6110_v62 = vshrl.u32 %v6061_v2, 16  ;;  %5006 = vst.msk [vmem:[#allocation5 + $0x20] sm:$0xff] %vm13994_vm15, %v11190_v27  ;;  %v11195_v6 = vld [vmem:[#allocation3 + $0x24] sm:$0xff]  }
 0x200   : > { %v7166_v18 = vsel %vm11418_vm10, %v7161_v10, %v7165_v22  ;;  %v7171_v17 = vrot.slane %v7170_v11, 4  ;;  %v6113_v58 = vshll.u32 %v6061_v2, 16  ;;  %v6119_v25 = vshll.u32 %v6062_v26, 16  ;;  %v11167_v7 = vld [vmem:[#allocation3 + $0x24] sm:$0xff]   ;;  %v5024_v11 = vld [vmem:[#allocation3 + $0x18] sm:$0xf] }
 0x201   : > { %v6141_v44 = vrot.slane %v6140_v16, 4  ;;  %v6150_v63 = vor.u32 %v6149_v5, %v6145_v51  ;;  %v11023_v14 = vpop.f32.mrb[8].mxu0  ;;  %v6112_v34 = vrot.slane %v6110_v62, 4  ;;  %v6123_v61 = vshrl.u32 %v6062_v26, 16  ;;  %v4796_v13 = vld [vmem:[#allocation3 + $0x48] sm:$0xf] }
 0x202   : > { %v7176_v3 = vsel %vm11418_vm10, %v7171_v17, %v7175_v57  ;;  %v4166_v15 = vadd.f32 %v11023_v14, %v12595_v0  ;;  %v4157_v20 = vpop.f32.mrb[9].mxu0  ;;  %v6115_v41 = vrot.slane %v6113_v58, 5  ;;  %v12715_v52 = vrot.slane %v6119_v25, 5  ;;  %v11168_v5 = vld [vmem:[#allocation3 + $0x24] sm:$0xff]   ;;  %5005 = vst.msk [vmem:[#allocation5 + $0x18] sm:$0xff] %vm13994_vm15, %v11195_v6 }
 0x203   : > { %7044 = vrot.lane.b32.xlu0 %v11165_v8, %s11236_s19  ;;  %v10572_v19 = vcombine.low %v7166_v18, %v7176_v3  ;;  %v6146_v43 = vsel %vm11418_vm10, %v6141_v44, %v6145_v51  ;;  %v6151_v45 = vrot.slane %v6150_v63, 4  ;;  %v4158_v30 = vadd.f32 %v12595_v0, %v4157_v20  ;;  %v11024_v31 = vpop.f32.mrb[10].mxu0  ;;  %v4789_v18 = vld [vmem:[#allocation3 + $0x3c] sm:$0xf]  ;;  %v4800_v14 = vld [vmem:[#allocation3 + $0x50] sm:$0x1] }
 0x204   : > { %v4262_v59 = vmax.f32 %v4166_v15, 0.0  ;;  %v4169_v21 = vadd.f32 %v11024_v31, %v12595_v0  ;;  %v4160_v12 = vpop.f32.mrb[11].mxu0  ;;  %v6125_v56 = vrot.slane %v6123_v61, 4  ;;  %v4009_v28 = vld [vmem:[#allocation4 + $0x70] sm:$0xff]  ;;  %v6116_v54 = vor.u32 %v6115_v41, %v6112_v34  ;;  %v5025_v27 = vld [vmem:[#allocation3 + $0x1c] sm:$0xf] }
 0x205   : > { %v6156_v47 = vsel %vm11418_vm10, %v6151_v45, %v6155_v32  ;;  %v4260_v48 = vmax.f32 %v4158_v30, 0.0  ;;  %v4161_v37 = vadd.f32 %v12595_v0, %v4160_v12  ;;  %11041 = vmatprep.mubr.msk.bf16.mxu0 %vm4038_vm8, %v4009_v28  ;;  %v6129_v60 = vshll.u32 %v6063_v39, 16  ;;  %v4793_v30 = vld [vmem:[#allocation3 + $0x44] sm:$0x1]  ;;  %v7658_v28 = vld [vmem:[#allocation3 + $0x38] sm:$0x1] }
 0x206   : > { %v10509_v50 = vcombine.low %v6146_v43, %v6156_v47  ;;  %v10881_v53 = vpack.c.bf16 %v4262_v59, %v4262_v59  ;;  %v4263_v42 = vmax.f32 %v4169_v21, 0.0  ;;  %v6126_v22 = vor.u32 %v6125_v56, %v12715_v52  ;;  %v5026_v59 = vld [vmem:[#allocation3 + $0x20] sm:$0x1] }
 0x207   : > { %7585 = vrot.lane.b32.xlu0 %v10572_v19, %s11239_s25  ;;  %v10879_v55 = vpack.c.bf16 %v4260_v48, %v4260_v48  ;;  %v4261_v46 = vmax.f32 %v4161_v37, 0.0  ;;  %v6117_v40 = vrot.slane %v6116_v54, 4  ;;  %v6131_v62 = vrot.slane %v6129_v60, 5 }
 0x208   : > { %6543 = vrot.lane.b32.xlu1 %v10509_v50, %s11233_s8  ;;  %v4522_v0 = vshrl.u32 %v10881_v53, 16  ;;  %v4525_v49 = vshll.u32 %v10881_v53, 16  ;;  %v10882_v1 = vpack.c.bf16 %v4263_v42, %v4263_v42  ;;  %v6127_v10 = vrot.slane %v6126_v22, 4  ;;  %v5021_v50 = vld [vmem:[#allocation3 + $0xc] sm:$0xf] }
 0x209   : > { %v4505_v9 = vshrl.u32 %v10879_v55, 16  ;;  %v4508_v33 = vshll.u32 %v10879_v55, 16  ;;  %v10880_v8 = vpack.c.bf16 %v4261_v46, %v4261_v46  ;;  %v6122_v2 = vsel %vm11418_vm10, %v6117_v40, %v12715_v52  ;;  %v7656_v52 = vld [vmem:[#allocation3 + $0x30] sm:$0xe] }
 0x20a   : > { %v4524_v51 = vrot.slane %v4522_v0, 7  ;;  %v4530_v57 = vshrl.u32 %v10882_v1, 16  ;;  %v4533_v16 = vshll.u32 %v10882_v1, 16  ;;  %v5115_v58 = vshrl.u32 %v5024_v11, 16  ;;  %v5022_v46 = vld [vmem:[#allocation3 + $0x10] sm:$0xf] }
 0x20b   : > { %v4507_v26 = vrot.slane %v4505_v9, 7  ;;  %6000 = vrot.lane.b32.xlu0 %v11167_v7, %s11231_s30  ;;  %v4513_v17 = vshrl.u32 %v10880_v8, 16  ;;  %v4516_v32 = vshll.u32 %v10880_v8, 16  ;;  %v6132_v61 = vsel %vm11418_vm10, %v6127_v10, %v6131_v62  ;;  %v5023_v1 = vld [vmem:[#allocation3 + $0x14] sm:$0x1] }
 0x20c   : > { %v4528_v44 = vrot.slane %v4524_v51, 4  ;;  %v4532_v63 = vrot.slane %v4530_v57, 7  ;;  %7042 = vrot.lane.b32.xlu1 %v11168_v5, %s11236_s19  ;;  %v10508_v31 = vcombine.low %v6122_v2, %v6132_v61  ;;  %v5117_v41 = vrot.slane %v5115_v58, 4  ;;  %v5575_v7 = vld [vmem:[#allocation3 + $0x30] sm:$0xe] }
 0x20d   : > { %v4510_v15 = vor.u32 %v4508_v33, %v4507_v26  ;;  %v4511_v20 = vrot.slane %v4507_v26, 4  ;;  %v4515_v34 = vrot.slane %v4513_v17, 7  ;;  %v5118_v37 = vshll.u32 %v5024_v11, 16  ;;  %v5577_v57 = vld [vmem:[#allocation3 + $0x38] sm:$0x1] }
 0x20e   : > { %v4535_v43 = vor.u32 %v4533_v16, %v4532_v63  ;;  %v4537_v45 = vrot.slane %v4532_v63, 4  ;;  %v5124_v56 = vshll.u32 %v5025_v27, 16  ;;  %v5128_v54 = vshrl.u32 %v5025_v27, 16  ;;  %v6616_v17 = vld [vmem:[#allocation3 + $0x34] sm:$0xf] }
 0x20f   : > { %v4790_v21 = vsel %vm12610_vm14, %v4510_v15, %v4789_v18  ;;  %v4518_v12 = vor.u32 %v4516_v32, %v4515_v34  ;;  %v4520_v39 = vrot.slane %v4515_v34, 4  ;;  %6541 = vrot.lane.b32.xlu0 %v10508_v31, %s11233_s8  ;;  %v5134_v55 = vshll.u32 %v5026_v59, 16  ;;  %v6615_v18 = vld [vmem:[#allocation3 + $0x30] sm:$0xe]  ;;  %v6617_v63 = vld [vmem:[#allocation3 + $0x38] sm:$0x1] }
 0x210   : > { %4791 = vst [vmem:[#allocation3 + $0x3c] sm:$0xf] %v4790_v21  ;;  %v4536_v47 = vsel %vm11426_vm11, %v4528_v44, %v4535_v43  ;;  %v4801_v48 = vsel %vm12618_vm4, %v4537_v45, %v4800_v14  ;;  %v5120_v22 = vrot.slane %v5118_v37, 5  ;;  %v5126_v60 = vrot.slane %v5124_v56, 5  ;;  %v7653_v15 = vld [vmem:[#allocation3 + $0x24] sm:$0xe] }
 0x211   : > { %4799 = vst.msk [vmem:[#allocation3 + $0x4c] sm:$0xf] %vm4284_vm0, %v4536_v47  ;;  %4802 = vst [vmem:[#allocation3 + $0x50] sm:$0x1] %v4801_v48  ;;  %v4519_v53 = vsel %vm11426_vm11, %v4511_v20, %v4518_v12  ;;  %v4794_v42 = vsel %vm12618_vm4, %v4520_v39, %v4793_v30  ;;  %v10590_v0 = vrot.slane %v7656_v52, 9  ;;  %v5130_v40 = vrot.slane %v5128_v54, 4 }
 0x212   : > { %v3640_v24 = vpop.permute.xlu1 %3639  ;;  %4792 = vst.msk [vmem:[#allocation3 + $0x40] sm:$0xf] %vm4284_vm0, %v4519_v53  ;;  %4795 = vst [vmem:[#allocation3 + $0x44] sm:$0x1] %v4794_v42  ;;  %v5136_v6 = vrot.slane %v5134_v55, 5  ;;  %v7765_v9 = vrot.slane %v7658_v28, 5  ;;  %v5121_v8 = vor.u32 %v5120_v22, %v5117_v41 }
 0x213   : > { %3673 = vst.msk [vmem:[#allocation4 + $0x78] sm:$0xff] %vm3657_vm7, %v3640_v24  ;;  %v4527_v24 = vor.u32 %v4525_v49, %v4524_v51  ;;  %v5091_v33 = vshrl.u32 %v5021_v50, 16  ;;  %v5094_v51 = vshll.u32 %v5021_v50, 16  ;;  %v5131_v16 = vor.u32 %v5130_v40, %v5126_v60  ;;  %v7655_v43 = vld [vmem:[#allocation3 + $0x2c] sm:$0x1] }
 0x214   : > { %v5100_v2 = vshll.u32 %v5022_v46, 16  ;;  %v5104_v26 = vshrl.u32 %v5022_v46, 16  ;;  %v5122_v32 = vrot.slane %v5121_v8, 4  ;;  %v5110_v44 = vshll.u32 %v5023_v1, 16  ;;  %v5572_v21 = vld [vmem:[#allocation3 + $0x24] sm:$0xe] }
 0x215   : > { %v4797_v19 = vsel %vm12610_vm14, %v4527_v24, %v4796_v13  ;;  %v5576_v13 = vld [vmem:[#allocation3 + $0x34] sm:$0xf]  ;;  %v5093_v5 = vrot.slane %v5091_v33, 4  ;;  %v5096_v24 = vrot.slane %v5094_v51, 5  ;;  %v5132_v14 = vrot.slane %v5131_v16, 4 }
 0x216   : > { %v3961_v35 = vpop.permute.xlu1 %3960  ;;  %4798 = vst [vmem:[#allocation3 + $0x48] sm:$0xf] %v4797_v19  ;;  %v5127_v20 = vsel %vm11418_vm10, %v5122_v32, %v5126_v60  ;;  %v5112_v61 = vrot.slane %v5110_v44, 5  ;;  %v10464_v27 = vrot.slane %v5575_v7, 9  ;;  %v7654_v19 = vld [vmem:[#allocation3 + $0x28] sm:$0xf] }
 0x217   : > { %3994 = vst.msk [vmem:[#allocation4 + $0x78] sm:$0xff] %vm14012_vm3, %v3961_v35  ;;  %v5499_v25 = vpop.permute.xlu0 %5498  ;;  %v7657_v35 = vld [vmem:[#allocation3 + $0x34] sm:$0xf]  ;;  %v5097_v34 = vor.u32 %v5096_v24, %v5093_v5  ;;  %v5137_v45 = vsel %vm11418_vm10, %v5132_v14, %v5136_v6  ;;  %v5689_v31 = vrot.slane %v5576_v13, 5  ;;  %v5692_v59 = vrot.slane %v5577_v57, 5 }
 0x218   : > { %5547 = vst.msk [vmem:[#allocation5] sm:$0xff] %vm5546_vm2, %v5499_v25  ;;  %v7762_v49 = vrot.slane %v7657_v35, 5  ;;  %v5102_v25 = vrot.slane %v5100_v2, 5  ;;  %v10446_v12 = vcombine.low %v5127_v20, %v5137_v45  ;;  %v10527_v41 = vrot.slane %v6615_v18, 9  ;;  %v5573_v35 = vld [vmem:[#allocation3 + $0x28] sm:$0xf] }
 0x219   : > { %v5098_v39 = vrot.slane %v5097_v34, 4  ;;  %v6725_v52 = vrot.slane %v6616_v17, 5  ;;  %v5690_v48 = vsel %vm11411_vm9, %v10464_v27, %v5689_v31  ;;  %v5691_v37 = vrot.slane %v5689_v31, 4  ;;  %v5574_v28 = vld [vmem:[#allocation3 + $0x2c] sm:$0x1] }
 0x21a   : > { %v7763_v10 = vsel %vm11411_vm9, %v10590_v0, %v7762_v49  ;;  %v7764_v11 = vrot.slane %v7762_v49, 4  ;;  %v6728_v56 = vrot.slane %v6617_v63, 5  ;;  %5502 = vrot.lane.b32.xlu1 %v10446_v12, %s11228_s27  ;;  %v10589_v54 = vrot.slane %v7653_v15, 9  ;;  %v6612_v55 = vld [vmem:[#allocation3 + $0x24] sm:$0xe] }
 0x21b   : > { %v5103_v50 = vsel %vm11418_vm10, %v5098_v39, %v5102_v25  ;;  %v6726_v53 = vsel %vm11411_vm9, %v10527_v41, %v6725_v52  ;;  %v6727_v42 = vrot.slane %v6725_v52, 4  ;;  %v5693_v22 = vsel %vm11411_vm9, %v5691_v37, %v5692_v59  ;;  %v6613_v49 = vld [vmem:[#allocation3 + $0x28] sm:$0xf]  ;;  %v6614_v1 = vld [vmem:[#allocation3 + $0x2c] sm:$0x1]  ;;  %v11200_v41 = vld [vmem:[#allocation3 + $0x3c] sm:$0xff]  }
 0x21c   : > { %v7766_v62 = vsel %vm11411_vm9, %v7764_v11, %v7765_v9  ;;  %v7755_v60 = vrot.slane %v7654_v19, 5  ;;  %v7758_v0 = vrot.slane %v7655_v43, 5  ;;  %v10480_v6 = vcombine.low %v5690_v48, %v5693_v22  ;;  %v7111_v7 = vld [vmem:[#allocation3 + $0x30] sm:$0xf]  ;;  %v7112_v2 = vld [vmem:[#allocation3 + $0x34] sm:$0xf] }
 0x21d   : > { %v10606_v58 = vcombine.low %v7763_v10, %v7766_v62  ;;  %v6729_v9 = vsel %vm11411_vm9, %v6727_v42, %v6728_v56  ;;  %v10463_v33 = vrot.slane %v5572_v21, 9  ;;  %v5682_v51 = vrot.slane %v5573_v35, 5  ;;  %v7113_v32 = vld [vmem:[#allocation3 + $0x38] sm:$0x1]  ;;  %v6071_v34 = vld [vmem:[#allocation3 + $0x34] sm:$0xf] }
 0x21e   : > { %v4010_v3 = vld [vmem:[#allocation4 + $0x78] sm:$0xff]  ;;  %v10543_v8 = vcombine.low %v6726_v53, %v6729_v9  ;;  %v7756_v10 = vsel %vm11411_vm9, %v10589_v54, %v7755_v60  ;;  %v7757_v11 = vrot.slane %v7755_v60, 4  ;;  %v5685_v13 = vrot.slane %v5574_v28, 5  ;;  %v6067_v39 = vld [vmem:[#allocation3 + $0x24] sm:$0xf]  ;;  %5007 = vst.msk [vmem:[#allocation5 + $0x28] sm:$0xff] %vm13994_vm15, %v11200_v41 }
 0x21f   : > { %11042 = vmatmul.mubr.msk.bf16.gmra.mrb[28].mxu0 %vm4038_vm8, %v4010_v3  ;;  %v5106_v3 = vrot.slane %v5104_v26, 4  ;;  %7910 = vrot.lane.b32.xlu0 %v10606_v58, %s11238_s24  ;;  %v10526_v57 = vrot.slane %v6612_v55, 9  ;;  %v6718_v16 = vrot.slane %v6613_v49, 5  ;;  %v6721_v5 = vrot.slane %v6614_v1, 5  ;;  %v6070_v58 = vld [vmem:[#allocation3 + $0x30] sm:$0xf] }
 0x220   : > { %v7759_v26 = vsel %vm11411_vm9, %v7757_v11, %v7758_v0  ;;  %v5683_v18 = vsel %vm11411_vm9, %v10463_v33, %v5682_v51  ;;  %v5684_v17 = vrot.slane %v5682_v51, 4  ;;  %v7202_v62 = vshrl.u32 %v7111_v7, 16  ;;  %v6068_v53 = vld [vmem:[#allocation3 + $0x28] sm:$0xf] }
 0x221   : > { %v5107_v30 = vor.u32 %v5106_v3, %v5102_v25  ;;  %v10605_v24 = vcombine.low %v7756_v10, %v7759_v26  ;;  %v6719_v44 = vsel %vm11411_vm9, %v10526_v57, %v6718_v16  ;;  %v6720_v63 = vrot.slane %v6718_v16, 4  ;;  %v11169_v42 = vld [vmem:[#allocation3 + $0x48] sm:$0xff]   ;;  %v5030_v10 = vld [vmem:[#allocation3 + $0x30] sm:$0xf] }
 0x222   : > { %v7205_v14 = vshll.u32 %v7111_v7, 16  ;;  %v5686_v25 = vsel %vm11411_vm9, %v5684_v17, %v5685_v13  ;;  %v7204_v3 = vrot.slane %v7202_v62, 4  ;;  %v7211_v15 = vshll.u32 %v7112_v2, 16  ;;  %v11170_v54 = vld [vmem:[#allocation3 + $0x48] sm:$0xff]  }
 0x223   : > { %v5108_v47 = vrot.slane %v5107_v30, 4  ;;  %5827 = vrot.lane.b32.xlu0 %v10480_v6, %s11234_s9  ;;  %v7215_v20 = vshrl.u32 %v7112_v2, 16  ;;  %v10479_v27 = vcombine.low %v5683_v18, %v5686_v25  ;;  %v6722_v19 = vsel %vm11411_vm9, %v6720_v63, %v6721_v5  ;;  %v6072_v30 = vld [vmem:[#allocation3 + $0x38] sm:$0x1]  ;;  %v12804_v63 = vld [vmem:[%s13986_s2] ss:$0 sm:$0xff] }
 0x224   : > { %v7207_v43 = vrot.slane %v7205_v14, 5  ;;  %v7221_v45 = vshll.u32 %v7113_v32, 16  ;;  %v10542_v31 = vcombine.low %v6719_v44, %v6722_v19  ;;  %v7213_v59 = vrot.slane %v7211_v15, 5  ;;  %v5031_v19 = vld [vmem:[#allocation3 + $0x34] sm:$0xf] }
 0x225   : > { %v5113_v46 = vsel %vm11418_vm10, %v5108_v47, %v5112_v61  ;;  %v11199_v61 = vld [vmem:[#allocation3 + $0x48] sm:$0xff]   ;;  %v7217_v21 = vrot.slane %v7215_v20, 4  ;;  %v6182_v12 = vshrl.u32 %v6070_v58, 16  ;;  %v6185_v47 = vshll.u32 %v6070_v58, 16 }
 0x226   : > { %v10445_v40 = vcombine.low %v5103_v50, %v5113_v46  ;;  %5008 = vst.msk [vmem:[#allocation5 + $0x30] sm:$0xff] %vm13994_vm15, %v11199_v61  ;;  %v7208_v52 = vor.u32 %v7207_v43, %v7204_v3  ;;  %v7223_v35 = vrot.slane %v7221_v45, 5  ;;  %v6191_v48 = vshll.u32 %v6071_v34, 16 }
 0x227   : > { %7908 = vrot.lane.b32.xlu0 %v10605_v24, %s11238_s24  ;;  %v7218_v37 = vor.u32 %v7217_v21, %v7213_v59  ;;  %v6184_v56 = vrot.slane %v6182_v12, 4  ;;  %v6195_v28 = vshrl.u32 %v6071_v34, 16  ;;  %v6201_v50 = vshll.u32 %v6072_v30, 16 }
 0x228   : > { %5500 = vrot.lane.b32.xlu1 %v10445_v40, %s11228_s27  ;;  %v7209_v55 = vrot.slane %v7208_v52, 4  ;;  %v6187_v46 = vrot.slane %v6185_v47, 5  ;;  %v6193_v22 = vrot.slane %v6191_v48, 5  ;;  %v6158_v60 = vshrl.u32 %v6067_v39, 16  ;;  %v6069_v40 = vld [vmem:[#allocation3 + $0x2c] sm:$0x1] }
 0x229   : > { %v7219_v0 = vrot.slane %v7218_v37, 4  ;;  %v6197_v49 = vrot.slane %v6195_v28, 4  ;;  %v6203_v1 = vrot.slane %v6201_v50, 5  ;;  %v6161_v6 = vshll.u32 %v6067_v39, 16  ;;  %v11171_v47 = vld [vmem:[#allocation3 + $0x3c] sm:$0xff]  }
 0x22a   : > { %v7214_v9 = vsel %vm11418_vm10, %v7209_v55, %v7213_v59  ;;  %v6188_v33 = vor.u32 %v6187_v46, %v6184_v56  ;;  %v6160_v7 = vrot.slane %v6158_v60, 4  ;;  %v6171_v57 = vshrl.u32 %v6068_v53, 16  ;;  %v11172_v46 = vld [vmem:[#allocation3 + $0x3c] sm:$0xff]  }
 0x22b   : > { %6866 = vrot.lane.b32.xlu0 %v10542_v31, %s11237_s20  ;;  %v7224_v11 = vsel %vm11418_vm10, %v7219_v0, %v7223_v35  ;;  %v6198_v51 = vor.u32 %v6197_v49, %v6193_v22  ;;  %v6163_v13 = vrot.slane %v6161_v6, 5  ;;  %v6177_v26 = vshll.u32 %v6069_v40, 16  ;;  %v4810_v60 = vld [vmem:[#allocation3 + $0x60] sm:$0xf] }
 0x22c   : > { %6868 = vrot.lane.b32.xlu1 %v10543_v8, %s11237_s20  ;;  %v6167_v8 = vshll.u32 %v6068_v53, 16  ;;  %v10574_v16 = vcombine.low %v7214_v9, %v7224_v11  ;;  %v6189_v5 = vrot.slane %v6188_v33, 4  ;;  %v11027_v17 = vpop.f32.mrb[12].mxu0  ;;  %v6173_v62 = vrot.slane %v6171_v57, 4  ;;  %v4803_v9 = vld [vmem:[#allocation3 + $0x54] sm:$0xf] }
 0x22d   : > { %v6199_v18 = vrot.slane %v6198_v51, 4  ;;  %v6164_v32 = vor.u32 %v6163_v13, %v6160_v7  ;;  %v5163_v24 = vshrl.u32 %v5030_v10, 16  ;;  %v4182_v14 = vadd.f32 %v12804_v63, %v11027_v17  ;;  %v4173_v58 = vpop.f32.mrb[13].mxu0  ;;  %v4814_v11 = vld [vmem:[#allocation3 + $0x68] sm:$0x1] }
 0x22e   : > { %v6169_v2 = vrot.slane %v6167_v8, 5  ;;  %v6194_v44 = vsel %vm11418_vm10, %v6189_v5, %v6193_v22  ;;  %v6179_v25 = vrot.slane %v6177_v26, 5  ;;  %v5166_v3 = vshll.u32 %v5030_v10, 16  ;;  %v11028_v34 = vpop.f32.mrb[14].mxu0  ;;  %v5032_v26 = vld [vmem:[#allocation3 + $0x38] sm:$0x1] }
 0x22f   : > { %7048 = vrot.lane.b32.xlu0 %v11169_v42, %s11236_s19  ;;  %v6204_v15 = vsel %vm11418_vm10, %v6199_v18, %v6203_v1  ;;  %v4174_v20 = vadd.f32 %v12804_v63, %v4173_v58  ;;  %v6165_v61 = vrot.slane %v6164_v32, 4  ;;  %v4266_v45 = vmax.f32 %v4182_v14, 0.0  ;;  %v4176_v31 = vpop.f32.mrb[15].mxu0  ;;  %v7662_v14 = vld [vmem:[#allocation3 + $0x48] sm:$0xe] }
 0x230   : > { %5825 = vrot.lane.b32.xlu1 %v10479_v27, %s11234_s9  ;;  %v6174_v27 = vor.u32 %v6173_v62, %v6169_v2  ;;  %v10511_v43 = vcombine.low %v6194_v44, %v6204_v15  ;;  %v4185_v30 = vadd.f32 %v12804_v63, %v11028_v34  ;;  %v5165_v59 = vrot.slane %v5163_v24, 4  ;;  %v4807_v24 = vld [vmem:[#allocation3 + $0x5c] sm:$0x1]  ;;  %v7664_v34 = vld [vmem:[#allocation3 + $0x50] sm:$0x1] }
 0x231   : > { %v4264_v21 = vmax.f32 %v4174_v20, 0.0  ;;  %v4177_v12 = vadd.f32 %v12804_v63, %v4176_v31  ;;  %v6170_v39 = vsel %vm11418_vm10, %v6165_v61, %v6169_v2  ;;  %v10885_v52 = vpack.c.bf16 %v4266_v45, %v4266_v45  ;;  %v7663_v20 = vld [vmem:[#allocation3 + $0x4c] sm:$0xf]  ;;  %v7108_v45 = vld [vmem:[#allocation3 + $0x24] sm:$0xf] }
 0x232   : > { %v6175_v41 = vrot.slane %v6174_v27, 4  ;;  %v4267_v35 = vmax.f32 %v4185_v30, 0.0  ;;  %v5168_v48 = vrot.slane %v5166_v3, 5  ;;  %v5172_v37 = vshll.u32 %v5031_v19, 16  ;;  %v7109_v30 = vld [vmem:[#allocation3 + $0x28] sm:$0xf] }
 0x233   : > { %7589 = vrot.lane.b32.xlu0 %v10574_v16, %s11239_s25  ;;  %v10883_v56 = vpack.c.bf16 %v4264_v21, %v4264_v21  ;;  %v4265_v28 = vmax.f32 %v4177_v12, 0.0  ;;  %v5176_v53 = vshrl.u32 %v5031_v19, 16  ;;  %v4556_v42 = vshrl.u32 %v10885_v52, 16 }
 0x234   : > { %6006 = vrot.lane.b32.xlu1 %v11170_v54, %s11231_s30  ;;  %v6180_v50 = vsel %vm11418_vm10, %v6175_v41, %v6179_v25  ;;  %v4559_v54 = vshll.u32 %v10885_v52, 16  ;;  %v10886_v55 = vpack.c.bf16 %v4267_v35, %v4267_v35  ;;  %v5169_v40 = vor.u32 %v5168_v48, %v5165_v59  ;;  %v5581_v41 = vld [vmem:[#allocation3 + $0x48] sm:$0xe] }
 0x235   : > { %v10510_v22 = vcombine.low %v6170_v39, %v6180_v50  ;;  %v4539_v0 = vshrl.u32 %v10883_v56, 16  ;;  %v4542_v49 = vshll.u32 %v10883_v56, 16  ;;  %v10884_v1 = vpack.c.bf16 %v4265_v28, %v4265_v28  ;;  %v7110_v39 = vld [vmem:[#allocation3 + $0x2c] sm:$0x1]  ;;  %v5583_v56 = vld [vmem:[#allocation3 + $0x50] sm:$0x1] }
 0x236   : > { %v4558_v6 = vrot.slane %v4556_v42, 7  ;;  %v4564_v33 = vshrl.u32 %v10886_v55, 16  ;;  %v4567_v7 = vshll.u32 %v10886_v55, 16  ;;  %v5174_v8 = vrot.slane %v5172_v37, 5  ;;  %v5582_v37 = vld [vmem:[#allocation3 + $0x4c] sm:$0xf] }
 0x237   : > { %6004 = vrot.lane.b32.xlu0 %v11171_v47, %s11231_s30  ;;  %v4541_v10 = vrot.slane %v4539_v0, 7  ;;  %v4547_v51 = vshrl.u32 %v10884_v1, 16  ;;  %v4550_v13 = vshll.u32 %v10884_v1, 16  ;;  %v5170_v57 = vrot.slane %v5169_v40, 4  ;;  %v5028_v0 = vld [vmem:[#allocation3 + $0x28] sm:$0xf] }
 0x238   : > { %6547 = vrot.lane.b32.xlu1 %v10511_v43, %s11233_s8  ;;  %v4561_v16 = vor.u32 %v4559_v54, %v4558_v6  ;;  %v4562_v5 = vrot.slane %v4558_v6, 4  ;;  %v4566_v2 = vrot.slane %v4564_v33, 7  ;;  %v5178_v18 = vrot.slane %v5176_v53, 4  ;;  %v5027_v54 = vld [vmem:[#allocation3 + $0x24] sm:$0xf] }
 0x239   : > { %v4544_v17 = vor.u32 %v4542_v49, %v4541_v10  ;;  %v4545_v32 = vrot.slane %v4541_v10, 4  ;;  %v4549_v62 = vrot.slane %v4547_v51, 7  ;;  %v5175_v44 = vsel %vm11418_vm10, %v5170_v57, %v5174_v8  ;;  %v5029_v10 = vld [vmem:[#allocation3 + $0x2c] sm:$0x1] }
 0x23a   : > { %v4811_v58 = vsel %vm12610_vm14, %v4561_v16, %v4810_v60  ;;  %v4569_v25 = vor.u32 %v4567_v7, %v4566_v2  ;;  %v4571_v3 = vrot.slane %v4566_v2, 4  ;;  %v5179_v15 = vor.u32 %v5178_v18, %v5174_v8  ;;  %v7659_v18 = vld [vmem:[#allocation3 + $0x3c] sm:$0xe] }
 0x23b   : > { %6545 = vrot.lane.b32.xlu0 %v10510_v22, %s11233_s8  ;;  %4812 = vst [vmem:[#allocation3 + $0x60] sm:$0xf] %v4811_v58  ;;  %v4804_v61 = vsel %vm12610_vm14, %v4544_v17, %v4803_v9  ;;  %v4552_v27 = vor.u32 %v4550_v13, %v4549_v62  ;;  %v4554_v19 = vrot.slane %v4549_v62, 4  ;;  %v5182_v43 = vshll.u32 %v5032_v26, 16  ;;  %v7660_v17 = vld [vmem:[#allocation3 + $0x40] sm:$0xf] }
 0x23c   : > { %7046 = vrot.lane.b32.xlu1 %v11172_v46, %s11236_s19  ;;  %4805 = vst [vmem:[#allocation3 + $0x54] sm:$0xf] %v4804_v61  ;;  %v4570_v31 = vsel %vm11426_vm11, %v4562_v5, %v4569_v25  ;;  %v4815_v59 = vsel %vm12618_vm4, %v4571_v3, %v4814_v11  ;;  %v5180_v21 = vrot.slane %v5179_v15, 4  ;;  %v10592_v12 = vrot.slane %v7662_v14, 9  ;;  %v7661_v14 = vld [vmem:[#allocation3 + $0x44] sm:$0x1] }
 0x23d   : > { %4813 = vst.msk [vmem:[#allocation3 + $0x64] sm:$0xf] %vm4284_vm0, %v4570_v31  ;;  %4816 = vst [vmem:[#allocation3 + $0x68] sm:$0x1] %v4815_v59  ;;  %v4553_v52 = vsel %vm11426_vm11, %v4545_v32, %v4552_v27  ;;  %v4808_v35 = vsel %vm12618_vm4, %v4554_v19, %v4807_v24  ;;  %v5184_v47 = vrot.slane %v5182_v43, 5  ;;  %v7776_v48 = vrot.slane %v7663_v20, 5 }
 0x23e   : > { %4806 = vst.msk [vmem:[#allocation3 + $0x58] sm:$0xf] %vm4284_vm0, %v4553_v52  ;;  %4809 = vst [vmem:[#allocation3 + $0x5c] sm:$0x1] %v4808_v35  ;;  %v7779_v28 = vrot.slane %v7664_v34, 5  ;;  %v7178_v50 = vshrl.u32 %v7108_v45, 16 }
 0x23f   : > { %v7181_v53 = vshll.u32 %v7108_v45, 16  ;;  %v7187_v42 = vshll.u32 %v7109_v30, 16  ;;  %v5185_v55 = vsel %vm11418_vm10, %v5180_v21, %v5184_v47  ;;  %v7777_v46 = vsel %vm11411_vm9, %v10592_v12, %v7776_v48  ;;  %v6621_v58 = vld [vmem:[#allocation3 + $0x48] sm:$0xe]  ;;  %v6622_v34 = vld [vmem:[#allocation3 + $0x4c] sm:$0xf] }
 0x240   : > { %v7778_v22 = vrot.slane %v7776_v48, 4  ;;  %v7191_v60 = vshrl.u32 %v7109_v30, 16  ;;  %v10448_v49 = vcombine.low %v5175_v44, %v5185_v55  ;;  %v7180_v1 = vrot.slane %v7178_v50, 4  ;;  %v6623_v61 = vld [vmem:[#allocation3 + $0x50] sm:$0x1] }
 0x241   : > { %v7183_v40 = vrot.slane %v7181_v53, 5  ;;  %v7189_v6 = vrot.slane %v7187_v42, 5  ;;  %v7197_v7 = vshll.u32 %v7110_v39, 16  ;;  %v10466_v8 = vrot.slane %v5581_v41, 9  ;;  %v6618_v30 = vld [vmem:[#allocation3 + $0x3c] sm:$0xe] }
 0x242   : > { %v7780_v9 = vsel %vm11411_vm9, %v7778_v22, %v7779_v28  ;;  %v7193_v33 = vrot.slane %v7191_v60, 4  ;;  %5506 = vrot.lane.b32.xlu1 %v10448_v49, %s11228_s27  ;;  %v5703_v13 = vrot.slane %v5582_v37, 5  ;;  %v5706_v57 = vrot.slane %v5583_v56, 5  ;;  %v6619_v47 = vld [vmem:[#allocation3 + $0x40] sm:$0xf] }
 0x243   : > { %v10608_v11 = vcombine.low %v7777_v46, %v7780_v9  ;;  %v7184_v51 = vor.u32 %v7183_v40, %v7180_v1  ;;  %v7199_v5 = vrot.slane %v7197_v7, 5  ;;  %v5139_v2 = vshrl.u32 %v5027_v54, 16  ;;  %v6620_v50 = vld [vmem:[#allocation3 + $0x44] sm:$0x1]  ;;  %v5578_v46 = vld [vmem:[#allocation3 + $0x3c] sm:$0xe] }
 0x244   : > { %v7194_v16 = vor.u32 %v7193_v33, %v7189_v6  ;;  %v5142_v26 = vshll.u32 %v5027_v54, 16  ;;  %v5704_v62 = vsel %vm11411_vm9, %v10466_v8, %v5703_v13  ;;  %v5705_v24 = vrot.slane %v5703_v13, 4  ;;  %v5579_v1 = vld [vmem:[#allocation3 + $0x40] sm:$0xf]  ;;  %v5580_v8 = vld [vmem:[#allocation3 + $0x44] sm:$0x1] }
 0x245   : > { %7914 = vrot.lane.b32.xlu0 %v10608_v11, %s11238_s24  ;;  %v7185_v32 = vrot.slane %v7184_v51, 4  ;;  %v5148_v44 = vshll.u32 %v5028_v0, 16  ;;  %v5141_v3 = vrot.slane %v5139_v2, 4  ;;  %v5152_v20 = vshrl.u32 %v5028_v0, 16  ;;  %v11204_v40 = vld [vmem:[#allocation3 + $0x60] sm:$0xff]  }
 0x246   : > { %v7195_v25 = vrot.slane %v7194_v16, 4  ;;  %v5144_v15 = vrot.slane %v5142_v26, 5  ;;  %v5707_v19 = vsel %vm11411_vm9, %v5705_v24, %v5706_v57  ;;  %v5158_v45 = vshll.u32 %v5029_v10, 16  ;;  %v7117_v10 = vld [vmem:[#allocation3 + $0x48] sm:$0xf]  ;;  %5010 = vst.msk [vmem:[#allocation5 + $0x40] sm:$0xff] %vm13994_vm15, %v11204_v40 }
 0x247   : > { %v7190_v27 = vsel %vm11418_vm10, %v7185_v32, %v7189_v6  ;;  %v5150_v43 = vrot.slane %v5148_v44, 5  ;;  %v10482_v59 = vcombine.low %v5704_v62, %v5707_v19  ;;  %v5154_v12 = vrot.slane %v5152_v20, 4  ;;  %v11206_v16 = vld [vmem:[#allocation3 + $0x54] sm:$0xff]   ;;  %v7119_v32 = vld [vmem:[#allocation3 + $0x50] sm:$0x1] }
 0x248   : > { %v7200_v31 = vsel %vm11418_vm10, %v7195_v25, %v7199_v5  ;;  %v5145_v21 = vor.u32 %v5144_v15, %v5141_v3  ;;  %v5160_v41 = vrot.slane %v5158_v45, 5  ;;  %v10591_v52 = vrot.slane %v7659_v18, 9  ;;  %5009 = vst.msk [vmem:[#allocation5 + $0x38] sm:$0xff] %vm13994_vm15, %v11206_v16  ;;  %v6078_v45 = vld [vmem:[#allocation3 + $0x50] sm:$0x1] }
 0x249   : > { %v10573_v39 = vcombine.low %v7190_v27, %v7200_v31  ;;  %v7769_v35 = vrot.slane %v7660_v17, 5  ;;  %5831 = vrot.lane.b32.xlu0 %v10482_v59, %s11234_s9  ;;  %v5155_v37 = vor.u32 %v5154_v12, %v5150_v43  ;;  %v7772_v56 = vrot.slane %v7661_v14, 5  ;;  %v7118_v17 = vld [vmem:[#allocation3 + $0x4c] sm:$0xf]  ;;  %v6073_v12 = vld [vmem:[#allocation3 + $0x3c] sm:$0xf] }
 0x24a   : > { %v5146_v48 = vrot.slane %v5145_v21, 4  ;;  %v10529_v28 = vrot.slane %v6621_v58, 9  ;;  %v6739_v54 = vrot.slane %v6622_v34, 5  ;;  %v6742_v55 = vrot.slane %v6623_v61, 5  ;;  %v6076_v58 = vld [vmem:[#allocation3 + $0x48] sm:$0xf] }
 0x24b   : > { %7587 = vrot.lane.b32.xlu1 %v10573_v39, %s11239_s25  ;;  %v7770_v53 = vsel %vm11411_vm9, %v10591_v52, %v7769_v35  ;;  %v7771_v42 = vrot.slane %v7769_v35, 4  ;;  %v5156_v60 = vrot.slane %v5155_v37, 4  ;;  %v10528_v0 = vrot.slane %v6618_v30, 9  ;;  %v6077_v34 = vld [vmem:[#allocation3 + $0x4c] sm:$0xf] }
 0x24c   : > { %v5151_v22 = vsel %vm11418_vm10, %v5146_v48, %v5150_v43  ;;  %v6732_v49 = vrot.slane %v6619_v47, 5  ;;  %v6740_v9 = vsel %vm11411_vm9, %v10529_v28, %v6739_v54  ;;  %v6741_v33 = vrot.slane %v6739_v54, 4  ;;  %v6074_v54 = vld [vmem:[#allocation3 + $0x40] sm:$0xf] }
 0x24d   : > { %v7773_v6 = vsel %vm11411_vm9, %v7771_v42, %v7772_v56  ;;  %v6735_v7 = vrot.slane %v6620_v50, 5  ;;  %v5161_v11 = vsel %vm11418_vm10, %v5156_v60, %v5160_v41  ;;  %v10465_v26 = vrot.slane %v5578_v46, 9  ;;  %v11173_v41 = vld [vmem:[#allocation3 + $0x60] sm:$0xff]  }
 0x24e   : > { %v10607_v51 = vcombine.low %v7770_v53, %v7773_v6  ;;  %v6733_v13 = vsel %vm11411_vm9, %v10528_v0, %v6732_v49  ;;  %v6734_v57 = vrot.slane %v6732_v49, 4  ;;  %v10447_v5 = vcombine.low %v5151_v22, %v5161_v11  ;;  %v6075_v0 = vld [vmem:[#allocation3 + $0x44] sm:$0x1] }
 0x24f   : > { %v6743_v2 = vsel %vm11411_vm9, %v6741_v33, %v6742_v55  ;;  %v5696_v18 = vrot.slane %v5579_v1, 5  ;;  %v5699_v44 = vrot.slane %v5580_v8, 5  ;;  %v7250_v14 = vshrl.u32 %v7117_v10, 16  ;;  %v11174_v33 = vld [vmem:[#allocation3 + $0x60] sm:$0xff]  }
 0x250   : > { %7912 = vrot.lane.b32.xlu0 %v10607_v51, %s11238_s24  ;;  %v10545_v62 = vcombine.low %v6740_v9, %v6743_v2  ;;  %v6736_v24 = vsel %vm11411_vm9, %v6734_v57, %v6735_v7  ;;  %5504 = vrot.lane.b32.xlu1 %v10447_v5, %s11228_s27  ;;  %v7253_v20 = vshll.u32 %v7117_v10, 16  ;;  %v7259_v27 = vshll.u32 %v7118_v17, 16  ;;  %v5036_v5 = vld [vmem:[#allocation3 + $0x48] sm:$0xf]  ;;  %v12887_v2 = vpop.permute.xlu0 %5819 }
 0x251   : > { %v10544_v25 = vcombine.low %v6733_v13, %v6736_v24  ;;  %v5697_v3 = vsel %vm11411_vm9, %v10465_v26, %v5696_v18  ;;  %v5698_v15 = vrot.slane %v5696_v18, 4  ;;  %v7252_v61 = vrot.slane %v7250_v14, 4 }
 0x252   : > { %v7263_v19 = vshrl.u32 %v7118_v17, 16  ;;  %v7269_v43 = vshll.u32 %v7119_v32, 16  ;;  %v7255_v31 = vrot.slane %v7253_v20, 5  ;;  %v6230_v59 = vshrl.u32 %v6076_v58, 16 }
 0x253   : > { %v5700_v30 = vsel %vm11411_vm9, %v5698_v15, %v5699_v44  ;;  %v6233_v21 = vshll.u32 %v6076_v58, 16  ;;  %v7261_v52 = vrot.slane %v7259_v27, 5  ;;  %v6239_v28 = vshll.u32 %v6077_v34, 16 }
 0x254   : > { %6870 = vrot.lane.b32.xlu0 %v10544_v25, %s11237_s20  ;;  %v10481_v39 = vcombine.low %v5697_v3, %v5700_v30  ;;  %v7265_v35 = vrot.slane %v7263_v19, 4  ;;  %v7271_v47 = vrot.slane %v7269_v43, 5  ;;  %6872 = vrot.lane.b32.xlu1 %v10545_v62, %s11237_s20  ;;  %v7256_v48 = vor.u32 %v7255_v31, %v7252_v61  ;;  %v12898_v31 = vld [vmem:[#allocation3 + $0x4c] sm:$0xf] }
 0x255   : > { %v6232_v37 = vrot.slane %v6230_v59, 4  ;;  %v6235_v56 = vrot.slane %v6233_v21, 5  ;;  %v6243_v53 = vshrl.u32 %v6077_v34, 16  ;;  %v6249_v42 = vshll.u32 %v6078_v45, 16 }
 0x256   : > { %v7266_v50 = vor.u32 %v7265_v35, %v7261_v52  ;;  %v6206_v55 = vshrl.u32 %v6073_v12, 16  ;;  %v7257_v46 = vrot.slane %v7256_v48, 4  ;;  %v6241_v60 = vrot.slane %v6239_v28, 5  ;;  %v11189_v28 = vld [vmem:[%s13987_s3 + $0x8] sm:$0xff]  }
 0x257   : > { %v6236_v22 = vor.u32 %v6235_v56, %v6232_v37  ;;  %v6209_v49 = vshll.u32 %v6073_v12, 16  ;;  %v6245_v40 = vrot.slane %v6243_v53, 4  ;;  %v6251_v6 = vrot.slane %v6249_v42, 5  ;;  %v11175_v12 = vld [vmem:[#allocation3 + $0x54] sm:$0xff]  }
 0x258   : > { %7052 = vrot.lane.b32.xlu0 %v11173_v41, %s11236_s19  ;;  %v7267_v1 = vrot.slane %v7266_v50, 4  ;;  %v6208_v9 = vrot.slane %v6206_v55, 4  ;;  %5829 = vrot.lane.b32.xlu1 %v10481_v39, %s11234_s9  ;;  %v7262_v7 = vsel %vm11418_vm10, %v7257_v46, %v7261_v52  ;;  %v6215_v11 = vshll.u32 %v6074_v54, 16  ;;  %v11188_v52 = vld [vmem:[%s13987_s3] sm:$0xff]  }
 0x259   : > { %v6237_v8 = vrot.slane %v6236_v22, 4  ;;  %v6211_v10 = vrot.slane %v6209_v49, 5  ;;  %v6246_v13 = vor.u32 %v6245_v40, %v6241_v60  ;;  %v6219_v57 = vshrl.u32 %v6074_v54, 16  ;;  %11045 = vmatprep.subr.bf16.mxu1 %v11188_v52 }
 0x25a   : > { %v7272_v51 = vsel %vm11418_vm10, %v7267_v1, %v7271_v47  ;;  %v6225_v16 = vshll.u32 %v6075_v0, 16  ;;  %v11031_v17 = vpop.f32.mrb[16].mxu0  ;;  %v6217_v62 = vrot.slane %v6215_v11, 5  ;;  %v5211_v34 = vshrl.u32 %v5036_v5, 16  ;;  %v11176_v1 = vld [vmem:[#allocation3 + $0x54] sm:$0xff]   ;;  %11046 = vmatpush3.bf16.msra.mxu1 %v11188_v52 }
 0x25b   : > { %v10576_v26 = vcombine.low %v7262_v7, %v7272_v51  ;;  %v6242_v18 = vsel %vm11418_vm10, %v6237_v8, %v6241_v60  ;;  %v6212_v32 = vor.u32 %v6211_v10, %v6208_v9  ;;  %v6247_v24 = vrot.slane %v6246_v13, 4  ;;  %v4189_v14 = vpop.f32.mrb[17].mxu0  ;;  %v4824_v60 = vld [vmem:[#allocation3 + $0x78] sm:$0xf]  ;;  %11047 = vmatprep.subr.bf16.mxu1 %v11189_v28 }
 0x25c   : > { %v4198_v44 = vadd.f32 %v12804_v63, %v11031_v17  ;;  %v6221_v58 = vrot.slane %v6219_v57, 4  ;;  %v6227_v25 = vrot.slane %v6225_v16, 5  ;;  %6010 = vrot.lane.b32.xlu1 %v11174_v33, %s11231_s30  ;;  %v4190_v3 = vadd.f32 %v12804_v63, %v4189_v14  ;;  %v11032_v15 = vpop.f32.mrb[18].mxu0  ;;  %v4817_v33 = vld [vmem:[#allocation3 + $0x6c] sm:$0xf]  ;;  %v11191_v51 = vld [vmem:[%s13987_s3 + $0x10] sm:$0xff]  }
 0x25d   : > { %7593 = vrot.lane.b32.xlu0 %v10576_v26, %s11239_s25  ;;  %v6213_v20 = vrot.slane %v6212_v32, 4  ;;  %v5214_v61 = vshll.u32 %v5036_v5, 16  ;;  %v6252_v27 = vsel %vm11418_vm10, %v6247_v24, %v6251_v6  ;;  %v4201_v43 = vadd.f32 %v12804_v63, %v11032_v15  ;;  %v4192_v45 = vpop.f32.mrb[19].mxu0  ;;  %v4828_v57 = vld [vmem:[#allocation3 + $0x80] sm:$0x1] }
 0x25e   : > { %v4270_v19 = vmax.f32 %v4198_v44, 0.0  ;;  %v6222_v30 = vor.u32 %v6221_v58, %v6217_v62  ;;  %v10513_v59 = vcombine.low %v6242_v18, %v6252_v27  ;;  %v4268_v21 = vmax.f32 %v4190_v3, 0.0  ;;  %v12906_v56 = vpop.permute.xlu0 %7040  ;;  %v5038_v26 = vld [vmem:[#allocation3 + $0x50] sm:$0x1]  ;;  %v4821_v24 = vld [vmem:[#allocation3 + $0x74] sm:$0x1]  ;;  %11048 = vmatpush3.bf16.msra.mxu1 %v11189_v28 }
 0x25f   : > { %v4193_v39 = vadd.f32 %v12804_v63, %v4192_v45  ;;  %v6218_v41 = vsel %vm11418_vm10, %v6213_v20, %v6217_v62  ;;  %v4271_v47 = vmax.f32 %v4201_v43, 0.0  ;;  %v5213_v37 = vrot.slane %v5211_v34, 4  ;;  %v7668_v14 = vld [vmem:[#allocation3 + $0x60] sm:$0xe]  ;;  %v7669_v20 = vld [vmem:[#allocation3 + $0x64] sm:$0xf]  ;;  %11049 = vmatprep.subr.bf16.mxu1 %v11191_v51 }
 0x260   : > { %v10889_v35 = vpack.c.bf16 %v4270_v19, %v4270_v19  ;;  %v6223_v48 = vrot.slane %v6222_v30, 4  ;;  %6551 = vrot.lane.b32.xlu1 %v10513_v59, %s11233_s8  ;;  %v10887_v63 = vpack.c.bf16 %v4268_v21, %v4268_v21  ;;  %v5216_v53 = vrot.slane %v5214_v61, 5  ;;  %v7670_v34 = vld [vmem:[#allocation3 + $0x68] sm:$0x1]  ;;  %v7114_v61 = vld [vmem:[#allocation3 + $0x3c] sm:$0xf] }
 0x261   : > { %6008 = vrot.lane.b32.xlu0 %v11175_v12, %s11231_s30  ;;  %v4269_v50 = vmax.f32 %v4193_v39, 0.0  ;;  %v5220_v42 = vshll.u32 %v12898_v31, 16  ;;  %v10890_v46 = vpack.c.bf16 %v4271_v47, %v4271_v47  ;;  %v5224_v15 = vshrl.u32 %v12898_v31, 16  ;;  %v7115_v30 = vld [vmem:[#allocation3 + $0x40] sm:$0xf] }
 0x262   : > { %v4590_v54 = vshrl.u32 %v10889_v35, 16  ;;  %v4593_v55 = vshll.u32 %v10889_v35, 16  ;;  %v6228_v22 = vsel %vm11418_vm10, %v6223_v48, %v6227_v25  ;;  %v4573_v0 = vshrl.u32 %v10887_v63, 16  ;;  %v12916_v11 = vpop.permute.xlu0 %5996  ;;  %v7116_v39 = vld [vmem:[#allocation3 + $0x44] sm:$0x1]  ;;  %11050 = vmatpush3.bf16.msra.mxu1 %v11191_v51 }
 0x263   : > { %v4576_v49 = vshll.u32 %v10887_v63, 16  ;;  %v10888_v40 = vpack.c.bf16 %v4269_v50, %v4269_v50  ;;  %v10512_v6 = vcombine.low %v6218_v41, %v6228_v22  ;;  %v4598_v7 = vshrl.u32 %v10890_v46, 16  ;;  %v5587_v50 = vld [vmem:[#allocation3 + $0x60] sm:$0xe] }
 0x264   : > { %v4592_v9 = vrot.slane %v4590_v54, 7  ;;  %v4601_v8 = vshll.u32 %v10890_v46, 16  ;;  %v5217_v10 = vor.u32 %v5216_v53, %v5213_v37  ;;  %v4575_v13 = vrot.slane %v4573_v0, 7  ;;  %7050 = vrot.lane.b32.xlu1 %v11176_v1, %s11236_s19  ;;  %v5588_v46 = vld [vmem:[#allocation3 + $0x64] sm:$0xf] }
 0x265   : > { %v4581_v16 = vshrl.u32 %v10888_v40, 16  ;;  %v4584_v5 = vshll.u32 %v10888_v40, 16  ;;  %6549 = vrot.lane.b32.xlu0 %v10512_v6, %s11233_s8  ;;  %v12923_v18 = vrot.slane %v5220_v42, 5  ;;  %v4600_v62 = vrot.slane %v4598_v7, 7  ;;  %v5589_v1 = vld [vmem:[#allocation3 + $0x68] sm:$0x1] }
 0x266   : > { %v4595_v17 = vor.u32 %v4593_v55, %v4592_v9  ;;  %v4596_v32 = vrot.slane %v4592_v9, 4  ;;  %v5218_v44 = vrot.slane %v5217_v10, 4  ;;  %v4578_v58 = vor.u32 %v4576_v49, %v4575_v13  ;;  %v5033_v40 = vld [vmem:[#allocation3 + $0x3c] sm:$0xf]  ;;  %v5034_v6 = vld [vmem:[#allocation3 + $0x40] sm:$0xf] }
 0x267   : > { %v4579_v25 = vrot.slane %v4575_v13, 4  ;;  %v4583_v3 = vrot.slane %v4581_v16, 7  ;;  %v4603_v19 = vor.u32 %v4601_v8, %v4600_v62  ;;  %v4605_v43 = vrot.slane %v4600_v62, 4  ;;  %v12954_v16 = vpop.permute.xlu1 %5998 }
 0x268   : > { %v4825_v27 = vsel %vm12610_vm14, %v4595_v17, %v4824_v60  ;;  %v5223_v45 = vsel %vm11418_vm10, %v5218_v44, %v12923_v18  ;;  %v4818_v59 = vsel %vm12610_vm14, %v4578_v58, %v4817_v33  ;;  %v5226_v12 = vrot.slane %v5224_v15, 4  ;;  %v12937_v47 = vpop.permute.xlu0 %7906  ;;  %v11193_v58 = vld [vmem:[%s13987_s3 + $0x18] sm:$0xff]  }
 0x269   : > { %4826 = vst [vmem:[#allocation3 + $0x78] sm:$0xf] %v4825_v27  ;;  %v4586_v31 = vor.u32 %v4584_v5, %v4583_v3  ;;  %v4588_v21 = vrot.slane %v4583_v3, 4  ;;  %4819 = vst [vmem:[#allocation3 + $0x6c] sm:$0xf] %v4818_v59  ;;  %v4604_v41 = vsel %vm11426_vm11, %v4596_v32, %v4603_v19  ;;  %v4829_v52 = vsel %vm12618_vm4, %v4605_v43, %v4828_v57 }
 0x26a   : > { %v5230_v35 = vshll.u32 %v5038_v26, 16  ;;  %vm5867_vm5 = vcmask 195712   ;;  %4827 = vst.msk [vmem:[#allocation3 + $0x7c] sm:$0xf] %vm4284_vm0, %v4604_v41  ;;  %4830 = vst [vmem:[#allocation3 + $0x80] sm:$0x1] %v4829_v52  ;;  %v5227_v28 = vor.u32 %v5226_v12, %v12923_v18  ;;  %11051 = vmatprep.subr.bf16.mxu1 %v11193_v58 }
 0x26b   : > { %v4587_v48 = vsel %vm11426_vm11, %v4579_v25, %v4586_v31  ;;  %v4822_v37 = vsel %vm12618_vm4, %v4588_v21, %v4821_v24  ;;  %5868 = vst.msk [vmem:[#allocation5] sm:$0xff] %vm5867_vm5, %v12887_v2  ;;  %v10594_v63 = vrot.slane %v7668_v14, 9  ;;  %v7790_v42 = vrot.slane %v7669_v20, 5  ;;  %v5035_v32 = vld [vmem:[#allocation3 + $0x44] sm:$0x1]  ;;  %v12967_v21 = vpop.permute.xlu1 %6864  ;;  %11052 = vmatpush3.bf16.msra.mxu1 %v11193_v58 }
 0x26c   : > { %4820 = vst.msk [vmem:[#allocation3 + $0x70] sm:$0xf] %vm4284_vm0, %v4587_v48  ;;  %4823 = vst [vmem:[#allocation3 + $0x74] sm:$0x1] %v4822_v37  ;;  %v5232_v53 = vrot.slane %v5230_v35, 5  ;;  %v7793_v54 = vrot.slane %v7670_v34, 5 }
 0x26d   : > { %v7226_v55 = vshrl.u32 %v7114_v61, 16  ;;  %v5228_v22 = vrot.slane %v5227_v28, 4  ;;  %v7229_v60 = vshll.u32 %v7114_v61, 16  ;;  %v7235_v0 = vshll.u32 %v7115_v30, 16  ;;  %v12950_v8 = vpop.permute.xlu0 %5823  ;;  %v7665_v34 = vld [vmem:[#allocation3 + $0x54] sm:$0xe] }
 0x26e   : > { %v7239_v49 = vshrl.u32 %v7115_v30, 16  ;;  %v7791_v2 = vsel %vm11411_vm9, %v10594_v63, %v7790_v42  ;;  %v7792_v9 = vrot.slane %v7790_v42, 4  ;;  %v7245_v7 = vshll.u32 %v7116_v39, 16  ;;  %v7666_v61 = vld [vmem:[#allocation3 + $0x58] sm:$0xf] }
 0x26f   : > { %v7228_v33 = vrot.slane %v7226_v55, 4  ;;  %v5233_v10 = vsel %vm11418_vm10, %v5228_v22, %v5232_v53  ;;  %v7231_v51 = vrot.slane %v7229_v60, 5  ;;  %v7237_v13 = vrot.slane %v7235_v0, 5  ;;  %v7667_v27 = vld [vmem:[#allocation3 + $0x5c] sm:$0x1] }
 0x270   : > { %v7241_v57 = vrot.slane %v7239_v49, 4  ;;  %v10450_v5 = vcombine.low %v5223_v45, %v5233_v10  ;;  %v7794_v26 = vsel %vm11411_vm9, %v7792_v9, %v7793_v54  ;;  %v7247_v18 = vrot.slane %v7245_v7, 5  ;;  %v6627_v31 = vld [vmem:[#allocation3 + $0x60] sm:$0xe]  ;;  %v6628_v35 = vld [vmem:[#allocation3 + $0x64] sm:$0xf] }
 0x271   : > { %v10468_v17 = vrot.slane %v5587_v50, 9  ;;  %v10610_v62 = vcombine.low %v7791_v2, %v7794_v26  ;;  %v7232_v24 = vor.u32 %v7231_v51, %v7228_v33  ;;  %v5717_v14 = vrot.slane %v5588_v46, 5  ;;  %v12962_v19 = vpop.permute.xlu0 %6862  ;;  %v6629_v55 = vld [vmem:[#allocation3 + $0x68] sm:$0x1]  ;;  %v6624_v46 = vld [vmem:[#allocation3 + $0x54] sm:$0xe] }
 0x272   : > { %v7242_v44 = vor.u32 %v7241_v57, %v7237_v13  ;;  %5510 = vrot.lane.b32.xlu1 %v10450_v5, %s11228_s27  ;;  %v5720_v25 = vrot.slane %v5589_v1, 5  ;;  %v5187_v3 = vshrl.u32 %v5033_v40, 16  ;;  %v5190_v15 = vshll.u32 %v5033_v40, 16  ;;  %v11208_v60 = vld [vmem:[#allocation3 + $0x78] sm:$0xff]   ;;  %v5584_v26 = vld [vmem:[#allocation3 + $0x54] sm:$0xe] }
 0x273   : > { %v5196_v20 = vshll.u32 %v5034_v6, 16  ;;  %7918 = vrot.lane.b32.xlu0 %v10610_v62, %s11238_s24  ;;  %v7233_v43 = vrot.slane %v7232_v24, 4  ;;  %v5718_v30 = vsel %vm11411_vm9, %v10468_v17, %v5717_v14  ;;  %v5719_v59 = vrot.slane %v5717_v14, 4  ;;  %v6626_v7 = vld [vmem:[#allocation3 + $0x5c] sm:$0x1]  ;;  %5012 = vst.msk [vmem:[#allocation5 + $0x50] sm:$0xff] %vm13994_vm15, %v11208_v60 }
 0x274   : > { %v7243_v45 = vrot.slane %v7242_v44, 4  ;;  %v5189_v12 = vrot.slane %v5187_v3, 4  ;;  %v5192_v39 = vrot.slane %v5190_v15, 5  ;;  %v5200_v52 = vshrl.u32 %v5034_v6, 16  ;;  %v6625_v6 = vld [vmem:[#allocation3 + $0x58] sm:$0xf] }
 0x275   : > { %v5198_v41 = vrot.slane %v5196_v20, 5  ;;  %v7238_v48 = vsel %vm11418_vm10, %v7233_v43, %v7237_v13  ;;  %v5721_v28 = vsel %vm11411_vm9, %v5719_v59, %v5720_v25  ;;  %v5206_v63 = vshll.u32 %v5035_v32, 16  ;;  %v12975_v22 = vpop.permute.xlu0 %7044  ;;  %v11209_v10 = vld [vmem:[#allocation3 + $0x6c] sm:$0xff]   ;;  %v5585_v44 = vld [vmem:[#allocation3 + $0x58] sm:$0xf] }
 0x276   : > { %v7248_v37 = vsel %vm11418_vm10, %v7243_v45, %v7247_v18  ;;  %v10484_v53 = vcombine.low %v5718_v30, %v5721_v28  ;;  %v5193_v42 = vor.u32 %v5192_v39, %v5189_v12  ;;  %v5202_v54 = vrot.slane %v5200_v52, 4  ;;  %v12984_v18 = vpop.permute.xlu1 %5821  ;;  %5011 = vst.msk [vmem:[#allocation5 + $0x48] sm:$0xff] %vm13994_vm15, %v11209_v10  ;;  %v5586_v3 = vld [vmem:[#allocation3 + $0x5c] sm:$0x1]  ;;  %v7123_v15 = vld [vmem:[#allocation3 + $0x60] sm:$0xf] }
 0x277   : > { %v10575_v50 = vcombine.low %v7238_v48, %v7248_v37  ;;  %v5208_v0 = vrot.slane %v5206_v63, 5  ;;  %v10593_v49 = vrot.slane %v7665_v34, 9  ;;  %v7783_v1 = vrot.slane %v7666_v61, 5  ;;  %v7124_v12 = vld [vmem:[#allocation3 + $0x64] sm:$0xf]  ;;  %v11178_v10 = vld [vmem:[#allocation3 + $0x78] sm:$0xff]  }
 0x278   : > { %v7786_v40 = vrot.slane %v7667_v27, 5  ;;  %5835 = vrot.lane.b32.xlu0 %v10484_v53, %s11234_s9  ;;  %v5194_v2 = vrot.slane %v5193_v42, 4  ;;  %v5203_v9 = vor.u32 %v5202_v54, %v5198_v41  ;;  %vm6044_vm6 = vcmask 261312   ;;  %v7125_v39 = vld [vmem:[#allocation3 + $0x68] sm:$0x1] }
 0x279   : > { %7591 = vrot.lane.b32.xlu1 %v10575_v50, %s11239_s25  ;;  %v10531_v33 = vrot.slane %v6627_v31, 9  ;;  %v7784_v51 = vsel %vm11411_vm9, %v10593_v49, %v7783_v1  ;;  %v7785_v13 = vrot.slane %v7783_v1, 4  ;;  %6045 = vst.msk [vmem:[#allocation5] sm:$0xff] %vm6044_vm6, %v12916_v11  ;;  %v6753_v57 = vrot.slane %v6628_v35, 5  ;;  %v12993_v20 = vpop.permute.xlu0 %7585  ;;  %v6082_v28 = vld [vmem:[#allocation3 + $0x60] sm:$0xf] }
 0x27a   : > { %v6756_v5 = vrot.slane %v6629_v55, 5  ;;  %v5199_v17 = vsel %vm11418_vm10, %v5194_v2, %v5198_v41  ;;  %v5204_v32 = vrot.slane %v5203_v9, 4  ;;  %v10530_v62 = vrot.slane %v6624_v46, 9  ;;  %v13001_v41 = vpop.permute.xlu1 %6002  ;;  %v6083_v54 = vld [vmem:[#allocation3 + $0x64] sm:$0xf] }
 0x27b   : > { %v6746_v24 = vrot.slane %v6625_v6, 5  ;;  %v7787_v14 = vsel %vm11411_vm9, %v7785_v13, %v7786_v40  ;;  %v6754_v11 = vsel %vm11411_vm9, %v10531_v33, %v6753_v57  ;;  %v6755_v58 = vrot.slane %v6753_v57, 4  ;;  %v6084_v49 = vld [vmem:[#allocation3 + $0x68] sm:$0x1]  ;;  %v6079_v9 = vld [vmem:[#allocation3 + $0x54] sm:$0xf] }
 0x27c   : > { %v6749_v25 = vrot.slane %v6626_v7, 5  ;;  %v5209_v34 = vsel %vm11418_vm10, %v5204_v32, %v5208_v0  ;;  %v10609_v61 = vcombine.low %v7784_v51, %v7787_v14  ;;  %v10467_v59 = vrot.slane %v5584_v26, 9 }
 0x27d   : > { %v6747_v27 = vsel %vm11411_vm9, %v10530_v62, %v6746_v24  ;;  %v6748_v43 = vrot.slane %v6746_v24, 4  ;;  %v10449_v45 = vcombine.low %v5199_v17, %v5209_v34  ;;  %v6757_v30 = vsel %vm11411_vm9, %v6755_v58, %v6756_v5  ;;  %v13011_v33 = vpop.permute.xlu0 %6000  ;;  %v6081_v34 = vld [vmem:[#allocation3 + $0x5c] sm:$0x1] }
 0x27e   : > { %v5710_v31 = vrot.slane %v5585_v44, 5  ;;  %7916 = vrot.lane.b32.xlu0 %v10609_v61, %s11238_s24  ;;  %v10547_v52 = vcombine.low %v6754_v11, %v6757_v30  ;;  %v5713_v48 = vrot.slane %v5586_v3, 5  ;;  %v7298_v37 = vshrl.u32 %v7123_v15, 16  ;;  %v13015_v62 = vpop.permute.xlu1 %6543  ;;  %v6080_v11 = vld [vmem:[#allocation3 + $0x58] sm:$0xf] }
 0x27f   : > { %v6750_v35 = vsel %vm11411_vm9, %v6748_v43, %v6749_v25  ;;  %5508 = vrot.lane.b32.xlu1 %v10449_v45, %s11228_s27  ;;  %v7301_v42 = vshll.u32 %v7123_v15, 16  ;;  %v7307_v46 = vshll.u32 %v7124_v12, 16  ;;  %v7311_v60 = vshrl.u32 %v7124_v12, 16 }
 0x280   : > { %v10546_v63 = vcombine.low %v6747_v27, %v6750_v35  ;;  %v5711_v50 = vsel %vm11411_vm9, %v10467_v59, %v5710_v31  ;;  %v5712_v53 = vrot.slane %v5710_v31, 4  ;;  %v7300_v55 = vrot.slane %v7298_v37, 4  ;;  %v11179_v59 = vld [vmem:[#allocation3 + $0x78] sm:$0xff]  }
 0x281   : > { %v7317_v0 = vshll.u32 %v7125_v39, 16  ;;  %v7303_v40 = vrot.slane %v7301_v42, 5  ;;  %v6278_v6 = vshrl.u32 %v6082_v28, 16  ;;  %v6281_v2 = vshll.u32 %v6082_v28, 16  ;;  %v13021_v35 = vpop.permute.xlu0 %6541 }
 0x282   : > { %v5714_v1 = vsel %vm11411_vm9, %v5712_v53, %v5713_v48  ;;  %6874 = vrot.lane.b32.xlu0 %v10546_v63, %s11237_s20  ;;  %v7309_v51 = vrot.slane %v7307_v46, 5  ;;  %v7313_v13 = vrot.slane %v7311_v60, 4  ;;  %v6287_v32 = vshll.u32 %v6083_v54, 16  ;;  %v13027_v60 = vpop.permute.xlu1 %7042 }
 0x283   : > { %v10483_v7 = vcombine.low %v5711_v50, %v5714_v1  ;;  %v7319_v57 = vrot.slane %v7317_v0, 5  ;;  %6876 = vrot.lane.b32.xlu1 %v10547_v52, %s11237_s20  ;;  %v7304_v5 = vor.u32 %v7303_v40, %v7300_v55  ;;  %v6280_v26 = vrot.slane %v6278_v6, 4  ;;  %v5042_v50 = vld [vmem:[#allocation3 + $0x60] sm:$0xf] }
 0x284   : > { %v6283_v17 = vrot.slane %v6281_v2, 5  ;;  %v7314_v24 = vor.u32 %v7313_v13, %v7309_v51  ;;  %v6291_v44 = vshrl.u32 %v6083_v54, 16  ;;  %v6297_v14 = vshll.u32 %v6084_v49, 16  ;;  %v13032_v49 = vld [vmem:[%s13986_s2] ss:$0 sm:$0xff] }
 0x285   : > { %v6254_v58 = vshrl.u32 %v6079_v9, 16  ;;  %v7305_v25 = vrot.slane %v7304_v5, 4  ;;  %v6289_v15 = vrot.slane %v6287_v32, 5  ;;  %v6257_v61 = vshll.u32 %v6079_v9, 16 }
 0x286   : > { %v6284_v3 = vor.u32 %v6283_v17, %v6280_v26  ;;  %7056 = vrot.lane.b32.xlu0 %v11178_v10, %s11236_s19  ;;  %v7315_v27 = vrot.slane %v7314_v24, 4  ;;  %v6293_v43 = vrot.slane %v6291_v44, 4  ;;  %v6299_v45 = vrot.slane %v6297_v14, 5  ;;  %v13041_v24 = vld [vmem:[#allocation3 + $0x64] sm:$0xf] }
 0x287   : > { %v6256_v30 = vrot.slane %v6254_v58, 4  ;;  %5833 = vrot.lane.b32.xlu1 %v10483_v7, %s11234_s9  ;;  %v7310_v31 = vsel %vm11418_vm10, %v7305_v25, %v7309_v51  ;;  %v6259_v39 = vrot.slane %v6257_v61, 5  ;;  %v6263_v52 = vshll.u32 %v6080_v11, 16 }
 0x288   : > { %v6285_v12 = vrot.slane %v6284_v3, 4  ;;  %v7320_v48 = vsel %vm11418_vm10, %v7315_v27, %v7319_v57  ;;  %v6294_v37 = vor.u32 %v6293_v43, %v6289_v15  ;;  %v6267_v28 = vshrl.u32 %v6080_v11, 16  ;;  %v11035_v54 = vpop.f32.mrb[20].mxu0  ;;  %v11180_v11 = vld [vmem:[#allocation3 + $0x6c] sm:$0xff]  }
 0x289   : > { %v6273_v63 = vshll.u32 %v6081_v34, 16  ;;  %v10578_v53 = vcombine.low %v7310_v31, %v7320_v48  ;;  %v6260_v55 = vor.u32 %v6259_v39, %v6256_v30  ;;  %v6265_v46 = vrot.slane %v6263_v52, 5  ;;  %v4205_v40 = vpop.f32.mrb[21].mxu0 }
 0x28a   : > { %v6290_v42 = vsel %vm11418_vm10, %v6285_v12, %v6289_v15  ;;  %v6295_v0 = vrot.slane %v6294_v37, 4  ;;  %v4214_v1 = vadd.f32 %v13032_v49, %v11035_v54  ;;  %v6269_v6 = vrot.slane %v6267_v28, 4  ;;  %v11036_v7 = vpop.f32.mrb[22].mxu0  ;;  %v4838_v37 = vld [vmem:[#allocation3 + $0x90] sm:$0xf] }
 0x28b   : > { %v6275_v2 = vrot.slane %v6273_v63, 5  ;;  %6014 = vrot.lane.b32.xlu1 %v11179_v59, %s11231_s30  ;;  %7597 = vrot.lane.b32.xlu0 %v10578_v53, %s11239_s25  ;;  %v4206_v9 = vadd.f32 %v13032_v49, %v4205_v40  ;;  %v6261_v10 = vrot.slane %v6260_v55, 4  ;;  %v5259_v51 = vshrl.u32 %v5042_v50, 16  ;;  %v4208_v17 = vpop.f32.mrb[23].mxu0  ;;  %v4831_v55 = vld [vmem:[#allocation3 + $0x84] sm:$0xf] }
 0x28c   : > { %v5262_v13 = vshll.u32 %v5042_v50, 16  ;;  %v6300_v57 = vsel %vm11418_vm10, %v6295_v0, %v6299_v45  ;;  %v4274_v5 = vmax.f32 %v4214_v1, 0.0  ;;  %v4217_v26 = vadd.f32 %v13032_v49, %v11036_v7  ;;  %v5503_v31 = vpop.permute.xlu1 %5502  ;;  %v11181_v50 = vld [vmem:[#allocation3 + $0x6c] sm:$0xff]   ;;  %v5044_v7 = vld [vmem:[#allocation3 + $0x68] sm:$0x1] }
 0x28d   : > { %v6270_v32 = vor.u32 %v6269_v6, %v6265_v46  ;;  %v10515_v44 = vcombine.low %v6290_v42, %v6300_v57  ;;  %v4272_v14 = vmax.f32 %v4206_v9, 0.0  ;;  %v4209_v58 = vadd.f32 %v13032_v49, %v4208_v17  ;;  %5549 = vst.msk [vmem:[#allocation5 + $0x10] sm:$0xff] %vm5546_vm2, %v5503_v31  ;;  %v4842_v6 = vld [vmem:[#allocation3 + $0x98] sm:$0x1] }
 0x28e   : > { %v6266_v25 = vsel %vm11418_vm10, %v6261_v10, %v6265_v46  ;;  %v10893_v15 = vpack.c.bf16 %v4274_v5, %v4274_v5  ;;  %v4275_v34 = vmax.f32 %v4217_v26, 0.0  ;;  %v5261_v27 = vrot.slane %v5259_v51, 4  ;;  %5870 = vst.msk [vmem:[#allocation5 + $0x10] sm:$0xff] %vm5867_vm5, %v12950_v8  ;;  %v7674_v8 = vld [vmem:[#allocation3 + $0x78] sm:$0xe] }
 0x28f   : > { %v6271_v61 = vrot.slane %v6270_v32, 4  ;;  %6555 = vrot.lane.b32.xlu1 %v10515_v44, %s11233_s8  ;;  %v10891_v43 = vpack.c.bf16 %v4272_v14, %v4272_v14  ;;  %6012 = vrot.lane.b32.xlu0 %v11180_v11, %s11231_s30  ;;  %v4273_v45 = vmax.f32 %v4209_v58, 0.0  ;;  %v5264_v30 = vrot.slane %v5262_v13, 5  ;;  %6047 = vst.msk [vmem:[#allocation5 + $0x10] sm:$0xff] %vm6044_vm6, %v13011_v33 }
 0x290   : > { %v5268_v59 = vshll.u32 %v13041_v24, 16  ;;  %v4624_v12 = vshrl.u32 %v10893_v15, 16  ;;  %v4627_v39 = vshll.u32 %v10893_v15, 16  ;;  %v10894_v52 = vpack.c.bf16 %v4275_v34, %v4275_v34  ;;  %v4835_v15 = vld [vmem:[#allocation3 + $0x8c] sm:$0x1] }
 0x291   : > { %v13046_v3 = vpop.permute.xlu0 %7910  ;;  %v6276_v48 = vsel %vm11418_vm10, %v6271_v61, %v6275_v2  ;;  %v4607_v28 = vshrl.u32 %v10891_v43, 16  ;;  %v4610_v63 = vshll.u32 %v10891_v43, 16  ;;  %v10892_v53 = vpack.c.bf16 %v4273_v45, %v4273_v45  ;;  %v7675_v61 = vld [vmem:[#allocation3 + $0x7c] sm:$0xf]  ;;  %v7676_v45 = vld [vmem:[#allocation3 + $0x80] sm:$0x1] }
 0x292   : > { %v10514_v42 = vcombine.low %v6266_v25, %v6276_v48  ;;  %v4626_v54 = vrot.slane %v4624_v12, 7  ;;  %v4632_v46 = vshrl.u32 %v10894_v52, 16  ;;  %v4635_v0 = vshll.u32 %v10894_v52, 16  ;;  %v7121_v52 = vld [vmem:[#allocation3 + $0x58] sm:$0xf] }
 0x293   : > { %v5265_v1 = vor.u32 %v5264_v30, %v5261_v27  ;;  %v4609_v40 = vrot.slane %v4607_v28, 7  ;;  %7054 = vrot.lane.b32.xlu1 %v11181_v50, %s11236_s19  ;;  %v4615_v2 = vshrl.u32 %v10892_v53, 16  ;;  %v4618_v9 = vshll.u32 %v10892_v53, 16  ;;  %v7120_v30 = vld [vmem:[#allocation3 + $0x54] sm:$0xf] }
 0x294   : > { %6553 = vrot.lane.b32.xlu0 %v10514_v42, %s11233_s8  ;;  %v13060_v10 = vrot.slane %v5268_v59, 5  ;;  %v4629_v57 = vor.u32 %v4627_v39, %v4626_v54  ;;  %v4630_v5 = vrot.slane %v4626_v54, 4  ;;  %v4634_v26 = vrot.slane %v4632_v46, 7  ;;  %v7122_v50 = vld [vmem:[#allocation3 + $0x5c] sm:$0x1] }
 0x295   : > { %v13062_v13 = vpop.permute.xlu0 %5827  ;;  %v5266_v17 = vrot.slane %v5265_v1, 4  ;;  %v4612_v33 = vor.u32 %v4610_v63, %v4609_v40  ;;  %v4613_v32 = vrot.slane %v4609_v40, 4  ;;  %v4617_v44 = vrot.slane %v4615_v2, 7  ;;  %v5039_v1 = vld [vmem:[#allocation3 + $0x54] sm:$0xf] }
 0x296   : > { %v5272_v14 = vshrl.u32 %v13041_v24, 16  ;;  %v4839_v11 = vsel %vm12610_vm14, %v4629_v57, %v4838_v37  ;;  %v4637_v58 = vor.u32 %v4635_v0, %v4634_v26  ;;  %v4639_v25 = vrot.slane %v4634_v26, 4  ;;  %v5593_v0 = vld [vmem:[#allocation3 + $0x78] sm:$0xe]  ;;  %v5595_v26 = vld [vmem:[#allocation3 + $0x80] sm:$0x1] }
 0x297   : > { %v5271_v34 = vsel %vm11418_vm10, %v5266_v17, %v13060_v10  ;;  %4840 = vst [vmem:[#allocation3 + $0x90] sm:$0xf] %v4839_v11  ;;  %v4832_v24 = vsel %vm12610_vm14, %v4612_v33, %v4831_v55  ;;  %v4620_v27 = vor.u32 %v4618_v9, %v4617_v44  ;;  %v5278_v39 = vshll.u32 %v5044_v7, 16  ;;  %v5594_v7 = vld [vmem:[#allocation3 + $0x7c] sm:$0xf] }
 0x298   : > { %v5274_v43 = vrot.slane %v5272_v14, 4  ;;  %4833 = vst [vmem:[#allocation3 + $0x84] sm:$0xf] %v4832_v24  ;;  %v4638_v31 = vsel %vm11426_vm11, %v4630_v5, %v4637_v58  ;;  %v4843_v12 = vsel %vm12618_vm4, %v4639_v25, %v4842_v6  ;;  %v7804_v63 = vrot.slane %v7675_v61, 5  ;;  %v5040_v14 = vld [vmem:[#allocation3 + $0x58] sm:$0xf] }
 0x299   : > { %v13077_v59 = vpop.permute.xlu0 %7908  ;;  %4841 = vst.msk [vmem:[#allocation3 + $0x94] sm:$0xf] %vm4284_vm0, %v4638_v31  ;;  %4844 = vst [vmem:[#allocation3 + $0x98] sm:$0x1] %v4843_v12  ;;  %v4621_v48 = vsel %vm11426_vm11, %v4613_v32, %v4620_v27  ;;  %v5280_v42 = vrot.slane %v5278_v39, 5  ;;  %v7807_v54 = vrot.slane %v7676_v45, 5 }
 0x29a   : > { %v5501_v51 = vpop.permute.xlu1 %5500  ;;  %v5275_v28 = vor.u32 %v5274_v43, %v13060_v10  ;;  %4834 = vst.msk [vmem:[#allocation3 + $0x88] sm:$0xf] %vm4284_vm0, %v4621_v48  ;;  %v7274_v55 = vshrl.u32 %v7120_v30, 16  ;;  %v7277_v46 = vshll.u32 %v7120_v30, 16  ;;  %v7806_v2 = vrot.slane %v7804_v63, 4 }
 0x29b   : > { %5548 = vst.msk [vmem:[#allocation5 + $0x8] sm:$0xff] %vm5546_vm2, %v5501_v51  ;;  %v7283_v9 = vshll.u32 %v7121_v52, 16  ;;  %v7287_v57 = vshrl.u32 %v7121_v52, 16  ;;  %v7293_v5 = vshll.u32 %v7122_v50, 16  ;;  %v5041_v61 = vld [vmem:[#allocation3 + $0x5c] sm:$0x1] }
 0x29c   : > { %5869 = vst.msk [vmem:[#allocation5 + $0x8] sm:$0xff] %vm5867_vm5, %v12984_v18  ;;  %v4622_v18 = vrot.slane %v4617_v44, 4  ;;  %v5276_v40 = vrot.slane %v5275_v28, 4  ;;  %v7279_v51 = vrot.slane %v7277_v46, 5  ;;  %v7808_v33 = vsel %vm11411_vm9, %v7806_v2, %v7807_v54  ;;  %v7671_v24 = vld [vmem:[#allocation3 + $0x6c] sm:$0xe] }
 0x29d   : > { %6046 = vst.msk [vmem:[#allocation5 + $0x8] sm:$0xff] %vm6044_vm6, %v12954_v16  ;;  %v10596_v16 = vrot.slane %v7674_v8, 9  ;;  %v13094_v10 = vpop.permute.xlu0 %6866  ;;  %v7276_v8 = vrot.slane %v7274_v55, 4  ;;  %v7285_v32 = vrot.slane %v7283_v9, 5  ;;  %v10470_v44 = vrot.slane %v5593_v0, 9 }
 0x29e   : > { %v4836_v37 = vsel %vm12618_vm4, %v4622_v18, %v4835_v15  ;;  %v13089_v53 = vpop.permute.xlu1 %6868  ;;  %v5281_v17 = vsel %vm11418_vm10, %v5276_v40, %v5280_v42  ;;  %v7289_v15 = vrot.slane %v7287_v57, 4  ;;  %v7295_v27 = vrot.slane %v7293_v5, 5  ;;  %v7672_v30 = vld [vmem:[#allocation3 + $0x70] sm:$0xf]  ;;  %v7673_v48 = vld [vmem:[#allocation3 + $0x74] sm:$0x1] }
 0x29f   : > { %4837 = vst [vmem:[#allocation3 + $0x8c] sm:$0x1] %v4836_v37  ;;  %v7805_v6 = vsel %vm11411_vm9, %v10596_v16, %v7804_v63  ;;  %v10452_v11 = vcombine.low %v5271_v34, %v5281_v17  ;;  %v7280_v25 = vor.u32 %v7279_v51, %v7276_v8  ;;  %v5731_v18 = vrot.slane %v5594_v7, 5  ;;  %v6633_v42 = vld [vmem:[#allocation3 + $0x78] sm:$0xe] }
 0x2a0   : > { %v10612_v58 = vcombine.low %v7805_v6, %v7808_v33  ;;  %v5734_v43 = vrot.slane %v5595_v26, 5  ;;  %v5235_v45 = vshrl.u32 %v5039_v1, 16  ;;  %v7290_v34 = vor.u32 %v7289_v15, %v7285_v32  ;;  %v6634_v40 = vld [vmem:[#allocation3 + $0x7c] sm:$0xf]  ;;  %v6635_v6 = vld [vmem:[#allocation3 + $0x80] sm:$0x1] }
 0x2a1   : > { %v13102_v12 = vpop.permute.xlu0 %7048  ;;  %5514 = vrot.lane.b32.xlu1 %v10452_v11, %s11228_s27  ;;  %v7281_v39 = vrot.slane %v7280_v25, 4  ;;  %v5238_v16 = vshll.u32 %v5039_v1, 16  ;;  %v5244_v52 = vshll.u32 %v5040_v14, 16  ;;  %v5732_v37 = vsel %vm11411_vm9, %v10470_v44, %v5731_v18  ;;  %v6630_v33 = vld [vmem:[#allocation3 + $0x6c] sm:$0xe] }
 0x2a2   : > { %v13100_v31 = vpop.permute.xlu1 %5825  ;;  %7922 = vrot.lane.b32.xlu0 %v10612_v58, %s11238_s24  ;;  %v5733_v28 = vrot.slane %v5731_v18, 4  ;;  %v5237_v63 = vrot.slane %v5235_v45, 4  ;;  %v5248_v50 = vshrl.u32 %v5040_v14, 16  ;;  %v7291_v55 = vrot.slane %v7290_v34, 4  ;;  %v6631_v25 = vld [vmem:[#allocation3 + $0x70] sm:$0xf] }
 0x2a3   : > { %v7286_v54 = vsel %vm11418_vm10, %v7281_v39, %v7285_v32  ;;  %v5240_v46 = vrot.slane %v5238_v16, 5  ;;  %v5246_v0 = vrot.slane %v5244_v52, 5  ;;  %v5254_v9 = vshll.u32 %v5041_v61, 16  ;;  %v11210_v32 = vld [vmem:[#allocation3 + $0x90] sm:$0xff]   ;;  %v5590_v16 = vld [vmem:[#allocation3 + $0x6c] sm:$0xe] }
 0x2a4   : > { %v5735_v1 = vsel %vm11411_vm9, %v5733_v28, %v5734_v43  ;;  %v5250_v2 = vrot.slane %v5248_v50, 4  ;;  %v10595_v7 = vrot.slane %v7671_v24, 9  ;;  %v7296_v57 = vsel %vm11418_vm10, %v7291_v55, %v7295_v27  ;;  %v6632_v15 = vld [vmem:[#allocation3 + $0x74] sm:$0x1]  ;;  %5014 = vst.msk [vmem:[#allocation5 + $0x60] sm:$0xff] %vm13994_vm15, %v11210_v32  ;;  %v11211_v27 = vld [vmem:[#allocation3 + $0x84] sm:$0xff]  }
 0x2a5   : > { %v13114_v51 = vpop.permute.xlu0 %7589  ;;  %v10486_v5 = vcombine.low %v5732_v37, %v5735_v1  ;;  %v5241_v26 = vor.u32 %v5240_v46, %v5237_v63  ;;  %v7797_v17 = vrot.slane %v7672_v30, 5  ;;  %v10577_v44 = vcombine.low %v7286_v54, %v7296_v57  ;;  %v5591_v50 = vld [vmem:[#allocation3 + $0x70] sm:$0xf]  ;;  %5013 = vst.msk [vmem:[#allocation5 + $0x58] sm:$0xff] %vm13994_vm15, %v11211_v27 }
 0x2a6   : > { %v13112_v8 = vpop.permute.xlu1 %6006  ;;  %v5251_v14 = vor.u32 %v5250_v2, %v5246_v0  ;;  %v5256_v11 = vrot.slane %v5254_v9, 5  ;;  %v7800_v58 = vrot.slane %v7673_v48, 5  ;;  %v10533_v43 = vrot.slane %v6633_v42, 9  ;;  %v5592_v42 = vld [vmem:[#allocation3 + $0x74] sm:$0x1] }
 0x2a7   : > { %5839 = vrot.lane.b32.xlu0 %v10486_v5, %s11234_s9  ;;  %v5242_v61 = vrot.slane %v5241_v26, 4  ;;  %v7798_v24 = vsel %vm11411_vm9, %v10595_v7, %v7797_v17  ;;  %v7799_v18 = vrot.slane %v7797_v17, 4  ;;  %7595 = vrot.lane.b32.xlu1 %v10577_v44, %s11239_s25  ;;  %v6767_v30 = vrot.slane %v6634_v40, 5  ;;  %v7129_v7 = vld [vmem:[#allocation3 + $0x78] sm:$0xf] }
 0x2a8   : > { %v5252_v45 = vrot.slane %v5251_v14, 4  ;;  %v6770_v39 = vrot.slane %v6635_v6, 5  ;;  %v10532_v34 = vrot.slane %v6630_v33, 9  ;;  %v6760_v28 = vrot.slane %v6631_v25, 5  ;;  %v7130_v17 = vld [vmem:[#allocation3 + $0x7c] sm:$0xf] }
 0x2a9   : > { %v13123_v52 = vpop.permute.xlu0 %6004  ;;  %v5247_v48 = vsel %vm11418_vm10, %v5242_v61, %v5246_v0  ;;  %v7801_v37 = vsel %vm11411_vm9, %v7799_v18, %v7800_v58  ;;  %v6763_v63 = vrot.slane %v6632_v15, 5  ;;  %v6768_v46 = vsel %vm11411_vm9, %v10533_v43, %v6767_v30  ;;  %v7131_v14 = vld [vmem:[#allocation3 + $0x80] sm:$0x1] }
 0x2aa   : > { %v5257_v54 = vsel %vm11418_vm10, %v5252_v45, %v5256_v11  ;;  %v10611_v55 = vcombine.low %v7798_v24, %v7801_v37  ;;  %v6769_v40 = vrot.slane %v6767_v30, 4  ;;  %v13134_v6 = vpop.permute.xlu1 %6547  ;;  %v6761_v1 = vsel %vm11411_vm9, %v10532_v34, %v6760_v28  ;;  %v6088_v11 = vld [vmem:[#allocation3 + $0x78] sm:$0xf]  ;;  %v6089_v24 = vld [vmem:[#allocation3 + $0x7c] sm:$0xf] }
 0x2ab   : > { %v10451_v0 = vcombine.low %v5247_v48, %v5257_v54  ;;  %v6762_v2 = vrot.slane %v6760_v28, 4  ;;  %v10469_v9 = vrot.slane %v5590_v16, 9  ;;  %v5724_v5 = vrot.slane %v5591_v50, 5  ;;  %v6090_v18 = vld [vmem:[#allocation3 + $0x80] sm:$0x1] }
 0x2ac   : > { %7920 = vrot.lane.b32.xlu0 %v10611_v55, %s11238_s24  ;;  %v6771_v57 = vsel %vm11411_vm9, %v6769_v40, %v6770_v39  ;;  %v5727_v26 = vrot.slane %v5592_v42, 5  ;;  %vm6589_vm7 = vcmask 326912   ;;  %vm6910_vm8 = vcmask 392512   ;;  %v11184_v55 = vld [vmem:[#allocation3 + $0x90] sm:$0xff]  }
 0x2ad   : > { %v6546_v33 = vpop.permute.xlu0 %6545  ;;  %5512 = vrot.lane.b32.xlu1 %v10451_v0, %s11228_s27  ;;  %v10549_v32 = vcombine.low %v6768_v46, %v6771_v57  ;;  %v6764_v44 = vsel %vm11411_vm9, %v6762_v2, %v6763_v63  ;;  %6590 = vst.msk [vmem:[#allocation5] sm:$0xff] %vm6589_vm7, %v13021_v35  ;;  %6591 = vst.msk [vmem:[#allocation5 + $0x8] sm:$0xff] %vm6589_vm7, %v13015_v62  ;;  %v5725_v25 = vsel %vm11411_vm9, %v10469_v9, %v5724_v5  ;;  %vm7954_vm1 = vcmask 589312  }
 0x2ae   : > { %6592 = vst.msk [vmem:[#allocation5 + $0x10] sm:$0xff] %vm6589_vm7, %v6546_v33  ;;  %v10548_v58 = vcombine.low %v6761_v1, %v6764_v44  ;;  %v5726_v15 = vrot.slane %v5724_v5, 4  ;;  %v7346_v62 = vshrl.u32 %v7129_v7, 16  ;;  %v7349_v35 = vshll.u32 %v7129_v7, 16  ;;  %v13168_v27 = vpop.permute.xlu1 %7046 }
 0x2af   : > { %6911 = vst.msk [vmem:[#allocation5] sm:$0xff] %vm6910_vm8, %v12962_v19  ;;  %6912 = vst.msk [vmem:[#allocation5 + $0x8] sm:$0xff] %vm6910_vm8, %v12967_v21  ;;  %v7355_v61 = vshll.u32 %v7130_v17, 16  ;;  %v11183_v21 = vld [vmem:[#allocation3 + $0x90] sm:$0xff]   ;;  %v6326_v43 = vshrl.u32 %v6088_v11, 16  ;;  %v6329_v48 = vshll.u32 %v6088_v11, 16 }
 0x2b0   : > { %6913 = vst.msk [vmem:[#allocation5 + $0x10] sm:$0xff] %vm6910_vm8, %v13094_v10  ;;  %6878 = vrot.lane.b32.xlu0 %v10548_v58, %s11237_s20  ;;  %v5728_v19 = vsel %vm11411_vm9, %v5726_v15, %v5727_v26  ;;  %v7365_v10 = vshll.u32 %v7131_v14, 16  ;;  %v7351_v45 = vrot.slane %v7349_v35, 5  ;;  %v6335_v28 = vshll.u32 %v6089_v24, 16 }
 0x2b1   : > { %7089 = vst.msk [vmem:[#allocation5] sm:$0xff] %vm7088_vm12, %v12906_v56  ;;  %7090 = vst.msk [vmem:[#allocation5 + $0x8] sm:$0xff] %vm7088_vm12, %v13027_v60  ;;  %v7359_v56 = vshrl.u32 %v7130_v17, 16  ;;  %6880 = vrot.lane.b32.xlu1 %v10549_v32, %s11237_s20  ;;  %v7348_v60 = vrot.slane %v7346_v62, 4  ;;  %v7357_v30 = vrot.slane %v7355_v61, 5  ;;  %v6328_v16 = vrot.slane %v6326_v43, 4 }
 0x2b2   : > { %7091 = vst.msk [vmem:[#allocation5 + $0x10] sm:$0xff] %vm7088_vm12, %v12975_v22  ;;  %v10485_v22 = vcombine.low %v5725_v25, %v5728_v19  ;;  %v7367_v34 = vrot.slane %v7365_v10, 5  ;;  %v6345_v63 = vshll.u32 %v6090_v18, 16  ;;  %v6331_v42 = vrot.slane %v6329_v48, 5 }
 0x2b3   : > { %7634 = vst.msk [vmem:[#allocation5] sm:$0xff] %vm7633_vm13, %v12993_v20  ;;  %7636 = vst.msk [vmem:[#allocation5 + $0x10] sm:$0xff] %vm7633_vm13, %v13114_v51  ;;  %v6085_v20 = vld [vmem:[#allocation3 + $0x6c] sm:$0xf]  ;;  %v7361_v39 = vrot.slane %v7359_v56, 4  ;;  %v7352_v37 = vor.u32 %v7351_v45, %v7348_v60  ;;  %v6339_v51 = vshrl.u32 %v6089_v24, 16 }
 0x2b4   : > { %7955 = vst.msk [vmem:[#allocation5] sm:$0xff] %vm7954_vm1, %v12937_v47  ;;  %7957 = vst.msk [vmem:[#allocation5 + $0x10] sm:$0xff] %vm7954_vm1, %v13046_v3  ;;  %7060 = vrot.lane.b32.xlu0 %v11183_v21, %s11236_s19  ;;  %vm8030_vm3 = vcmask 588800   ;;  %v13178_v47 = vld [vmem:[#allocation3 + $0x70] sm:$0xf]  ;;  %v6302_v54 = vshrl.u32 %v6085_v20, 16  ;;  %v6332_v2 = vor.u32 %v6331_v42, %v6328_v16  ;;  %v5507_v5 = vpop.permute.xlu1 %5506 }
 0x2b5   : > { %v7362_v50 = vor.u32 %v7361_v39, %v7357_v30  ;;  %5837 = vrot.lane.b32.xlu1 %v10485_v22, %s11234_s9  ;;  %v7353_v3 = vrot.slane %v7352_v37, 4  ;;  %v6337_v46 = vrot.slane %v6335_v28, 5  ;;  %v6341_v40 = vrot.slane %v6339_v51, 4  ;;  %v11039_v9 = vpop.f32.mrb[24].mxu0  ;;  %5551 = vst.msk [vmem:[#allocation5 + $0x20] sm:$0xff] %vm5546_vm2, %v5507_v5  ;;  %v11186_v28 = vld [vmem:[#allocation3 + $0x84] sm:$0xff]  }
 0x2b6   : > { %v6347_v0 = vrot.slane %v6345_v63, 5  ;;  %v6304_v7 = vrot.slane %v6302_v54, 4  ;;  %v6305_v57 = vshll.u32 %v6085_v20, 16  ;;  %v4230_v33 = vadd.f32 %v13032_v49, %v11039_v9  ;;  %v4221_v32 = vpop.f32.mrb[25].mxu0  ;;  %5872 = vst.msk [vmem:[#allocation5 + $0x20] sm:$0xff] %vm5867_vm5, %v13062_v13 }
 0x2b7   : > { %v7363_v1 = vrot.slane %v7362_v50, 4  ;;  %v7358_v26 = vsel %vm11418_vm10, %v7353_v3, %v7357_v30  ;;  %v6342_v17 = vor.u32 %v6341_v40, %v6337_v46  ;;  %v6311_v44 = vshll.u32 %v13178_v47, 16  ;;  %v11040_v25 = vpop.f32.mrb[26].mxu0  ;;  %v13191_v35 = vpop.permute.xlu0 %7914  ;;  %6049 = vst.msk [vmem:[#allocation5 + $0x20] sm:$0xff] %vm6044_vm6, %v13123_v52  ;;  %v4852_v50 = vld [vmem:[#allocation3 + $0xa8] sm:$0xf] }
 0x2b8   : > { %v6333_v11 = vrot.slane %v6332_v2, 4  ;;  %v4222_v58 = vadd.f32 %v13032_v49, %v4221_v32  ;;  %v6307_v62 = vrot.slane %v6305_v57, 5  ;;  %v4278_v19 = vmax.f32 %v4230_v33, 0.0  ;;  %v4224_v56 = vpop.f32.mrb[27].mxu0  ;;  %v4856_v57 = vld [vmem:[#allocation3 + $0xb0] sm:$0x1] }
 0x2b9   : > { %v7368_v14 = vsel %vm11418_vm10, %v7363_v1, %v7367_v34  ;;  %6018 = vrot.lane.b32.xlu1 %v11184_v55, %s11231_s30  ;;  %v6343_v24 = vrot.slane %v6342_v17, 4  ;;  %v4233_v21 = vadd.f32 %v13032_v49, %v11040_v25  ;;  %v4225_v13 = vadd.f32 %v13032_v49, %v4224_v56  ;;  %v6087_v49 = vld [vmem:[#allocation3 + $0x74] sm:$0x1]  ;;  %v11187_v55 = vld [vmem:[#allocation3 + $0x84] sm:$0xff]   ;;  %v4845_v1 = vld [vmem:[#allocation3 + $0x9c] sm:$0xf] }
 0x2ba   : > { %v10580_v61 = vcombine.low %v7358_v26, %v7368_v14  ;;  %v6338_v10 = vsel %vm11418_vm10, %v6333_v11, %v6337_v46  ;;  %v4276_v18 = vmax.f32 %v4222_v58, 0.0  ;;  %v6308_v43 = vor.u32 %v6307_v62, %v6304_v7  ;;  %v5048_v11 = vld [vmem:[#allocation3 + $0x78] sm:$0xf]  ;;  %v4849_v62 = vld [vmem:[#allocation3 + $0xa4] sm:$0x1] }
 0x2bb   : > { %v7971_v15 = vld [vmem:[#allocation5] sm:$0xff]  ;;  %v6348_v22 = vsel %vm11418_vm10, %v6343_v24, %v6347_v0  ;;  %v10897_v60 = vpack.c.bf16 %v4278_v19, %v4278_v19  ;;  %v4279_v45 = vmax.f32 %v4233_v21, 0.0  ;;  %v13204_v30 = vrot.slane %v6311_v44, 5  ;;  %v13209_v63 = vpop.permute.xlu0 %5831 }
 0x2bc   : > { %11055 = vmatprep.mubr.msk.bf16.mxu1 %vm8030_vm3, %v7971_v15  ;;  %7601 = vrot.lane.b32.xlu0 %v10580_v61, %s11239_s25  ;;  %v10517_v20 = vcombine.low %v6338_v10, %v6348_v22  ;;  %v10895_v39 = vpack.c.bf16 %v4276_v18, %v4276_v18  ;;  %v4277_v34 = vmax.f32 %v4225_v13, 0.0  ;;  %v13206_v52 = vrot.slane %v6308_v43, 4  ;;  %v5050_v10 = vld [vmem:[#allocation3 + $0x80] sm:$0x1] }
 0x2bd   : > { %v4658_v16 = vshrl.u32 %v10897_v60, 16  ;;  %v4661_v48 = vshll.u32 %v10897_v60, 16  ;;  %v10898_v37 = vpack.c.bf16 %v4279_v45, %v4279_v45  ;;  %v6315_v51 = vshrl.u32 %v13178_v47, 16  ;;  %v7588_v40 = vpop.permute.xlu1 %7587  ;;  %v7680_v45 = vld [vmem:[#allocation3 + $0x90] sm:$0xe] }
 0x2be   : > { %6559 = vrot.lane.b32.xlu1 %v10517_v20, %s11233_s8  ;;  %v4641_v42 = vshrl.u32 %v10895_v39, 16  ;;  %v4644_v54 = vshll.u32 %v10895_v39, 16  ;;  %v10896_v3 = vpack.c.bf16 %v4277_v34, %v4277_v34  ;;  %v6314_v46 = vsel %vm11418_vm10, %v13206_v52, %v13204_v30  ;;  %7635 = vst.msk [vmem:[#allocation5 + $0x8] sm:$0xff] %vm7633_vm13, %v7588_v40 }
 0x2bf   : > { %v4660_v0 = vrot.slane %v4658_v16, 7  ;;  %v4666_v2 = vshrl.u32 %v10898_v37, 16  ;;  %v4669_v9 = vshll.u32 %v10898_v37, 16  ;;  %v6317_v47 = vrot.slane %v6315_v51, 4  ;;  %7956 = vst.msk [vmem:[#allocation5 + $0x8] sm:$0xff] %vm7954_vm1, %v13077_v59 }
 0x2c0   : > { %6016 = vrot.lane.b32.xlu0 %v11186_v28, %s11231_s30  ;;  %v4643_v7 = vrot.slane %v4641_v42, 7  ;;  %v4649_v5 = vshrl.u32 %v10896_v3, 16  ;;  %v4652_v26 = vshll.u32 %v10896_v3, 16  ;;  %v6321_v17 = vshll.u32 %v6087_v49, 16  ;;  %v5049_v59 = vld [vmem:[#allocation3 + $0x7c] sm:$0xf] }
 0x2c1   : > { %v4663_v33 = vor.u32 %v4661_v48, %v4660_v0  ;;  %v4664_v32 = vrot.slane %v4660_v0, 4  ;;  %v4668_v44 = vrot.slane %v4666_v2, 7  ;;  %v6318_v14 = vor.u32 %v6317_v47, %v13204_v30  ;;  %v7126_v30 = vld [vmem:[#allocation3 + $0x6c] sm:$0xf]  ;;  %v7681_v48 = vld [vmem:[#allocation3 + $0x94] sm:$0xf] }
 0x2c2   : > { %v4646_v58 = vor.u32 %v4644_v54, %v4643_v7  ;;  %v4647_v25 = vrot.slane %v4643_v7, 4  ;;  %7058 = vrot.lane.b32.xlu1 %v11187_v55, %s11236_s19  ;;  %v4651_v15 = vrot.slane %v4649_v5, 7  ;;  %v6323_v61 = vrot.slane %v6321_v17, 5  ;;  %v13224_v18 = vpop.permute.xlu0 %7912  ;;  %v5505_v20 = vpop.permute.xlu1 %5504  ;;  %v7682_v37 = vld [vmem:[#allocation3 + $0x98] sm:$0x1] }
 0x2c3   : > { %v4853_v24 = vsel %vm12610_vm14, %v4663_v33, %v4852_v50  ;;  %v4671_v19 = vor.u32 %v4669_v9, %v4668_v44  ;;  %v4673_v21 = vrot.slane %v4668_v44, 4  ;;  %v6319_v56 = vrot.slane %v6318_v14, 4  ;;  %5550 = vst.msk [vmem:[#allocation5 + $0x18] sm:$0xff] %vm5546_vm2, %v5505_v20  ;;  %v7127_v42 = vld [vmem:[#allocation3 + $0x70] sm:$0xf] }
 0x2c4   : > { %4854 = vst [vmem:[#allocation3 + $0xa8] sm:$0xf] %v4853_v24  ;;  %v4846_v13 = vsel %vm12610_vm14, %v4646_v58, %v4845_v1  ;;  %v4654_v43 = vor.u32 %v4652_v26, %v4651_v15  ;;  %v4656_v22 = vrot.slane %v4651_v15, 4  ;;  %v5307_v60 = vshrl.u32 %v5048_v11, 16  ;;  %5871 = vst.msk [vmem:[#allocation5 + $0x18] sm:$0xff] %vm5867_vm5, %v13100_v31 }
 0x2c5   : > { %4847 = vst [vmem:[#allocation3 + $0x9c] sm:$0xf] %v4846_v13  ;;  %v4672_v39 = vsel %vm11426_vm11, %v4664_v32, %v4671_v19  ;;  %v4857_v34 = vsel %vm12618_vm4, %v4673_v21, %v4856_v57  ;;  %v6324_v52 = vsel %vm11418_vm10, %v6319_v56, %v6323_v61  ;;  %v5310_v16 = vshll.u32 %v5048_v11, 16  ;;  %v7128_v0 = vld [vmem:[#allocation3 + $0x74] sm:$0x1]  ;;  %6048 = vst.msk [vmem:[#allocation5 + $0x18] sm:$0xff] %vm6044_vm6, %v13001_v41 }
 0x2c6   : > { %4855 = vst.msk [vmem:[#allocation3 + $0xac] sm:$0xf] %vm4284_vm0, %v4672_v39  ;;  %4858 = vst [vmem:[#allocation3 + $0xb0] sm:$0x1] %v4857_v34  ;;  %v4655_v28 = vsel %vm11426_vm11, %v4647_v25, %v4654_v43  ;;  %v4850_v49 = vsel %vm12618_vm4, %v4656_v22, %v4849_v62  ;;  %v10516_v51 = vcombine.low %v6314_v46, %v6324_v52  ;;  %v5309_v50 = vrot.slane %v5307_v60, 4  ;;  %v13245_v1 = vpop.permute.xlu0 %6870  ;;  %v13250_v7 = vpop.permute.xlu1 %6872 }
 0x2c7   : > { %4848 = vst.msk [vmem:[#allocation3 + $0xa0] sm:$0xf] %vm4284_vm0, %v4655_v28  ;;  %4851 = vst [vmem:[#allocation3 + $0xa4] sm:$0x1] %v4850_v49  ;;  %v5312_v54 = vrot.slane %v5310_v16, 5  ;;  %v5316_v55 = vshll.u32 %v5049_v59, 16 }
 0x2c8   : > { %v5320_v3 = vshrl.u32 %v5049_v59, 16  ;;  %v5326_v40 = vshll.u32 %v5050_v10, 16  ;;  %6557 = vrot.lane.b32.xlu0 %v10516_v51, %s11233_s8  ;;  %v10598_v46 = vrot.slane %v7680_v45, 9  ;;  %v7818_v2 = vrot.slane %v7681_v48, 5  ;;  %v5599_v31 = vld [vmem:[#allocation3 + $0x90] sm:$0xe] }
 0x2c9   : > { %v7821_v9 = vrot.slane %v7682_v37, 5  ;;  %v7322_v47 = vshrl.u32 %v7126_v30, 16  ;;  %6593 = vst.msk [vmem:[#allocation5 + $0x18] sm:$0xff] %vm6589_vm7, %v13134_v6  ;;  %v5313_v57 = vor.u32 %v5312_v54, %v5309_v50  ;;  %v5318_v5 = vrot.slane %v5316_v55, 5  ;;  %v5600_v33 = vld [vmem:[#allocation3 + $0x94] sm:$0xf] }
 0x2ca   : > { %v5322_v26 = vrot.slane %v5320_v3, 4  ;;  %v5328_v17 = vrot.slane %v5326_v40, 5  ;;  %6914 = vst.msk [vmem:[#allocation5 + $0x18] sm:$0xff] %vm6910_vm8, %v13089_v53  ;;  %v7819_v41 = vsel %vm11411_vm9, %v10598_v46, %v7818_v2  ;;  %v7820_v32 = vrot.slane %v7818_v2, 4  ;;  %v5601_v11 = vld [vmem:[#allocation3 + $0x98] sm:$0x1]  ;;  %v13258_v61 = vpop.permute.xlu0 %7052  ;;  %v13264_v22 = vpop.permute.xlu1 %5829 }
 0x2cb   : > { %v7324_v44 = vrot.slane %v7322_v47, 4  ;;  %v7325_v14 = vshll.u32 %v7126_v30, 16  ;;  %v5045_v58 = vld [vmem:[#allocation3 + $0x6c] sm:$0xf]  ;;  %7092 = vst.msk [vmem:[#allocation5 + $0x18] sm:$0xff] %vm7088_vm12, %v13168_v27  ;;  %v5314_v6 = vrot.slane %v5313_v57, 4 }
 0x2cc   : > { %v5323_v25 = vor.u32 %v5322_v26, %v5318_v5  ;;  %v7331_v15 = vshll.u32 %v7127_v42, 16  ;;  %v7335_v62 = vshrl.u32 %v7127_v42, 16  ;;  %v7822_v53 = vsel %vm11411_vm9, %v7820_v32, %v7821_v9  ;;  %v5046_v56 = vld [vmem:[#allocation3 + $0x70] sm:$0xf]  ;;  %v5047_v27 = vld [vmem:[#allocation3 + $0x74] sm:$0x1] }
 0x2cd   : > { %v7327_v24 = vrot.slane %v7325_v14, 5  ;;  %v7341_v19 = vshll.u32 %v7128_v0, 16  ;;  %v10472_v21 = vrot.slane %v5599_v31, 9  ;;  %v5319_v59 = vsel %vm11418_vm10, %v5314_v6, %v5318_v5  ;;  %v7677_v39 = vld [vmem:[#allocation3 + $0x84] sm:$0xe] }
 0x2ce   : > { %v5324_v10 = vrot.slane %v5323_v25, 4  ;;  %v10614_v13 = vcombine.low %v7819_v41, %v7822_v53  ;;  %v7333_v43 = vrot.slane %v7331_v15, 5  ;;  %v7337_v45 = vrot.slane %v7335_v62, 4  ;;  %v7678_v50 = vld [vmem:[#allocation3 + $0x88] sm:$0xf]  ;;  %v11212_v5 = vld [vmem:[#allocation3 + $0x9c] sm:$0xff]   ;;  %v13278_v14 = vpop.permute.xlu1 %6010 }
 0x2cf   : > { %v7328_v60 = vor.u32 %v7327_v24, %v7324_v44  ;;  %v7343_v30 = vrot.slane %v7341_v19, 5  ;;  %v5745_v20 = vrot.slane %v5600_v33, 5  ;;  %v5748_v52 = vrot.slane %v5601_v11, 5  ;;  %v7679_v42 = vld [vmem:[#allocation3 + $0x8c] sm:$0x1]  ;;  %v13271_v54 = vpop.permute.xlu0 %7593  ;;  %5015 = vst.msk [vmem:[#allocation5 + $0x68] sm:$0xff] %vm13994_vm15, %v11212_v5 }
 0x2d0   : > { %v5329_v34 = vsel %vm11418_vm10, %v5324_v10, %v5328_v17  ;;  %7926 = vrot.lane.b32.xlu0 %v10614_v13, %s11238_s24  ;;  %v5283_v16 = vshrl.u32 %v5045_v58, 16  ;;  %v5286_v48 = vshll.u32 %v5045_v58, 16  ;;  %v7338_v49 = vor.u32 %v7337_v45, %v7333_v43  ;;  %v6639_v46 = vld [vmem:[#allocation3 + $0x90] sm:$0xe]  ;;  %v6640_v57 = vld [vmem:[#allocation3 + $0x94] sm:$0xf] }
 0x2d1   : > { %v10454_v37 = vcombine.low %v5319_v59, %v5329_v34  ;;  %v7329_v28 = vrot.slane %v7328_v60, 4  ;;  %v5746_v51 = vsel %vm11411_vm9, %v10472_v21, %v5745_v20  ;;  %v5747_v55 = vrot.slane %v5745_v20, 4  ;;  %v6641_v32 = vld [vmem:[#allocation3 + $0x98] sm:$0x1]  ;;  %v6636_v44 = vld [vmem:[#allocation3 + $0x84] sm:$0xe] }
 0x2d2   : > { %v5285_v3 = vrot.slane %v5283_v16, 4  ;;  %v5288_v40 = vrot.slane %v5286_v48, 5  ;;  %v5292_v0 = vshll.u32 %v5046_v56, 16  ;;  %v7339_v9 = vrot.slane %v7338_v49, 4  ;;  %v6637_v15 = vld [vmem:[#allocation3 + $0x88] sm:$0xf] }
 0x2d3   : > { %5518 = vrot.lane.b32.xlu1 %v10454_v37, %s11228_s27  ;;  %v7334_v2 = vsel %vm11418_vm10, %v7329_v28, %v7333_v43  ;;  %v5296_v47 = vshrl.u32 %v5046_v56, 16  ;;  %v5302_v31 = vshll.u32 %v5047_v27, 16  ;;  %v5749_v26 = vsel %vm11411_vm9, %v5747_v55, %v5748_v52  ;;  %v6638_v62 = vld [vmem:[#allocation3 + $0x8c] sm:$0x1]  ;;  %v13282_v53 = vpop.permute.xlu0 %6008  ;;  %v5596_v59 = vld [vmem:[#allocation3 + $0x84] sm:$0xe] }
 0x2d4   : > { %v5289_v17 = vor.u32 %v5288_v40, %v5285_v3  ;;  %v5294_v33 = vrot.slane %v5292_v0, 5  ;;  %v10597_v41 = vrot.slane %v7677_v39, 9  ;;  %v7344_v11 = vsel %vm11418_vm10, %v7339_v9, %v7343_v30  ;;  %v11213_v10 = vld [vmem:[#allocation3 + $0xa8] sm:$0xff]   ;;  %v7135_v3 = vld [vmem:[#allocation3 + $0x90] sm:$0xf]  ;;  %v13296_v40 = vpop.permute.xlu1 %6551 }
 0x2d5   : > { %v10488_v58 = vcombine.low %v5746_v51, %v5749_v26  ;;  %v5298_v6 = vrot.slane %v5296_v47, 4  ;;  %v5304_v25 = vrot.slane %v5302_v31, 5  ;;  %v10579_v24 = vcombine.low %v7334_v2, %v7344_v11  ;;  %v5597_v45 = vld [vmem:[#allocation3 + $0x88] sm:$0xf]  ;;  %5016 = vst.msk [vmem:[#allocation5 + $0x70] sm:$0xff] %vm13994_vm15, %v11213_v10 }
 0x2d6   : > { %v5290_v19 = vrot.slane %v5289_v17, 4  ;;  %v7811_v21 = vrot.slane %v7678_v50, 5  ;;  %v7814_v56 = vrot.slane %v7679_v42, 5  ;;  %v10535_v43 = vrot.slane %v6639_v46, 9  ;;  %v5598_v28 = vld [vmem:[#allocation3 + $0x8c] sm:$0x1] }
 0x2d7   : > { %5843 = vrot.lane.b32.xlu0 %v10488_v58, %s11234_s9  ;;  %v5299_v13 = vor.u32 %v5298_v6, %v5294_v33  ;;  %v6781_v27 = vrot.slane %v6640_v57, 5  ;;  %v6784_v60 = vrot.slane %v6641_v32, 5  ;;  %7599 = vrot.lane.b32.xlu1 %v10579_v24, %s11239_s25  ;;  %v10534_v34 = vrot.slane %v6636_v44, 9  ;;  %v6550_v49 = vpop.permute.xlu0 %6549  ;;  %v7136_v47 = vld [vmem:[#allocation3 + $0x94] sm:$0xf] }
 0x2d8   : > { %v5295_v30 = vsel %vm11418_vm10, %v5290_v19, %v5294_v33  ;;  %v7812_v20 = vsel %vm11411_vm9, %v10597_v41, %v7811_v21  ;;  %v7813_v39 = vrot.slane %v7811_v21, 4  ;;  %v6774_v37 = vrot.slane %v6637_v15, 5  ;;  %6594 = vst.msk [vmem:[#allocation5 + $0x20] sm:$0xff] %vm6589_vm7, %v6550_v49  ;;  %v7137_v31 = vld [vmem:[#allocation3 + $0x98] sm:$0x1] }
 0x2d9   : > { %v5300_v52 = vrot.slane %v5299_v13, 4  ;;  %v6782_v16 = vsel %vm11411_vm9, %v10535_v43, %v6781_v27  ;;  %v6783_v48 = vrot.slane %v6781_v27, 4  ;;  %v6777_v50 = vrot.slane %v6638_v62, 5  ;;  %6915 = vst.msk [vmem:[#allocation5 + $0x20] sm:$0xff] %vm6910_vm8, %v13245_v1  ;;  %v6094_v11 = vld [vmem:[#allocation3 + $0x90] sm:$0xf]  ;;  %v13326_v43 = vpop.permute.xlu1 %7050 }
 0x2da   : > { %v7815_v51 = vsel %vm11411_vm9, %v7813_v39, %v7814_v56  ;;  %v10471_v42 = vrot.slane %v5596_v59, 9  ;;  %v5738_v55 = vrot.slane %v5597_v45, 5  ;;  %v6775_v9 = vsel %vm11411_vm9, %v10534_v34, %v6774_v37  ;;  %7093 = vst.msk [vmem:[#allocation5 + $0x20] sm:$0xff] %vm7088_vm12, %v13102_v12  ;;  %v6095_v15 = vld [vmem:[#allocation3 + $0x94] sm:$0xf] }
 0x2db   : > { %v5305_v0 = vsel %vm11418_vm10, %v5300_v52, %v5304_v25  ;;  %v10613_v46 = vcombine.low %v7812_v20, %v7815_v51  ;;  %v6785_v2 = vsel %vm11411_vm9, %v6783_v48, %v6784_v60  ;;  %v6776_v26 = vrot.slane %v6774_v37, 4  ;;  %7638 = vst.msk [vmem:[#allocation5 + $0x20] sm:$0xff] %vm7633_vm13, %v13271_v54  ;;  %v6096_v21 = vld [vmem:[#allocation3 + $0x98] sm:$0x1]  ;;  %v13324_v54 = vld [vmem:[%s13987_s3 + $0x20] ss:$0 sps:$4 sm:$0xff]  }
 0x2dc   : > { %v10453_v57 = vcombine.low %v5295_v30, %v5305_v0  ;;  %v10551_v5 = vcombine.low %v6782_v16, %v6785_v2  ;;  %v5739_v17 = vsel %vm11411_vm9, %v10471_v42, %v5738_v55  ;;  %v5740_v33 = vrot.slane %v5738_v55, 4  ;;  %7959 = vst.msk [vmem:[#allocation5 + $0x20] sm:$0xff] %vm7954_vm1, %v13191_v35  ;;  %v6091_v30 = vld [vmem:[#allocation3 + $0x84] sm:$0xf] }
 0x2dd   : > { %7924 = vrot.lane.b32.xlu0 %v10613_v46, %s11238_s24  ;;  %v5741_v41 = vrot.slane %v5598_v28, 5  ;;  %v7394_v32 = vshrl.u32 %v7135_v3, 16  ;;  %v7397_v44 = vshll.u32 %v7135_v3, 16  ;;  %v6778_v1 = vsel %vm11411_vm9, %v6776_v26, %v6777_v50  ;;  %v11217_v3 = vld [vmem:[%s13986_s2] ss:$0 sm:$0xff] }
 0x2de   : > { %5516 = vrot.lane.b32.xlu1 %v10453_v57, %s11228_s27  ;;  %v7403_v58 = vshll.u32 %v7136_v47, 16  ;;  %v7407_v6 = vshrl.u32 %v7136_v47, 16  ;;  %v7413_v25 = vshll.u32 %v7137_v31, 16  ;;  %v10550_v12 = vcombine.low %v6775_v9, %v6778_v1  ;;  %v11192_v31 = vld [vmem:[#allocation3 + $0xa8] sm:$0xff]  }
 0x2df   : > { %v5742_v62 = vsel %vm11411_vm9, %v5740_v33, %v5741_v41  ;;  %v7396_v24 = vrot.slane %v7394_v32, 4  ;;  %v7399_v19 = vrot.slane %v7397_v44, 5  ;;  %v6374_v27 = vshrl.u32 %v6094_v11, 16 }
 0x2e0   : > { %v10487_v56 = vcombine.low %v5739_v17, %v5742_v62  ;;  %v7405_v59 = vrot.slane %v7403_v58, 5  ;;  %v7409_v10 = vrot.slane %v7407_v6, 4  ;;  %v7415_v13 = vrot.slane %v7413_v25, 5  ;;  %v6092_v17 = vld [vmem:[#allocation3 + $0x88] sm:$0xf] }
 0x2e1   : > { %6882 = vrot.lane.b32.xlu0 %v10550_v12, %s11237_s20  ;;  %v7400_v35 = vor.u32 %v7399_v19, %v7396_v24  ;;  %v6377_v60 = vshll.u32 %v6094_v11, 16  ;;  %v6383_v45 = vshll.u32 %v6095_v15, 16  ;;  %v6387_v39 = vshrl.u32 %v6095_v15, 16 }
 0x2e2   : > { %6884 = vrot.lane.b32.xlu1 %v10551_v5, %s11237_s20  ;;  %v7410_v20 = vor.u32 %v7409_v10, %v7405_v59  ;;  %v6393_v34 = vshll.u32 %v6096_v21, 16  ;;  %vm8079_vm15 = vcmask 1043456   ;;  %v6376_v16 = vrot.slane %v6374_v27, 4 }
 0x2e3   : > { %v7401_v52 = vrot.slane %v7400_v35, 4  ;;  %v6379_v48 = vrot.slane %v6377_v60, 5  ;;  %v6385_v37 = vrot.slane %v6383_v45, 5  ;;  %11088 = vmatprep.subr.msk.bf16.mxu1 %vm8079_vm15, %v13324_v54  ;;  %v6389_v51 = vrot.slane %v6387_v39, 4  ;;  %v11194_v60 = vld [vmem:[#allocation3 + $0x9c] sm:$0xff]  }
 0x2e4   : > { %v7411_v28 = vrot.slane %v7410_v20, 4  ;;  %v6395_v50 = vrot.slane %v6393_v34, 5  ;;  %v6350_v42 = vshrl.u32 %v6091_v30, 16  ;;  %v6353_v9 = vshll.u32 %v6091_v30, 16  ;;  %v5511_v41 = vpop.permute.xlu1 %5510  ;;  %v4866_v20 = vld [vmem:[#allocation3 + $0xc0] sm:$0xf] }
 0x2e5   : > { %v7406_v55 = vsel %vm11418_vm10, %v7401_v52, %v7405_v59  ;;  %v6380_v2 = vor.u32 %v6379_v48, %v6376_v16  ;;  %v6390_v5 = vor.u32 %v6389_v51, %v6385_v37  ;;  %5553 = vst.msk [vmem:[#allocation5 + $0x30] sm:$0xff] %vm5546_vm2, %v5511_v41  ;;  %v13341_v6 = vpop.permute.xlu0 %7918  ;;  %v8081_v4 = vsel %vm8079_vm15, %v13324_v54, 0 }
 0x2e6   : > { %5841 = vrot.lane.b32.xlu1 %v10487_v56, %s11234_s9  ;;  %v7416_v47 = vsel %vm11418_vm10, %v7411_v28, %v7415_v13  ;;  %v6352_v33 = vrot.slane %v6350_v42, 4  ;;  %v6355_v62 = vrot.slane %v6353_v9, 5  ;;  %5874 = vst.msk [vmem:[#allocation5 + $0x30] sm:$0xff] %vm5867_vm5, %v13209_v63  ;;  %v6359_v56 = vshll.u32 %v6092_v17, 16  ;;  %v4859_v28 = vld [vmem:[#allocation3 + $0xb4] sm:$0xf]  ;;  %11054 = vmatpush3.bf16.msra.mxu1 %v8081_v4 }
 0x2e7   : > { %v10582_v32 = vcombine.low %v7406_v55, %v7416_v47  ;;  %v6381_v11 = vrot.slane %v6380_v2, 4  ;;  %v6391_v15 = vrot.slane %v6390_v5, 4  ;;  %6051 = vst.msk [vmem:[#allocation5 + $0x30] sm:$0xff] %vm6044_vm6, %v13282_v53  ;;  %v4870_v55 = vld [vmem:[#allocation3 + $0xc8] sm:$0x1]  ;;  %v6363_v2 = vshrl.u32 %v6092_v17, 16 }
 0x2e8   : > { %v6356_v35 = vor.u32 %v6355_v62, %v6352_v33  ;;  %v13368_v17 = vld [vmem:[#allocation3 + $0xa4] sm:$0x1]  ;;  %vm9922_vm15 = vcmask 1045509  }
 0x2e9   : > { %7605 = vrot.lane.b32.xlu0 %v10582_v32, %s11239_s25  ;;  %v6386_v19 = vsel %vm11418_vm10, %v6381_v11, %v6385_v37  ;;  %v6396_v10 = vsel %vm11418_vm10, %v6391_v15, %v6395_v50  ;;  %v13358_v50 = vrot.slane %v6359_v56, 5  ;;  %v11197_v11 = vld [vmem:[#allocation3 + $0x9c] sm:$0xff]  }
 0x2ea   : > { %6022 = vrot.lane.b32.xlu1 %v11192_v31, %s11231_s30  ;;  %v10519_v45 = vcombine.low %v6386_v19, %v6396_v10  ;;  %v13353_v16 = vrot.slane %v6356_v35, 4  ;;  %v13355_v48 = vpop.permute.xlu0 %5835  ;;  %v5055_v35 = vld [vmem:[#allocation3 + $0x94] sm:$0xf] }
 0x2eb   : > { %v7592_v53 = vpop.permute.xlu1 %7591  ;;  %v5364_v38 = vshll.u32 %v5055_v35, 16 }
 0x2ec   : > { %7637 = vst.msk [vmem:[#allocation5 + $0x18] sm:$0xff] %vm7633_vm13, %v7592_v53  ;;  %v6362_v5 = vsel %vm11418_vm10, %v13353_v16, %v13358_v50  ;;  %v6097_v53 = vld [vmem:[#allocation3 + $0x9c] sm:$0xf] }
 0x2ed   : > { %6020 = vrot.lane.b32.xlu0 %v11194_v60, %s11231_s30  ;;  %7958 = vst.msk [vmem:[#allocation5 + $0x18] sm:$0xff] %vm7954_vm1, %v13224_v18 }
 0x2ee   : > { %6563 = vrot.lane.b32.xlu1 %v10519_v45, %s11233_s8 }
 0x2f0   : > { %v13376_v56 = vpop.permute.xlu0 %7916 }
 0x2f2   : > { %v11043_v49 = vpop.f32.mrb[28].mxu0  ;;  %7062 = vrot.lane.b32.xlu1 %v11197_v11, %s11236_s19  ;;  %v7133_v11 = vld [vmem:[#allocation3 + $0x88] sm:$0xf] }
 0x2f3   : > { %v4246_v0 = vadd.f32 %v11217_v3, %v11043_v49  ;;  %v4237_v46 = vpop.f32.mrb[29].mxu0 }
 0x2f4   : > { %v4238_v57 = vadd.f32 %v11217_v3, %v4237_v46  ;;  %v11044_v26 = vpop.f32.mrb[30].mxu0  ;;  %v6093_v46 = vld [vmem:[#allocation3 + $0x8c] sm:$0x1] }
 0x2f5   : > { %v4282_v44 = vmax.f32 %v4246_v0, 0.0  ;;  %v4249_v1 = vadd.f32 %v11217_v3, %v11044_v26  ;;  %v4240_v58 = vpop.f32.mrb[31].mxu0  ;;  %v7683_v26 = vld [vmem:[#allocation3 + $0x9c] sm:$0xe] }
 0x2f6   : > { %v4280_v25 = vmax.f32 %v4238_v57, 0.0  ;;  %v4241_v12 = vadd.f32 %v11217_v3, %v4240_v58  ;;  %v4863_v57 = vld [vmem:[#allocation3 + $0xbc] sm:$0x1]  ;;  %v5054_v58 = vld [vmem:[#allocation3 + $0x90] sm:$0xf] }
 0x2f7   : > { %v10901_v24 = vpack.c.bf16 %v4282_v44, %v4282_v44  ;;  %v4283_v21 = vmax.f32 %v4249_v1, 0.0  ;;  %v6365_v44 = vrot.slane %v6363_v2, 4  ;;  %v7684_v1 = vld [vmem:[#allocation3 + $0xa0] sm:$0xf]  ;;  %v5358_v16 = vshll.u32 %v5054_v58, 16 }
 0x2f8   : > { %v10899_v59 = vpack.c.bf16 %v4280_v25, %v4280_v25  ;;  %v4281_v13 = vmax.f32 %v4241_v12, 0.0  ;;  %v6369_v12 = vshll.u32 %v6093_v46, 16  ;;  %v7825_v54 = vrot.slane %v7684_v1, 5 }
 0x2f9   : > { %v4692_v63 = vshrl.u32 %v10901_v24, 16  ;;  %v4695_v27 = vshll.u32 %v10901_v24, 16  ;;  %v10902_v30 = vpack.c.bf16 %v4283_v21, %v4283_v21  ;;  %v6366_v21 = vor.u32 %v6365_v44, %v13358_v50 }
 0x2fa   : > { %v4675_v39 = vshrl.u32 %v10899_v59, 16  ;;  %v4678_v34 = vshll.u32 %v10899_v59, 16  ;;  %v10900_v52 = vpack.c.bf16 %v4281_v13, %v4281_v13  ;;  %v6371_v13 = vrot.slane %v6369_v12, 5 }
 0x2fb   : > { %v4694_v37 = vrot.slane %v4692_v63, 7  ;;  %v4700_v49 = vshrl.u32 %v10902_v30, 16  ;;  %v4703_v51 = vshll.u32 %v10902_v30, 16  ;;  %v5056_v63 = vld [vmem:[#allocation3 + $0x98] sm:$0x1]  ;;  %v6367_v30 = vrot.slane %v6366_v21, 4 }
 0x2fc   : > { %v4677_v42 = vrot.slane %v4675_v39, 7  ;;  %v4683_v3 = vshrl.u32 %v10900_v52, 16  ;;  %v4686_v0 = vshll.u32 %v10900_v52, 16  ;;  %v7972_v39 = vld [vmem:[#allocation5 + $0x8] sm:$0xff]  ;;  %v5355_v52 = vshrl.u32 %v5054_v58, 16 }
 0x2fd   : > { %v4697_v9 = vor.u32 %v4695_v27, %v4694_v37  ;;  %v4698_v47 = vrot.slane %v4694_v37, 4  ;;  %v4702_v31 = vrot.slane %v4700_v49, 7  ;;  %v5509_v27 = vpop.permute.xlu1 %5508  ;;  %v6372_v36 = vsel %vm11418_vm10, %v6367_v30, %v6371_v13  ;;  %v6098_v49 = vld [vmem:[#allocation3 + $0xa0] sm:$0xf]  ;;  %11056 = vmatmul.mubr.msk.bf16.vlgmr.msra.gmra.mrb[0].mxu1 %vm8030_vm3, %v7972_v39 }
 0x2fe   : > { %v4680_v33 = vor.u32 %v4678_v34, %v4677_v42  ;;  %v4681_v41 = vrot.slane %v4677_v42, 4  ;;  %v4685_v32 = vrot.slane %v4683_v3, 7  ;;  %5552 = vst.msk [vmem:[#allocation5 + $0x28] sm:$0xff] %vm5546_vm2, %v5509_v27  ;;  %v7828_v34 = vrot.slane %v13368_v17, 5  ;;  %v6643_v21 = vld [vmem:[#allocation3 + $0xa0] sm:$0xf] }
 0x2ff   : > { %v4867_v18 = vsel %vm12610_vm14, %v4697_v9, %v4866_v20  ;;  %v4705_v25 = vor.u32 %v4703_v51, %v4702_v31  ;;  %v4707_v15 = vrot.slane %v4702_v31, 4  ;;  %v10599_v20 = vrot.slane %v7683_v26, 9  ;;  %5873 = vst.msk [vmem:[#allocation5 + $0x28] sm:$0xff] %vm5867_vm5, %v13264_v22  ;;  %v13398_v51 = vpop.permute.xlu0 %6874  ;;  %v7973_v22 = vld [vmem:[#allocation5 + $0x10] sm:$0xff]  ;;  %v6099_v31 = vld [vmem:[#allocation3 + $0xa4] sm:$0x1] }
 0x300   : > { %4868 = vst [vmem:[#allocation3 + $0xc0] sm:$0xf] %v4867_v18  ;;  %v4860_v62 = vsel %vm12610_vm14, %v4680_v33, %v4859_v28  ;;  %v4688_v24 = vor.u32 %v4686_v0, %v4685_v32  ;;  %v4690_v19 = vrot.slane %v4685_v32, 4  ;;  %v5368_v37 = vshrl.u32 %v5055_v35, 16  ;;  %6050 = vst.msk [vmem:[#allocation5 + $0x28] sm:$0xff] %vm6044_vm6, %v13112_v8  ;;  %11059 = vmatprep.mubr.msk.bf16.mxu1 %vm8030_vm3, %v7973_v22 }
 0x301   : > { %4861 = vst [vmem:[#allocation3 + $0xb4] sm:$0xf] %v4860_v62  ;;  %v4706_v59 = vsel %vm11426_vm11, %v4698_v47, %v4705_v25  ;;  %v4871_v10 = vsel %vm12618_vm4, %v4707_v15, %v4870_v55  ;;  %v5374_v28 = vshll.u32 %v5056_v63, 16  ;;  %v10518_v50 = vcombine.low %v6362_v5, %v6372_v36  ;;  %v7132_v0 = vld [vmem:[#allocation3 + $0x84] sm:$0xf]  ;;  %6595 = vst.msk [vmem:[#allocation5 + $0x28] sm:$0xff] %vm6589_vm7, %v13296_v40  ;;  %v13405_v46 = vpop.permute.xlu1 %6876 }
 0x302   : > { %4869 = vst.msk [vmem:[#allocation3 + $0xc4] sm:$0xf] %vm4284_vm0, %v4706_v59  ;;  %4872 = vst [vmem:[#allocation3 + $0xc8] sm:$0x1] %v4871_v10  ;;  %v4689_v60 = vsel %vm11426_vm11, %v4681_v41, %v4688_v24  ;;  %v4864_v45 = vsel %vm12618_vm4, %v4690_v19, %v4863_v57  ;;  %v7826_v42 = vsel %vm11411_vm9, %v10599_v20, %v7825_v54  ;;  %v7827_v55 = vrot.slane %v7825_v54, 4  ;;  %v7974_v59 = vld [vmem:[#allocation5 + $0x18] sm:$0xff] }
 0x303   : > { %4862 = vst.msk [vmem:[#allocation3 + $0xb8] sm:$0xf] %vm4284_vm0, %v4689_v60  ;;  %4865 = vst [vmem:[#allocation3 + $0xbc] sm:$0x1] %v4864_v45  ;;  %v5357_v3 = vrot.slane %v5355_v52, 4  ;;  %v5360_v2 = vrot.slane %v5358_v16, 5  ;;  %6561 = vrot.lane.b32.xlu0 %v10518_v50, %s11233_s8  ;;  %v13415_v1 = vpop.permute.xlu0 %7056 }
 0x304   : > { %v5366_v9 = vrot.slane %v5364_v38, 5  ;;  %v5370_v8 = vrot.slane %v5368_v37, 4  ;;  %v5376_v47 = vrot.slane %v5374_v28, 5  ;;  %6916 = vst.msk [vmem:[#allocation5 + $0x28] sm:$0xff] %vm6910_vm8, %v13250_v7  ;;  %v7829_v57 = vsel %vm11411_vm9, %v7827_v55, %v7828_v34  ;;  %v7134_v25 = vld [vmem:[#allocation3 + $0x8c] sm:$0x1] }
 0x305   : > { %v6398_v5 = vshrl.u32 %v6097_v53, 16  ;;  %v6401_v26 = vshll.u32 %v6097_v53, 16  ;;  %v6407_v40 = vshll.u32 %v6098_v49, 16  ;;  %7094 = vst.msk [vmem:[#allocation5 + $0x28] sm:$0xff] %vm7088_vm12, %v13326_v43  ;;  %v10615_v33 = vcombine.low %v7826_v42, %v7829_v57  ;;  %v6642_v15 = vld [vmem:[#allocation3 + $0x9c] sm:$0xe]  ;;  %v13417_v43 = vpop.permute.xlu1 %5833  ;;  %11060 = vmatmul.mubr.msk.bf16.gmra.mrb[4].mxu1 %vm8030_vm3, %v7974_v59 }
 0x306   : > { %v5361_v41 = vor.u32 %v5360_v2, %v5357_v3  ;;  %v5371_v32 = vor.u32 %v5370_v8, %v5366_v9  ;;  %v6411_v44 = vshrl.u32 %v6098_v49, 16  ;;  %v6417_v18 = vshll.u32 %v6099_v31, 16  ;;  %v6644_v63 = vld [vmem:[#allocation3 + $0xa4] sm:$0x1]  ;;  %v7975_v16 = vld [vmem:[#allocation5 + $0x20] sm:$0xff] }
 0x307   : > { %v6400_v17 = vrot.slane %v6398_v5, 4  ;;  %v6403_v7 = vrot.slane %v6401_v26, 5  ;;  %v6409_v58 = vrot.slane %v6407_v40, 5  ;;  %v7370_v19 = vshrl.u32 %v7132_v0, 16  ;;  %7928 = vrot.lane.b32.xlu0 %v10615_v33, %s11238_s24  ;;  %v5051_v52 = vld [vmem:[#allocation3 + $0x84] sm:$0xf]  ;;  %v13425_v53 = vpop.permute.xlu0 %7597  ;;  %11063 = vmatprep.mubr.msk.bf16.mxu1 %vm8030_vm3, %v7975_v16 }
 0x308   : > { %v5362_v12 = vrot.slane %v5361_v41, 4  ;;  %v5372_v62 = vrot.slane %v5371_v32, 4  ;;  %v6413_v24 = vrot.slane %v6411_v44, 4  ;;  %v6419_v13 = vrot.slane %v6417_v18, 5  ;;  %v5052_v3 = vld [vmem:[#allocation3 + $0x88] sm:$0xf] }
 0x309   : > { %v6404_v10 = vor.u32 %v6403_v7, %v6400_v17  ;;  %v7373_v4 = vshll.u32 %v7132_v0, 16  ;;  %v7379_v35 = vshll.u32 %v7133_v11, 16  ;;  %v7372_v30 = vrot.slane %v7370_v19, 4  ;;  %v5602_v40 = vld [vmem:[#allocation3 + $0x9c] sm:$0xe] }
 0x30a   : > { %v5367_v27 = vsel %vm11418_vm10, %v5362_v12, %v5366_v9  ;;  %v5377_v60 = vsel %vm11418_vm10, %v5372_v62, %v5376_v47  ;;  %v6414_v45 = vor.u32 %v6413_v24, %v6409_v58  ;;  %v7383_v38 = vshrl.u32 %v7133_v11, 16  ;;  %v5053_v9 = vld [vmem:[#allocation3 + $0x8c] sm:$0x1]  ;;  %v13433_v47 = vpop.permute.xlu1 %6014  ;;  %v5603_v33 = vld [vmem:[#allocation3 + $0xa0] sm:$0xf] }
 0x30b   : > { %v10456_v20 = vcombine.low %v5367_v27, %v5377_v60  ;;  %v6405_v39 = vrot.slane %v6404_v10, 4  ;;  %v7375_v54 = vrot.slane %v7373_v4, 5  ;;  %v7381_v34 = vrot.slane %v7379_v35, 5  ;;  %v13437_v41 = vpop.permute.xlu0 %6012  ;;  %v5604_v7 = vld [vmem:[#allocation3 + $0xa4] sm:$0x1] }
 0x30c   : > { %v6415_v36 = vrot.slane %v6414_v45, 4  ;;  %v7389_v37 = vshll.u32 %v7134_v25, 16  ;;  %v10536_v28 = vrot.slane %v6642_v15, 9  ;;  %v6788_v42 = vrot.slane %v6643_v21, 5  ;;  %v7141_v62 = vld [vmem:[#allocation3 + $0xa8] sm:$0xf] }
 0x30d   : > { %5522 = vrot.lane.b32.xlu1 %v10456_v20, %s11228_s27  ;;  %v6410_v49 = vsel %vm11418_vm10, %v6405_v39, %v6409_v58  ;;  %v7376_v50 = vor.u32 %v7375_v54, %v7372_v30  ;;  %v6791_v55 = vrot.slane %v6644_v63, 5  ;;  %v7385_v0 = vrot.slane %v7383_v38, 4  ;;  %v11214_v58 = vld [vmem:[#allocation3 + $0xb4] sm:$0xff]   ;;  %v7142_v63 = vld [vmem:[#allocation3 + $0xac] sm:$0xf] }
 0x30e   : > { %v6420_v22 = vsel %vm11418_vm10, %v6415_v36, %v6419_v13  ;;  %v7391_v2 = vrot.slane %v7389_v37, 5  ;;  %v5331_v8 = vshrl.u32 %v5051_v52, 16  ;;  %v6789_v5 = vsel %vm11411_vm9, %v10536_v28, %v6788_v42  ;;  %v7143_v20 = vld [vmem:[#allocation3 + $0xb0] sm:$0x1]  ;;  %v13447_v54 = vpop.permute.xlu1 %6555  ;;  %v6100_v38 = vld [vmem:[#allocation3 + $0xa8] sm:$0xf] }
 0x30f   : > { %v10520_v31 = vcombine.low %v6410_v49, %v6420_v22  ;;  %v7377_v57 = vrot.slane %v7376_v50, 4  ;;  %v6790_v26 = vrot.slane %v6788_v42, 4  ;;  %v7386_v32 = vor.u32 %v7385_v0, %v7381_v34  ;;  %v6554_v27 = vpop.permute.xlu0 %6553  ;;  %v6101_v42 = vld [vmem:[#allocation3 + $0xac] sm:$0xf] }
 0x310   : > { %v5333_v44 = vrot.slane %v5331_v8, 4  ;;  %v5334_v11 = vshll.u32 %v5051_v52, 16  ;;  %v5340_v17 = vshll.u32 %v5052_v3, 16  ;;  %v5344_v15 = vshrl.u32 %v5052_v3, 16  ;;  %6596 = vst.msk [vmem:[#allocation5 + $0x30] sm:$0xff] %vm6589_vm7, %v6554_v27  ;;  %v11198_v3 = vld [vmem:[#allocation3 + $0xa8] sm:$0xff]  }
 0x311   : > { %6565 = vrot.lane.b32.xlu0 %v10520_v31, %s11233_s8  ;;  %v7382_v18 = vsel %vm11418_vm10, %v7377_v57, %v7381_v34  ;;  %v6792_v25 = vsel %vm11411_vm9, %v6790_v26, %v6791_v55  ;;  %v5350_v12 = vshll.u32 %v5053_v9, 16  ;;  %v7387_v24 = vrot.slane %v7386_v32, 4  ;;  %6917 = vst.msk [vmem:[#allocation5 + $0x30] sm:$0xff] %vm6910_vm8, %v13398_v51  ;;  %v6102_v9 = vld [vmem:[#allocation3 + $0xb0] sm:$0x1] }
 0x312   : > { %v10552_v19 = vcombine.low %v6789_v5, %v6792_v25  ;;  %v5336_v21 = vrot.slane %v5334_v11, 5  ;;  %v5342_v59 = vrot.slane %v5340_v17, 5  ;;  %vm14013_vm4 = vcmask 64512   ;;  %7095 = vst.msk [vmem:[#allocation5 + $0x30] sm:$0xff] %vm7088_vm12, %v13258_v61  ;;  %v7686_v61 = vld [vmem:[#allocation3 + $0xa8] sm:$0xe] }
 0x313   : > { %5017 = vst.msk [vmem:[#allocation5 + $0x78] sm:$0xff] %vm14013_vm4, %v11214_v58  ;;  %v5346_v10 = vrot.slane %v5344_v15, 4  ;;  %v5352_v13 = vrot.slane %v5350_v12, 5  ;;  %v10473_v4 = vrot.slane %v5602_v40, 9  ;;  %v5752_v35 = vrot.slane %v5603_v33, 5 }
 0x314   : > { %v7392_v60 = vsel %vm11418_vm10, %v7387_v24, %v7391_v2  ;;  %v5337_v45 = vor.u32 %v5336_v21, %v5333_v44  ;;  %v5755_v30 = vrot.slane %v5604_v7, 5  ;;  %v7442_v39 = vshrl.u32 %v7141_v62, 16  ;;  %7640 = vst.msk [vmem:[#allocation5 + $0x30] sm:$0xff] %vm7633_vm13, %v13425_v53  ;;  %v7687_v5 = vld [vmem:[#allocation3 + $0xac] sm:$0xf] }
 0x315   : > { %v10581_v34 = vcombine.low %v7382_v18, %v7392_v60  ;;  %6886 = vrot.lane.b32.xlu0 %v10552_v19, %s11237_s20  ;;  %v5347_v52 = vor.u32 %v5346_v10, %v5342_v59  ;;  %v5753_v16 = vsel %vm11411_vm9, %v10473_v4, %v5752_v35  ;;  %v5754_v36 = vrot.slane %v5752_v35, 4  ;;  %7961 = vst.msk [vmem:[#allocation5 + $0x30] sm:$0xff] %vm7954_vm1, %v13341_v6  ;;  %v7688_v53 = vld [vmem:[#allocation3 + $0xb0] sm:$0x1]  ;;  %v7138_v58 = vld [vmem:[#allocation3 + $0x9c] sm:$0xf]  ;;  %v13469_v18 = vpop.permute.xlu1 %7054 }
 0x316   : > { %v5338_v37 = vrot.slane %v5337_v45, 4  ;;  %v7444_v28 = vrot.slane %v7442_v39, 4  ;;  %v7445_v49 = vshll.u32 %v7141_v62, 16  ;;  %v7451_v50 = vshll.u32 %v7142_v63, 16  ;;  %v7139_v60 = vld [vmem:[#allocation3 + $0xa0] sm:$0xf] }
 0x317   : > { %7603 = vrot.lane.b32.xlu1 %v10581_v34, %s11239_s25  ;;  %v5348_v55 = vrot.slane %v5347_v52, 4  ;;  %v5756_v22 = vsel %vm11411_vm9, %v5754_v36, %v5755_v30  ;;  %v7455_v0 = vshrl.u32 %v7142_v63, 16  ;;  %v7461_v2 = vshll.u32 %v7143_v20, 16  ;;  %v7140_v45 = vld [vmem:[#allocation3 + $0xa4] sm:$0x1] }
 0x318   : > { %v5343_v51 = vsel %vm11418_vm10, %v5338_v37, %v5342_v59  ;;  %v10489_v8 = vcombine.low %v5753_v16, %v5756_v22  ;;  %v7447_v31 = vrot.slane %v7445_v49, 5  ;;  %v7453_v57 = vrot.slane %v7451_v50, 5  ;;  %v7689_v16 = vld [vmem:[#allocation3 + $0xb4] sm:$0xe]  ;;  %v7690_v36 = vld [vmem:[#allocation3 + $0xb8] sm:$0xf] }
 0x319   : > { %v5353_v26 = vsel %vm11418_vm10, %v5348_v55, %v5352_v13  ;;  %7064 = vrot.lane.b32.xlu0 %v11198_v3, %s11236_s19  ;;  %v7457_v40 = vrot.slane %v7455_v0, 4  ;;  %v7463_v33 = vrot.slane %v7461_v2, 5  ;;  %v6422_v32 = vshrl.u32 %v6100_v38, 16  ;;  %v5515_v50 = vpop.permute.xlu1 %5514 }
 0x31a   : > { %v10455_v44 = vcombine.low %v5343_v51, %v5353_v26  ;;  %v7448_v11 = vor.u32 %v7447_v31, %v7444_v28  ;;  %v6425_v17 = vshll.u32 %v6100_v38, 16  ;;  %v6431_v7 = vshll.u32 %v6101_v42, 16  ;;  %5555 = vst.msk [vmem:[#allocation5 + $0x40] sm:$0xff] %vm5546_vm2, %v5515_v50  ;;  %v7691_v31 = vld [vmem:[#allocation3 + $0xbc] sm:$0x1] }
 0x31b   : > { %v7458_v25 = vor.u32 %v7457_v40, %v7453_v57  ;;  %v6424_v15 = vrot.slane %v6422_v32, 4  ;;  %v6435_v12 = vshrl.u32 %v6101_v42, 16  ;;  %v6441_v6 = vshll.u32 %v6102_v9, 16  ;;  %v13479_v42 = vpop.permute.xlu0 %7922  ;;  %5876 = vst.msk [vmem:[#allocation5 + $0x40] sm:$0xff] %vm5867_vm5, %v13355_v48  ;;  %v6103_v50 = vld [vmem:[#allocation3 + $0xb4] sm:$0xf] }
 0x31c   : > { %5520 = vrot.lane.b32.xlu1 %v10455_v44, %s11228_s27  ;;  %v7449_v62 = vrot.slane %v7448_v11, 4  ;;  %v6427_v24 = vrot.slane %v6425_v17, 5  ;;  %v6433_v19 = vrot.slane %v6431_v7, 5  ;;  %v10600_v21 = vrot.slane %v7686_v61, 9  ;;  %6053 = vst.msk [vmem:[#allocation5 + $0x40] sm:$0xff] %vm6044_vm6, %v13437_v41 }
 0x31d   : > { %v7459_v59 = vrot.slane %v7458_v25, 4  ;;  %v6437_v10 = vrot.slane %v6435_v12, 4  ;;  %v6443_v13 = vrot.slane %v6441_v6, 5  ;;  %v7832_v4 = vrot.slane %v7687_v5, 5  ;;  %v5605_v41 = vld [vmem:[#allocation3 + $0xa8] sm:$0xe] }
 0x31e   : > { %v7454_v35 = vsel %vm11418_vm10, %v7449_v62, %v7453_v57  ;;  %v6428_v63 = vor.u32 %v6427_v24, %v6424_v15  ;;  %v7835_v27 = vrot.slane %v7688_v53, 5  ;;  %v7418_v30 = vshrl.u32 %v7138_v58, 16  ;;  %v5057_v57 = vld [vmem:[#allocation3 + $0x9c] sm:$0xf] }
 0x31f   : > { %v7464_v20 = vsel %vm11418_vm10, %v7459_v59, %v7463_v33  ;;  %v6438_v39 = vor.u32 %v6437_v10, %v6433_v19  ;;  %v7833_v34 = vsel %vm11411_vm9, %v10600_v21, %v7832_v4  ;;  %v7834_v52 = vrot.slane %v7832_v4, 4  ;;  %v5058_v33 = vld [vmem:[#allocation3 + $0xa0] sm:$0xf]  ;;  %v13497_v24 = vpop.permute.xlu0 %5839  ;;  %v7596_v4 = vpop.permute.xlu1 %7595 }
 0x320   : > { %5845 = vrot.lane.b32.xlu1 %v10489_v8, %s11234_s9  ;;  %v10584_v38 = vcombine.low %v7454_v35, %v7464_v20  ;;  %v6429_v37 = vrot.slane %v6428_v63, 4  ;;  %v7420_v28 = vrot.slane %v7418_v30, 4  ;;  %v7421_v49 = vshll.u32 %v7138_v58, 16  ;;  %v5059_v58 = vld [vmem:[#allocation3 + $0xa4] sm:$0x1]  ;;  %7639 = vst.msk [vmem:[#allocation5 + $0x28] sm:$0xff] %vm7633_vm13, %v7596_v4 }
 0x321   : > { %v6439_v55 = vrot.slane %v6438_v39, 4  ;;  %v7836_v3 = vsel %vm11411_vm9, %v7834_v52, %v7835_v27  ;;  %v7427_v22 = vshll.u32 %v7139_v60, 16  ;;  %v7431_v0 = vshrl.u32 %v7139_v60, 16  ;;  %v6645_v30 = vld [vmem:[#allocation3 + $0xa8] sm:$0xe]  ;;  %7960 = vst.msk [vmem:[#allocation5 + $0x28] sm:$0xff] %vm7954_vm1, %v13376_v56 }
 0x322   : > { %7609 = vrot.lane.b32.xlu0 %v10584_v38, %s11239_s25  ;;  %v6434_v2 = vsel %vm11418_vm10, %v6429_v37, %v6433_v19  ;;  %v10616_v9 = vcombine.low %v7833_v34, %v7836_v3  ;;  %v7423_v51 = vrot.slane %v7421_v49, 5  ;;  %v7437_v8 = vshll.u32 %v7140_v45, 16  ;;  %v5607_v45 = vld [vmem:[#allocation3 + $0xb0] sm:$0x1] }
 0x323   : > { %v6444_v61 = vsel %vm11418_vm10, %v6439_v55, %v6443_v13  ;;  %v7429_v5 = vrot.slane %v7427_v22, 5  ;;  %v7433_v26 = vrot.slane %v7431_v0, 4  ;;  %v10601_v40 = vrot.slane %v7689_v16, 9  ;;  %v5606_v13 = vld [vmem:[#allocation3 + $0xac] sm:$0xf] }
 0x324   : > { %v10521_v32 = vcombine.low %v6434_v2, %v6444_v61  ;;  %v7424_v53 = vor.u32 %v7423_v51, %v7420_v28  ;;  %v7439_v44 = vrot.slane %v7437_v8, 5  ;;  %v7839_v11 = vrot.slane %v7690_v36, 5  ;;  %v6646_v16 = vld [vmem:[#allocation3 + $0xac] sm:$0xf]  ;;  %v6647_v36 = vld [vmem:[#allocation3 + $0xb0] sm:$0x1] }
 0x325   : > { %v7434_v17 = vor.u32 %v7433_v26, %v7429_v5  ;;  %v7842_v7 = vrot.slane %v7691_v31, 5  ;;  %v5379_v25 = vshrl.u32 %v5057_v57, 16  ;;  %v5382_v15 = vshll.u32 %v5057_v57, 16  ;;  %v6104_v2 = vld [vmem:[#allocation3 + $0xb8] sm:$0xf]  ;;  %v5513_v57 = vpop.permute.xlu1 %5512 }
 0x326   : > { %6567 = vrot.lane.b32.xlu1 %v10521_v32, %s11233_s8  ;;  %7930 = vrot.lane.b32.xlu0 %v10616_v9, %s11238_s24  ;;  %v7425_v48 = vrot.slane %v7424_v53, 4  ;;  %v7840_v12 = vsel %vm11411_vm9, %v10601_v40, %v7839_v11  ;;  %v7841_v6 = vrot.slane %v7839_v11, 4  ;;  %v5388_v62 = vshll.u32 %v5058_v33, 16  ;;  %v13509_v9 = vpop.permute.xlu0 %7920  ;;  %5554 = vst.msk [vmem:[#allocation5 + $0x38] sm:$0xff] %vm5546_vm2, %v5513_v57 }
 0x327   : > { %v7435_v19 = vrot.slane %v7434_v17, 4  ;;  %v5381_v21 = vrot.slane %v5379_v25, 4  ;;  %v5384_v59 = vrot.slane %v5382_v15, 5  ;;  %v5392_v10 = vshrl.u32 %v5058_v33, 16  ;;  %v7144_v17 = vld [vmem:[#allocation3 + $0xb4] sm:$0xf] }
 0x328   : > { %v7430_v35 = vsel %vm11418_vm10, %v7425_v48, %v7429_v5  ;;  %v7843_v63 = vsel %vm11411_vm9, %v7841_v6, %v7842_v7  ;;  %v5390_v27 = vrot.slane %v5388_v62, 5  ;;  %v5398_v60 = vshll.u32 %v5059_v58, 16  ;;  %5875 = vst.msk [vmem:[#allocation5 + $0x38] sm:$0xff] %vm5867_vm5, %v13417_v43  ;;  %v7145_v48 = vld [vmem:[#allocation3 + $0xb8] sm:$0xf]  ;;  %v7976_v43 = vld [vmem:[#allocation5 + $0x28] sm:$0xff] }
 0x329   : > { %v7440_v20 = vsel %vm11418_vm10, %v7435_v19, %v7439_v44  ;;  %v10617_v39 = vcombine.low %v7840_v12, %v7843_v63  ;;  %v5385_v34 = vor.u32 %v5384_v59, %v5381_v21  ;;  %v5394_v52 = vrot.slane %v5392_v10, 4  ;;  %v6105_v44 = vld [vmem:[#allocation3 + $0xbc] sm:$0x1]  ;;  %6052 = vst.msk [vmem:[#allocation5 + $0x38] sm:$0xff] %vm6044_vm6, %v13278_v14  ;;  %v11201_v10 = vld [vmem:[#allocation3 + $0xb4] sm:$0xff]   ;;  %11064 = vmatmul.mubr.msk.bf16.gmra.mrb[8].mxu1 %vm8030_vm3, %v7976_v43  ;;  %v7977_v63 = vld [vmem:[#allocation5 + $0x30] sm:$0xff] }
 0x32a   : > { %v10583_v38 = vcombine.low %v7430_v35, %v7440_v20  ;;  %v5400_v37 = vrot.slane %v5398_v60, 5  ;;  %v10474_v28 = vrot.slane %v5605_v41, 9  ;;  %v5759_v49 = vrot.slane %v5606_v13, 5  ;;  %v13527_v12 = vpop.permute.xlu0 %6878  ;;  %v7146_v21 = vld [vmem:[#allocation3 + $0xbc] sm:$0x1]  ;;  %6597 = vst.msk [vmem:[#allocation5 + $0x38] sm:$0xff] %vm6589_vm7, %v13447_v54  ;;  %11067 = vmatprep.mubr.msk.bf16.mxu1 %vm8030_vm3, %v7977_v63 }
 0x32b   : > { %7932 = vrot.lane.b32.xlu0 %v10617_v39, %s11238_s24  ;;  %v5386_v55 = vrot.slane %v5385_v34, 4  ;;  %v5395_v3 = vor.u32 %v5394_v52, %v5390_v27  ;;  %v5762_v22 = vrot.slane %v5607_v45, 5  ;;  %v10537_v0 = vrot.slane %v6645_v30, 9  ;;  %v6648_v35 = vld [vmem:[#allocation3 + $0xb4] sm:$0xe]  ;;  %6918 = vst.msk [vmem:[#allocation5 + $0x38] sm:$0xff] %vm6910_vm8, %v13405_v46 }
 0x32c   : > { %7607 = vrot.lane.b32.xlu1 %v10583_v38, %s11239_s25  ;;  %v5760_v51 = vsel %vm11411_vm9, %v10474_v28, %v5759_v49  ;;  %v5761_v56 = vrot.slane %v5759_v49, 4  ;;  %v6795_v8 = vrot.slane %v6646_v16, 5  ;;  %v6798_v31 = vrot.slane %v6647_v36, 5  ;;  %v6649_v30 = vld [vmem:[#allocation3 + $0xb8] sm:$0xf]  ;;  %7096 = vst.msk [vmem:[#allocation5 + $0x38] sm:$0xff] %vm7088_vm12, %v13469_v18  ;;  %v13541_v16 = vpop.permute.xlu1 %6880 }
 0x32d   : > { %v5391_v61 = vsel %vm11418_vm10, %v5386_v55, %v5390_v27  ;;  %v5396_v5 = vrot.slane %v5395_v3, 4  ;;  %v6446_v26 = vshrl.u32 %v6103_v50, 16  ;;  %v6449_v40 = vshll.u32 %v6103_v50, 16  ;;  %v6650_v46 = vld [vmem:[#allocation3 + $0xbc] sm:$0x1] }
 0x32e   : > { %v5763_v33 = vsel %vm11411_vm9, %v5761_v56, %v5762_v22  ;;  %v6796_v32 = vsel %vm11411_vm9, %v10537_v0, %v6795_v8  ;;  %v6797_v53 = vrot.slane %v6795_v8, 4  ;;  %v6455_v11 = vshll.u32 %v6104_v2, 16  ;;  %v5060_v49 = vld [vmem:[#allocation3 + $0xa8] sm:$0xf]  ;;  %v5061_v22 = vld [vmem:[#allocation3 + $0xac] sm:$0xf]  ;;  %v13546_v0 = vpop.permute.xlu0 %7060 }
 0x32f   : > { %v5401_v7 = vsel %vm11418_vm10, %v5396_v5, %v5400_v37  ;;  %v10490_v58 = vcombine.low %v5760_v51, %v5763_v33  ;;  %v6448_v25 = vrot.slane %v6446_v26, 4  ;;  %v6451_v15 = vrot.slane %v6449_v40, 5  ;;  %v11202_v5 = vld [vmem:[#allocation3 + $0xb4] sm:$0xff]  }
 0x330   : > { %v10457_v6 = vcombine.low %v5391_v61, %v5401_v7  ;;  %v6799_v62 = vsel %vm11411_vm9, %v6797_v53, %v6798_v31  ;;  %v6457_v41 = vrot.slane %v6455_v11, 5  ;;  %v6459_v19 = vshrl.u32 %v6104_v2, 16 }
 0x331   : > { %5847 = vrot.lane.b32.xlu0 %v10490_v58, %s11234_s9  ;;  %v10553_v59 = vcombine.low %v6796_v32, %v6799_v62  ;;  %v6452_v13 = vor.u32 %v6451_v15, %v6448_v25  ;;  %v6465_v4 = vshll.u32 %v6105_v44, 16  ;;  %v7466_v14 = vshrl.u32 %v7144_v17, 16  ;;  %v5062_v32 = vld [vmem:[#allocation3 + $0xb0] sm:$0x1]  ;;  %v5063_v58 = vld [vmem:[#allocation3 + $0xb4] sm:$0xf]  ;;  %v13553_v15 = vpop.permute.xlu1 %5837 }
 0x332   : > { %5524 = vrot.lane.b32.xlu1 %v10457_v6, %s11228_s27  ;;  %v6461_v27 = vrot.slane %v6459_v19, 4  ;;  %v7469_v60 = vshll.u32 %v7144_v17, 16  ;;  %v7475_v54 = vshll.u32 %v7145_v48, 16  ;;  %v7479_v45 = vshrl.u32 %v7145_v48, 16  ;;  %v5064_v25 = vld [vmem:[#allocation3 + $0xb8] sm:$0xf] }
 0x333   : > { %v6453_v20 = vrot.slane %v6452_v13, 4  ;;  %v6467_v39 = vrot.slane %v6465_v4, 5  ;;  %v7468_v34 = vrot.slane %v7466_v14, 4  ;;  %v7485_v52 = vshll.u32 %v7146_v21, 16  ;;  %v5065_v19 = vld [vmem:[#allocation3 + $0xbc] sm:$0x1]  ;;  %v13563_v13 = vpop.permute.xlu0 %7601 }
 0x334   : > { %v6462_v36 = vor.u32 %v6461_v27, %v6457_v41  ;;  %v7471_v38 = vrot.slane %v7469_v60, 5  ;;  %v7477_v37 = vrot.slane %v7475_v54, 5  ;;  %v7481_v28 = vrot.slane %v7479_v45, 4  ;;  %v7147_v27 = vld [vmem:[#allocation3 + $0xc0] sm:$0xf] }
 0x335   : > { %6024 = vrot.lane.b32.xlu0 %v11201_v10, %s11231_s30  ;;  %v6458_v50 = vsel %vm11418_vm10, %v6453_v20, %v6457_v41  ;;  %v7487_v18 = vrot.slane %v7485_v52, 5  ;;  %v10538_v55 = vrot.slane %v6648_v35, 9  ;;  %v6802_v3 = vrot.slane %v6649_v30, 5  ;;  %v7148_v20 = vld [vmem:[#allocation3 + $0xc4] sm:$0xf] }
 0x336   : > { %6888 = vrot.lane.b32.xlu1 %v10553_v59, %s11237_s20  ;;  %v6463_v2 = vrot.slane %v6462_v36, 4  ;;  %v7472_v51 = vor.u32 %v7471_v38, %v7468_v34  ;;  %v7482_v56 = vor.u32 %v7481_v28, %v7477_v37  ;;  %v6805_v8 = vrot.slane %v6650_v46, 5  ;;  %v7149_v36 = vld [vmem:[#allocation3 + $0xc8] sm:$0x1] }
 0x337   : > { %v6804_v31 = vrot.slane %v6802_v3, 4  ;;  %v5403_v57 = vshrl.u32 %v5060_v49, 16  ;;  %v5406_v61 = vshll.u32 %v5060_v49, 16  ;;  %v5412_v53 = vshll.u32 %v5061_v22, 16 }
 0x338   : > { %v6468_v26 = vsel %vm11418_vm10, %v6463_v2, %v6467_v39  ;;  %v7473_v40 = vrot.slane %v7472_v51, 4  ;;  %v7483_v33 = vrot.slane %v7482_v56, 4  ;;  %v6803_v11 = vsel %vm11411_vm9, %v10538_v55, %v6802_v3  ;;  %v5608_v51 = vld [vmem:[#allocation3 + $0xb4] sm:$0xe] }
 0x339   : > { %v10522_v44 = vcombine.low %v6458_v50, %v6468_v26  ;;  %v5405_v17 = vrot.slane %v5403_v57, 4  ;;  %v5408_v7 = vrot.slane %v5406_v61, 5  ;;  %v6806_v62 = vsel %vm11411_vm9, %v6804_v31, %v6805_v8  ;;  %v13567_v50 = vpop.permute.xlu1 %6018  ;;  %v5609_v61 = vld [vmem:[#allocation3 + $0xb8] sm:$0xf] }
 0x33a   : > { %7066 = vrot.lane.b32.xlu1 %v11202_v5, %s11236_s19  ;;  %v7478_v48 = vsel %vm11418_vm10, %v7473_v40, %v7477_v37  ;;  %v7488_v6 = vsel %vm11418_vm10, %v7483_v33, %v7487_v18  ;;  %v5414_v41 = vrot.slane %v5412_v53, 5  ;;  %v5416_v59 = vshrl.u32 %v5061_v22, 16  ;;  %v11203_v18 = vld [vmem:[#allocation3 + $0xc0] sm:$0xff]   ;;  %v13569_v5 = vpop.permute.xlu0 %6016  ;;  %v5610_v53 = vld [vmem:[#allocation3 + $0xbc] sm:$0x1] }
 0x33b   : > { %6569 = vrot.lane.b32.xlu0 %v10522_v44, %s11233_s8  ;;  %v10585_v21 = vcombine.low %v7478_v48, %v7488_v6  ;;  %v5409_v43 = vor.u32 %v5408_v7, %v5405_v17  ;;  %v5422_v10 = vshll.u32 %v5062_v32, 16  ;;  %v5427_v4 = vshrl.u32 %v5063_v58, 16 }
 0x33c   : > { %v5430_v14 = vshll.u32 %v5063_v58, 16  ;;  %v5436_v35 = vshll.u32 %v5064_v25, 16  ;;  %v5440_v63 = vshrl.u32 %v5064_v25, 16  ;;  %v10554_v60 = vcombine.low %v6803_v11, %v6806_v62  ;;  %v7692_v58 = vld [vmem:[#allocation3 + $0xc0] sm:$0xe] }
 0x33d   : > { %v5410_v54 = vrot.slane %v5409_v43, 4  ;;  %v5418_v45 = vrot.slane %v5416_v59, 4  ;;  %v5446_v30 = vshll.u32 %v5065_v19, 16  ;;  %v5429_v39 = vrot.slane %v5427_v4, 4  ;;  %v7693_v25 = vld [vmem:[#allocation3 + $0xc4] sm:$0xf] }
 0x33e   : > { %7611 = vrot.lane.b32.xlu1 %v10585_v21, %s11239_s25  ;;  %v5432_v34 = vrot.slane %v5430_v14, 5  ;;  %v5438_v52 = vrot.slane %v5436_v35, 5  ;;  %v5442_v46 = vrot.slane %v5440_v63, 4  ;;  %v5424_v37 = vrot.slane %v5422_v10, 5  ;;  %v7694_v21 = vld [vmem:[#allocation3 + $0xc8] sm:$0x1]  ;;  %v13580_v14 = vpop.permute.xlu1 %6559 }
 0x33f   : > { %6890 = vrot.lane.b32.xlu0 %v10554_v60, %s11237_s20  ;;  %v5419_v38 = vor.u32 %v5418_v45, %v5414_v41  ;;  %v5448_v28 = vrot.slane %v5446_v30, 5  ;;  %v7490_v49 = vshrl.u32 %v7147_v27, 16  ;;  %v7493_v22 = vshll.u32 %v7147_v27, 16  ;;  %v6106_v43 = vld [vmem:[#allocation3 + $0xc0] sm:$0xf] }
 0x340   : > { %v5433_v55 = vor.u32 %v5432_v34, %v5429_v39  ;;  %v5443_v3 = vor.u32 %v5442_v46, %v5438_v52  ;;  %v7499_v2 = vshll.u32 %v7148_v20, 16  ;;  %v7503_v31 = vshrl.u32 %v7148_v20, 16  ;;  %v6558_v34 = vpop.permute.xlu0 %6557 }
 0x341   : > { %v5420_v56 = vrot.slane %v5419_v38, 4  ;;  %v7492_v8 = vrot.slane %v7490_v49, 4  ;;  %v7509_v57 = vshll.u32 %v7149_v36, 16  ;;  %v7495_v33 = vrot.slane %v7493_v22, 5  ;;  %v6108_v38 = vld [vmem:[#allocation3 + $0xc8] sm:$0x1] }
 0x342   : > { %v5434_v26 = vrot.slane %v5433_v55, 4  ;;  %v5444_v40 = vrot.slane %v5443_v3, 4  ;;  %v7501_v32 = vrot.slane %v7499_v2, 5  ;;  %v5415_v44 = vsel %vm11418_vm10, %v5410_v54, %v5414_v41  ;;  %v6107_v54 = vld [vmem:[#allocation3 + $0xc4] sm:$0xf]  ;;  %6598 = vst.msk [vmem:[#allocation5 + $0x40] sm:$0xff] %vm6589_vm7, %v6558_v34 }
 0x343   : > { %v5425_v11 = vsel %vm11418_vm10, %v5420_v56, %v5424_v37  ;;  %7068 = vrot.lane.b32.xlu0 %v11203_v18, %s11236_s19  ;;  %v7505_v17 = vrot.slane %v7503_v31, 4  ;;  %v10475_v7 = vrot.slane %v5608_v51, 9  ;;  %v7496_v19 = vor.u32 %v7495_v33, %v7492_v8  ;;  %6919 = vst.msk [vmem:[#allocation5 + $0x40] sm:$0xff] %vm6910_vm8, %v13527_v12  ;;  %v6652_v51 = vld [vmem:[#allocation3 + $0xc4] sm:$0xf]  ;;  %v13601_v12 = vpop.permute.xlu1 %7058 }
 0x344   : > { %v10458_v48 = vcombine.low %v5415_v44, %v5425_v11  ;;  %v5439_v6 = vsel %vm11418_vm10, %v5434_v26, %v5438_v52  ;;  %v5449_v62 = vsel %vm11418_vm10, %v5444_v40, %v5448_v28  ;;  %v7511_v59 = vrot.slane %v7509_v57, 5  ;;  %v7150_v56 = vld [vmem:[#allocation3 + $0xcc] sm:$0xf]  ;;  %7097 = vst.msk [vmem:[#allocation5 + $0x40] sm:$0xff] %vm7088_vm12, %v13415_v1  ;;  %v7151_v26 = vld [vmem:[#allocation3 + $0xd0] sm:$0xf] }
 0x345   : > { %v7506_v41 = vor.u32 %v7505_v17, %v7501_v32  ;;  %v5766_v10 = vrot.slane %v5609_v61, 5  ;;  %v5769_v4 = vrot.slane %v5610_v53, 5  ;;  %v10459_v35 = vcombine.low %v5439_v6, %v5449_v62  ;;  %7642 = vst.msk [vmem:[#allocation5 + $0x40] sm:$0xff] %vm7633_vm13, %v13563_v13  ;;  %v6653_v53 = vld [vmem:[#allocation3 + $0xc8] sm:$0x1] }
 0x346   : > { %5526 = vrot.lane.b32.xlu1 %v10458_v48, %s11228_s27  ;;  %v7497_v63 = vrot.slane %v7496_v19, 4  ;;  %v10602_v27 = vrot.slane %v7692_v58, 9  ;;  %v7846_v60 = vrot.slane %v7693_v25, 5  ;;  %v7849_v20 = vrot.slane %v7694_v21, 5  ;;  %7963 = vst.msk [vmem:[#allocation5 + $0x40] sm:$0xff] %vm7954_vm1, %v13479_v42  ;;  %v11205_v21 = vld [vmem:[#allocation3 + $0xc0] sm:$0xff]  }
 0x347   : > { %v7507_v45 = vrot.slane %v7506_v41, 4  ;;  %v5768_v30 = vrot.slane %v5766_v10, 4  ;;  %v6470_v39 = vshrl.u32 %v6106_v43, 16  ;;  %v5767_v46 = vsel %vm11411_vm9, %v10475_v7, %v5766_v10  ;;  %v7152_v41 = vld [vmem:[#allocation3 + $0xd4] sm:$0x1] }
 0x348   : > { %v7502_v52 = vsel %vm11418_vm10, %v7497_v63, %v7501_v32  ;;  %v7848_v36 = vrot.slane %v7846_v60, 4  ;;  %v6473_v37 = vshll.u32 %v6106_v43, 16  ;;  %v6479_v55 = vshll.u32 %v6107_v54, 16  ;;  %v6651_v32 = vld [vmem:[#allocation3 + $0xc0] sm:$0xe] }
 0x349   : > { %v7512_v28 = vsel %vm11418_vm10, %v7507_v45, %v7511_v59  ;;  %v5770_v49 = vsel %vm11411_vm9, %v5768_v30, %v5769_v4  ;;  %v6472_v18 = vrot.slane %v6470_v39, 4  ;;  %v7847_v22 = vsel %vm11411_vm9, %v10602_v27, %v7846_v60  ;;  %v5519_v27 = vpop.permute.xlu1 %5518  ;;  %v7696_v34 = vld [vmem:[#allocation3 + $0xd0] sm:$0xf] }
 0x34a   : > { %5528 = vrot.lane.b32.xlu1 %v10459_v35, %s11228_s27  ;;  %v10586_v3 = vcombine.low %v7502_v52, %v7512_v28  ;;  %v6475_v2 = vrot.slane %v6473_v37, 5  ;;  %v7850_v8 = vsel %vm11411_vm9, %v7848_v36, %v7849_v20  ;;  %v6481_v31 = vrot.slane %v6479_v55, 5  ;;  %5557 = vst.msk [vmem:[#allocation5 + $0x50] sm:$0xff] %vm5546_vm2, %v5519_v27  ;;  %v7927_v20 = vpop.permute.xlu0 %7926  ;;  %v7697_v55 = vld [vmem:[#allocation3 + $0xd4] sm:$0x1] }
 0x34b   : > { %v6483_v57 = vshrl.u32 %v6107_v54, 16  ;;  %v6489_v61 = vshll.u32 %v6108_v38, 16  ;;  %v10491_v40 = vcombine.low %v5767_v46, %v5770_v49  ;;  %v6809_v44 = vrot.slane %v6652_v51, 5  ;;  %5878 = vst.msk [vmem:[#allocation5 + $0x50] sm:$0xff] %vm5867_vm5, %v13497_v24  ;;  %v7695_v49 = vld [vmem:[#allocation3 + $0xcc] sm:$0xe] }
 0x34c   : > { %7613 = vrot.lane.b32.xlu0 %v10586_v3, %s11239_s25  ;;  %v6476_v33 = vor.u32 %v6475_v2, %v6472_v18  ;;  %v7514_v11 = vshrl.u32 %v7150_v56, 16  ;;  %v7517_v17 = vshll.u32 %v7150_v56, 16  ;;  %v10618_v7 = vcombine.low %v7847_v22, %v7850_v8  ;;  %6055 = vst.msk [vmem:[#allocation5 + $0x50] sm:$0xff] %vm6044_vm6, %v13569_v5  ;;  %v11207_v3 = vld [vmem:[#allocation3 + $0xcc] sm:$0xff]  }
 0x34d   : > { %v6485_v1 = vrot.slane %v6483_v57, 4  ;;  %v6491_v25 = vrot.slane %v6489_v61, 5  ;;  %v7523_v48 = vshll.u32 %v7151_v26, 16  ;;  %v7527_v19 = vshrl.u32 %v7151_v26, 16  ;;  %v7600_v36 = vpop.permute.xlu1 %7599 }
 0x34e   : > { %5849 = vrot.lane.b32.xlu1 %v10491_v40, %s11234_s9  ;;  %v6477_v58 = vrot.slane %v6476_v33, 4  ;;  %v7516_v6 = vrot.slane %v7514_v11, 4  ;;  %v7519_v62 = vrot.slane %v7517_v17, 5  ;;  %v10539_v43 = vrot.slane %v6651_v32, 9  ;;  %7641 = vst.msk [vmem:[#allocation5 + $0x38] sm:$0xff] %vm7633_vm13, %v7600_v36  ;;  %v5844_v5 = vpop.permute.xlu0 %5843  ;;  %v7979_v40 = vld [vmem:[#allocation5 + $0x40] sm:$0xff] }
 0x34f   : > { %v6486_v13 = vor.u32 %v6485_v1, %v6481_v31  ;;  %v6812_v42 = vrot.slane %v6653_v53, 5  ;;  %v7525_v59 = vrot.slane %v7523_v48, 5  ;;  %v6811_v35 = vrot.slane %v6809_v44, 4  ;;  %7962 = vst.msk [vmem:[#allocation5 + $0x38] sm:$0xff] %vm7954_vm1, %v13509_v9 }
 0x350   : > { %7934 = vrot.lane.b32.xlu0 %v10618_v7, %s11238_s24  ;;  %v6482_v10 = vsel %vm11418_vm10, %v6477_v58, %v6481_v31  ;;  %v7529_v63 = vrot.slane %v7527_v19, 4  ;;  %v7520_v54 = vor.u32 %v7519_v62, %v7516_v6  ;;  %v7533_v30 = vshll.u32 %v7152_v41, 16 }
 0x351   : > { %v6487_v4 = vrot.slane %v6486_v13, 4  ;;  %v6810_v52 = vsel %vm11411_vm9, %v10539_v43, %v6809_v44  ;;  %v6813_v46 = vsel %vm11411_vm9, %v6811_v35, %v6812_v42  ;;  %v7853_v24 = vrot.slane %v7696_v34, 5  ;;  %v5517_v31 = vpop.permute.xlu1 %5516 }
 0x352   : > { %6026 = vrot.lane.b32.xlu1 %v11205_v21, %s11231_s30  ;;  %v7530_v45 = vor.u32 %v7529_v63, %v7525_v59  ;;  %v7521_v38 = vrot.slane %v7520_v54, 4  ;;  %v7535_v28 = vrot.slane %v7533_v30, 5  ;;  %v10555_v18 = vcombine.low %v6810_v52, %v6813_v46  ;;  %5556 = vst.msk [vmem:[#allocation5 + $0x48] sm:$0xff] %vm5546_vm2, %v5517_v31  ;;  %v7925_v29 = vpop.permute.xlu0 %7924 }
 0x353   : > { %v6492_v60 = vsel %vm11418_vm10, %v6487_v4, %v6491_v25  ;;  %v10603_v22 = vrot.slane %v7695_v49, 9  ;;  %v7855_v56 = vrot.slane %v7853_v24, 4  ;;  %v7856_v8 = vrot.slane %v7697_v55, 5  ;;  %5877 = vst.msk [vmem:[#allocation5 + $0x48] sm:$0xff] %vm5867_vm5, %v13553_v15 }
 0x354   : > { %v10523_v39 = vcombine.low %v6482_v10, %v6492_v60  ;;  %v7531_v37 = vrot.slane %v7530_v45, 4  ;;  %v7526_v2 = vsel %vm11418_vm10, %v7521_v38, %v7525_v59  ;;  %6054 = vst.msk [vmem:[#allocation5 + $0x48] sm:$0xff] %vm6044_vm6, %v13433_v47  ;;  %v11240_v49 = vmov 1983009808  }
 0x355   : > { %v7854_v9 = vsel %vm11411_vm9, %v10603_v22, %v7853_v24  ;;  %v7857_v61 = vsel %vm11411_vm9, %v7855_v56, %v7856_v8  ;;  %6599 = vst.msk [vmem:[#allocation5 + $0x48] sm:$0xff] %vm6589_vm7, %v13580_v14  ;;  %v6885_v15 = vpop.permute.xlu1 %6884  ;;  %v8343_v24 = vunpack.c.l.s4 %v11240_v49  ;;  %vm8276_vm9 = vcmask 130048  }
 0x356   : > { %6571 = vrot.lane.b32.xlu1 %v10523_v39, %s11233_s8  ;;  %v7536_v51 = vsel %vm11418_vm10, %v7531_v37, %v7535_v28  ;;  %v7978_v26 = vld [vmem:[#allocation5 + $0x38] sm:$0xff]  ;;  %6920 = vst.msk [vmem:[#allocation5 + $0x48] sm:$0xff] %vm6910_vm8, %v13541_v16  ;;  %v10619_v23 = vcombine.low %v7854_v9, %v7857_v61  ;;  %v6883_v47 = vpop.permute.xlu0 %6882  ;;  %vm9910_vm10 = vcmask 1041409   ;;  %vm9913_vm11 = vcmask 1042434  }
 0x357   : > { %v10587_v57 = vcombine.low %v7526_v2, %v7536_v51  ;;  %11068 = vmatmul.mubr.msk.bf16.gmra.mrb[12].mxu1 %vm8030_vm3, %v7978_v26  ;;  %7098 = vst.msk [vmem:[#allocation5 + $0x48] sm:$0xff] %vm7088_vm12, %v13601_v12  ;;  %v13709_v2 = vld [vmem:[%s13988_s4] ss:$0 sm:$0xff]  ;;  %vm9916_vm0 = vcmask 1043459   ;;  %vm9919_vm14 = vcmask 1044484  }
 0x358   : > { %11071 = vmatprep.mubr.msk.bf16.mxu1 %vm8030_vm3, %v7979_v40 }
 0x359   : > { %v5842_v33 = vpop.permute.xlu1 %5841 }
 0x35a   : > { %6892 = vrot.lane.b32.xlu1 %v10555_v18, %s11237_s20  ;;  %v8345_v18 = vlaneseq }
 0x35b   : > { %v7606_v14 = vpop.permute.xlu0 %7605 }
 0x35d   : > { %v6023_v32 = vpop.permute.xlu1 %6022 }
 0x35e   : > { %7070 = vrot.lane.b32.xlu1 %v11207_v3, %s11236_s19  ;;  %v8346_v3 = vshrl.u32 %v8345_v18, 7  ;;  %s13720_s19 = scalar_lea.vmem %s13989_s5, %s10836_s23  ;;  %s10838_s23 = sshll.u32 %s14015_s22, 5 }
 0x35f   : > { %v6021_v1 = vpop.permute.xlu0 %6020 }
 0x361   : > { %v6564_v53 = vpop.permute.xlu1 %6563 }
 0x362   : > { %7615 = vrot.lane.b32.xlu1 %v10587_v57, %s11239_s25 }
 0x365   : > { %v7063_v16 = vpop.permute.xlu1 %7062 }
 0x366   : > { %7936 = vrot.lane.b32.xlu1 %v10619_v23, %s11238_s24  ;;  %s13771_s24 = scalar_lea.vmem %s13990_s6, %s10838_s23 }
 0x375   : > { %v6562_v44 = vpop.permute.xlu0 %6561 }
 0x376   : > { %6600 = vst.msk [vmem:[#allocation5 + $0x50] sm:$0xff] %vm6589_vm7, %v6562_v44 }
 0x377   : > { %6921 = vst.msk [vmem:[#allocation5 + $0x50] sm:$0xff] %vm6910_vm8, %v6883_v47 }
 0x378   : > { %7099 = vst.msk [vmem:[#allocation5 + $0x50] sm:$0xff] %vm7088_vm12, %v13546_v0 }
 0x379   : > { %7644 = vst.msk [vmem:[#allocation5 + $0x50] sm:$0xff] %vm7633_vm13, %v7606_v14  ;;  %v7929_v12 = vpop.permute.xlu0 %7928 }
 0x37a   : > { %7965 = vst.msk [vmem:[#allocation5 + $0x50] sm:$0xff] %vm7954_vm1, %v7927_v20 }
 0x37f   : > { %v5523_v11 = vpop.permute.xlu1 %5522 }
 0x380   : > { %5559 = vst.msk [vmem:[#allocation5 + $0x60] sm:$0xff] %vm5546_vm2, %v5523_v11 }
 0x381   : > { %5880 = vst.msk [vmem:[#allocation5 + $0x60] sm:$0xff] %vm5867_vm5, %v5844_v5  ;;  %v7981_v6 = vld [vmem:[#allocation5 + $0x50] sm:$0xff]  ;;  %v8344_v5 = vunpack.c.0.s8 %v8343_v24 }
 0x382   : > { %6057 = vst.msk [vmem:[#allocation5 + $0x60] sm:$0xff] %vm6044_vm6, %v6021_v1 }
 0x383   : > { %v6566_v17 = vpop.permute.xlu0 %6565  ;;  %v13713_v8 = vsub.s32 %v8344_v5, %v8346_v3 }
 0x384   : > { %6602 = vst.msk [vmem:[#allocation5 + $0x60] sm:$0xff] %vm6589_vm7, %v6566_v17 }
 0x387   : > { %v6887_v7 = vpop.permute.xlu0 %6886 }
 0x388   : > { %6923 = vst.msk [vmem:[#allocation5 + $0x60] sm:$0xff] %vm6910_vm8, %v6887_v7 }
 0x389   : > { %v7604_v58 = vpop.permute.xlu1 %7603 }
 0x38a   : > { %7643 = vst.msk [vmem:[#allocation5 + $0x48] sm:$0xff] %vm7633_vm13, %v7604_v58 }
 0x38b   : > { %7964 = vst.msk [vmem:[#allocation5 + $0x48] sm:$0xff] %vm7954_vm1, %v7925_v29  ;;  %v7065_v0 = vpop.permute.xlu0 %7064 }
 0x38c   : > { %7101 = vst.msk [vmem:[#allocation5 + $0x60] sm:$0xff] %vm7088_vm12, %v7065_v0 }
 0x38e   : > { %v5521_v25 = vpop.permute.xlu1 %5520 }
 0x38f   : > { %5558 = vst.msk [vmem:[#allocation5 + $0x58] sm:$0xff] %vm5546_vm2, %v5521_v25 }
 0x390   : > { %5879 = vst.msk [vmem:[#allocation5 + $0x58] sm:$0xff] %vm5867_vm5, %v5842_v33 }
 0x391   : > { %6056 = vst.msk [vmem:[#allocation5 + $0x58] sm:$0xff] %vm6044_vm6, %v13567_v50 }
 0x392   : > { %6601 = vst.msk [vmem:[#allocation5 + $0x58] sm:$0xff] %vm6589_vm7, %v6564_v53  ;;  %v5846_v48 = vpop.permute.xlu1 %5845  ;;  %v7980_v13 = vld [vmem:[#allocation5 + $0x48] sm:$0xff] }
 0x393   : > { %6922 = vst.msk [vmem:[#allocation5 + $0x58] sm:$0xff] %vm6910_vm8, %v6885_v15  ;;  %11072 = vmatmul.mubr.msk.bf16.gmra.mrb[16].mxu1 %vm8030_vm3, %v7980_v13 }
 0x394   : > { %7100 = vst.msk [vmem:[#allocation5 + $0x58] sm:$0xff] %vm7088_vm12, %v7063_v16  ;;  %11075 = vmatprep.mubr.msk.bf16.mxu1 %vm8030_vm3, %v7981_v6  ;;  %v7610_v62 = vpop.permute.xlu0 %7609 }
 0x395   : > { %7646 = vst.msk [vmem:[#allocation5 + $0x60] sm:$0xff] %vm7633_vm13, %v7610_v62 }
 0x398   : > { %v6568_v19 = vpop.permute.xlu1 %6567  ;;  %v7931_v21 = vpop.permute.xlu0 %7930 }
 0x399   : > { %7967 = vst.msk [vmem:[#allocation5 + $0x60] sm:$0xff] %vm7954_vm1, %v7931_v21 }
 0x39d   : > { %v7933_v50 = vpop.permute.xlu0 %7932 }
 0x39e   : > { %v7608_v43 = vpop.permute.xlu1 %7607 }
 0x39f   : > { %7645 = vst.msk [vmem:[#allocation5 + $0x58] sm:$0xff] %vm7633_vm13, %v7608_v43 }
 0x3a0   : > { %7966 = vst.msk [vmem:[#allocation5 + $0x58] sm:$0xff] %vm7954_vm1, %v7929_v12  ;;  %v7983_v35 = vld [vmem:[#allocation5 + $0x60] sm:$0xff] }
 0x3a3   : > { %v5848_v42 = vpop.permute.xlu0 %5847 }
 0x3a4   : > { %v5525_v41 = vpop.permute.xlu1 %5524 }
 0x3a5   : > { %5560 = vst.msk [vmem:[#allocation5 + $0x68] sm:$0xff] %vm5546_vm2, %v5525_v41 }
 0x3a6   : > { %5881 = vst.msk [vmem:[#allocation5 + $0x68] sm:$0xff] %vm5867_vm5, %v5846_v48 }
 0x3a7   : > { %6058 = vst.msk [vmem:[#allocation5 + $0x68] sm:$0xff] %vm6044_vm6, %v6023_v32  ;;  %v7982_v59 = vld [vmem:[#allocation5 + $0x58] sm:$0xff]  ;;  %v6025_v10 = vpop.permute.xlu0 %6024 }
 0x3a8   : > { %6603 = vst.msk [vmem:[#allocation5 + $0x68] sm:$0xff] %vm6589_vm7, %v6568_v19  ;;  %v6889_v4 = vpop.permute.xlu1 %6888  ;;  %11076 = vmatmul.mubr.msk.bf16.gmra.mrb[20].mxu1 %vm8030_vm3, %v7982_v59 }
 0x3a9   : > { %6924 = vst.msk [vmem:[#allocation5 + $0x68] sm:$0xff] %vm6910_vm8, %v6889_v4  ;;  %11079 = vmatprep.mubr.msk.bf16.mxu1 %vm8030_vm3, %v7983_v35 }
 0x3ac   : > { %v7067_v63 = vpop.permute.xlu1 %7066 }
 0x3ad   : > { %7102 = vst.msk [vmem:[#allocation5 + $0x68] sm:$0xff] %vm7088_vm12, %v7067_v63  ;;  %v6570_v27 = vpop.permute.xlu0 %6569 }
 0x3b0   : > { %v7612_v60 = vpop.permute.xlu1 %7611 }
 0x3b1   : > { %7647 = vst.msk [vmem:[#allocation5 + $0x68] sm:$0xff] %vm7633_vm13, %v7612_v60  ;;  %v6891_v54 = vpop.permute.xlu0 %6890 }
 0x3b2   : > { %7968 = vst.msk [vmem:[#allocation5 + $0x68] sm:$0xff] %vm7954_vm1, %v7933_v50 }
 0x3b5   : > { %v7069_v30 = vpop.permute.xlu0 %7068 }
 0x3b8   : > { %v5527_v45 = vpop.permute.xlu1 %5526 }
 0x3b9   : > { %5561 = vst.msk [vmem:[#allocation5 + $0x70] sm:$0xff] %vm5546_vm2, %v5527_v45  ;;  %v7984_v20 = vld [vmem:[#allocation5 + $0x68] sm:$0xff] }
 0x3ba   : > { %5882 = vst.msk [vmem:[#allocation5 + $0x70] sm:$0xff] %vm5867_vm5, %v5848_v42  ;;  %11080 = vmatmul.mubr.msk.bf16.gmra.mrb[24].mxu1 %vm8030_vm3, %v7984_v20 }
 0x3bb   : > { %6059 = vst.msk [vmem:[#allocation5 + $0x70] sm:$0xff] %vm6044_vm6, %v6025_v10 }
 0x3bc   : > { %6604 = vst.msk [vmem:[#allocation5 + $0x70] sm:$0xff] %vm6589_vm7, %v6570_v27  ;;  %v5529_v39 = vpop.permute.xlu1 %5528 }
 0x3bd   : > { %6925 = vst.msk [vmem:[#allocation5 + $0x70] sm:$0xff] %vm6910_vm8, %v6891_v54 }
 0x3be   : > { %5562 = vst.msk [vmem:[#allocation5 + $0x78] sm:$0xff] %vm5546_vm2, %v5529_v39  ;;  %v7614_v34 = vpop.permute.xlu0 %7613  ;;  %vm9925_vm2 = vcmask 1046534  }
 0x3bf   : > { %7103 = vst.msk [vmem:[#allocation5 + $0x70] sm:$0xff] %vm7088_vm12, %v7069_v30 }
 0x3c0   : > { %7648 = vst.msk [vmem:[#allocation5 + $0x70] sm:$0xff] %vm7633_vm13, %v7614_v34  ;;  %v5850_v52 = vpop.permute.xlu1 %5849 }
 0x3c1   : > { %5883 = vst.msk [vmem:[#allocation5 + $0x78] sm:$0xff] %vm5867_vm5, %v5850_v52  ;;  %vm9928_vm5 = vcmask 1047559  }
 0x3c2   : > { %v7935_v46 = vpop.permute.xlu0 %7934 }
 0x3c3   : > { %7969 = vst.msk [vmem:[#allocation5 + $0x70] sm:$0xff] %vm7954_vm1, %v7935_v46 }
 0x3c4   : > { %v6027_v36 = vpop.permute.xlu1 %6026 }
 0x3c5   : > { %6060 = vst.msk [vmem:[#allocation5 + $0x78] sm:$0xff] %vm6044_vm6, %v6027_v36  ;;  %vm10044_vm6 = vcmask 125952  }
 0x3c8   : > { %v6572_v38 = vpop.permute.xlu1 %6571 }
 0x3c9   : > { %6605 = vst.msk [vmem:[#allocation5 + $0x78] sm:$0xff] %vm6589_vm7, %v6572_v38 }
 0x3ca   : > { %v7985_v37 = vld [vmem:[#allocation5 + $0x70] sm:$0xff] }
 0x3cb   : > { %11083 = vmatprep.mubr.msk.bf16.mxu1 %vm8030_vm3, %v7985_v37 }
 0x3cc   : > { %v6893_v28 = vpop.permute.xlu1 %6892 }
 0x3cd   : > { %6926 = vst.msk [vmem:[#allocation5 + $0x78] sm:$0xff] %vm6910_vm8, %v6893_v28 }
 0x3d0   : > { %v7071_v55 = vpop.permute.xlu1 %7070  ;;  %v11057_v51 = vpop.f32.mrb[0].mxu1 }
 0x3d1   : > { %7104 = vst.msk [vmem:[#allocation5 + $0x78] sm:$0xff] %vm7088_vm12, %v7071_v55  ;;  %v8126_v56 = vadd.f32 %v11057_v51, %v13709_v2  ;;  %v8117_v31 = vpop.f32.mrb[1].mxu1 }
 0x3d2   : > { %v8118_v9 = vadd.f32 %v13709_v2, %v8117_v31  ;;  %v11058_v61 = vpop.f32.mrb[2].mxu1 }
 0x3d3   : > { %v8246_v29 = vmax.f32 %v8126_v56, 0.0  ;;  %v8129_v26 = vadd.f32 %v11058_v61, %v13709_v2  ;;  %v8120_v40 = vpop.f32.mrb[3].mxu1 }
 0x3d4   : > { %v7616_v22 = vpop.permute.xlu1 %7615  ;;  %v8244_v15 = vmax.f32 %v8118_v9, 0.0  ;;  %v8121_v23 = vadd.f32 %v13709_v2, %v8120_v40 }
 0x3d5   : > { %7649 = vst.msk [vmem:[#allocation5 + $0x78] sm:$0xff] %vm7633_vm13, %v7616_v22  ;;  %v8375_v47 = vcombine.high %v8246_v29, %v8246_v29  ;;  %v8382_v33 = vrot.slane %v8246_v29, %v13713_v8  ;;  %v8247_v14 = vmax.f32 %v8129_v26, 0.0 }
 0x3d6   : > { %8279 = vst.msk [vmem:[%s13720_s19 + $0x10] sm:$0xff] %vm8276_vm9, %v8246_v29  ;;  %8277 = vst.msk [vmem:[%s13720_s19] sm:$0xff] %vm8276_vm9, %v8244_v15  ;;  %v8341_v32 = vcombine.high %v8244_v15, %v8244_v15  ;;  %v8348_v1 = vrot.slane %v8244_v15, %v13713_v8  ;;  %v8245_v53 = vmax.f32 %v8121_v23, 0.0 }
 0x3d7   : > { %v8389_v44 = vrot.slane %v8375_v47, %v13713_v8  ;;  %v8390_v16 = vcombine.high %v8382_v33, %v8382_v33  ;;  %v10706_v12 = vrot.slane %v8382_v33, 9  ;;  %8280 = vst.msk [vmem:[%s13720_s19 + $0x18] sm:$0xff] %vm8276_vm9, %v8247_v14  ;;  %v8392_v11 = vcombine.high %v8247_v14, %v8247_v14 }
 0x3d8   : > { %v7937_v57 = vpop.permute.xlu1 %7936  ;;  %v8355_v17 = vrot.slane %v8341_v32, %v13713_v8  ;;  %v8356_v7 = vcombine.high %v8348_v1, %v8348_v1  ;;  %v10642_v58 = vrot.slane %v8348_v1, 9  ;;  %v8399_v0 = vrot.slane %v8247_v14, %v13713_v8  ;;  %8278 = vst.msk [vmem:[%s13720_s19 + $0x8] sm:$0xff] %vm8276_vm9, %v8245_v53  ;;  %v11061_v25 = vpop.f32.mrb[4].mxu1 }
 0x3d9   : > { %7970 = vst.msk [vmem:[#allocation5 + $0x78] sm:$0xff] %vm7954_vm1, %v7937_v57  ;;  %v8391_v48 = vcombine.high %v8389_v44, %v8389_v44  ;;  %v10707_v13 = vrot.slane %v8390_v16, 9  ;;  %v10708_v6 = vrot.slane %v8389_v44, 9  ;;  %v9461_v62 = vmax.f32 %v8382_v33, %v10706_v12  ;;  %v8133_v19 = vpop.f32.mrb[5].mxu1 }
 0x3da   : > { %v8357_v50 = vcombine.high %v8355_v17, %v8355_v17  ;;  %v10643_v43 = vrot.slane %v8356_v7, 9  ;;  %v10644_v42 = vrot.slane %v8355_v17, 9  ;;  %v9205_v41 = vmax.f32 %v8348_v1, %v10642_v58  ;;  %v11062_v59 = vpop.f32.mrb[6].mxu1 }
 0x3db   : > { %v10709_v10 = vrot.slane %v8391_v48, 9  ;;  %v9462_v4 = vmax.f32 %v8390_v16, %v10707_v13  ;;  %v9463_v35 = vmax.f32 %v8389_v44, %v10708_v6  ;;  %v8406_v63 = vrot.slane %v8392_v11, %v13713_v8  ;;  %v13741_v27 = vpop.f32.mrb[7].mxu1 }
 0x3dc   : > { %v10645_v60 = vrot.slane %v8357_v50, 9  ;;  %v9206_v54 = vmax.f32 %v8356_v7, %v10643_v43  ;;  %v9207_v45 = vmax.f32 %v8355_v17, %v10644_v42  ;;  %v9525_v30 = vmax.f32 %v9205_v41, %v9461_v62 }
 0x3dd   : > { %v9464_v20 = vmax.f32 %v8391_v48, %v10709_v10  ;;  %v8407_v39 = vcombine.high %v8399_v0, %v8399_v0  ;;  %v8408_v34 = vcombine.high %v8406_v63, %v8406_v63  ;;  %v10710_v52 = vrot.slane %v8399_v0, 9 }
 0x3de   : > { %v9208_v46 = vmax.f32 %v8357_v50, %v10645_v60  ;;  %v9526_v36 = vmax.f32 %v9206_v54, %v9462_v4  ;;  %v9527_v38 = vmax.f32 %v9207_v45, %v9463_v35  ;;  %v10903_v37 = vpack.c.bf16 %v9525_v30, %v9525_v30 }
 0x3df   : > { %v10711_v28 = vrot.slane %v8407_v39, 9  ;;  %v10712_v49 = vrot.slane %v8406_v63, 9  ;;  %v10713_v24 = vrot.slane %v8408_v34, 9  ;;  %v9465_v18 = vmax.f32 %v8399_v0, %v10710_v52 }
 0x3e0   : > { %v7986_v21 = vld [vmem:[#allocation5 + $0x78] sm:$0xff]  ;;  %v9528_v55 = vmax.f32 %v9208_v46, %v9464_v20  ;;  %v10904_v5 = vpack.c.bf16 %v9526_v36, %v9526_v36  ;;  %v10905_v3 = vpack.c.bf16 %v9527_v38, %v9527_v38  ;;  %v9845_v22 = vunpack.c.l.b16 %v10903_v37 }
 0x3e1   : > { %11084 = vmatmul.mubr.msk.bf16.gmra.mrb[28].mxu1 %vm8030_vm3, %v7986_v21  ;;  %v9466_v51 = vmax.f32 %v8407_v39, %v10711_v28  ;;  %v9467_v56 = vmax.f32 %v8406_v63, %v10712_v49  ;;  %v9468_v31 = vmax.f32 %v8408_v34, %v10713_v24  ;;  %v8358_v57 = vcombine.high %v8245_v53, %v8245_v53 }
 0x3e2   : > { %v10906_v9 = vpack.c.bf16 %v9528_v55, %v9528_v55  ;;  %v9846_v61 = vunpack.c.l.b16 %v10904_v5  ;;  %v9847_v29 = vunpack.c.l.b16 %v10905_v3  ;;  %v8365_v26 = vrot.slane %v8245_v53, %v13713_v8 }
 0x3e3   : > { %v8372_v40 = vrot.slane %v8358_v57, %v13713_v8  ;;  %v8142_v15 = vadd.f32 %v11061_v25, %v13709_v2  ;;  %v8134_v23 = vadd.f32 %v13709_v2, %v8133_v19  ;;  %v13748_v47 = vadd.f32 %v11062_v59, %v13709_v2 }
 0x3e4   : > { %v9848_v33 = vunpack.c.l.b16 %v10906_v9  ;;  %v9909_v14 = vrot.slane %v9846_v61, 7  ;;  %v9912_v32 = vrot.slane %v9847_v29, 6  ;;  %v8373_v1 = vcombine.high %v8365_v26, %v8365_v26 }
 0x3e5   : > { %v8374_v44 = vcombine.high %v8372_v40, %v8372_v40  ;;  %v10646_v16 = vrot.slane %v8365_v26, 9  ;;  %v10648_v12 = vrot.slane %v8372_v40, 9  ;;  %v8250_v11 = vmax.f32 %v8142_v15, 0.0 }
 0x3e6   : > { %v9911_v53 = vsel %vm9910_vm10, %v9909_v14, %v9845_v22  ;;  %v9915_v17 = vrot.slane %v9848_v33, 5  ;;  %v10647_v7 = vrot.slane %v8373_v1, 9  ;;  %v8248_v58 = vmax.f32 %v8134_v23, 0.0 }
 0x3e7   : > { %v9914_v0 = vsel %vm9913_vm11, %v9912_v32, %v9911_v53  ;;  %v10649_v25 = vrot.slane %v8374_v44, 9  ;;  %v9209_v48 = vmax.f32 %v8365_v26, %v10646_v16  ;;  %v9211_v13 = vmax.f32 %v8372_v40, %v10648_v12  ;;  %8283 = vst.msk [vmem:[%s13720_s19 + $0x30] sm:$0xff] %vm8276_vm9, %v8250_v11 }
 0x3e8   : > { %v9210_v6 = vmax.f32 %v8373_v1, %v10647_v7  ;;  %v9917_v62 = vsel %vm9916_vm0, %v9915_v17, %v9914_v0  ;;  %v8443_v19 = vcombine.high %v8250_v11, %v8250_v11  ;;  %v8450_v21 = vrot.slane %v8250_v11, %v13713_v8  ;;  %8281 = vst.msk [vmem:[%s13720_s19 + $0x20] sm:$0xff] %vm8276_vm9, %v8248_v58 }
 0x3e9   : > { %v9212_v50 = vmax.f32 %v8374_v44, %v10649_v25  ;;  %v9529_v43 = vmax.f32 %v9209_v48, %v9465_v18  ;;  %v9531_v42 = vmax.f32 %v9211_v13, %v9467_v56  ;;  %v8409_v41 = vcombine.high %v8248_v58, %v8248_v58 }
 0x3ea   : > { %v9530_v59 = vmax.f32 %v9210_v6, %v9466_v51  ;;  %v8457_v10 = vrot.slane %v8443_v19, %v13713_v8  ;;  %v8458_v4 = vcombine.high %v8450_v21, %v8450_v21  ;;  %v10714_v35 = vrot.slane %v8450_v21, 9 }
 0x3eb   : > { %v9532_v63 = vmax.f32 %v9212_v50, %v9468_v31  ;;  %v10907_v60 = vpack.c.bf16 %v9529_v43, %v9529_v43  ;;  %v10909_v54 = vpack.c.bf16 %v9531_v42, %v9531_v42  ;;  %v8416_v45 = vrot.slane %v8248_v58, %v13713_v8 }
 0x3ec   : > { %v10908_v30 = vpack.c.bf16 %v9530_v59, %v9530_v59  ;;  %v8459_v20 = vcombine.high %v8457_v10, %v8457_v10  ;;  %v10715_v39 = vrot.slane %v8458_v4, 9  ;;  %v10716_v34 = vrot.slane %v8457_v10, 9 }
 0x3ed   : > { %v10910_v52 = vpack.c.bf16 %v9532_v63, %v9532_v63  ;;  %v9849_v46 = vunpack.c.l.b16 %v10907_v60  ;;  %v9851_v36 = vunpack.c.l.b16 %v10909_v54  ;;  %v9469_v38 = vmax.f32 %v8450_v21, %v10714_v35 }
 0x3ee   : > { %v9850_v37 = vunpack.c.l.b16 %v10908_v30  ;;  %v10717_v28 = vrot.slane %v8459_v20, 9  ;;  %v9470_v49 = vmax.f32 %v8458_v4, %v10715_v39  ;;  %v9471_v24 = vmax.f32 %v8457_v10, %v10716_v34 }
 0x3ef   : > { %v9852_v18 = vunpack.c.l.b16 %v10910_v52  ;;  %v9918_v55 = vrot.slane %v9849_v46, 4  ;;  %v9924_v5 = vrot.slane %v9851_v36, 2  ;;  %v8423_v3 = vrot.slane %v8409_v41, %v13713_v8 }
 0x3f0   : > { %v9921_v22 = vrot.slane %v9850_v37, 3  ;;  %v9472_v51 = vmax.f32 %v8459_v20, %v10717_v28  ;;  %v8424_v56 = vcombine.high %v8416_v45, %v8416_v45  ;;  %v10650_v31 = vrot.slane %v8416_v45, 9 }
 0x3f1   : > { %v9920_v57 = vsel %vm9919_vm14, %v9918_v55, %v9917_v62  ;;  %v9927_v9 = vrot.slane %v9852_v18, 1  ;;  %v8425_v61 = vcombine.high %v8423_v3, %v8423_v3  ;;  %v10652_v29 = vrot.slane %v8423_v3, 9 }
 0x3f2   : > { %v9923_v26 = vsel %vm9922_vm15, %v9921_v22, %v9920_v57  ;;  %v10651_v40 = vrot.slane %v8424_v56, 9  ;;  %v9213_v15 = vmax.f32 %v8416_v45, %v10650_v31  ;;  %v8251_v23 = vmax.f32 %v13748_v47, 0.0 }
 0x3f3   : > { %v9926_v33 = vsel %vm9925_vm2, %v9924_v5, %v9923_v26  ;;  %v10653_v14 = vrot.slane %v8425_v61, 9  ;;  %v9215_v32 = vmax.f32 %v8423_v3, %v10652_v29  ;;  %v8137_v1 = vadd.f32 %v13709_v2, %v13741_v27 }
 0x3f4   : > { %v9929_v44 = vsel %vm9928_vm5, %v9927_v9, %v9926_v33  ;;  %v9214_v16 = vmax.f32 %v8424_v56, %v10651_v40  ;;  %v9533_v12 = vmax.f32 %v9213_v15, %v9469_v38  ;;  %8284 = vst.msk [vmem:[%s13720_s19 + $0x38] sm:$0xff] %vm8276_vm9, %v8251_v23  ;;  %v8460_v47 = vcombine.high %v8251_v23, %v8251_v23 }
 0x3f5   : > { %v10028_v11 = vpack.c.b16 %v9929_v44, %v9929_v44  ;;  %v9216_v53 = vmax.f32 %v8425_v61, %v10653_v14  ;;  %v9535_v17 = vmax.f32 %v9215_v32, %v9471_v24  ;;  %v8467_v7 = vrot.slane %v8251_v23, %v13713_v8 }
 0x3f6   : > { %v9534_v27 = vmax.f32 %v9214_v16, %v9470_v49  ;;  %v8474_v58 = vrot.slane %v8460_v47, %v13713_v8  ;;  %v8249_v0 = vmax.f32 %v8137_v1, 0.0  ;;  %v10911_v48 = vpack.c.bf16 %v9533_v12, %v9533_v12 }
 0x3f7   : > { %10045 = vst.msk [vmem:[%s13771_s24] sm:$0xf] %vm10044_vm6, %v10028_v11  ;;  %v9536_v25 = vmax.f32 %v9216_v53, %v9472_v51  ;;  %v10913_v13 = vpack.c.bf16 %v9535_v17, %v9535_v17  ;;  %v8475_v6 = vcombine.high %v8467_v7, %v8467_v7  ;;  %v10718_v21 = vrot.slane %v8467_v7, 9 }
 0x3f8   : > { %v10912_v62 = vpack.c.bf16 %v9534_v27, %v9534_v27  ;;  %v8476_v19 = vcombine.high %v8474_v58, %v8474_v58  ;;  %v10720_v50 = vrot.slane %v8474_v58, 9  ;;  %8282 = vst.msk [vmem:[%s13720_s19 + $0x28] sm:$0xff] %vm8276_vm9, %v8249_v0  ;;  %v8426_v4 = vcombine.high %v8249_v0, %v8249_v0 }
 0x3f9   : > { %v10914_v43 = vpack.c.bf16 %v9536_v25, %v9536_v25  ;;  %v9855_v42 = vunpack.c.l.b16 %v10913_v13  ;;  %v10719_v41 = vrot.slane %v8475_v6, 9  ;;  %v9853_v35 = vunpack.c.l.b16 %v10911_v48 }
 0x3fa   : > { %v9854_v59 = vunpack.c.l.b16 %v10912_v62  ;;  %v10721_v10 = vrot.slane %v8476_v19, 9  ;;  %v8433_v54 = vrot.slane %v8249_v0, %v13713_v8  ;;  %v9473_v30 = vmax.f32 %v8467_v7, %v10718_v21 }
 0x3fb   : > { %v9856_v63 = vunpack.c.l.b16 %v10914_v43  ;;  %v9932_v60 = vrot.slane %v9855_v42, 6  ;;  %v9475_v20 = vmax.f32 %v8474_v58, %v10720_v50  ;;  %v8440_v39 = vrot.slane %v8426_v4, %v13713_v8 }
 0x3fc   : > { %v9930_v45 = vrot.slane %v9854_v59, 7  ;;  %v9474_v52 = vmax.f32 %v8475_v6, %v10719_v41  ;;  %v8441_v46 = vcombine.high %v8433_v54, %v8433_v54  ;;  %v10654_v36 = vrot.slane %v8433_v54, 9  ;;  %v11065_v24 = vpop.f32.mrb[8].mxu1 }
 0x3fd   : > { %v9934_v34 = vrot.slane %v9856_v63, 5  ;;  %v9476_v37 = vmax.f32 %v8476_v19, %v10721_v10  ;;  %v8442_v28 = vcombine.high %v8440_v39, %v8440_v39  ;;  %v10656_v49 = vrot.slane %v8440_v39, 9  ;;  %v8149_v22 = vpop.f32.mrb[9].mxu1 }
 0x3fe   : > { %v9931_v38 = vsel %vm9910_vm10, %v9930_v45, %v9853_v35  ;;  %v10655_v55 = vrot.slane %v8441_v46, 9  ;;  %v9217_v5 = vmax.f32 %v8433_v54, %v10654_v36  ;;  %v8158_v3 = vadd.f32 %v11065_v24, %v13709_v2  ;;  %v11066_v9 = vpop.f32.mrb[10].mxu1 }
 0x3ff   : > { %v9933_v18 = vsel %vm9913_vm11, %v9932_v60, %v9931_v38  ;;  %v10657_v51 = vrot.slane %v8442_v28, 9  ;;  %v9219_v56 = vmax.f32 %v8440_v39, %v10656_v49  ;;  %v8150_v57 = vadd.f32 %v13709_v2, %v8149_v22  ;;  %v8152_v15 = vpop.f32.mrb[11].mxu1 }
 0x400   : > { %v9935_v31 = vsel %vm9916_vm0, %v9934_v34, %v9933_v18  ;;  %v9218_v61 = vmax.f32 %v8441_v46, %v10655_v55  ;;  %v9537_v29 = vmax.f32 %v9217_v5, %v9473_v30  ;;  %v8254_v26 = vmax.f32 %v8158_v3, 0.0 }
 0x401   : > { %v8161_v40 = vadd.f32 %v11066_v9, %v13709_v2  ;;  %v9220_v23 = vmax.f32 %v8442_v28, %v10657_v51  ;;  %v9539_v33 = vmax.f32 %v9219_v56, %v9475_v20  ;;  %v8252_v14 = vmax.f32 %v8150_v57, 0.0 }
 0x402   : > { %v8153_v32 = vadd.f32 %v13709_v2, %v8152_v15  ;;  %v9538_v1 = vmax.f32 %v9218_v61, %v9474_v52  ;;  %v10915_v44 = vpack.c.bf16 %v9537_v29, %v9537_v29  ;;  %8287 = vst.msk [vmem:[%s13720_s19 + $0x50] sm:$0xff] %vm8276_vm9, %v8254_v26  ;;  %v8511_v16 = vcombine.high %v8254_v26, %v8254_v26 }
 0x403   : > { %v8518_v12 = vrot.slane %v8254_v26, %v13713_v8  ;;  %v9540_v47 = vmax.f32 %v9220_v23, %v9476_v37  ;;  %v10917_v11 = vpack.c.bf16 %v9539_v33, %v9539_v33  ;;  %8285 = vst.msk [vmem:[%s13720_s19 + $0x40] sm:$0xff] %vm8276_vm9, %v8252_v14  ;;  %v8477_v53 = vcombine.high %v8252_v14, %v8252_v14 }
 0x404   : > { %v8484_v17 = vrot.slane %v8252_v14, %v13713_v8  ;;  %v10916_v7 = vpack.c.bf16 %v9538_v1, %v9538_v1  ;;  %v9857_v27 = vunpack.c.l.b16 %v10915_v44  ;;  %v8525_v58 = vrot.slane %v8511_v16, %v13713_v8 }
 0x405   : > { %v8526_v0 = vcombine.high %v8518_v12, %v8518_v12  ;;  %v10918_v25 = vpack.c.bf16 %v9540_v47, %v9540_v47  ;;  %v9859_v48 = vunpack.c.l.b16 %v10917_v11  ;;  %v10722_v13 = vrot.slane %v8518_v12, 9 }
 0x406   : > { %v8491_v6 = vrot.slane %v8477_v53, %v13713_v8  ;;  %v9858_v62 = vunpack.c.l.b16 %v10916_v7  ;;  %v9936_v19 = vrot.slane %v9857_v27, 4  ;;  %v8527_v21 = vcombine.high %v8525_v58, %v8525_v58 }
 0x407   : > { %v10723_v50 = vrot.slane %v8526_v0, 9  ;;  %v9860_v43 = vunpack.c.l.b16 %v10918_v25  ;;  %v9940_v42 = vrot.slane %v9859_v48, 2  ;;  %v10724_v41 = vrot.slane %v8525_v58, 9 }
 0x408   : > { %v9477_v59 = vmax.f32 %v8518_v12, %v10722_v13  ;;  %v9937_v10 = vsel %vm9919_vm14, %v9936_v19, %v9935_v31  ;;  %v9938_v4 = vrot.slane %v9858_v62, 3  ;;  %v10725_v35 = vrot.slane %v8527_v21, 9 }
 0x409   : > { %v9478_v63 = vmax.f32 %v8526_v0, %v10723_v50  ;;  %v9942_v60 = vrot.slane %v9860_v43, 1  ;;  %v9479_v54 = vmax.f32 %v8525_v58, %v10724_v41  ;;  %v8492_v45 = vcombine.high %v8484_v17, %v8484_v17 }
 0x40a   : > { %v8493_v30 = vcombine.high %v8491_v6, %v8491_v6  ;;  %v9939_v20 = vsel %vm9922_vm15, %v9938_v4, %v9937_v10  ;;  %v9480_v39 = vmax.f32 %v8527_v21, %v10725_v35  ;;  %v10658_v34 = vrot.slane %v8484_v17, 9 }
 0x40b   : > { %v10660_v52 = vrot.slane %v8491_v6, 9  ;;  %v9941_v46 = vsel %vm9925_vm2, %v9940_v42, %v9939_v20  ;;  %v10659_v36 = vrot.slane %v8492_v45, 9  ;;  %v8255_v37 = vmax.f32 %v8161_v40, 0.0 }
 0x40c   : > { %v10661_v38 = vrot.slane %v8493_v30, 9  ;;  %v9943_v28 = vsel %vm9928_vm5, %v9942_v60, %v9941_v46  ;;  %v9221_v49 = vmax.f32 %v8484_v17, %v10658_v34  ;;  %v8253_v18 = vmax.f32 %v8153_v32, 0.0 }
 0x40d   : > { %v9223_v24 = vmax.f32 %v8491_v6, %v10660_v52  ;;  %v10029_v55 = vpack.c.b16 %v9943_v28, %v9943_v28  ;;  %v9222_v5 = vmax.f32 %v8492_v45, %v10659_v36  ;;  %8288 = vst.msk [vmem:[%s13720_s19 + $0x58] sm:$0xff] %vm8276_vm9, %v8255_v37  ;;  %v8528_v22 = vcombine.high %v8255_v37, %v8255_v37 }
 0x40e   : > { %v9224_v3 = vmax.f32 %v8493_v30, %v10661_v38  ;;  %v9541_v51 = vmax.f32 %v9221_v49, %v9477_v59  ;;  %v8535_v31 = vrot.slane %v8255_v37, %v13713_v8  ;;  %8286 = vst.msk [vmem:[%s13720_s19 + $0x48] sm:$0xff] %vm8276_vm9, %v8253_v18  ;;  %v8494_v57 = vcombine.high %v8253_v18, %v8253_v18 }
 0x40f   : > { %v9543_v56 = vmax.f32 %v9223_v24, %v9479_v54  ;;  %10046 = vst.msk [vmem:[%s13771_s24 + $0x4] sm:$0xf] %vm10044_vm6, %v10029_v55  ;;  %v9542_v9 = vmax.f32 %v9222_v5, %v9478_v63  ;;  %v8542_v29 = vrot.slane %v8528_v22, %v13713_v8  ;;  %v8501_v26 = vrot.slane %v8253_v18, %v13713_v8 }
 0x410   : > { %v9544_v61 = vmax.f32 %v9224_v3, %v9480_v39  ;;  %v10919_v40 = vpack.c.bf16 %v9541_v51, %v9541_v51  ;;  %v8543_v23 = vcombine.high %v8535_v31, %v8535_v31  ;;  %v10726_v33 = vrot.slane %v8535_v31, 9 }
 0x411   : > { %v10921_v15 = vpack.c.bf16 %v9543_v56, %v9543_v56  ;;  %v10920_v14 = vpack.c.bf16 %v9542_v9, %v9542_v9  ;;  %v8544_v1 = vcombine.high %v8542_v29, %v8542_v29  ;;  %v10728_v44 = vrot.slane %v8542_v29, 9 }
 0x412   : > { %v10922_v32 = vpack.c.bf16 %v9544_v61, %v9544_v61  ;;  %v10727_v12 = vrot.slane %v8543_v23, 9  ;;  %v9861_v47 = vunpack.c.l.b16 %v10919_v40  ;;  %v9481_v27 = vmax.f32 %v8535_v31, %v10726_v33 }
 0x413   : > { %v9863_v16 = vunpack.c.l.b16 %v10921_v15  ;;  %v9862_v11 = vunpack.c.l.b16 %v10920_v14  ;;  %v10729_v17 = vrot.slane %v8544_v1, 9  ;;  %v8508_v58 = vrot.slane %v8494_v57, %v13713_v8 }
 0x414   : > { %v9864_v53 = vunpack.c.l.b16 %v10922_v32  ;;  %v8509_v0 = vcombine.high %v8501_v26, %v8501_v26  ;;  %v9483_v13 = vmax.f32 %v8542_v29, %v10728_v44  ;;  %v10662_v6 = vrot.slane %v8501_v26, 9 }
 0x415   : > { %v9946_v7 = vrot.slane %v9863_v16, 6  ;;  %v9944_v25 = vrot.slane %v9862_v11, 7  ;;  %v9482_v62 = vmax.f32 %v8543_v23, %v10727_v12  ;;  %v8510_v19 = vcombine.high %v8508_v58, %v8508_v58 }
 0x416   : > { %v9948_v48 = vrot.slane %v9864_v53, 5  ;;  %v10663_v21 = vrot.slane %v8509_v0, 9  ;;  %v10664_v50 = vrot.slane %v8508_v58, 9  ;;  %v9484_v42 = vmax.f32 %v8544_v1, %v10729_v17 }
 0x417   : > { %v9945_v43 = vsel %vm9910_vm10, %v9944_v25, %v9861_v47  ;;  %v9225_v41 = vmax.f32 %v8501_v26, %v10662_v6  ;;  %v10665_v10 = vrot.slane %v8510_v19, 9 }
 0x418   : > { %v9947_v59 = vsel %vm9913_vm11, %v9946_v7, %v9945_v43  ;;  %v9226_v4 = vmax.f32 %v8509_v0, %v10663_v21  ;;  %v9227_v35 = vmax.f32 %v8508_v58, %v10664_v50 }
 0x419   : > { %v9545_v63 = vmax.f32 %v9225_v41, %v9481_v27  ;;  %v9949_v60 = vsel %vm9916_vm0, %v9948_v48, %v9947_v59  ;;  %v9228_v54 = vmax.f32 %v8510_v19, %v10665_v10 }
 0x41a   : > { %v9546_v45 = vmax.f32 %v9226_v4, %v9482_v62  ;;  %v9547_v30 = vmax.f32 %v9227_v35, %v9483_v13 }
 0x41b   : > { %v10923_v20 = vpack.c.bf16 %v9545_v63, %v9545_v63  ;;  %v9548_v39 = vmax.f32 %v9228_v54, %v9484_v42 }
 0x41c   : > { %v10924_v34 = vpack.c.bf16 %v9546_v45, %v9546_v45  ;;  %v10925_v52 = vpack.c.bf16 %v9547_v30, %v9547_v30 }
 0x41d   : > { %v9865_v46 = vunpack.c.l.b16 %v10923_v20  ;;  %v10926_v36 = vpack.c.bf16 %v9548_v39, %v9548_v39 }
 0x41e   : > { %v9866_v38 = vunpack.c.l.b16 %v10924_v34  ;;  %v9867_v37 = vunpack.c.l.b16 %v10925_v52 }
 0x41f   : > { %v9950_v28 = vrot.slane %v9865_v46, 4  ;;  %v9868_v49 = vunpack.c.l.b16 %v10926_v36 }
 0x420   : > { %v9952_v24 = vrot.slane %v9866_v38, 3  ;;  %v9954_v55 = vrot.slane %v9867_v37, 2 }
 0x421   : > { %v9951_v18 = vsel %vm9919_vm14, %v9950_v28, %v9949_v60  ;;  %v9956_v3 = vrot.slane %v9868_v49, 1 }
 0x422   : > { %v9953_v5 = vsel %vm9922_vm15, %v9952_v24, %v9951_v18 }
 0x423   : > { %v9955_v22 = vsel %vm9925_vm2, %v9954_v55, %v9953_v5 }
 0x424   : > { %v9957_v51 = vsel %vm9928_vm5, %v9956_v3, %v9955_v22 }
 0x425   : > { %v10030_v56 = vpack.c.b16 %v9957_v51, %v9957_v51 }
 0x427   : > { %10047 = vst.msk [vmem:[%s13771_s24 + $0x8] sm:$0xf] %vm10044_vm6, %v10030_v56 }
 0x42a   : > { %v11069_v31 = vpop.f32.mrb[12].mxu1 }
 0x42b   : > { %v8174_v57 = vadd.f32 %v11069_v31, %v13709_v2  ;;  %v8165_v9 = vpop.f32.mrb[13].mxu1 }
 0x42c   : > { %v8166_v61 = vadd.f32 %v13709_v2, %v8165_v9  ;;  %v11070_v29 = vpop.f32.mrb[14].mxu1 }
 0x42d   : > { %v8258_v26 = vmax.f32 %v8174_v57, 0.0  ;;  %v8177_v40 = vadd.f32 %v11070_v29, %v13709_v2  ;;  %v8168_v15 = vpop.f32.mrb[15].mxu1 }
 0x42e   : > { %v8256_v23 = vmax.f32 %v8166_v61, 0.0  ;;  %v8169_v33 = vadd.f32 %v13709_v2, %v8168_v15 }
 0x42f   : > { %8291 = vst.msk [vmem:[%s13720_s19 + $0x70] sm:$0xff] %vm8276_vm9, %v8258_v26  ;;  %v8579_v14 = vcombine.high %v8258_v26, %v8258_v26  ;;  %v8586_v32 = vrot.slane %v8258_v26, %v13713_v8  ;;  %v8259_v1 = vmax.f32 %v8177_v40, 0.0 }
 0x430   : > { %8289 = vst.msk [vmem:[%s13720_s19 + $0x60] sm:$0xff] %vm8276_vm9, %v8256_v23  ;;  %v8545_v44 = vcombine.high %v8256_v23, %v8256_v23  ;;  %v8552_v16 = vrot.slane %v8256_v23, %v13713_v8  ;;  %v8257_v12 = vmax.f32 %v8169_v33, 0.0 }
 0x431   : > { %v8593_v47 = vrot.slane %v8579_v14, %v13713_v8  ;;  %v8594_v11 = vcombine.high %v8586_v32, %v8586_v32  ;;  %v10730_v53 = vrot.slane %v8586_v32, 9  ;;  %8292 = vst.msk [vmem:[%s13720_s19 + $0x78] sm:$0xff] %vm8276_vm9, %v8259_v1  ;;  %v8596_v17 = vcombine.high %v8259_v1, %v8259_v1 }
 0x432   : > { %v8559_v7 = vrot.slane %v8545_v44, %v13713_v8  ;;  %v8560_v27 = vcombine.high %v8552_v16, %v8552_v16  ;;  %v10666_v58 = vrot.slane %v8552_v16, 9  ;;  %v8603_v0 = vrot.slane %v8259_v1, %v13713_v8  ;;  %8290 = vst.msk [vmem:[%s13720_s19 + $0x68] sm:$0xff] %vm8276_vm9, %v8257_v12 }
 0x433   : > { %v8595_v25 = vcombine.high %v8593_v47, %v8593_v47  ;;  %v10731_v48 = vrot.slane %v8594_v11, 9  ;;  %v10732_v13 = vrot.slane %v8593_v47, 9  ;;  %v9485_v6 = vmax.f32 %v8586_v32, %v10730_v53 }
 0x434   : > { %v8561_v62 = vcombine.high %v8559_v7, %v8559_v7  ;;  %v10667_v19 = vrot.slane %v8560_v27, 9  ;;  %v10668_v21 = vrot.slane %v8559_v7, 9  ;;  %v9229_v50 = vmax.f32 %v8552_v16, %v10666_v58 }
 0x435   : > { %v10733_v43 = vrot.slane %v8595_v25, 9  ;;  %v9486_v42 = vmax.f32 %v8594_v11, %v10731_v48  ;;  %v9487_v41 = vmax.f32 %v8593_v47, %v10732_v13  ;;  %v8610_v59 = vrot.slane %v8596_v17, %v13713_v8 }
 0x436   : > { %v10669_v10 = vrot.slane %v8561_v62, 9  ;;  %v9230_v4 = vmax.f32 %v8560_v27, %v10667_v19  ;;  %v9231_v35 = vmax.f32 %v8559_v7, %v10668_v21  ;;  %v9549_v63 = vmax.f32 %v9229_v50, %v9485_v6 }
 0x437   : > { %v9488_v60 = vmax.f32 %v8595_v25, %v10733_v43  ;;  %v8611_v54 = vcombine.high %v8603_v0, %v8603_v0  ;;  %v8612_v45 = vcombine.high %v8610_v59, %v8610_v59  ;;  %v10734_v52 = vrot.slane %v8603_v0, 9 }
 0x438   : > { %v9232_v30 = vmax.f32 %v8561_v62, %v10669_v10  ;;  %v9550_v20 = vmax.f32 %v9230_v4, %v9486_v42  ;;  %v9551_v39 = vmax.f32 %v9231_v35, %v9487_v41  ;;  %v10927_v34 = vpack.c.bf16 %v9549_v63, %v9549_v63 }
 0x439   : > { %v10735_v46 = vrot.slane %v8611_v54, 9  ;;  %v10736_v28 = vrot.slane %v8610_v59, 9  ;;  %v10737_v49 = vrot.slane %v8612_v45, 9  ;;  %v8562_v24 = vcombine.high %v8257_v12, %v8257_v12 }
 0x43a   : > { %v9552_v36 = vmax.f32 %v9232_v30, %v9488_v60  ;;  %v10928_v38 = vpack.c.bf16 %v9550_v20, %v9550_v20  ;;  %v10929_v37 = vpack.c.bf16 %v9551_v39, %v9551_v39  ;;  %v8569_v3 = vrot.slane %v8257_v12, %v13713_v8 }
 0x43b   : > { %v9869_v22 = vunpack.c.l.b16 %v10927_v34  ;;  %v9489_v51 = vmax.f32 %v8603_v0, %v10734_v52  ;;  %v9490_v56 = vmax.f32 %v8611_v54, %v10735_v46  ;;  %v8576_v31 = vrot.slane %v8562_v24, %v13713_v8 }
 0x43c   : > { %v10930_v18 = vpack.c.bf16 %v9552_v36, %v9552_v36  ;;  %v9870_v55 = vunpack.c.l.b16 %v10928_v38  ;;  %v9871_v5 = vunpack.c.l.b16 %v10929_v37  ;;  %v8577_v29 = vcombine.high %v8569_v3, %v8569_v3 }
 0x43d   : > { %v9491_v26 = vmax.f32 %v8610_v59, %v10736_v28  ;;  %v8578_v40 = vcombine.high %v8576_v31, %v8576_v31  ;;  %v10670_v15 = vrot.slane %v8569_v3, 9  ;;  %v10672_v23 = vrot.slane %v8576_v31, 9 }
 0x43e   : > { %v9872_v57 = vunpack.c.l.b16 %v10930_v18  ;;  %v9958_v9 = vrot.slane %v9870_v55, 7  ;;  %v9960_v61 = vrot.slane %v9871_v5, 6  ;;  %v9492_v32 = vmax.f32 %v8612_v45, %v10737_v49 }
 0x43f   : > { %v10671_v1 = vrot.slane %v8577_v29, 9  ;;  %v10673_v16 = vrot.slane %v8578_v40, 9  ;;  %v9233_v12 = vmax.f32 %v8569_v3, %v10670_v15  ;;  %v9235_v47 = vmax.f32 %v8576_v31, %v10672_v23 }
 0x440   : > { %v9959_v33 = vsel %vm9910_vm10, %v9958_v9, %v9869_v22  ;;  %v9962_v14 = vrot.slane %v9872_v57, 5 }
 0x441   : > { %v9961_v44 = vsel %vm9913_vm11, %v9960_v61, %v9959_v33  ;;  %v9234_v11 = vmax.f32 %v8577_v29, %v10671_v1  ;;  %v9236_v17 = vmax.f32 %v8578_v40, %v10673_v16  ;;  %v9553_v7 = vmax.f32 %v9233_v12, %v9489_v51 }
 0x442   : > { %v9963_v53 = vsel %vm9916_vm0, %v9962_v14, %v9961_v44  ;;  %v9555_v27 = vmax.f32 %v9235_v47, %v9491_v26 }
 0x443   : > { %v9554_v58 = vmax.f32 %v9234_v11, %v9490_v56  ;;  %v9556_v0 = vmax.f32 %v9236_v17, %v9492_v32  ;;  %v10931_v25 = vpack.c.bf16 %v9553_v7, %v9553_v7 }
 0x444   : > { %v10933_v48 = vpack.c.bf16 %v9555_v27, %v9555_v27 }
 0x445   : > { %v10932_v13 = vpack.c.bf16 %v9554_v58, %v9554_v58  ;;  %v10934_v6 = vpack.c.bf16 %v9556_v0, %v9556_v0  ;;  %v9873_v62 = vunpack.c.l.b16 %v10931_v25 }
 0x446   : > { %v9875_v19 = vunpack.c.l.b16 %v10933_v48 }
 0x447   : > { %v9874_v21 = vunpack.c.l.b16 %v10932_v13  ;;  %v9876_v50 = vunpack.c.l.b16 %v10934_v6  ;;  %v9964_v43 = vrot.slane %v9873_v62, 4 }
 0x448   : > { %v9968_v59 = vrot.slane %v9875_v19, 2 }
 0x449   : > { %v9966_v42 = vrot.slane %v9874_v21, 3  ;;  %v9965_v41 = vsel %vm9919_vm14, %v9964_v43, %v9963_v53  ;;  %v9970_v4 = vrot.slane %v9876_v50, 1 }
 0x44b   : > { %v9967_v10 = vsel %vm9922_vm15, %v9966_v42, %v9965_v41 }
 0x44c   : > { %v9969_v35 = vsel %vm9925_vm2, %v9968_v59, %v9967_v10 }
 0x44d   : > { %v9971_v63 = vsel %vm9928_vm5, %v9970_v4, %v9969_v35 }
 0x44e   : > { %v10031_v60 = vpack.c.b16 %v9971_v63, %v9971_v63 }
 0x450   : > { %10048 = vst.msk [vmem:[%s13771_s24 + $0xc] sm:$0xf] %vm10044_vm6, %v10031_v60 }
 0x466   : > { %v11073_v54 = vpop.f32.mrb[16].mxu1 }
 0x467   : > { %v8190_v45 = vadd.f32 %v11073_v54, %v13709_v2  ;;  %v8181_v30 = vpop.f32.mrb[17].mxu1 }
 0x468   : > { %v8182_v20 = vadd.f32 %v13709_v2, %v8181_v30  ;;  %v11074_v39 = vpop.f32.mrb[18].mxu1 }
 0x469   : > { %v8262_v34 = vmax.f32 %v8190_v45, 0.0  ;;  %v8193_v52 = vadd.f32 %v11074_v39, %v13709_v2  ;;  %v8184_v46 = vpop.f32.mrb[19].mxu1 }
 0x46a   : > { %v8260_v36 = vmax.f32 %v8182_v20, 0.0  ;;  %v8185_v38 = vadd.f32 %v13709_v2, %v8184_v46 }
 0x46b   : > { %8295 = vst.msk [vmem:[%s13720_s19 + $0x90] sm:$0xff] %vm8276_vm9, %v8262_v34  ;;  %v8647_v37 = vcombine.high %v8262_v34, %v8262_v34  ;;  %v8654_v28 = vrot.slane %v8262_v34, %v13713_v8  ;;  %v8263_v49 = vmax.f32 %v8193_v52, 0.0 }
 0x46c   : > { %8293 = vst.msk [vmem:[%s13720_s19 + $0x80] sm:$0xff] %vm8276_vm9, %v8260_v36  ;;  %v8613_v24 = vcombine.high %v8260_v36, %v8260_v36  ;;  %v8620_v18 = vrot.slane %v8260_v36, %v13713_v8  ;;  %v8261_v55 = vmax.f32 %v8185_v38, 0.0 }
 0x46d   : > { %v8661_v5 = vrot.slane %v8647_v37, %v13713_v8  ;;  %v8662_v3 = vcombine.high %v8654_v28, %v8654_v28  ;;  %v10738_v22 = vrot.slane %v8654_v28, 9  ;;  %8296 = vst.msk [vmem:[%s13720_s19 + $0x98] sm:$0xff] %vm8276_vm9, %v8263_v49  ;;  %v8664_v2 = vcombine.high %v8263_v49, %v8263_v49 }
 0x46e   : > { %v8627_v51 = vrot.slane %v8613_v24, %v13713_v8  ;;  %v8628_v56 = vcombine.high %v8620_v18, %v8620_v18  ;;  %v10674_v31 = vrot.slane %v8620_v18, 9  ;;  %v8671_v57 = vrot.slane %v8263_v49, %v13713_v8  ;;  %8294 = vst.msk [vmem:[%s13720_s19 + $0x88] sm:$0xff] %vm8276_vm9, %v8261_v55  ;;  %v13875_v24 = vld [vmem:[%s13988_s4] ss:$0 sm:$0xff] }
 0x46f   : > { %v8663_v9 = vcombine.high %v8661_v5, %v8661_v5  ;;  %v10739_v61 = vrot.slane %v8662_v3, 9  ;;  %v10740_v29 = vrot.slane %v8661_v5, 9  ;;  %v9493_v26 = vmax.f32 %v8654_v28, %v10738_v22 }
 0x470   : > { %v8629_v40 = vcombine.high %v8627_v51, %v8627_v51  ;;  %v10675_v15 = vrot.slane %v8628_v56, 9  ;;  %v10676_v23 = vrot.slane %v8627_v51, 9  ;;  %v9237_v33 = vmax.f32 %v8620_v18, %v10674_v31 }
 0x471   : > { %v10741_v14 = vrot.slane %v8663_v9, 9  ;;  %v9494_v32 = vmax.f32 %v8662_v3, %v10739_v61  ;;  %v9495_v1 = vmax.f32 %v8661_v5, %v10740_v29  ;;  %v8678_v44 = vrot.slane %v8664_v2, %v13713_v8 }
 0x472   : > { %v10677_v16 = vrot.slane %v8629_v40, 9  ;;  %v9238_v12 = vmax.f32 %v8628_v56, %v10675_v15  ;;  %v9239_v47 = vmax.f32 %v8627_v51, %v10676_v23  ;;  %v9557_v11 = vmax.f32 %v9237_v33, %v9493_v26 }
 0x473   : > { %v9496_v53 = vmax.f32 %v8663_v9, %v10741_v14  ;;  %v8679_v17 = vcombine.high %v8671_v57, %v8671_v57  ;;  %v8680_v7 = vcombine.high %v8678_v44, %v8678_v44  ;;  %v10742_v27 = vrot.slane %v8671_v57, 9 }
 0x474   : > { %v9240_v58 = vmax.f32 %v8629_v40, %v10677_v16  ;;  %v9558_v0 = vmax.f32 %v9238_v12, %v9494_v32  ;;  %v9559_v25 = vmax.f32 %v9239_v47, %v9495_v1  ;;  %v10935_v48 = vpack.c.bf16 %v9557_v11, %v9557_v11 }
 0x475   : > { %v10743_v13 = vrot.slane %v8679_v17, 9  ;;  %v10744_v6 = vrot.slane %v8678_v44, 9  ;;  %v10745_v50 = vrot.slane %v8680_v7, 9  ;;  %v9497_v43 = vmax.f32 %v8671_v57, %v10742_v27 }
 0x476   : > { %v9560_v62 = vmax.f32 %v9240_v58, %v9496_v53  ;;  %v10936_v19 = vpack.c.bf16 %v9558_v0, %v9558_v0  ;;  %v10937_v21 = vpack.c.bf16 %v9559_v25, %v9559_v25  ;;  %v8630_v42 = vcombine.high %v8261_v55, %v8261_v55 }
 0x477   : > { %v8637_v4 = vrot.slane %v8261_v55, %v13713_v8  ;;  %v9877_v35 = vunpack.c.l.b16 %v10935_v48  ;;  %v9498_v63 = vmax.f32 %v8679_v17, %v10743_v13  ;;  %v9499_v60 = vmax.f32 %v8678_v44, %v10744_v6 }
 0x478   : > { %v10938_v41 = vpack.c.bf16 %v9560_v62, %v9560_v62  ;;  %v9878_v59 = vunpack.c.l.b16 %v10936_v19  ;;  %v9879_v10 = vunpack.c.l.b16 %v10937_v21  ;;  %v8644_v54 = vrot.slane %v8630_v42, %v13713_v8 }
 0x479   : > { %v8645_v39 = vcombine.high %v8637_v4, %v8637_v4  ;;  %v9500_v34 = vmax.f32 %v8680_v7, %v10745_v50  ;;  %v10678_v46 = vrot.slane %v8637_v4, 9 }
 0x47a   : > { %v9880_v45 = vunpack.c.l.b16 %v10938_v41  ;;  %v9972_v30 = vrot.slane %v9878_v59, 7  ;;  %v9974_v20 = vrot.slane %v9879_v10, 6  ;;  %v8646_v52 = vcombine.high %v8644_v54, %v8644_v54 }
 0x47b   : > { %v10680_v36 = vrot.slane %v8644_v54, 9  ;;  %v11077_v38 = vpop.f32.mrb[20].mxu1  ;;  %v10679_v49 = vrot.slane %v8645_v39, 9  ;;  %v9241_v22 = vmax.f32 %v8637_v4, %v10678_v46 }
 0x47c   : > { %v9973_v37 = vsel %vm9910_vm10, %v9972_v30, %v9877_v35  ;;  %v9976_v28 = vrot.slane %v9880_v45, 5  ;;  %v8206_v18 = vadd.f32 %v13875_v24, %v11077_v38  ;;  %v8197_v55 = vpop.f32.mrb[21].mxu1  ;;  %v10681_v3 = vrot.slane %v8646_v52, 9 }
 0x47d   : > { %v9975_v5 = vsel %vm9913_vm11, %v9974_v20, %v9973_v37  ;;  %v9243_v2 = vmax.f32 %v8644_v54, %v10680_v36  ;;  %v11078_v51 = vpop.f32.mrb[22].mxu1  ;;  %v9242_v56 = vmax.f32 %v8645_v39, %v10679_v49  ;;  %v8198_v9 = vadd.f32 %v13875_v24, %v8197_v55 }
 0x47e   : > { %v9977_v31 = vsel %vm9916_vm0, %v9976_v28, %v9975_v5  ;;  %v8266_v57 = vmax.f32 %v8206_v18, 0.0  ;;  %v13881_v61 = vpop.f32.mrb[23].mxu1  ;;  %v9244_v29 = vmax.f32 %v8646_v52, %v10681_v3  ;;  %v9561_v26 = vmax.f32 %v9241_v22, %v9497_v43 }
 0x47f   : > { %v9563_v40 = vmax.f32 %v9243_v2, %v9499_v60  ;;  %v8209_v15 = vadd.f32 %v13875_v24, %v11078_v51  ;;  %v9562_v23 = vmax.f32 %v9242_v56, %v9498_v63  ;;  %v8264_v32 = vmax.f32 %v8198_v9, 0.0 }
 0x480   : > { %8299 = vst.msk [vmem:[%s13720_s19 + $0xb0] sm:$0xff] %vm8276_vm9, %v8266_v57  ;;  %v8715_v33 = vcombine.high %v8266_v57, %v8266_v57  ;;  %v8722_v14 = vrot.slane %v8266_v57, %v13713_v8  ;;  %v9564_v1 = vmax.f32 %v9244_v29, %v9500_v34  ;;  %v10939_v44 = vpack.c.bf16 %v9561_v26, %v9561_v26 }
 0x481   : > { %v10941_v16 = vpack.c.bf16 %v9563_v40, %v9563_v40  ;;  %v8267_v12 = vmax.f32 %v8209_v15, 0.0  ;;  %v10940_v47 = vpack.c.bf16 %v9562_v23, %v9562_v23  ;;  %8297 = vst.msk [vmem:[%s13720_s19 + $0xa0] sm:$0xff] %vm8276_vm9, %v8264_v32  ;;  %v8681_v0 = vcombine.high %v8264_v32, %v8264_v32 }
 0x482   : > { %v8729_v11 = vrot.slane %v8715_v33, %v13713_v8  ;;  %v8730_v53 = vcombine.high %v8722_v14, %v8722_v14  ;;  %v10746_v17 = vrot.slane %v8722_v14, 9  ;;  %v10942_v7 = vpack.c.bf16 %v9564_v1, %v9564_v1 }
 0x483   : > { %v9881_v27 = vunpack.c.l.b16 %v10939_v44  ;;  %v9883_v58 = vunpack.c.l.b16 %v10941_v16  ;;  %8300 = vst.msk [vmem:[%s13720_s19 + $0xb8] sm:$0xff] %vm8276_vm9, %v8267_v12  ;;  %v9882_v25 = vunpack.c.l.b16 %v10940_v47  ;;  %v8688_v35 = vrot.slane %v8264_v32, %v13713_v8 }
 0x484   : > { %v8731_v48 = vcombine.high %v8729_v11, %v8729_v11  ;;  %v10747_v13 = vrot.slane %v8730_v53, 9  ;;  %v10748_v6 = vrot.slane %v8729_v11, 9  ;;  %v9884_v62 = vunpack.c.l.b16 %v10942_v7 }
 0x485   : > { %v9978_v19 = vrot.slane %v9881_v27, 4  ;;  %v9982_v21 = vrot.slane %v9883_v58, 2  ;;  %v9501_v50 = vmax.f32 %v8722_v14, %v10746_v17  ;;  %v9980_v43 = vrot.slane %v9882_v25, 3 }
 0x486   : > { %v10749_v42 = vrot.slane %v8731_v48, 9  ;;  %v9502_v41 = vmax.f32 %v8730_v53, %v10747_v13  ;;  %v9503_v59 = vmax.f32 %v8729_v11, %v10748_v6  ;;  %v9984_v4 = vrot.slane %v9884_v62, 1 }
 0x487   : > { %v9979_v10 = vsel %vm9919_vm14, %v9978_v19, %v9977_v31  ;;  %v8695_v63 = vrot.slane %v8681_v0, %v13713_v8  ;;  %v8732_v45 = vcombine.high %v8267_v12, %v8267_v12  ;;  %v8739_v30 = vrot.slane %v8267_v12, %v13713_v8 }
 0x488   : > { %v9981_v60 = vsel %vm9922_vm15, %v9980_v43, %v9979_v10  ;;  %v9504_v54 = vmax.f32 %v8731_v48, %v10749_v42  ;;  %v8696_v39 = vcombine.high %v8688_v35, %v8688_v35  ;;  %v10682_v52 = vrot.slane %v8688_v35, 9 }
 0x489   : > { %v9983_v20 = vsel %vm9925_vm2, %v9982_v21, %v9981_v60  ;;  %v8697_v34 = vcombine.high %v8695_v63, %v8695_v63  ;;  %v10684_v36 = vrot.slane %v8695_v63, 9  ;;  %v8746_v38 = vrot.slane %v8732_v45, %v13713_v8 }
 0x48a   : > { %v9985_v46 = vsel %vm9928_vm5, %v9984_v4, %v9983_v20  ;;  %v8747_v37 = vcombine.high %v8739_v30, %v8739_v30  ;;  %v10683_v49 = vrot.slane %v8696_v39, 9  ;;  %v9245_v55 = vmax.f32 %v8688_v35, %v10682_v52 }
 0x48b   : > { %v10032_v28 = vpack.c.b16 %v9985_v46, %v9985_v46  ;;  %v10685_v18 = vrot.slane %v8697_v34, 9  ;;  %v9247_v5 = vmax.f32 %v8695_v63, %v10684_v36  ;;  %v8748_v3 = vcombine.high %v8746_v38, %v8746_v38 }
 0x48c   : > { %v10750_v22 = vrot.slane %v8739_v30, 9  ;;  %v10751_v2 = vrot.slane %v8747_v37, 9  ;;  %v9246_v51 = vmax.f32 %v8696_v39, %v10683_v49  ;;  %v9565_v31 = vmax.f32 %v9245_v55, %v9501_v50 }
 0x48d   : > { %10049 = vst.msk [vmem:[%s13771_s24 + $0x10] sm:$0xf] %vm10044_vm6, %v10032_v28  ;;  %v9248_v56 = vmax.f32 %v8697_v34, %v10685_v18  ;;  %v10752_v57 = vrot.slane %v8746_v38, 9  ;;  %v11081_v9 = vpop.f32.mrb[24].mxu1  ;;  %v9567_v29 = vmax.f32 %v9247_v5, %v9503_v59  ;;  %v10753_v26 = vrot.slane %v8748_v3, 9 }
 0x48e   : > { %v9505_v40 = vmax.f32 %v8739_v30, %v10750_v22  ;;  %v9506_v15 = vmax.f32 %v8747_v37, %v10751_v2  ;;  %v8213_v23 = vpop.f32.mrb[25].mxu1  ;;  %v9566_v33 = vmax.f32 %v9246_v51, %v9502_v41  ;;  %v10943_v32 = vpack.c.bf16 %v9565_v31, %v9565_v31 }
 0x48f   : > { %v9568_v14 = vmax.f32 %v9248_v56, %v9504_v54  ;;  %v9507_v1 = vmax.f32 %v8746_v38, %v10752_v57  ;;  %v11082_v44 = vpop.f32.mrb[26].mxu1  ;;  %v10945_v16 = vpack.c.bf16 %v9567_v29, %v9567_v29  ;;  %v9508_v12 = vmax.f32 %v8748_v3, %v10753_v26 }
 0x490   : > { %v8201_v47 = vadd.f32 %v13875_v24, %v13881_v61  ;;  %v8222_v11 = vadd.f32 %v13875_v24, %v11081_v9  ;;  %v8216_v53 = vpop.f32.mrb[27].mxu1  ;;  %v10944_v17 = vpack.c.bf16 %v9566_v33, %v9566_v33  ;;  %v9885_v27 = vunpack.c.l.b16 %v10943_v32 }
 0x491   : > { %v10946_v7 = vpack.c.bf16 %v9568_v14, %v9568_v14  ;;  %v8214_v58 = vadd.f32 %v13875_v24, %v8213_v23  ;;  %v9887_v0 = vunpack.c.l.b16 %v10945_v16  ;;  %v13907_v13 = vadd.f32 %v13875_v24, %v11082_v44 }
 0x492   : > { %v8265_v25 = vmax.f32 %v8201_v47, 0.0  ;;  %v8270_v48 = vmax.f32 %v8222_v11, 0.0  ;;  %v9886_v6 = vunpack.c.l.b16 %v10944_v17  ;;  %v13910_v19 = vadd.f32 %v13875_v24, %v8216_v53 }
 0x493   : > { %v9888_v62 = vunpack.c.l.b16 %v10946_v7  ;;  %v8268_v61 = vmax.f32 %v8214_v58, 0.0  ;;  %v9988_v21 = vrot.slane %v9887_v0, 6 }
 0x494   : > { %8298 = vst.msk [vmem:[%s13720_s19 + $0xa8] sm:$0xff] %vm8276_vm9, %v8265_v25  ;;  %v8698_v50 = vcombine.high %v8265_v25, %v8265_v25  ;;  %v8705_v43 = vrot.slane %v8265_v25, %v13713_v8  ;;  %8303 = vst.msk [vmem:[%s13720_s19 + $0xd0] sm:$0xff] %vm8276_vm9, %v8270_v48  ;;  %v8783_v42 = vcombine.high %v8270_v48, %v8270_v48  ;;  %v9986_v41 = vrot.slane %v9886_v6, 7 }
 0x495   : > { %v9990_v59 = vrot.slane %v9888_v62, 5  ;;  %v8790_v10 = vrot.slane %v8270_v48, %v13713_v8  ;;  %8301 = vst.msk [vmem:[%s13720_s19 + $0xc0] sm:$0xff] %vm8276_vm9, %v8268_v61  ;;  %v8749_v4 = vcombine.high %v8268_v61, %v8268_v61  ;;  %v8756_v39 = vrot.slane %v8268_v61, %v13713_v8 }
 0x496   : > { %v8712_v35 = vrot.slane %v8698_v50, %v13713_v8  ;;  %v8713_v63 = vcombine.high %v8705_v43, %v8705_v43  ;;  %v10686_v60 = vrot.slane %v8705_v43, 9  ;;  %v8797_v54 = vrot.slane %v8783_v42, %v13713_v8 }
 0x497   : > { %v9987_v45 = vsel %vm9910_vm10, %v9986_v41, %v9885_v27  ;;  %v8798_v30 = vcombine.high %v8790_v10, %v8790_v10  ;;  %v10754_v20 = vrot.slane %v8790_v10, 9  ;;  %v8763_v33 = vrot.slane %v8749_v4, %v13713_v8 }
 0x498   : > { %v9989_v34 = vsel %vm9913_vm11, %v9988_v21, %v9987_v45  ;;  %v8714_v52 = vcombine.high %v8712_v35, %v8712_v35  ;;  %v10687_v46 = vrot.slane %v8713_v63, 9  ;;  %v10688_v36 = vrot.slane %v8712_v35, 9 }
 0x499   : > { %v9249_v38 = vmax.f32 %v8705_v43, %v10686_v60  ;;  %v9991_v37 = vsel %vm9916_vm0, %v9990_v59, %v9989_v34  ;;  %v8799_v28 = vcombine.high %v8797_v54, %v8797_v54  ;;  %v10755_v49 = vrot.slane %v8798_v30, 9 }
 0x49a   : > { %v10689_v18 = vrot.slane %v8714_v52, 9  ;;  %v9250_v55 = vmax.f32 %v8713_v63, %v10687_v46  ;;  %v9251_v5 = vmax.f32 %v8712_v35, %v10688_v36  ;;  %v10756_v3 = vrot.slane %v8797_v54, 9 }
 0x49b   : > { %v9569_v22 = vmax.f32 %v9249_v38, %v9505_v40  ;;  %v10757_v2 = vrot.slane %v8799_v28, 9  ;;  %v9509_v51 = vmax.f32 %v8790_v10, %v10754_v20  ;;  %v9510_v56 = vmax.f32 %v8798_v30, %v10755_v49 }
 0x49c   : > { %v9252_v31 = vmax.f32 %v8714_v52, %v10689_v18  ;;  %v9570_v57 = vmax.f32 %v9250_v55, %v9506_v15  ;;  %v9571_v9 = vmax.f32 %v9251_v5, %v9507_v1  ;;  %v9511_v29 = vmax.f32 %v8797_v54, %v10756_v3 }
 0x49d   : > { %v10947_v26 = vpack.c.bf16 %v9569_v22, %v9569_v22  ;;  %v9512_v23 = vmax.f32 %v8799_v28, %v10757_v2  ;;  %v8764_v14 = vcombine.high %v8756_v39, %v8756_v39  ;;  %v10690_v47 = vrot.slane %v8756_v39, 9 }
 0x49e   : > { %v9572_v32 = vmax.f32 %v9252_v31, %v9508_v12  ;;  %v10948_v44 = vpack.c.bf16 %v9570_v57, %v9570_v57  ;;  %v10949_v16 = vpack.c.bf16 %v9571_v9, %v9571_v9  ;;  %v8765_v53 = vcombine.high %v8763_v33, %v8763_v33 }
 0x49f   : > { %v9889_v11 = vunpack.c.l.b16 %v10947_v26  ;;  %v10691_v17 = vrot.slane %v8764_v14, 9  ;;  %v10692_v40 = vrot.slane %v8763_v33, 9  ;;  %v9253_v0 = vmax.f32 %v8756_v39, %v10690_v47 }
 0x4a0   : > { %v10950_v7 = vpack.c.bf16 %v9572_v32, %v9572_v32  ;;  %v9890_v27 = vunpack.c.l.b16 %v10948_v44  ;;  %v9891_v58 = vunpack.c.l.b16 %v10949_v16  ;;  %v10693_v1 = vrot.slane %v8765_v53, 9 }
 0x4a1   : > { %v9992_v15 = vrot.slane %v9889_v11, 4  ;;  %v9254_v25 = vmax.f32 %v8764_v14, %v10691_v17  ;;  %v9255_v48 = vmax.f32 %v8763_v33, %v10692_v40  ;;  %v9573_v12 = vmax.f32 %v9253_v0, %v9509_v51 }
 0x4a2   : > { %v9892_v6 = vunpack.c.l.b16 %v10950_v7  ;;  %v9994_v62 = vrot.slane %v9890_v27, 3  ;;  %v9996_v61 = vrot.slane %v9891_v58, 2  ;;  %v9256_v50 = vmax.f32 %v8765_v53, %v10693_v1 }
 0x4a3   : > { %v9993_v21 = vsel %vm9919_vm14, %v9992_v15, %v9991_v37  ;;  %v9574_v43 = vmax.f32 %v9254_v25, %v9510_v56  ;;  %v9575_v42 = vmax.f32 %v9255_v48, %v9511_v29  ;;  %v10951_v10 = vpack.c.bf16 %v9573_v12, %v9573_v12 }
 0x4a4   : > { %v9995_v41 = vsel %vm9922_vm15, %v9994_v62, %v9993_v21  ;;  %v9998_v59 = vrot.slane %v9892_v6, 1  ;;  %v8271_v4 = vmax.f32 %v13907_v13, 0.0  ;;  %v9576_v63 = vmax.f32 %v9256_v50, %v9512_v23 }
 0x4a5   : > { %v9997_v35 = vsel %vm9925_vm2, %v9996_v61, %v9995_v41  ;;  %v10952_v60 = vpack.c.bf16 %v9574_v43, %v9574_v43  ;;  %v10953_v54 = vpack.c.bf16 %v9575_v42, %v9575_v42  ;;  %v8269_v37 = vmax.f32 %v13910_v19, 0.0 }
 0x4a6   : > { %v9999_v45 = vsel %vm9928_vm5, %v9998_v59, %v9997_v35  ;;  %8304 = vst.msk [vmem:[%s13720_s19 + $0xd8] sm:$0xff] %vm8276_vm9, %v8271_v4  ;;  %v8800_v30 = vcombine.high %v8271_v4, %v8271_v4  ;;  %v8807_v20 = vrot.slane %v8271_v4, %v13713_v8  ;;  %v10954_v34 = vpack.c.bf16 %v9576_v63, %v9576_v63 }
 0x4a7   : > { %v10033_v39 = vpack.c.b16 %v9999_v45, %v9999_v45  ;;  %v9894_v52 = vunpack.c.l.b16 %v10952_v60  ;;  %v9895_v46 = vunpack.c.l.b16 %v10953_v54  ;;  %v9893_v28 = vunpack.c.l.b16 %v10951_v10  ;;  %8302 = vst.msk [vmem:[%s13720_s19 + $0xc8] sm:$0xff] %vm8276_vm9, %v8269_v37 }
 0x4a8   : > { %v8814_v13 = vrot.slane %v8800_v30, %v13713_v8  ;;  %v8815_v36 = vcombine.high %v8807_v20, %v8807_v20  ;;  %v10758_v38 = vrot.slane %v8807_v20, 9  ;;  %v9896_v49 = vunpack.c.l.b16 %v10954_v34 }
 0x4a9   : > { %10050 = vst.msk [vmem:[%s13771_s24 + $0x14] sm:$0xf] %vm10044_vm6, %v10033_v39  ;;  %v10000_v18 = vrot.slane %v9894_v52, 7  ;;  %v10002_v55 = vrot.slane %v9895_v46, 6  ;;  %v8766_v56 = vcombine.high %v8269_v37, %v8269_v37  ;;  %v8773_v31 = vrot.slane %v8269_v37, %v13713_v8 }
 0x4aa   : > { %v8816_v5 = vcombine.high %v8814_v13, %v8814_v13  ;;  %v10759_v3 = vrot.slane %v8815_v36, 9  ;;  %v10760_v22 = vrot.slane %v8814_v13, 9  ;;  %v10004_v51 = vrot.slane %v9896_v49, 5 }
 0x4ab   : > { %v10001_v2 = vsel %vm9910_vm10, %v10000_v18, %v9893_v28  ;;  %v9513_v9 = vmax.f32 %v8807_v20, %v10758_v38  ;;  %v8780_v29 = vrot.slane %v8766_v56, %v13713_v8  ;;  %v8781_v26 = vcombine.high %v8773_v31, %v8773_v31 }
 0x4ac   : > { %v10003_v57 = vsel %vm9913_vm11, %v10002_v55, %v10001_v2  ;;  %v10761_v19 = vrot.slane %v8816_v5, 9  ;;  %v10694_v23 = vrot.slane %v8773_v31, 9  ;;  %v9514_v14 = vmax.f32 %v8815_v36, %v10759_v3 }
 0x4ad   : > { %v10005_v33 = vsel %vm9916_vm0, %v10004_v51, %v10003_v57  ;;  %v9515_v32 = vmax.f32 %v8814_v13, %v10760_v22  ;;  %v8782_v44 = vcombine.high %v8780_v29, %v8780_v29  ;;  %v10695_v16 = vrot.slane %v8781_v26, 9 }
 0x4ae   : > { %v10696_v47 = vrot.slane %v8780_v29, 9  ;;  %v9257_v11 = vmax.f32 %v8773_v31, %v10694_v23  ;;  %v9516_v53 = vmax.f32 %v8816_v5, %v10761_v19 }
 0x4af   : > { %v10697_v17 = vrot.slane %v8782_v44, 9  ;;  %v9258_v40 = vmax.f32 %v8781_v26, %v10695_v16 }
 0x4b0   : > { %v9259_v7 = vmax.f32 %v8780_v29, %v10696_v47  ;;  %v9577_v27 = vmax.f32 %v9257_v11, %v9513_v9 }
 0x4b1   : > { %v9260_v58 = vmax.f32 %v8782_v44, %v10697_v17  ;;  %v9578_v0 = vmax.f32 %v9258_v40, %v9514_v14 }
 0x4b2   : > { %v9579_v15 = vmax.f32 %v9259_v7, %v9515_v32  ;;  %v10955_v1 = vpack.c.bf16 %v9577_v27, %v9577_v27 }
 0x4b3   : > { %v9580_v48 = vmax.f32 %v9260_v58, %v9516_v53  ;;  %v10956_v6 = vpack.c.bf16 %v9578_v0, %v9578_v0 }
 0x4b4   : > { %v11085_v25 = vpop.f32.mrb[28].mxu1  ;;  %v10957_v62 = vpack.c.bf16 %v9579_v15, %v9579_v15  ;;  %v9897_v61 = vunpack.c.l.b16 %v10955_v1 }
 0x4b5   : > { %v8229_v12 = vpop.f32.mrb[29].mxu1  ;;  %v8238_v21 = vadd.f32 %v13875_v24, %v11085_v25  ;;  %v10958_v42 = vpack.c.bf16 %v9580_v48, %v9580_v48  ;;  %v9898_v41 = vunpack.c.l.b16 %v10956_v6 }
 0x4b6   : > { %v8230_v50 = vadd.f32 %v13875_v24, %v8229_v12  ;;  %v11086_v43 = vpop.f32.mrb[30].mxu1  ;;  %v9899_v59 = vunpack.c.l.b16 %v10957_v62  ;;  %v10006_v10 = vrot.slane %v9897_v61, 4 }
 0x4b7   : > { %v8232_v4 = vpop.f32.mrb[31].mxu1  ;;  %v8274_v35 = vmax.f32 %v8238_v21, 0.0  ;;  %v8241_v60 = vadd.f32 %v13875_v24, %v11086_v43  ;;  %v9900_v45 = vunpack.c.l.b16 %v10958_v42  ;;  %v10008_v20 = vrot.slane %v9898_v41, 3 }
 0x4b8   : > { %v8272_v63 = vmax.f32 %v8230_v50, 0.0  ;;  %v8233_v54 = vadd.f32 %v13875_v24, %v8232_v4  ;;  %v10007_v30 = vsel %vm9919_vm14, %v10006_v10, %v10005_v33  ;;  %v10010_v39 = vrot.slane %v9899_v59, 2 }
 0x4b9   : > { %8307 = vst.msk [vmem:[%s13720_s19 + $0xf0] sm:$0xff] %vm8276_vm9, %v8274_v35  ;;  %v8851_v34 = vcombine.high %v8274_v35, %v8274_v35  ;;  %v8858_v52 = vrot.slane %v8274_v35, %v13713_v8  ;;  %v10009_v36 = vsel %vm9922_vm15, %v10008_v20, %v10007_v30  ;;  %v10012_v24 = vrot.slane %v9900_v45, 1 }
 0x4ba   : > { %8305 = vst.msk [vmem:[%s13720_s19 + $0xe0] sm:$0xff] %vm8276_vm9, %v8272_v63  ;;  %v8817_v46 = vcombine.high %v8272_v63, %v8272_v63  ;;  %v8824_v13 = vrot.slane %v8272_v63, %v13713_v8  ;;  %v8275_v38 = vmax.f32 %v8241_v60, 0.0  ;;  %v8273_v37 = vmax.f32 %v8233_v54, 0.0 }
 0x4bb   : > { %v10011_v28 = vsel %vm9925_vm2, %v10010_v39, %v10009_v36  ;;  %v8865_v49 = vrot.slane %v8851_v34, %v13713_v8  ;;  %v8866_v18 = vcombine.high %v8858_v52, %v8858_v52  ;;  %v10762_v55 = vrot.slane %v8858_v52, 9 }
 0x4bc   : > { %v10013_v5 = vsel %vm9928_vm5, %v10012_v24, %v10011_v28  ;;  %v8831_v3 = vrot.slane %v8817_v46, %v13713_v8  ;;  %v8832_v22 = vcombine.high %v8824_v13, %v8824_v13  ;;  %v10698_v2 = vrot.slane %v8824_v13, 9  ;;  %8308 = vst.msk [vmem:[%s13720_s19 + $0xf8] sm:$0xff] %vm8276_vm9, %v8275_v38  ;;  %8306 = vst.msk [vmem:[%s13720_s19 + $0xe8] sm:$0xff] %vm8276_vm9, %v8273_v37 }
 0x4bd   : > { %v10034_v51 = vpack.c.b16 %v10013_v5, %v10013_v5  ;;  %v8867_v56 = vcombine.high %v8865_v49, %v8865_v49  ;;  %v10763_v31 = vrot.slane %v8866_v18, 9  ;;  %v10764_v57 = vrot.slane %v8865_v49, 9 }
 0x4be   : > { %v9517_v19 = vmax.f32 %v8858_v52, %v10762_v55  ;;  %v8833_v9 = vcombine.high %v8831_v3, %v8831_v3  ;;  %v10699_v29 = vrot.slane %v8832_v22, 9  ;;  %v10700_v26 = vrot.slane %v8831_v3, 9 }
 0x4bf   : > { %10051 = vst.msk [vmem:[%s13771_s24 + $0x18] sm:$0xf] %vm10044_vm6, %v10034_v51  ;;  %v10765_v23 = vrot.slane %v8867_v56, 9  ;;  %v9518_v33 = vmax.f32 %v8866_v18, %v10763_v31  ;;  %v9519_v14 = vmax.f32 %v8865_v49, %v10764_v57  ;;  %v9261_v32 = vmax.f32 %v8824_v13, %v10698_v2 }
 0x4c0   : > { %v10701_v44 = vrot.slane %v8833_v9, 9  ;;  %v9262_v16 = vmax.f32 %v8832_v22, %v10699_v29  ;;  %v9263_v47 = vmax.f32 %v8831_v3, %v10700_v26  ;;  %v8868_v11 = vcombine.high %v8275_v38, %v8275_v38 }
 0x4c1   : > { %v9520_v53 = vmax.f32 %v8867_v56, %v10765_v23  ;;  %v9581_v17 = vmax.f32 %v9261_v32, %v9517_v19  ;;  %v8875_v40 = vrot.slane %v8275_v38, %v13713_v8  ;;  %v8834_v7 = vcombine.high %v8273_v37, %v8273_v37 }
 0x4c2   : > { %v9264_v27 = vmax.f32 %v8833_v9, %v10701_v44  ;;  %v9582_v58 = vmax.f32 %v9262_v16, %v9518_v33  ;;  %v9583_v0 = vmax.f32 %v9263_v47, %v9519_v14  ;;  %v8882_v15 = vrot.slane %v8868_v11, %v13713_v8 }
 0x4c3   : > { %v10959_v1 = vpack.c.bf16 %v9581_v17, %v9581_v17  ;;  %v8883_v25 = vcombine.high %v8875_v40, %v8875_v40  ;;  %v10766_v48 = vrot.slane %v8875_v40, 9  ;;  %v8841_v6 = vrot.slane %v8273_v37, %v13713_v8 }
 0x4c4   : > { %v9584_v62 = vmax.f32 %v9264_v27, %v9520_v53  ;;  %v10960_v61 = vpack.c.bf16 %v9582_v58, %v9582_v58  ;;  %v10961_v12 = vpack.c.bf16 %v9583_v0, %v9583_v0  ;;  %v8884_v21 = vcombine.high %v8882_v15, %v8882_v15 }
 0x4c5   : > { %v10767_v50 = vrot.slane %v8883_v25, 9  ;;  %v10768_v43 = vrot.slane %v8882_v15, 9  ;;  %v9901_v4 = vunpack.c.l.b16 %v10959_v1  ;;  %v9521_v35 = vmax.f32 %v8875_v40, %v10766_v48 }
 0x4c6   : > { %v10962_v42 = vpack.c.bf16 %v9584_v62, %v9584_v62  ;;  %v9902_v41 = vunpack.c.l.b16 %v10960_v61  ;;  %v9903_v59 = vunpack.c.l.b16 %v10961_v12  ;;  %v10769_v10 = vrot.slane %v8884_v21, 9 }
 0x4c7   : > { %v8848_v63 = vrot.slane %v8834_v7, %v13713_v8  ;;  %v8849_v60 = vcombine.high %v8841_v6, %v8841_v6  ;;  %v9522_v20 = vmax.f32 %v8883_v25, %v10767_v50  ;;  %v10702_v34 = vrot.slane %v8841_v6, 9 }
 0x4c8   : > { %v9904_v54 = vunpack.c.l.b16 %v10962_v42  ;;  %v10014_v45 = vrot.slane %v9902_v41, 7  ;;  %v10016_v30 = vrot.slane %v9903_v59, 6  ;;  %v9523_v24 = vmax.f32 %v8882_v15, %v10768_v43 }
 0x4c9   : > { %v8850_v39 = vcombine.high %v8848_v63, %v8848_v63  ;;  %v10703_v52 = vrot.slane %v8849_v60, 9  ;;  %v10704_v46 = vrot.slane %v8848_v63, 9  ;;  %v9524_v38 = vmax.f32 %v8884_v21, %v10769_v10 }
 0x4ca   : > { %v10015_v13 = vsel %vm9910_vm10, %v10014_v45, %v9901_v4  ;;  %v10018_v36 = vrot.slane %v9904_v54, 5  ;;  %v9265_v49 = vmax.f32 %v8841_v6, %v10702_v34 }
 0x4cb   : > { %v10017_v37 = vsel %vm9913_vm11, %v10016_v30, %v10015_v13  ;;  %v10705_v28 = vrot.slane %v8850_v39, 9  ;;  %v9266_v18 = vmax.f32 %v8849_v60, %v10703_v52  ;;  %v9267_v8 = vmax.f32 %v8848_v63, %v10704_v46 }
 0x4cc   : > { %v10019_v55 = vsel %vm9916_vm0, %v10018_v36, %v10017_v37  ;;  %v9585_v3 = vmax.f32 %v9265_v49, %v9521_v35 }
 0x4cd   : > { %v9268_v5 = vmax.f32 %v8850_v39, %v10705_v28  ;;  %v9586_v22 = vmax.f32 %v9266_v18, %v9522_v20  ;;  %v9587_v2 = vmax.f32 %v9267_v8, %v9523_v24 }
 0x4ce   : > { %v10963_v56 = vpack.c.bf16 %v9585_v3, %v9585_v3 }
 0x4cf   : > { %v9588_v51 = vmax.f32 %v9268_v5, %v9524_v38  ;;  %v10964_v31 = vpack.c.bf16 %v9586_v22, %v9586_v22  ;;  %v10965_v57 = vpack.c.bf16 %v9587_v2, %v9587_v2 }
 0x4d0   : > { %v9905_v9 = vunpack.c.l.b16 %v10963_v56 }
 0x4d1   : > { %v10966_v19 = vpack.c.bf16 %v9588_v51, %v9588_v51  ;;  %v9906_v29 = vunpack.c.l.b16 %v10964_v31  ;;  %v9907_v26 = vunpack.c.l.b16 %v10965_v57 }
 0x4d2   : > { %v10020_v33 = vrot.slane %v9905_v9, 4 }
 0x4d3   : > { %v9908_v23 = vunpack.c.l.b16 %v10966_v19  ;;  %v10022_v14 = vrot.slane %v9906_v29, 3  ;;  %v10024_v44 = vrot.slane %v9907_v26, 2 }
 0x4d4   : > { %v10021_v32 = vsel %vm9919_vm14, %v10020_v33, %v10019_v55 }
 0x4d5   : > { %v10023_v16 = vsel %vm9922_vm15, %v10022_v14, %v10021_v32  ;;  %v10026_v47 = vrot.slane %v9908_v23, 1 }
 0x4d6   : > { %v10025_v11 = vsel %vm9925_vm2, %v10024_v44, %v10023_v16 }
 0x4d7   : > { %v10027_v53 = vsel %vm9928_vm5, %v10026_v47, %v10025_v11 }
 0x4d8   : > { %v10035_v17 = vpack.c.b16 %v10027_v53, %v10027_v53 }
 0x4da   : > { %10052 = vst.msk [vmem:[%s13771_s24 + $0x1c] sm:$0xf] %vm10044_vm6, %v10035_v17 }
 0x4db PF: > { %s17_s21 = sadd.s32 1, %s11225_s21  }
 0x4dc   : > { %p14_p4 = scmp.ge.s32.totalorder %s17_s21, 4  }
 0x4de   :  { %16 = sbr.rel (!%p14_p4) target bundleno = 1 (0x1), region = 86 }

</bundles_post_ra>
